<compile_context>
chip_gen: v7x
topology: tpu7x:2x2x1
jax: 0.10.0
libtpu: 0.0.40
codegen_flags: <defaults>
</compile_context>

<pallas_src>
import functools

import jax
import jax.numpy as jnp
from jax.experimental import pallas as pl
from jax.experimental.pallas import tpu as pltpu


def _round_up(n, m):
    return ((n + m - 1) // m) * m


# ----------------------------------------------------------------------------
# Host-side packing: one bf16 weight slab + one f32 bias slab + static metadata
# ----------------------------------------------------------------------------
def pack_params(params, args):
    """Pack every conv / linear unit into two slabs.

    Returns (w_slab, b_slab, meta).  meta is a Python list (static) of
      ("conv", row_off, bias_col, cin)   conv tap k lives at rows [row_off+k*H, +H)
      ("lin",  row_off, bias_col, out_f) linear weight (out_f, H) at rows [row_off, +out_f)
    in the exact order the kernel consumes them.
    """
    NI = args["num_iteration"]
    H = args["dec_num_unit"]
    F = args["num_iter_ft"]
    C0 = 2 + F
    WCOLS = max(H, C0)

    w_blocks, b_cols, meta = [], [], []
    row_off = 0

    def add_conv(w, b):
        # w: (H, Cin, K) torch Conv1d layout, b: (H,)
        nonlocal row_off
        h, cin, k = w.shape
        blk = jnp.transpose(w, (2, 0, 1)).reshape(k * h, cin)     # rows k*H+h = W[h, c, k]
        rows = _round_up(k * h, 8)
        blk = jnp.pad(blk, ((0, rows - k * h), (0, WCOLS - cin)))
        w_blocks.append(blk.astype(jnp.bfloat16))
        b_cols.append(jnp.pad(b, (0, WCOLS - b.shape[0])).astype(jnp.float32))
        meta.append(("conv", row_off, len(b_cols) - 1, cin))
        row_off += rows

    def add_lin(w, b):
        # w: (out_f, H) torch Linear layout, b: (out_f,)
        nonlocal row_off
        out_f, h = w.shape
        rows = _round_up(out_f, 8)
        blk = jnp.pad(w, ((0, rows - out_f), (0, WCOLS - h)))
        w_blocks.append(blk.astype(jnp.bfloat16))
        b_cols.append(jnp.pad(b, (0, WCOLS - b.shape[0])).astype(jnp.float32))
        meta.append(("lin", row_off, len(b_cols) - 1, out_f))
        row_off += rows

    for idx in range(NI):
        for (w, b) in params["dec1_cnns"][idx]:
            add_conv(w, b)
        add_lin(*params["dec1_outputs"][idx])
        for (w, b) in params["dec2_cnns"][idx]:
            add_conv(w, b)
        add_lin(*params["dec2_outputs"][idx])

    w_slab = jnp.concatenate(w_blocks, axis=0)        # (R, WCOLS) bf16, R multiple of 8
    b_slab = jnp.stack(b_cols, axis=1)                # (WCOLS, n_units) f32
    return w_slab, b_slab, meta


# ----------------------------------------------------------------------------
# Fused kernel (all shapes / loop counts static; Bt batch elements per step)
# ----------------------------------------------------------------------------
def build_kernel(args, meta, Bt):
    NI = args["num_iteration"]
    NL = args["dec_num_layer"]
    K = args["dec_kernel_size"]
    pad = K // 2
    L = args["block_len"]
    F = args["num_iter_ft"]
    H = args["dec_num_unit"]
    extrinsic = bool(args["extrinsic"])

    def kernel(recv_ref, w_ref, b_ref, p_ref, pt_ref, o_ref):
        p_mat = p_ref[...]          # (L, L) bf16, deinterleave:  x @ P
        pt_mat = pt_ref[...]        # (L, L) bf16, interleave:    x @ P^T

        # Edge masks for the zero-filled 'same' conv shifts (hoisted, reused
        # by every layer / iteration / batch element).
        lane = jax.lax.broadcasted_iota(jnp.int32, (1, L), 1)
        masks = {d: jnp.logical_and(lane + d >= 0, lane + d < L)
                 for d in range(-pad, pad + 1) if d != 0}

        def shift(x, d):
            # y[:, l] = x[:, l + d] for 0 <= l + d < L else 0   (XLU roll + VPU mask)
            if d == 0:
                return x
            rolled = pltpu.roll(x, (-d) % L, 1)
            return jnp.where(masks[d], rolled, 0.0)

        def conv_elu(x, row_off, bias_col, cin):
            # x: (cin, L) f32 -> (H, L) f32;  per-tap bf16 matmuls, f32 accumulation
            acc = b_ref[0:H, bias_col:bias_col + 1]               # (H, 1) broadcast
            for k in range(K):
                wk = w_ref[row_off + k * H: row_off + (k + 1) * H, 0:cin]   # (H, cin)
                xs = shift(x, k - pad).astype(jnp.bfloat16)
                acc = acc + jnp.dot(wk, xs, preferred_element_type=jnp.float32)
            # ELU (alpha = 1.0) on f32
            return jnp.where(acc > 0.0, acc, jnp.exp(jnp.minimum(acc, 0.0)) - 1.0)

        def linear(x, row_off, bias_col, out_f):
            # x: (H, L) f32 -> (out_f, L) f32
            w = w_ref[row_off: row_off + out_f, 0:H]              # (out_f, H) bf16
            b = b_ref[0:out_f, bias_col:bias_col + 1]             # (out_f, 1) f32
            return jnp.dot(w, x.astype(jnp.bfloat16),
                           preferred_element_type=jnp.float32) + b

        def interleave(x):        # y[:, i] = x[:, p[i]]
            return jnp.dot(x.astype(jnp.bfloat16), pt_mat,
                           preferred_element_type=jnp.float32)

        def deinterleave(x):      # inverse permutation
            return jnp.dot(x.astype(jnp.bfloat16), p_mat,
                           preferred_element_type=jnp.float32)

        def decode(recv_b):       # recv_b: (3, L) f32  ->  (1, L) posterior
            units = iter(meta)
            r_sys = recv_b[0:1, :]
            r_par1 = recv_b[1:2, :]
            r_par2 = recv_b[2:3, :]
            r_sys_int = interleave(r_sys)
            prior = jnp.zeros((F, L), jnp.float32)

            for idx in range(NI):
                # ---------------- decoder 1 ----------------
                x = jnp.concatenate([r_sys, r_par1, prior], axis=0)       # (2+F, L)
                for _ in range(NL):
                    kind, off, bc, cin = next(units)
                    assert kind == "conv"
                    x = conv_elu(x, off, bc, cin)
                kind, off, bc, out_f = next(units)
                assert kind == "lin"
                x_plr = linear(x, off, bc, out_f)                          # (F, L)
                if extrinsic:
                    x_plr = x_plr - prior
                x_plr_int = interleave(x_plr)

                # ---------------- decoder 2 ----------------
                x = jnp.concatenate([r_sys_int, r_par2, x_plr_int], axis=0)
                for _ in range(NL):
                    kind, off, bc, cin = next(units)
                    assert kind == "conv"
                    x = conv_elu(x, off, bc, cin)
                kind, off, bc, out_f = next(units)
                assert kind == "lin"
                if idx == NI - 1:
                    y = linear(x, off, bc, out_f)                          # (1, L)
                    return jax.nn.sigmoid(deinterleave(y))
                y = linear(x, off, bc, out_f)                              # (F, L)
                if extrinsic:
                    y = y - x_plr_int
                prior = deinterleave(y)

        recv = recv_ref[0]                                # (Bt, 3, L) f32
        outs = [decode(recv[b]) for b in range(Bt)]       # Bt x (1, L)
        o_ref[0] = jnp.concatenate(outs, axis=0)          # lane-dense (Bt, L) store

    return kernel


# ----------------------------------------------------------------------------
# Forward pass: one pallas_call for the whole decoder
# ----------------------------------------------------------------------------
def dec_large_cnn_forward(received, params, p_array, args):
    B = args["batch_size"]
    L = args["block_len"]

    # One grid step per TensorCore on v7x; on v5e/v6e this is just 2 cheap steps.
    G = 2 if (B >= 2 and B % 2 == 0) else 1
    Bt = B // G

    # interleave(x)[i] = x[p_array[i]]  =>  P[i, p_array[i]] = 1  (exact in bf16)
    P = jnp.zeros((L, L), jnp.float32).at[jnp.arange(L), p_array].set(1.0)
    p_bf = P.astype(jnp.bfloat16)          # deinterleave: x @ P
    pt_bf = P.T.astype(jnp.bfloat16)       # interleave:   x @ P^T

    w_slab, b_slab, meta = pack_params(params, args)
    kernel = build_kernel(args, meta, Bt)

    # Transposed, batch-sharded layout: (G, Bt, 3, L) with L on lanes.
    recv = received.astype(jnp.float32).transpose(0, 2, 1).reshape(G, Bt, 3, L)

    out = pl.pallas_call(
        kernel,
        out_shape=jax.ShapeDtypeStruct((G, Bt, L), jnp.float32),
        grid=(G,),
        in_specs=[
            pl.BlockSpec((1, Bt, 3, L), lambda g: (g, 0, 0, 0)),   # received (streamed)
            pl.BlockSpec(w_slab.shape, lambda g: (0, 0)),          # weight slab (resident)
            pl.BlockSpec(b_slab.shape, lambda g: (0, 0)),          # bias slab   (resident)
            pl.BlockSpec((L, L), lambda g: (0, 0)),                # P           (resident)
            pl.BlockSpec((L, L), lambda g: (0, 0)),                # P^T         (resident)
        ],
        out_specs=pl.BlockSpec((1, Bt, L), lambda g: (g, 0, 0)),
        compiler_params=pltpu.CompilerParams(
            dimension_semantics=("parallel",),
            vmem_limit_bytes=32 * 1024 * 1024,
        ),
    )(recv, w_slab, b_slab, p_bf, pt_bf)

    return out.reshape(B, L, 1)


# ----------------------------------------------------------------------------
# Deterministic synthetic parameters (PyTorch layouts: Conv1d (H,Cin,K), Linear (out,in))
# ----------------------------------------------------------------------------
def make_params(key, args):
    F = args["num_iter_ft"]
    H = args["dec_num_unit"]
    K = args["dec_kernel_size"]
    NL = args["dec_num_layer"]
    NI = args["num_iteration"]
    C0 = 2 + F

    def conv_stack(key):
        layers = []
        for li in range(NL):
            cin = C0 if li == 0 else H
            key, kw, kb = jax.random.split(key, 3)
            w = 0.1 * jax.random.normal(kw, (H, cin, K), jnp.float32)
            b = 0.1 * jax.random.normal(kb, (H,), jnp.float32)
            layers.append((w, b))
        return layers, key

    params = {"dec1_cnns": [], "dec2_cnns": [],
              "dec1_outputs": [], "dec2_outputs": []}
    for idx in range(NI):
        s1, key = conv_stack(key)
        s2, key = conv_stack(key)
        params["dec1_cnns"].append(s1)
        params["dec2_cnns"].append(s2)

        key, kw, kb = jax.random.split(key, 3)
        params["dec1_outputs"].append(
            (0.1 * jax.random.normal(kw, (F, H), jnp.float32),
             0.1 * jax.random.normal(kb, (F,), jnp.float32)))

        out_f = 1 if idx == NI - 1 else F
        key, kw, kb = jax.random.split(key, 3)
        params["dec2_outputs"].append(
            (0.1 * jax.random.normal(kw, (out_f, H), jnp.float32),
             0.1 * jax.random.normal(kb, (out_f,), jnp.float32)))
    return params


# ----------------------------------------------------------------------------
if __name__ == "__main__":
    args = {
        "batch_size": 4,
        "block_len": 16,
        "num_iter_ft": 4,
        "dec_num_unit": 32,
        "dec_kernel_size": 5,
        "dec_num_layer": 2,
        "num_iteration": 2,
        "extrinsic": True,
    }

    key = jax.random.PRNGKey(0)
    key, k_in, k_perm, k_par = jax.random.split(key, 4)

    received = jax.random.normal(
        k_in, (args["batch_size"], args["block_len"], 3), jnp.float32)
    p_array = jax.random.permutation(k_perm, args["block_len"])
    params = make_params(k_par, args)

    fwd = jax.jit(functools.partial(dec_large_cnn_forward, args=args))
    out = jax.block_until_ready(fwd(received, params, p_array))

    assert out.shape == (args["batch_size"], args["block_len"], 1)
    assert bool(jnp.all(jnp.isfinite(out)))
    print("KERNEL_OK")
</pallas_src>

<mosaic_0001>
module attributes {stable_mosaic.version = 11 : i64} {
  func.func @kernel(%arg0: i32, %arg1: memref<1x2x3x16xf32, #tpu.memory_space<vmem>>, %arg2: memref<1312x32xbf16, #tpu.memory_space<vmem>>, %arg3: memref<32x12xf32, #tpu.memory_space<vmem>>, %arg4: memref<16x16xbf16, #tpu.memory_space<vmem>>, %arg5: memref<16x16xbf16, #tpu.memory_space<vmem>>, %arg6: memref<1x2x16xf32, #tpu.memory_space<vmem>>) attributes {dimension_semantics = [#tpu.dimension_semantics<parallel>], iteration_bounds = array<i64: 2>, scalar_prefetch = 0 : i64, scratch_operands = 0 : i64, tpu.core_type = #tpu.core_type<tc>, window_params = [{transform_indices = @transform_0, window_bounds = array<i64: 1, 2, 3, 16>}, {pipeline_mode = #tpu.pipeline_mode<synchronous>, transform_indices = @transform_1, window_bounds = array<i64: 1312, 32>}, {pipeline_mode = #tpu.pipeline_mode<synchronous>, transform_indices = @transform_2, window_bounds = array<i64: 32, 12>}, {pipeline_mode = #tpu.pipeline_mode<synchronous>, transform_indices = @transform_3, window_bounds = array<i64: 16, 16>}, {pipeline_mode = #tpu.pipeline_mode<synchronous>, transform_indices = @transform_4, window_bounds = array<i64: 16, 16>}, {transform_indices = @transform_5, window_bounds = array<i64: 1, 2, 16>}]} {
    %c0 = arith.constant 0 : index
    %c0_0 = arith.constant 0 : index
    %0 = vector.load %arg4[%c0, %c0_0] : memref<16x16xbf16, #tpu.memory_space<vmem>>, vector<16x16xbf16>
    %c0_1 = arith.constant 0 : index
    %c0_2 = arith.constant 0 : index
    %1 = vector.load %arg5[%c0_1, %c0_2] : memref<16x16xbf16, #tpu.memory_space<vmem>>, vector<16x16xbf16>
    %2 = tpu.iota {dimensions = array<i32: 1>} : vector<1x16xi32>
    %c-2_i32 = arith.constant -2 : i32
    %3 = vector.broadcast %c-2_i32 : i32 to vector<1x16xi32>
    %4 = arith.addi %2, %3 : vector<1x16xi32>
    %c0_i32 = arith.constant 0 : i32
    %5 = vector.broadcast %c0_i32 : i32 to vector<1x16xi32>
    %6 = arith.cmpi sge, %4, %5 : vector<1x16xi32>
    %c-2_i32_3 = arith.constant -2 : i32
    %7 = vector.broadcast %c-2_i32_3 : i32 to vector<1x16xi32>
    %8 = arith.addi %2, %7 : vector<1x16xi32>
    %c16_i32 = arith.constant 16 : i32
    %9 = vector.broadcast %c16_i32 : i32 to vector<1x16xi32>
    %10 = arith.cmpi slt, %8, %9 : vector<1x16xi32>
    %11 = arith.andi %6, %10 : vector<1x16xi1>
    %c-1_i32 = arith.constant -1 : i32
    %12 = vector.broadcast %c-1_i32 : i32 to vector<1x16xi32>
    %13 = arith.addi %2, %12 : vector<1x16xi32>
    %c0_i32_4 = arith.constant 0 : i32
    %14 = vector.broadcast %c0_i32_4 : i32 to vector<1x16xi32>
    %15 = arith.cmpi sge, %13, %14 : vector<1x16xi32>
    %c-1_i32_5 = arith.constant -1 : i32
    %16 = vector.broadcast %c-1_i32_5 : i32 to vector<1x16xi32>
    %17 = arith.addi %2, %16 : vector<1x16xi32>
    %c16_i32_6 = arith.constant 16 : i32
    %18 = vector.broadcast %c16_i32_6 : i32 to vector<1x16xi32>
    %19 = arith.cmpi slt, %17, %18 : vector<1x16xi32>
    %20 = arith.andi %15, %19 : vector<1x16xi1>
    %c1_i32 = arith.constant 1 : i32
    %21 = vector.broadcast %c1_i32 : i32 to vector<1x16xi32>
    %22 = arith.addi %2, %21 : vector<1x16xi32>
    %c0_i32_7 = arith.constant 0 : i32
    %23 = vector.broadcast %c0_i32_7 : i32 to vector<1x16xi32>
    %24 = arith.cmpi sge, %22, %23 : vector<1x16xi32>
    %c1_i32_8 = arith.constant 1 : i32
    %25 = vector.broadcast %c1_i32_8 : i32 to vector<1x16xi32>
    %26 = arith.addi %2, %25 : vector<1x16xi32>
    %c16_i32_9 = arith.constant 16 : i32
    %27 = vector.broadcast %c16_i32_9 : i32 to vector<1x16xi32>
    %28 = arith.cmpi slt, %26, %27 : vector<1x16xi32>
    %29 = arith.andi %24, %28 : vector<1x16xi1>
    %c2_i32 = arith.constant 2 : i32
    %30 = vector.broadcast %c2_i32 : i32 to vector<1x16xi32>
    %31 = arith.addi %2, %30 : vector<1x16xi32>
    %c0_i32_10 = arith.constant 0 : i32
    %32 = vector.broadcast %c0_i32_10 : i32 to vector<1x16xi32>
    %33 = arith.cmpi sge, %31, %32 : vector<1x16xi32>
    %c2_i32_11 = arith.constant 2 : i32
    %34 = vector.broadcast %c2_i32_11 : i32 to vector<1x16xi32>
    %35 = arith.addi %2, %34 : vector<1x16xi32>
    %c16_i32_12 = arith.constant 16 : i32
    %36 = vector.broadcast %c16_i32_12 : i32 to vector<1x16xi32>
    %37 = arith.cmpi slt, %35, %36 : vector<1x16xi32>
    %38 = arith.andi %33, %37 : vector<1x16xi1>
    %c0_13 = arith.constant 0 : index
    %c0_14 = arith.constant 0 : index
    %c0_15 = arith.constant 0 : index
    %c0_16 = arith.constant 0 : index
    %39 = vector.load %arg1[%c0_13, %c0_14, %c0_15, %c0_16] : memref<1x2x3x16xf32, #tpu.memory_space<vmem>>, vector<1x2x3x16xf32>
    %40 = vector.shape_cast %39 : vector<1x2x3x16xf32> to vector<2x3x16xf32>
    %41 = vector.extract_strided_slice %40 {offsets = [0, 0, 0], sizes = [1, 3, 16], strides = [1, 1, 1]} : vector<2x3x16xf32> to vector<1x3x16xf32>
    %42 = vector.shape_cast %41 : vector<1x3x16xf32> to vector<3x16xf32>
    %43 = vector.extract_strided_slice %42 {offsets = [0, 0], sizes = [1, 16], strides = [1, 1]} : vector<3x16xf32> to vector<1x16xf32>
    %44 = vector.extract_strided_slice %42 {offsets = [1, 0], sizes = [1, 16], strides = [1, 1]} : vector<3x16xf32> to vector<1x16xf32>
    %45 = vector.extract_strided_slice %42 {offsets = [2, 0], sizes = [1, 16], strides = [1, 1]} : vector<3x16xf32> to vector<1x16xf32>
    %46 = arith.truncf %43 : vector<1x16xf32> to vector<1x16xbf16>
    %cst = arith.constant dense<0.000000e+00> : vector<1x16xf32>
    %47 = tpu.matmul %46, %1, %cst {dimension_numbers = #tpu.dot_dimension_numbers<[1], [0], [0], [1], [0, 0, 1, 1], [], []>} : vector<1x16xbf16>, vector<16x16xbf16>, vector<1x16xf32> -> vector<1x16xf32>
    %cst_17 = arith.constant 0.000000e+00 : f32
    %48 = vector.broadcast %cst_17 : f32 to vector<4x16xf32>
    %49 = tpu.concatenate %43, %44, %48 in 0 : vector<1x16xf32>, vector<1x16xf32>, vector<4x16xf32> -> vector<6x16xf32>
    %c0_18 = arith.constant 0 : index
    %c0_19 = arith.constant 0 : index
    %50 = vector.load %arg3[%c0_18, %c0_19] : memref<32x12xf32, #tpu.memory_space<vmem>>, vector<32x1xf32>
    %c0_20 = arith.constant 0 : index
    %c0_21 = arith.constant 0 : index
    %51 = vector.load %arg2[%c0_20, %c0_21] : memref<1312x32xbf16, #tpu.memory_space<vmem>>, vector<32x6xbf16>
    %c2_i32_22 = arith.constant 2 : i32
    %52 = tpu.dynamic_rotate %49 by %c2_i32_22 dim 1 : vector<6x16xf32>, i32 -> vector<6x16xf32>
    %cst_23 = arith.constant 0.000000e+00 : f32
    %53 = vector.shape_cast %11 : vector<1x16xi1> to vector<1x16xi1>
    %54 = vector.broadcast %53 : vector<1x16xi1> to vector<6x16xi1>
    %55 = vector.broadcast %cst_23 : f32 to vector<6x16xf32>
    %56 = arith.select %54, %52, %55 : vector<6x16xi1>, vector<6x16xf32>
    %57 = arith.truncf %56 : vector<6x16xf32> to vector<6x16xbf16>
    %cst_24 = arith.constant dense<0.000000e+00> : vector<32x16xf32>
    %58 = tpu.matmul %51, %57, %cst_24 {dimension_numbers = #tpu.dot_dimension_numbers<[1], [0], [0], [1], [0, 0, 1, 1], [], []>} : vector<32x6xbf16>, vector<6x16xbf16>, vector<32x16xf32> -> vector<32x16xf32>
    %59 = vector.broadcast %50 : vector<32x1xf32> to vector<32x16xf32>
    %60 = arith.addf %59, %58 : vector<32x16xf32>
    %c32 = arith.constant 32 : index
    %c0_25 = arith.constant 0 : index
    %61 = vector.load %arg2[%c32, %c0_25] : memref<1312x32xbf16, #tpu.memory_space<vmem>>, vector<32x6xbf16>
    %c1_i32_26 = arith.constant 1 : i32
    %62 = tpu.dynamic_rotate %49 by %c1_i32_26 dim 1 : vector<6x16xf32>, i32 -> vector<6x16xf32>
    %cst_27 = arith.constant 0.000000e+00 : f32
    %63 = vector.shape_cast %20 : vector<1x16xi1> to vector<1x16xi1>
    %64 = vector.broadcast %63 : vector<1x16xi1> to vector<6x16xi1>
    %65 = vector.broadcast %cst_27 : f32 to vector<6x16xf32>
    %66 = arith.select %64, %62, %65 : vector<6x16xi1>, vector<6x16xf32>
    %67 = arith.truncf %66 : vector<6x16xf32> to vector<6x16xbf16>
    %cst_28 = arith.constant dense<0.000000e+00> : vector<32x16xf32>
    %68 = tpu.matmul %61, %67, %cst_28 {dimension_numbers = #tpu.dot_dimension_numbers<[1], [0], [0], [1], [0, 0, 1, 1], [], []>} : vector<32x6xbf16>, vector<6x16xbf16>, vector<32x16xf32> -> vector<32x16xf32>
    %69 = arith.addf %60, %68 : vector<32x16xf32>
    %c64 = arith.constant 64 : index
    %c0_29 = arith.constant 0 : index
    %70 = vector.load %arg2[%c64, %c0_29] : memref<1312x32xbf16, #tpu.memory_space<vmem>>, vector<32x6xbf16>
    %71 = arith.truncf %49 : vector<6x16xf32> to vector<6x16xbf16>
    %cst_30 = arith.constant dense<0.000000e+00> : vector<32x16xf32>
    %72 = tpu.matmul %70, %71, %cst_30 {dimension_numbers = #tpu.dot_dimension_numbers<[1], [0], [0], [1], [0, 0, 1, 1], [], []>} : vector<32x6xbf16>, vector<6x16xbf16>, vector<32x16xf32> -> vector<32x16xf32>
    %73 = arith.addf %69, %72 : vector<32x16xf32>
    %c96 = arith.constant 96 : index
    %c0_31 = arith.constant 0 : index
    %74 = vector.load %arg2[%c96, %c0_31] : memref<1312x32xbf16, #tpu.memory_space<vmem>>, vector<32x6xbf16>
    %c15_i32 = arith.constant 15 : i32
    %75 = tpu.dynamic_rotate %49 by %c15_i32 dim 1 : vector<6x16xf32>, i32 -> vector<6x16xf32>
    %cst_32 = arith.constant 0.000000e+00 : f32
    %76 = vector.shape_cast %29 : vector<1x16xi1> to vector<1x16xi1>
    %77 = vector.broadcast %76 : vector<1x16xi1> to vector<6x16xi1>
    %78 = vector.broadcast %cst_32 : f32 to vector<6x16xf32>
    %79 = arith.select %77, %75, %78 : vector<6x16xi1>, vector<6x16xf32>
    %80 = arith.truncf %79 : vector<6x16xf32> to vector<6x16xbf16>
    %cst_33 = arith.constant dense<0.000000e+00> : vector<32x16xf32>
    %81 = tpu.matmul %74, %80, %cst_33 {dimension_numbers = #tpu.dot_dimension_numbers<[1], [0], [0], [1], [0, 0, 1, 1], [], []>} : vector<32x6xbf16>, vector<6x16xbf16>, vector<32x16xf32> -> vector<32x16xf32>
    %82 = arith.addf %73, %81 : vector<32x16xf32>
    %c128 = arith.constant 128 : index
    %c0_34 = arith.constant 0 : index
    %83 = vector.load %arg2[%c128, %c0_34] : memref<1312x32xbf16, #tpu.memory_space<vmem>>, vector<32x6xbf16>
    %c14_i32 = arith.constant 14 : i32
    %84 = tpu.dynamic_rotate %49 by %c14_i32 dim 1 : vector<6x16xf32>, i32 -> vector<6x16xf32>
    %cst_35 = arith.constant 0.000000e+00 : f32
    %85 = vector.shape_cast %38 : vector<1x16xi1> to vector<1x16xi1>
    %86 = vector.broadcast %85 : vector<1x16xi1> to vector<6x16xi1>
    %87 = vector.broadcast %cst_35 : f32 to vector<6x16xf32>
    %88 = arith.select %86, %84, %87 : vector<6x16xi1>, vector<6x16xf32>
    %89 = arith.truncf %88 : vector<6x16xf32> to vector<6x16xbf16>
    %cst_36 = arith.constant dense<0.000000e+00> : vector<32x16xf32>
    %90 = tpu.matmul %83, %89, %cst_36 {dimension_numbers = #tpu.dot_dimension_numbers<[1], [0], [0], [1], [0, 0, 1, 1], [], []>} : vector<32x6xbf16>, vector<6x16xbf16>, vector<32x16xf32> -> vector<32x16xf32>
    %91 = arith.addf %82, %90 : vector<32x16xf32>
    %cst_37 = arith.constant 0.000000e+00 : f32
    %92 = vector.broadcast %cst_37 : f32 to vector<32x16xf32>
    %93 = arith.cmpf ogt, %91, %92 : vector<32x16xf32>
    %cst_38 = arith.constant 0.000000e+00 : f32
    %94 = vector.broadcast %cst_38 : f32 to vector<32x16xf32>
    %95 = arith.minimumf %91, %94 : vector<32x16xf32>
    %96 = math.exp %95 : vector<32x16xf32>
    %cst_39 = arith.constant 1.000000e+00 : f32
    %97 = vector.broadcast %cst_39 : f32 to vector<32x16xf32>
    %98 = arith.subf %96, %97 : vector<32x16xf32>
    %99 = arith.select %93, %91, %98 : vector<32x16xi1>, vector<32x16xf32>
    %c0_40 = arith.constant 0 : index
    %c1 = arith.constant 1 : index
    %100 = vector.load %arg3[%c0_40, %c1] : memref<32x12xf32, #tpu.memory_space<vmem>>, vector<32x1xf32>
    %c160 = arith.constant 160 : index
    %c0_41 = arith.constant 0 : index
    %101 = vector.load %arg2[%c160, %c0_41] : memref<1312x32xbf16, #tpu.memory_space<vmem>>, vector<32x32xbf16>
    %c2_i32_42 = arith.constant 2 : i32
    %102 = tpu.dynamic_rotate %99 by %c2_i32_42 dim 1 : vector<32x16xf32>, i32 -> vector<32x16xf32>
    %cst_43 = arith.constant 0.000000e+00 : f32
    %103 = vector.shape_cast %11 : vector<1x16xi1> to vector<1x16xi1>
    %104 = vector.broadcast %103 : vector<1x16xi1> to vector<32x16xi1>
    %105 = vector.broadcast %cst_43 : f32 to vector<32x16xf32>
    %106 = arith.select %104, %102, %105 : vector<32x16xi1>, vector<32x16xf32>
    %107 = arith.truncf %106 : vector<32x16xf32> to vector<32x16xbf16>
    %cst_44 = arith.constant dense<0.000000e+00> : vector<32x16xf32>
    %108 = tpu.matmul %101, %107, %cst_44 {dimension_numbers = #tpu.dot_dimension_numbers<[1], [0], [0], [1], [0, 0, 1, 1], [], []>} : vector<32x32xbf16>, vector<32x16xbf16>, vector<32x16xf32> -> vector<32x16xf32>
    %109 = vector.broadcast %100 : vector<32x1xf32> to vector<32x16xf32>
    %110 = arith.addf %109, %108 : vector<32x16xf32>
    %c192 = arith.constant 192 : index
    %c0_45 = arith.constant 0 : index
    %111 = vector.load %arg2[%c192, %c0_45] : memref<1312x32xbf16, #tpu.memory_space<vmem>>, vector<32x32xbf16>
    %c1_i32_46 = arith.constant 1 : i32
    %112 = tpu.dynamic_rotate %99 by %c1_i32_46 dim 1 : vector<32x16xf32>, i32 -> vector<32x16xf32>
    %cst_47 = arith.constant 0.000000e+00 : f32
    %113 = vector.shape_cast %20 : vector<1x16xi1> to vector<1x16xi1>
    %114 = vector.broadcast %113 : vector<1x16xi1> to vector<32x16xi1>
    %115 = vector.broadcast %cst_47 : f32 to vector<32x16xf32>
    %116 = arith.select %114, %112, %115 : vector<32x16xi1>, vector<32x16xf32>
    %117 = arith.truncf %116 : vector<32x16xf32> to vector<32x16xbf16>
    %cst_48 = arith.constant dense<0.000000e+00> : vector<32x16xf32>
    %118 = tpu.matmul %111, %117, %cst_48 {dimension_numbers = #tpu.dot_dimension_numbers<[1], [0], [0], [1], [0, 0, 1, 1], [], []>} : vector<32x32xbf16>, vector<32x16xbf16>, vector<32x16xf32> -> vector<32x16xf32>
    %119 = arith.addf %110, %118 : vector<32x16xf32>
    %c224 = arith.constant 224 : index
    %c0_49 = arith.constant 0 : index
    %120 = vector.load %arg2[%c224, %c0_49] : memref<1312x32xbf16, #tpu.memory_space<vmem>>, vector<32x32xbf16>
    %121 = arith.truncf %99 : vector<32x16xf32> to vector<32x16xbf16>
    %cst_50 = arith.constant dense<0.000000e+00> : vector<32x16xf32>
    %122 = tpu.matmul %120, %121, %cst_50 {dimension_numbers = #tpu.dot_dimension_numbers<[1], [0], [0], [1], [0, 0, 1, 1], [], []>} : vector<32x32xbf16>, vector<32x16xbf16>, vector<32x16xf32> -> vector<32x16xf32>
    %123 = arith.addf %119, %122 : vector<32x16xf32>
    %c256 = arith.constant 256 : index
    %c0_51 = arith.constant 0 : index
    %124 = vector.load %arg2[%c256, %c0_51] : memref<1312x32xbf16, #tpu.memory_space<vmem>>, vector<32x32xbf16>
    %c15_i32_52 = arith.constant 15 : i32
    %125 = tpu.dynamic_rotate %99 by %c15_i32_52 dim 1 : vector<32x16xf32>, i32 -> vector<32x16xf32>
    %cst_53 = arith.constant 0.000000e+00 : f32
    %126 = vector.shape_cast %29 : vector<1x16xi1> to vector<1x16xi1>
    %127 = vector.broadcast %126 : vector<1x16xi1> to vector<32x16xi1>
    %128 = vector.broadcast %cst_53 : f32 to vector<32x16xf32>
    %129 = arith.select %127, %125, %128 : vector<32x16xi1>, vector<32x16xf32>
    %130 = arith.truncf %129 : vector<32x16xf32> to vector<32x16xbf16>
    %cst_54 = arith.constant dense<0.000000e+00> : vector<32x16xf32>
    %131 = tpu.matmul %124, %130, %cst_54 {dimension_numbers = #tpu.dot_dimension_numbers<[1], [0], [0], [1], [0, 0, 1, 1], [], []>} : vector<32x32xbf16>, vector<32x16xbf16>, vector<32x16xf32> -> vector<32x16xf32>
    %132 = arith.addf %123, %131 : vector<32x16xf32>
    %c288 = arith.constant 288 : index
    %c0_55 = arith.constant 0 : index
    %133 = vector.load %arg2[%c288, %c0_55] : memref<1312x32xbf16, #tpu.memory_space<vmem>>, vector<32x32xbf16>
    %c14_i32_56 = arith.constant 14 : i32
    %134 = tpu.dynamic_rotate %99 by %c14_i32_56 dim 1 : vector<32x16xf32>, i32 -> vector<32x16xf32>
    %cst_57 = arith.constant 0.000000e+00 : f32
    %135 = vector.shape_cast %38 : vector<1x16xi1> to vector<1x16xi1>
    %136 = vector.broadcast %135 : vector<1x16xi1> to vector<32x16xi1>
    %137 = vector.broadcast %cst_57 : f32 to vector<32x16xf32>
    %138 = arith.select %136, %134, %137 : vector<32x16xi1>, vector<32x16xf32>
    %139 = arith.truncf %138 : vector<32x16xf32> to vector<32x16xbf16>
    %cst_58 = arith.constant dense<0.000000e+00> : vector<32x16xf32>
    %140 = tpu.matmul %133, %139, %cst_58 {dimension_numbers = #tpu.dot_dimension_numbers<[1], [0], [0], [1], [0, 0, 1, 1], [], []>} : vector<32x32xbf16>, vector<32x16xbf16>, vector<32x16xf32> -> vector<32x16xf32>
    %141 = arith.addf %132, %140 : vector<32x16xf32>
    %cst_59 = arith.constant 0.000000e+00 : f32
    %142 = vector.broadcast %cst_59 : f32 to vector<32x16xf32>
    %143 = arith.cmpf ogt, %141, %142 : vector<32x16xf32>
    %cst_60 = arith.constant 0.000000e+00 : f32
    %144 = vector.broadcast %cst_60 : f32 to vector<32x16xf32>
    %145 = arith.minimumf %141, %144 : vector<32x16xf32>
    %146 = math.exp %145 : vector<32x16xf32>
    %cst_61 = arith.constant 1.000000e+00 : f32
    %147 = vector.broadcast %cst_61 : f32 to vector<32x16xf32>
    %148 = arith.subf %146, %147 : vector<32x16xf32>
    %149 = arith.select %143, %141, %148 : vector<32x16xi1>, vector<32x16xf32>
    %c320 = arith.constant 320 : index
    %c0_62 = arith.constant 0 : index
    %150 = vector.load %arg2[%c320, %c0_62] : memref<1312x32xbf16, #tpu.memory_space<vmem>>, vector<4x32xbf16>
    %c0_63 = arith.constant 0 : index
    %c2 = arith.constant 2 : index
    %151 = vector.load %arg3[%c0_63, %c2] : memref<32x12xf32, #tpu.memory_space<vmem>>, vector<4x1xf32>
    %152 = arith.truncf %149 : vector<32x16xf32> to vector<32x16xbf16>
    %cst_64 = arith.constant dense<0.000000e+00> : vector<4x16xf32>
    %153 = tpu.matmul %150, %152, %cst_64 {dimension_numbers = #tpu.dot_dimension_numbers<[1], [0], [0], [1], [0, 0, 1, 1], [], []>} : vector<4x32xbf16>, vector<32x16xbf16>, vector<4x16xf32> -> vector<4x16xf32>
    %154 = vector.broadcast %151 : vector<4x1xf32> to vector<4x16xf32>
    %155 = arith.addf %153, %154 : vector<4x16xf32>
    %156 = arith.subf %155, %48 : vector<4x16xf32>
    %157 = arith.truncf %156 : vector<4x16xf32> to vector<4x16xbf16>
    %cst_65 = arith.constant dense<0.000000e+00> : vector<4x16xf32>
    %158 = tpu.matmul %157, %1, %cst_65 {dimension_numbers = #tpu.dot_dimension_numbers<[1], [0], [0], [1], [0, 0, 1, 1], [], []>} : vector<4x16xbf16>, vector<16x16xbf16>, vector<4x16xf32> -> vector<4x16xf32>
    %159 = tpu.concatenate %47, %45, %158 in 0 : vector<1x16xf32>, vector<1x16xf32>, vector<4x16xf32> -> vector<6x16xf32>
    %c0_66 = arith.constant 0 : index
    %c3 = arith.constant 3 : index
    %160 = vector.load %arg3[%c0_66, %c3] : memref<32x12xf32, #tpu.memory_space<vmem>>, vector<32x1xf32>
    %c328 = arith.constant 328 : index
    %c0_67 = arith.constant 0 : index
    %161 = vector.load %arg2[%c328, %c0_67] : memref<1312x32xbf16, #tpu.memory_space<vmem>>, vector<32x6xbf16>
    %c2_i32_68 = arith.constant 2 : i32
    %162 = tpu.dynamic_rotate %159 by %c2_i32_68 dim 1 : vector<6x16xf32>, i32 -> vector<6x16xf32>
    %cst_69 = arith.constant 0.000000e+00 : f32
    %163 = vector.shape_cast %11 : vector<1x16xi1> to vector<1x16xi1>
    %164 = vector.broadcast %163 : vector<1x16xi1> to vector<6x16xi1>
    %165 = vector.broadcast %cst_69 : f32 to vector<6x16xf32>
    %166 = arith.select %164, %162, %165 : vector<6x16xi1>, vector<6x16xf32>
    %167 = arith.truncf %166 : vector<6x16xf32> to vector<6x16xbf16>
    %cst_70 = arith.constant dense<0.000000e+00> : vector<32x16xf32>
    %168 = tpu.matmul %161, %167, %cst_70 {dimension_numbers = #tpu.dot_dimension_numbers<[1], [0], [0], [1], [0, 0, 1, 1], [], []>} : vector<32x6xbf16>, vector<6x16xbf16>, vector<32x16xf32> -> vector<32x16xf32>
    %169 = vector.broadcast %160 : vector<32x1xf32> to vector<32x16xf32>
    %170 = arith.addf %169, %168 : vector<32x16xf32>
    %c360 = arith.constant 360 : index
    %c0_71 = arith.constant 0 : index
    %171 = vector.load %arg2[%c360, %c0_71] : memref<1312x32xbf16, #tpu.memory_space<vmem>>, vector<32x6xbf16>
    %c1_i32_72 = arith.constant 1 : i32
    %172 = tpu.dynamic_rotate %159 by %c1_i32_72 dim 1 : vector<6x16xf32>, i32 -> vector<6x16xf32>
    %cst_73 = arith.constant 0.000000e+00 : f32
    %173 = vector.shape_cast %20 : vector<1x16xi1> to vector<1x16xi1>
    %174 = vector.broadcast %173 : vector<1x16xi1> to vector<6x16xi1>
    %175 = vector.broadcast %cst_73 : f32 to vector<6x16xf32>
    %176 = arith.select %174, %172, %175 : vector<6x16xi1>, vector<6x16xf32>
    %177 = arith.truncf %176 : vector<6x16xf32> to vector<6x16xbf16>
    %cst_74 = arith.constant dense<0.000000e+00> : vector<32x16xf32>
    %178 = tpu.matmul %171, %177, %cst_74 {dimension_numbers = #tpu.dot_dimension_numbers<[1], [0], [0], [1], [0, 0, 1, 1], [], []>} : vector<32x6xbf16>, vector<6x16xbf16>, vector<32x16xf32> -> vector<32x16xf32>
    %179 = arith.addf %170, %178 : vector<32x16xf32>
    %c392 = arith.constant 392 : index
    %c0_75 = arith.constant 0 : index
    %180 = vector.load %arg2[%c392, %c0_75] : memref<1312x32xbf16, #tpu.memory_space<vmem>>, vector<32x6xbf16>
    %181 = arith.truncf %159 : vector<6x16xf32> to vector<6x16xbf16>
    %cst_76 = arith.constant dense<0.000000e+00> : vector<32x16xf32>
    %182 = tpu.matmul %180, %181, %cst_76 {dimension_numbers = #tpu.dot_dimension_numbers<[1], [0], [0], [1], [0, 0, 1, 1], [], []>} : vector<32x6xbf16>, vector<6x16xbf16>, vector<32x16xf32> -> vector<32x16xf32>
    %183 = arith.addf %179, %182 : vector<32x16xf32>
    %c424 = arith.constant 424 : index
    %c0_77 = arith.constant 0 : index
    %184 = vector.load %arg2[%c424, %c0_77] : memref<1312x32xbf16, #tpu.memory_space<vmem>>, vector<32x6xbf16>
    %c15_i32_78 = arith.constant 15 : i32
    %185 = tpu.dynamic_rotate %159 by %c15_i32_78 dim 1 : vector<6x16xf32>, i32 -> vector<6x16xf32>
    %cst_79 = arith.constant 0.000000e+00 : f32
    %186 = vector.shape_cast %29 : vector<1x16xi1> to vector<1x16xi1>
    %187 = vector.broadcast %186 : vector<1x16xi1> to vector<6x16xi1>
    %188 = vector.broadcast %cst_79 : f32 to vector<6x16xf32>
    %189 = arith.select %187, %185, %188 : vector<6x16xi1>, vector<6x16xf32>
    %190 = arith.truncf %189 : vector<6x16xf32> to vector<6x16xbf16>
    %cst_80 = arith.constant dense<0.000000e+00> : vector<32x16xf32>
    %191 = tpu.matmul %184, %190, %cst_80 {dimension_numbers = #tpu.dot_dimension_numbers<[1], [0], [0], [1], [0, 0, 1, 1], [], []>} : vector<32x6xbf16>, vector<6x16xbf16>, vector<32x16xf32> -> vector<32x16xf32>
    %192 = arith.addf %183, %191 : vector<32x16xf32>
    %c456 = arith.constant 456 : index
    %c0_81 = arith.constant 0 : index
    %193 = vector.load %arg2[%c456, %c0_81] : memref<1312x32xbf16, #tpu.memory_space<vmem>>, vector<32x6xbf16>
    %c14_i32_82 = arith.constant 14 : i32
    %194 = tpu.dynamic_rotate %159 by %c14_i32_82 dim 1 : vector<6x16xf32>, i32 -> vector<6x16xf32>
    %cst_83 = arith.constant 0.000000e+00 : f32
    %195 = vector.shape_cast %38 : vector<1x16xi1> to vector<1x16xi1>
    %196 = vector.broadcast %195 : vector<1x16xi1> to vector<6x16xi1>
    %197 = vector.broadcast %cst_83 : f32 to vector<6x16xf32>
    %198 = arith.select %196, %194, %197 : vector<6x16xi1>, vector<6x16xf32>
    %199 = arith.truncf %198 : vector<6x16xf32> to vector<6x16xbf16>
    %cst_84 = arith.constant dense<0.000000e+00> : vector<32x16xf32>
    %200 = tpu.matmul %193, %199, %cst_84 {dimension_numbers = #tpu.dot_dimension_numbers<[1], [0], [0], [1], [0, 0, 1, 1], [], []>} : vector<32x6xbf16>, vector<6x16xbf16>, vector<32x16xf32> -> vector<32x16xf32>
    %201 = arith.addf %192, %200 : vector<32x16xf32>
    %cst_85 = arith.constant 0.000000e+00 : f32
    %202 = vector.broadcast %cst_85 : f32 to vector<32x16xf32>
    %203 = arith.cmpf ogt, %201, %202 : vector<32x16xf32>
    %cst_86 = arith.constant 0.000000e+00 : f32
    %204 = vector.broadcast %cst_86 : f32 to vector<32x16xf32>
    %205 = arith.minimumf %201, %204 : vector<32x16xf32>
    %206 = math.exp %205 : vector<32x16xf32>
    %cst_87 = arith.constant 1.000000e+00 : f32
    %207 = vector.broadcast %cst_87 : f32 to vector<32x16xf32>
    %208 = arith.subf %206, %207 : vector<32x16xf32>
    %209 = arith.select %203, %201, %208 : vector<32x16xi1>, vector<32x16xf32>
    %c0_88 = arith.constant 0 : index
    %c4 = arith.constant 4 : index
    %210 = vector.load %arg3[%c0_88, %c4] : memref<32x12xf32, #tpu.memory_space<vmem>>, vector<32x1xf32>
    %c488 = arith.constant 488 : index
    %c0_89 = arith.constant 0 : index
    %211 = vector.load %arg2[%c488, %c0_89] : memref<1312x32xbf16, #tpu.memory_space<vmem>>, vector<32x32xbf16>
    %c2_i32_90 = arith.constant 2 : i32
    %212 = tpu.dynamic_rotate %209 by %c2_i32_90 dim 1 : vector<32x16xf32>, i32 -> vector<32x16xf32>
    %cst_91 = arith.constant 0.000000e+00 : f32
    %213 = vector.shape_cast %11 : vector<1x16xi1> to vector<1x16xi1>
    %214 = vector.broadcast %213 : vector<1x16xi1> to vector<32x16xi1>
    %215 = vector.broadcast %cst_91 : f32 to vector<32x16xf32>
    %216 = arith.select %214, %212, %215 : vector<32x16xi1>, vector<32x16xf32>
    %217 = arith.truncf %216 : vector<32x16xf32> to vector<32x16xbf16>
    %cst_92 = arith.constant dense<0.000000e+00> : vector<32x16xf32>
    %218 = tpu.matmul %211, %217, %cst_92 {dimension_numbers = #tpu.dot_dimension_numbers<[1], [0], [0], [1], [0, 0, 1, 1], [], []>} : vector<32x32xbf16>, vector<32x16xbf16>, vector<32x16xf32> -> vector<32x16xf32>
    %219 = vector.broadcast %210 : vector<32x1xf32> to vector<32x16xf32>
    %220 = arith.addf %219, %218 : vector<32x16xf32>
    %c520 = arith.constant 520 : index
    %c0_93 = arith.constant 0 : index
    %221 = vector.load %arg2[%c520, %c0_93] : memref<1312x32xbf16, #tpu.memory_space<vmem>>, vector<32x32xbf16>
    %c1_i32_94 = arith.constant 1 : i32
    %222 = tpu.dynamic_rotate %209 by %c1_i32_94 dim 1 : vector<32x16xf32>, i32 -> vector<32x16xf32>
    %cst_95 = arith.constant 0.000000e+00 : f32
    %223 = vector.shape_cast %20 : vector<1x16xi1> to vector<1x16xi1>
    %224 = vector.broadcast %223 : vector<1x16xi1> to vector<32x16xi1>
    %225 = vector.broadcast %cst_95 : f32 to vector<32x16xf32>
    %226 = arith.select %224, %222, %225 : vector<32x16xi1>, vector<32x16xf32>
    %227 = arith.truncf %226 : vector<32x16xf32> to vector<32x16xbf16>
    %cst_96 = arith.constant dense<0.000000e+00> : vector<32x16xf32>
    %228 = tpu.matmul %221, %227, %cst_96 {dimension_numbers = #tpu.dot_dimension_numbers<[1], [0], [0], [1], [0, 0, 1, 1], [], []>} : vector<32x32xbf16>, vector<32x16xbf16>, vector<32x16xf32> -> vector<32x16xf32>
    %229 = arith.addf %220, %228 : vector<32x16xf32>
    %c552 = arith.constant 552 : index
    %c0_97 = arith.constant 0 : index
    %230 = vector.load %arg2[%c552, %c0_97] : memref<1312x32xbf16, #tpu.memory_space<vmem>>, vector<32x32xbf16>
    %231 = arith.truncf %209 : vector<32x16xf32> to vector<32x16xbf16>
    %cst_98 = arith.constant dense<0.000000e+00> : vector<32x16xf32>
    %232 = tpu.matmul %230, %231, %cst_98 {dimension_numbers = #tpu.dot_dimension_numbers<[1], [0], [0], [1], [0, 0, 1, 1], [], []>} : vector<32x32xbf16>, vector<32x16xbf16>, vector<32x16xf32> -> vector<32x16xf32>
    %233 = arith.addf %229, %232 : vector<32x16xf32>
    %c584 = arith.constant 584 : index
    %c0_99 = arith.constant 0 : index
    %234 = vector.load %arg2[%c584, %c0_99] : memref<1312x32xbf16, #tpu.memory_space<vmem>>, vector<32x32xbf16>
    %c15_i32_100 = arith.constant 15 : i32
    %235 = tpu.dynamic_rotate %209 by %c15_i32_100 dim 1 : vector<32x16xf32>, i32 -> vector<32x16xf32>
    %cst_101 = arith.constant 0.000000e+00 : f32
    %236 = vector.shape_cast %29 : vector<1x16xi1> to vector<1x16xi1>
    %237 = vector.broadcast %236 : vector<1x16xi1> to vector<32x16xi1>
    %238 = vector.broadcast %cst_101 : f32 to vector<32x16xf32>
    %239 = arith.select %237, %235, %238 : vector<32x16xi1>, vector<32x16xf32>
    %240 = arith.truncf %239 : vector<32x16xf32> to vector<32x16xbf16>
    %cst_102 = arith.constant dense<0.000000e+00> : vector<32x16xf32>
    %241 = tpu.matmul %234, %240, %cst_102 {dimension_numbers = #tpu.dot_dimension_numbers<[1], [0], [0], [1], [0, 0, 1, 1], [], []>} : vector<32x32xbf16>, vector<32x16xbf16>, vector<32x16xf32> -> vector<32x16xf32>
    %242 = arith.addf %233, %241 : vector<32x16xf32>
    %c616 = arith.constant 616 : index
    %c0_103 = arith.constant 0 : index
    %243 = vector.load %arg2[%c616, %c0_103] : memref<1312x32xbf16, #tpu.memory_space<vmem>>, vector<32x32xbf16>
    %c14_i32_104 = arith.constant 14 : i32
    %244 = tpu.dynamic_rotate %209 by %c14_i32_104 dim 1 : vector<32x16xf32>, i32 -> vector<32x16xf32>
    %cst_105 = arith.constant 0.000000e+00 : f32
    %245 = vector.shape_cast %38 : vector<1x16xi1> to vector<1x16xi1>
    %246 = vector.broadcast %245 : vector<1x16xi1> to vector<32x16xi1>
    %247 = vector.broadcast %cst_105 : f32 to vector<32x16xf32>
    %248 = arith.select %246, %244, %247 : vector<32x16xi1>, vector<32x16xf32>
    %249 = arith.truncf %248 : vector<32x16xf32> to vector<32x16xbf16>
    %cst_106 = arith.constant dense<0.000000e+00> : vector<32x16xf32>
    %250 = tpu.matmul %243, %249, %cst_106 {dimension_numbers = #tpu.dot_dimension_numbers<[1], [0], [0], [1], [0, 0, 1, 1], [], []>} : vector<32x32xbf16>, vector<32x16xbf16>, vector<32x16xf32> -> vector<32x16xf32>
    %251 = arith.addf %242, %250 : vector<32x16xf32>
    %cst_107 = arith.constant 0.000000e+00 : f32
    %252 = vector.broadcast %cst_107 : f32 to vector<32x16xf32>
    %253 = arith.cmpf ogt, %251, %252 : vector<32x16xf32>
    %cst_108 = arith.constant 0.000000e+00 : f32
    %254 = vector.broadcast %cst_108 : f32 to vector<32x16xf32>
    %255 = arith.minimumf %251, %254 : vector<32x16xf32>
    %256 = math.exp %255 : vector<32x16xf32>
    %cst_109 = arith.constant 1.000000e+00 : f32
    %257 = vector.broadcast %cst_109 : f32 to vector<32x16xf32>
    %258 = arith.subf %256, %257 : vector<32x16xf32>
    %259 = arith.select %253, %251, %258 : vector<32x16xi1>, vector<32x16xf32>
    %c648 = arith.constant 648 : index
    %c0_110 = arith.constant 0 : index
    %260 = vector.load %arg2[%c648, %c0_110] : memref<1312x32xbf16, #tpu.memory_space<vmem>>, vector<4x32xbf16>
    %c0_111 = arith.constant 0 : index
    %c5 = arith.constant 5 : index
    %261 = vector.load %arg3[%c0_111, %c5] : memref<32x12xf32, #tpu.memory_space<vmem>>, vector<4x1xf32>
    %262 = arith.truncf %259 : vector<32x16xf32> to vector<32x16xbf16>
    %cst_112 = arith.constant dense<0.000000e+00> : vector<4x16xf32>
    %263 = tpu.matmul %260, %262, %cst_112 {dimension_numbers = #tpu.dot_dimension_numbers<[1], [0], [0], [1], [0, 0, 1, 1], [], []>} : vector<4x32xbf16>, vector<32x16xbf16>, vector<4x16xf32> -> vector<4x16xf32>
    %264 = vector.broadcast %261 : vector<4x1xf32> to vector<4x16xf32>
    %265 = arith.addf %263, %264 : vector<4x16xf32>
    %266 = arith.subf %265, %158 : vector<4x16xf32>
    %267 = arith.truncf %266 : vector<4x16xf32> to vector<4x16xbf16>
    %cst_113 = arith.constant dense<0.000000e+00> : vector<4x16xf32>
    %268 = tpu.matmul %267, %0, %cst_113 {dimension_numbers = #tpu.dot_dimension_numbers<[1], [0], [0], [1], [0, 0, 1, 1], [], []>} : vector<4x16xbf16>, vector<16x16xbf16>, vector<4x16xf32> -> vector<4x16xf32>
    %269 = tpu.concatenate %43, %44, %268 in 0 : vector<1x16xf32>, vector<1x16xf32>, vector<4x16xf32> -> vector<6x16xf32>
    %c0_114 = arith.constant 0 : index
    %c6 = arith.constant 6 : index
    %270 = vector.load %arg3[%c0_114, %c6] : memref<32x12xf32, #tpu.memory_space<vmem>>, vector<32x1xf32>
    %c656 = arith.constant 656 : index
    %c0_115 = arith.constant 0 : index
    %271 = vector.load %arg2[%c656, %c0_115] : memref<1312x32xbf16, #tpu.memory_space<vmem>>, vector<32x6xbf16>
    %c2_i32_116 = arith.constant 2 : i32
    %272 = tpu.dynamic_rotate %269 by %c2_i32_116 dim 1 : vector<6x16xf32>, i32 -> vector<6x16xf32>
    %cst_117 = arith.constant 0.000000e+00 : f32
    %273 = vector.shape_cast %11 : vector<1x16xi1> to vector<1x16xi1>
    %274 = vector.broadcast %273 : vector<1x16xi1> to vector<6x16xi1>
    %275 = vector.broadcast %cst_117 : f32 to vector<6x16xf32>
    %276 = arith.select %274, %272, %275 : vector<6x16xi1>, vector<6x16xf32>
    %277 = arith.truncf %276 : vector<6x16xf32> to vector<6x16xbf16>
    %cst_118 = arith.constant dense<0.000000e+00> : vector<32x16xf32>
    %278 = tpu.matmul %271, %277, %cst_118 {dimension_numbers = #tpu.dot_dimension_numbers<[1], [0], [0], [1], [0, 0, 1, 1], [], []>} : vector<32x6xbf16>, vector<6x16xbf16>, vector<32x16xf32> -> vector<32x16xf32>
    %279 = vector.broadcast %270 : vector<32x1xf32> to vector<32x16xf32>
    %280 = arith.addf %279, %278 : vector<32x16xf32>
    %c688 = arith.constant 688 : index
    %c0_119 = arith.constant 0 : index
    %281 = vector.load %arg2[%c688, %c0_119] : memref<1312x32xbf16, #tpu.memory_space<vmem>>, vector<32x6xbf16>
    %c1_i32_120 = arith.constant 1 : i32
    %282 = tpu.dynamic_rotate %269 by %c1_i32_120 dim 1 : vector<6x16xf32>, i32 -> vector<6x16xf32>
    %cst_121 = arith.constant 0.000000e+00 : f32
    %283 = vector.shape_cast %20 : vector<1x16xi1> to vector<1x16xi1>
    %284 = vector.broadcast %283 : vector<1x16xi1> to vector<6x16xi1>
    %285 = vector.broadcast %cst_121 : f32 to vector<6x16xf32>
    %286 = arith.select %284, %282, %285 : vector<6x16xi1>, vector<6x16xf32>
    %287 = arith.truncf %286 : vector<6x16xf32> to vector<6x16xbf16>
    %cst_122 = arith.constant dense<0.000000e+00> : vector<32x16xf32>
    %288 = tpu.matmul %281, %287, %cst_122 {dimension_numbers = #tpu.dot_dimension_numbers<[1], [0], [0], [1], [0, 0, 1, 1], [], []>} : vector<32x6xbf16>, vector<6x16xbf16>, vector<32x16xf32> -> vector<32x16xf32>
    %289 = arith.addf %280, %288 : vector<32x16xf32>
    %c720 = arith.constant 720 : index
    %c0_123 = arith.constant 0 : index
    %290 = vector.load %arg2[%c720, %c0_123] : memref<1312x32xbf16, #tpu.memory_space<vmem>>, vector<32x6xbf16>
    %291 = arith.truncf %269 : vector<6x16xf32> to vector<6x16xbf16>
    %cst_124 = arith.constant dense<0.000000e+00> : vector<32x16xf32>
    %292 = tpu.matmul %290, %291, %cst_124 {dimension_numbers = #tpu.dot_dimension_numbers<[1], [0], [0], [1], [0, 0, 1, 1], [], []>} : vector<32x6xbf16>, vector<6x16xbf16>, vector<32x16xf32> -> vector<32x16xf32>
    %293 = arith.addf %289, %292 : vector<32x16xf32>
    %c752 = arith.constant 752 : index
    %c0_125 = arith.constant 0 : index
    %294 = vector.load %arg2[%c752, %c0_125] : memref<1312x32xbf16, #tpu.memory_space<vmem>>, vector<32x6xbf16>
    %c15_i32_126 = arith.constant 15 : i32
    %295 = tpu.dynamic_rotate %269 by %c15_i32_126 dim 1 : vector<6x16xf32>, i32 -> vector<6x16xf32>
    %cst_127 = arith.constant 0.000000e+00 : f32
    %296 = vector.shape_cast %29 : vector<1x16xi1> to vector<1x16xi1>
    %297 = vector.broadcast %296 : vector<1x16xi1> to vector<6x16xi1>
    %298 = vector.broadcast %cst_127 : f32 to vector<6x16xf32>
    %299 = arith.select %297, %295, %298 : vector<6x16xi1>, vector<6x16xf32>
    %300 = arith.truncf %299 : vector<6x16xf32> to vector<6x16xbf16>
    %cst_128 = arith.constant dense<0.000000e+00> : vector<32x16xf32>
    %301 = tpu.matmul %294, %300, %cst_128 {dimension_numbers = #tpu.dot_dimension_numbers<[1], [0], [0], [1], [0, 0, 1, 1], [], []>} : vector<32x6xbf16>, vector<6x16xbf16>, vector<32x16xf32> -> vector<32x16xf32>
    %302 = arith.addf %293, %301 : vector<32x16xf32>
    %c784 = arith.constant 784 : index
    %c0_129 = arith.constant 0 : index
    %303 = vector.load %arg2[%c784, %c0_129] : memref<1312x32xbf16, #tpu.memory_space<vmem>>, vector<32x6xbf16>
    %c14_i32_130 = arith.constant 14 : i32
    %304 = tpu.dynamic_rotate %269 by %c14_i32_130 dim 1 : vector<6x16xf32>, i32 -> vector<6x16xf32>
    %cst_131 = arith.constant 0.000000e+00 : f32
    %305 = vector.shape_cast %38 : vector<1x16xi1> to vector<1x16xi1>
    %306 = vector.broadcast %305 : vector<1x16xi1> to vector<6x16xi1>
    %307 = vector.broadcast %cst_131 : f32 to vector<6x16xf32>
    %308 = arith.select %306, %304, %307 : vector<6x16xi1>, vector<6x16xf32>
    %309 = arith.truncf %308 : vector<6x16xf32> to vector<6x16xbf16>
    %cst_132 = arith.constant dense<0.000000e+00> : vector<32x16xf32>
    %310 = tpu.matmul %303, %309, %cst_132 {dimension_numbers = #tpu.dot_dimension_numbers<[1], [0], [0], [1], [0, 0, 1, 1], [], []>} : vector<32x6xbf16>, vector<6x16xbf16>, vector<32x16xf32> -> vector<32x16xf32>
    %311 = arith.addf %302, %310 : vector<32x16xf32>
    %cst_133 = arith.constant 0.000000e+00 : f32
    %312 = vector.broadcast %cst_133 : f32 to vector<32x16xf32>
    %313 = arith.cmpf ogt, %311, %312 : vector<32x16xf32>
    %cst_134 = arith.constant 0.000000e+00 : f32
    %314 = vector.broadcast %cst_134 : f32 to vector<32x16xf32>
    %315 = arith.minimumf %311, %314 : vector<32x16xf32>
    %316 = math.exp %315 : vector<32x16xf32>
    %cst_135 = arith.constant 1.000000e+00 : f32
    %317 = vector.broadcast %cst_135 : f32 to vector<32x16xf32>
    %318 = arith.subf %316, %317 : vector<32x16xf32>
    %319 = arith.select %313, %311, %318 : vector<32x16xi1>, vector<32x16xf32>
    %c0_136 = arith.constant 0 : index
    %c7 = arith.constant 7 : index
    %320 = vector.load %arg3[%c0_136, %c7] : memref<32x12xf32, #tpu.memory_space<vmem>>, vector<32x1xf32>
    %c816 = arith.constant 816 : index
    %c0_137 = arith.constant 0 : index
    %321 = vector.load %arg2[%c816, %c0_137] : memref<1312x32xbf16, #tpu.memory_space<vmem>>, vector<32x32xbf16>
    %c2_i32_138 = arith.constant 2 : i32
    %322 = tpu.dynamic_rotate %319 by %c2_i32_138 dim 1 : vector<32x16xf32>, i32 -> vector<32x16xf32>
    %cst_139 = arith.constant 0.000000e+00 : f32
    %323 = vector.shape_cast %11 : vector<1x16xi1> to vector<1x16xi1>
    %324 = vector.broadcast %323 : vector<1x16xi1> to vector<32x16xi1>
    %325 = vector.broadcast %cst_139 : f32 to vector<32x16xf32>
    %326 = arith.select %324, %322, %325 : vector<32x16xi1>, vector<32x16xf32>
    %327 = arith.truncf %326 : vector<32x16xf32> to vector<32x16xbf16>
    %cst_140 = arith.constant dense<0.000000e+00> : vector<32x16xf32>
    %328 = tpu.matmul %321, %327, %cst_140 {dimension_numbers = #tpu.dot_dimension_numbers<[1], [0], [0], [1], [0, 0, 1, 1], [], []>} : vector<32x32xbf16>, vector<32x16xbf16>, vector<32x16xf32> -> vector<32x16xf32>
    %329 = vector.broadcast %320 : vector<32x1xf32> to vector<32x16xf32>
    %330 = arith.addf %329, %328 : vector<32x16xf32>
    %c848 = arith.constant 848 : index
    %c0_141 = arith.constant 0 : index
    %331 = vector.load %arg2[%c848, %c0_141] : memref<1312x32xbf16, #tpu.memory_space<vmem>>, vector<32x32xbf16>
    %c1_i32_142 = arith.constant 1 : i32
    %332 = tpu.dynamic_rotate %319 by %c1_i32_142 dim 1 : vector<32x16xf32>, i32 -> vector<32x16xf32>
    %cst_143 = arith.constant 0.000000e+00 : f32
    %333 = vector.shape_cast %20 : vector<1x16xi1> to vector<1x16xi1>
    %334 = vector.broadcast %333 : vector<1x16xi1> to vector<32x16xi1>
    %335 = vector.broadcast %cst_143 : f32 to vector<32x16xf32>
    %336 = arith.select %334, %332, %335 : vector<32x16xi1>, vector<32x16xf32>
    %337 = arith.truncf %336 : vector<32x16xf32> to vector<32x16xbf16>
    %cst_144 = arith.constant dense<0.000000e+00> : vector<32x16xf32>
    %338 = tpu.matmul %331, %337, %cst_144 {dimension_numbers = #tpu.dot_dimension_numbers<[1], [0], [0], [1], [0, 0, 1, 1], [], []>} : vector<32x32xbf16>, vector<32x16xbf16>, vector<32x16xf32> -> vector<32x16xf32>
    %339 = arith.addf %330, %338 : vector<32x16xf32>
    %c880 = arith.constant 880 : index
    %c0_145 = arith.constant 0 : index
    %340 = vector.load %arg2[%c880, %c0_145] : memref<1312x32xbf16, #tpu.memory_space<vmem>>, vector<32x32xbf16>
    %341 = arith.truncf %319 : vector<32x16xf32> to vector<32x16xbf16>
    %cst_146 = arith.constant dense<0.000000e+00> : vector<32x16xf32>
    %342 = tpu.matmul %340, %341, %cst_146 {dimension_numbers = #tpu.dot_dimension_numbers<[1], [0], [0], [1], [0, 0, 1, 1], [], []>} : vector<32x32xbf16>, vector<32x16xbf16>, vector<32x16xf32> -> vector<32x16xf32>
    %343 = arith.addf %339, %342 : vector<32x16xf32>
    %c912 = arith.constant 912 : index
    %c0_147 = arith.constant 0 : index
    %344 = vector.load %arg2[%c912, %c0_147] : memref<1312x32xbf16, #tpu.memory_space<vmem>>, vector<32x32xbf16>
    %c15_i32_148 = arith.constant 15 : i32
    %345 = tpu.dynamic_rotate %319 by %c15_i32_148 dim 1 : vector<32x16xf32>, i32 -> vector<32x16xf32>
    %cst_149 = arith.constant 0.000000e+00 : f32
    %346 = vector.shape_cast %29 : vector<1x16xi1> to vector<1x16xi1>
    %347 = vector.broadcast %346 : vector<1x16xi1> to vector<32x16xi1>
    %348 = vector.broadcast %cst_149 : f32 to vector<32x16xf32>
    %349 = arith.select %347, %345, %348 : vector<32x16xi1>, vector<32x16xf32>
    %350 = arith.truncf %349 : vector<32x16xf32> to vector<32x16xbf16>
    %cst_150 = arith.constant dense<0.000000e+00> : vector<32x16xf32>
    %351 = tpu.matmul %344, %350, %cst_150 {dimension_numbers = #tpu.dot_dimension_numbers<[1], [0], [0], [1], [0, 0, 1, 1], [], []>} : vector<32x32xbf16>, vector<32x16xbf16>, vector<32x16xf32> -> vector<32x16xf32>
    %352 = arith.addf %343, %351 : vector<32x16xf32>
    %c944 = arith.constant 944 : index
    %c0_151 = arith.constant 0 : index
    %353 = vector.load %arg2[%c944, %c0_151] : memref<1312x32xbf16, #tpu.memory_space<vmem>>, vector<32x32xbf16>
    %c14_i32_152 = arith.constant 14 : i32
    %354 = tpu.dynamic_rotate %319 by %c14_i32_152 dim 1 : vector<32x16xf32>, i32 -> vector<32x16xf32>
    %cst_153 = arith.constant 0.000000e+00 : f32
    %355 = vector.shape_cast %38 : vector<1x16xi1> to vector<1x16xi1>
    %356 = vector.broadcast %355 : vector<1x16xi1> to vector<32x16xi1>
    %357 = vector.broadcast %cst_153 : f32 to vector<32x16xf32>
    %358 = arith.select %356, %354, %357 : vector<32x16xi1>, vector<32x16xf32>
    %359 = arith.truncf %358 : vector<32x16xf32> to vector<32x16xbf16>
    %cst_154 = arith.constant dense<0.000000e+00> : vector<32x16xf32>
    %360 = tpu.matmul %353, %359, %cst_154 {dimension_numbers = #tpu.dot_dimension_numbers<[1], [0], [0], [1], [0, 0, 1, 1], [], []>} : vector<32x32xbf16>, vector<32x16xbf16>, vector<32x16xf32> -> vector<32x16xf32>
    %361 = arith.addf %352, %360 : vector<32x16xf32>
    %cst_155 = arith.constant 0.000000e+00 : f32
    %362 = vector.broadcast %cst_155 : f32 to vector<32x16xf32>
    %363 = arith.cmpf ogt, %361, %362 : vector<32x16xf32>
    %cst_156 = arith.constant 0.000000e+00 : f32
    %364 = vector.broadcast %cst_156 : f32 to vector<32x16xf32>
    %365 = arith.minimumf %361, %364 : vector<32x16xf32>
    %366 = math.exp %365 : vector<32x16xf32>
    %cst_157 = arith.constant 1.000000e+00 : f32
    %367 = vector.broadcast %cst_157 : f32 to vector<32x16xf32>
    %368 = arith.subf %366, %367 : vector<32x16xf32>
    %369 = arith.select %363, %361, %368 : vector<32x16xi1>, vector<32x16xf32>
    %c976 = arith.constant 976 : index
    %c0_158 = arith.constant 0 : index
    %370 = vector.load %arg2[%c976, %c0_158] : memref<1312x32xbf16, #tpu.memory_space<vmem>>, vector<4x32xbf16>
    %c0_159 = arith.constant 0 : index
    %c8 = arith.constant 8 : index
    %371 = vector.load %arg3[%c0_159, %c8] : memref<32x12xf32, #tpu.memory_space<vmem>>, vector<4x1xf32>
    %372 = arith.truncf %369 : vector<32x16xf32> to vector<32x16xbf16>
    %cst_160 = arith.constant dense<0.000000e+00> : vector<4x16xf32>
    %373 = tpu.matmul %370, %372, %cst_160 {dimension_numbers = #tpu.dot_dimension_numbers<[1], [0], [0], [1], [0, 0, 1, 1], [], []>} : vector<4x32xbf16>, vector<32x16xbf16>, vector<4x16xf32> -> vector<4x16xf32>
    %374 = vector.broadcast %371 : vector<4x1xf32> to vector<4x16xf32>
    %375 = arith.addf %373, %374 : vector<4x16xf32>
    %376 = arith.subf %375, %268 : vector<4x16xf32>
    %377 = arith.truncf %376 : vector<4x16xf32> to vector<4x16xbf16>
    %cst_161 = arith.constant dense<0.000000e+00> : vector<4x16xf32>
    %378 = tpu.matmul %377, %1, %cst_161 {dimension_numbers = #tpu.dot_dimension_numbers<[1], [0], [0], [1], [0, 0, 1, 1], [], []>} : vector<4x16xbf16>, vector<16x16xbf16>, vector<4x16xf32> -> vector<4x16xf32>
    %379 = tpu.concatenate %47, %45, %378 in 0 : vector<1x16xf32>, vector<1x16xf32>, vector<4x16xf32> -> vector<6x16xf32>
    %c0_162 = arith.constant 0 : index
    %c9 = arith.constant 9 : index
    %380 = vector.load %arg3[%c0_162, %c9] : memref<32x12xf32, #tpu.memory_space<vmem>>, vector<32x1xf32>
    %c984 = arith.constant 984 : index
    %c0_163 = arith.constant 0 : index
    %381 = vector.load %arg2[%c984, %c0_163] : memref<1312x32xbf16, #tpu.memory_space<vmem>>, vector<32x6xbf16>
    %c2_i32_164 = arith.constant 2 : i32
    %382 = tpu.dynamic_rotate %379 by %c2_i32_164 dim 1 : vector<6x16xf32>, i32 -> vector<6x16xf32>
    %cst_165 = arith.constant 0.000000e+00 : f32
    %383 = vector.shape_cast %11 : vector<1x16xi1> to vector<1x16xi1>
    %384 = vector.broadcast %383 : vector<1x16xi1> to vector<6x16xi1>
    %385 = vector.broadcast %cst_165 : f32 to vector<6x16xf32>
    %386 = arith.select %384, %382, %385 : vector<6x16xi1>, vector<6x16xf32>
    %387 = arith.truncf %386 : vector<6x16xf32> to vector<6x16xbf16>
    %cst_166 = arith.constant dense<0.000000e+00> : vector<32x16xf32>
    %388 = tpu.matmul %381, %387, %cst_166 {dimension_numbers = #tpu.dot_dimension_numbers<[1], [0], [0], [1], [0, 0, 1, 1], [], []>} : vector<32x6xbf16>, vector<6x16xbf16>, vector<32x16xf32> -> vector<32x16xf32>
    %389 = vector.broadcast %380 : vector<32x1xf32> to vector<32x16xf32>
    %390 = arith.addf %389, %388 : vector<32x16xf32>
    %c1016 = arith.constant 1016 : index
    %c0_167 = arith.constant 0 : index
    %391 = vector.load %arg2[%c1016, %c0_167] : memref<1312x32xbf16, #tpu.memory_space<vmem>>, vector<32x6xbf16>
    %c1_i32_168 = arith.constant 1 : i32
    %392 = tpu.dynamic_rotate %379 by %c1_i32_168 dim 1 : vector<6x16xf32>, i32 -> vector<6x16xf32>
    %cst_169 = arith.constant 0.000000e+00 : f32
    %393 = vector.shape_cast %20 : vector<1x16xi1> to vector<1x16xi1>
    %394 = vector.broadcast %393 : vector<1x16xi1> to vector<6x16xi1>
    %395 = vector.broadcast %cst_169 : f32 to vector<6x16xf32>
    %396 = arith.select %394, %392, %395 : vector<6x16xi1>, vector<6x16xf32>
    %397 = arith.truncf %396 : vector<6x16xf32> to vector<6x16xbf16>
    %cst_170 = arith.constant dense<0.000000e+00> : vector<32x16xf32>
    %398 = tpu.matmul %391, %397, %cst_170 {dimension_numbers = #tpu.dot_dimension_numbers<[1], [0], [0], [1], [0, 0, 1, 1], [], []>} : vector<32x6xbf16>, vector<6x16xbf16>, vector<32x16xf32> -> vector<32x16xf32>
    %399 = arith.addf %390, %398 : vector<32x16xf32>
    %c1048 = arith.constant 1048 : index
    %c0_171 = arith.constant 0 : index
    %400 = vector.load %arg2[%c1048, %c0_171] : memref<1312x32xbf16, #tpu.memory_space<vmem>>, vector<32x6xbf16>
    %401 = arith.truncf %379 : vector<6x16xf32> to vector<6x16xbf16>
    %cst_172 = arith.constant dense<0.000000e+00> : vector<32x16xf32>
    %402 = tpu.matmul %400, %401, %cst_172 {dimension_numbers = #tpu.dot_dimension_numbers<[1], [0], [0], [1], [0, 0, 1, 1], [], []>} : vector<32x6xbf16>, vector<6x16xbf16>, vector<32x16xf32> -> vector<32x16xf32>
    %403 = arith.addf %399, %402 : vector<32x16xf32>
    %c1080 = arith.constant 1080 : index
    %c0_173 = arith.constant 0 : index
    %404 = vector.load %arg2[%c1080, %c0_173] : memref<1312x32xbf16, #tpu.memory_space<vmem>>, vector<32x6xbf16>
    %c15_i32_174 = arith.constant 15 : i32
    %405 = tpu.dynamic_rotate %379 by %c15_i32_174 dim 1 : vector<6x16xf32>, i32 -> vector<6x16xf32>
    %cst_175 = arith.constant 0.000000e+00 : f32
    %406 = vector.shape_cast %29 : vector<1x16xi1> to vector<1x16xi1>
    %407 = vector.broadcast %406 : vector<1x16xi1> to vector<6x16xi1>
    %408 = vector.broadcast %cst_175 : f32 to vector<6x16xf32>
    %409 = arith.select %407, %405, %408 : vector<6x16xi1>, vector<6x16xf32>
    %410 = arith.truncf %409 : vector<6x16xf32> to vector<6x16xbf16>
    %cst_176 = arith.constant dense<0.000000e+00> : vector<32x16xf32>
    %411 = tpu.matmul %404, %410, %cst_176 {dimension_numbers = #tpu.dot_dimension_numbers<[1], [0], [0], [1], [0, 0, 1, 1], [], []>} : vector<32x6xbf16>, vector<6x16xbf16>, vector<32x16xf32> -> vector<32x16xf32>
    %412 = arith.addf %403, %411 : vector<32x16xf32>
    %c1112 = arith.constant 1112 : index
    %c0_177 = arith.constant 0 : index
    %413 = vector.load %arg2[%c1112, %c0_177] : memref<1312x32xbf16, #tpu.memory_space<vmem>>, vector<32x6xbf16>
    %c14_i32_178 = arith.constant 14 : i32
    %414 = tpu.dynamic_rotate %379 by %c14_i32_178 dim 1 : vector<6x16xf32>, i32 -> vector<6x16xf32>
    %cst_179 = arith.constant 0.000000e+00 : f32
    %415 = vector.shape_cast %38 : vector<1x16xi1> to vector<1x16xi1>
    %416 = vector.broadcast %415 : vector<1x16xi1> to vector<6x16xi1>
    %417 = vector.broadcast %cst_179 : f32 to vector<6x16xf32>
    %418 = arith.select %416, %414, %417 : vector<6x16xi1>, vector<6x16xf32>
    %419 = arith.truncf %418 : vector<6x16xf32> to vector<6x16xbf16>
    %cst_180 = arith.constant dense<0.000000e+00> : vector<32x16xf32>
    %420 = tpu.matmul %413, %419, %cst_180 {dimension_numbers = #tpu.dot_dimension_numbers<[1], [0], [0], [1], [0, 0, 1, 1], [], []>} : vector<32x6xbf16>, vector<6x16xbf16>, vector<32x16xf32> -> vector<32x16xf32>
    %421 = arith.addf %412, %420 : vector<32x16xf32>
    %cst_181 = arith.constant 0.000000e+00 : f32
    %422 = vector.broadcast %cst_181 : f32 to vector<32x16xf32>
    %423 = arith.cmpf ogt, %421, %422 : vector<32x16xf32>
    %cst_182 = arith.constant 0.000000e+00 : f32
    %424 = vector.broadcast %cst_182 : f32 to vector<32x16xf32>
    %425 = arith.minimumf %421, %424 : vector<32x16xf32>
    %426 = math.exp %425 : vector<32x16xf32>
    %cst_183 = arith.constant 1.000000e+00 : f32
    %427 = vector.broadcast %cst_183 : f32 to vector<32x16xf32>
    %428 = arith.subf %426, %427 : vector<32x16xf32>
    %429 = arith.select %423, %421, %428 : vector<32x16xi1>, vector<32x16xf32>
    %c0_184 = arith.constant 0 : index
    %c10 = arith.constant 10 : index
    %430 = vector.load %arg3[%c0_184, %c10] : memref<32x12xf32, #tpu.memory_space<vmem>>, vector<32x1xf32>
    %c1144 = arith.constant 1144 : index
    %c0_185 = arith.constant 0 : index
    %431 = vector.load %arg2[%c1144, %c0_185] : memref<1312x32xbf16, #tpu.memory_space<vmem>>, vector<32x32xbf16>
    %c2_i32_186 = arith.constant 2 : i32
    %432 = tpu.dynamic_rotate %429 by %c2_i32_186 dim 1 : vector<32x16xf32>, i32 -> vector<32x16xf32>
    %cst_187 = arith.constant 0.000000e+00 : f32
    %433 = vector.shape_cast %11 : vector<1x16xi1> to vector<1x16xi1>
    %434 = vector.broadcast %433 : vector<1x16xi1> to vector<32x16xi1>
    %435 = vector.broadcast %cst_187 : f32 to vector<32x16xf32>
    %436 = arith.select %434, %432, %435 : vector<32x16xi1>, vector<32x16xf32>
    %437 = arith.truncf %436 : vector<32x16xf32> to vector<32x16xbf16>
    %cst_188 = arith.constant dense<0.000000e+00> : vector<32x16xf32>
    %438 = tpu.matmul %431, %437, %cst_188 {dimension_numbers = #tpu.dot_dimension_numbers<[1], [0], [0], [1], [0, 0, 1, 1], [], []>} : vector<32x32xbf16>, vector<32x16xbf16>, vector<32x16xf32> -> vector<32x16xf32>
    %439 = vector.broadcast %430 : vector<32x1xf32> to vector<32x16xf32>
    %440 = arith.addf %439, %438 : vector<32x16xf32>
    %c1176 = arith.constant 1176 : index
    %c0_189 = arith.constant 0 : index
    %441 = vector.load %arg2[%c1176, %c0_189] : memref<1312x32xbf16, #tpu.memory_space<vmem>>, vector<32x32xbf16>
    %c1_i32_190 = arith.constant 1 : i32
    %442 = tpu.dynamic_rotate %429 by %c1_i32_190 dim 1 : vector<32x16xf32>, i32 -> vector<32x16xf32>
    %cst_191 = arith.constant 0.000000e+00 : f32
    %443 = vector.shape_cast %20 : vector<1x16xi1> to vector<1x16xi1>
    %444 = vector.broadcast %443 : vector<1x16xi1> to vector<32x16xi1>
    %445 = vector.broadcast %cst_191 : f32 to vector<32x16xf32>
    %446 = arith.select %444, %442, %445 : vector<32x16xi1>, vector<32x16xf32>
    %447 = arith.truncf %446 : vector<32x16xf32> to vector<32x16xbf16>
    %cst_192 = arith.constant dense<0.000000e+00> : vector<32x16xf32>
    %448 = tpu.matmul %441, %447, %cst_192 {dimension_numbers = #tpu.dot_dimension_numbers<[1], [0], [0], [1], [0, 0, 1, 1], [], []>} : vector<32x32xbf16>, vector<32x16xbf16>, vector<32x16xf32> -> vector<32x16xf32>
    %449 = arith.addf %440, %448 : vector<32x16xf32>
    %c1208 = arith.constant 1208 : index
    %c0_193 = arith.constant 0 : index
    %450 = vector.load %arg2[%c1208, %c0_193] : memref<1312x32xbf16, #tpu.memory_space<vmem>>, vector<32x32xbf16>
    %451 = arith.truncf %429 : vector<32x16xf32> to vector<32x16xbf16>
    %cst_194 = arith.constant dense<0.000000e+00> : vector<32x16xf32>
    %452 = tpu.matmul %450, %451, %cst_194 {dimension_numbers = #tpu.dot_dimension_numbers<[1], [0], [0], [1], [0, 0, 1, 1], [], []>} : vector<32x32xbf16>, vector<32x16xbf16>, vector<32x16xf32> -> vector<32x16xf32>
    %453 = arith.addf %449, %452 : vector<32x16xf32>
    %c1240 = arith.constant 1240 : index
    %c0_195 = arith.constant 0 : index
    %454 = vector.load %arg2[%c1240, %c0_195] : memref<1312x32xbf16, #tpu.memory_space<vmem>>, vector<32x32xbf16>
    %c15_i32_196 = arith.constant 15 : i32
    %455 = tpu.dynamic_rotate %429 by %c15_i32_196 dim 1 : vector<32x16xf32>, i32 -> vector<32x16xf32>
    %cst_197 = arith.constant 0.000000e+00 : f32
    %456 = vector.shape_cast %29 : vector<1x16xi1> to vector<1x16xi1>
    %457 = vector.broadcast %456 : vector<1x16xi1> to vector<32x16xi1>
    %458 = vector.broadcast %cst_197 : f32 to vector<32x16xf32>
    %459 = arith.select %457, %455, %458 : vector<32x16xi1>, vector<32x16xf32>
    %460 = arith.truncf %459 : vector<32x16xf32> to vector<32x16xbf16>
    %cst_198 = arith.constant dense<0.000000e+00> : vector<32x16xf32>
    %461 = tpu.matmul %454, %460, %cst_198 {dimension_numbers = #tpu.dot_dimension_numbers<[1], [0], [0], [1], [0, 0, 1, 1], [], []>} : vector<32x32xbf16>, vector<32x16xbf16>, vector<32x16xf32> -> vector<32x16xf32>
    %462 = arith.addf %453, %461 : vector<32x16xf32>
    %c1272 = arith.constant 1272 : index
    %c0_199 = arith.constant 0 : index
    %463 = vector.load %arg2[%c1272, %c0_199] : memref<1312x32xbf16, #tpu.memory_space<vmem>>, vector<32x32xbf16>
    %c14_i32_200 = arith.constant 14 : i32
    %464 = tpu.dynamic_rotate %429 by %c14_i32_200 dim 1 : vector<32x16xf32>, i32 -> vector<32x16xf32>
    %cst_201 = arith.constant 0.000000e+00 : f32
    %465 = vector.shape_cast %38 : vector<1x16xi1> to vector<1x16xi1>
    %466 = vector.broadcast %465 : vector<1x16xi1> to vector<32x16xi1>
    %467 = vector.broadcast %cst_201 : f32 to vector<32x16xf32>
    %468 = arith.select %466, %464, %467 : vector<32x16xi1>, vector<32x16xf32>
    %469 = arith.truncf %468 : vector<32x16xf32> to vector<32x16xbf16>
    %cst_202 = arith.constant dense<0.000000e+00> : vector<32x16xf32>
    %470 = tpu.matmul %463, %469, %cst_202 {dimension_numbers = #tpu.dot_dimension_numbers<[1], [0], [0], [1], [0, 0, 1, 1], [], []>} : vector<32x32xbf16>, vector<32x16xbf16>, vector<32x16xf32> -> vector<32x16xf32>
    %471 = arith.addf %462, %470 : vector<32x16xf32>
    %cst_203 = arith.constant 0.000000e+00 : f32
    %472 = vector.broadcast %cst_203 : f32 to vector<32x16xf32>
    %473 = arith.cmpf ogt, %471, %472 : vector<32x16xf32>
    %cst_204 = arith.constant 0.000000e+00 : f32
    %474 = vector.broadcast %cst_204 : f32 to vector<32x16xf32>
    %475 = arith.minimumf %471, %474 : vector<32x16xf32>
    %476 = math.exp %475 : vector<32x16xf32>
    %cst_205 = arith.constant 1.000000e+00 : f32
    %477 = vector.broadcast %cst_205 : f32 to vector<32x16xf32>
    %478 = arith.subf %476, %477 : vector<32x16xf32>
    %479 = arith.select %473, %471, %478 : vector<32x16xi1>, vector<32x16xf32>
    %c1304 = arith.constant 1304 : index
    %c0_206 = arith.constant 0 : index
    %480 = vector.load %arg2[%c1304, %c0_206] : memref<1312x32xbf16, #tpu.memory_space<vmem>>, vector<1x32xbf16>
    %c0_207 = arith.constant 0 : index
    %c11 = arith.constant 11 : index
    %481 = vector.load %arg3[%c0_207, %c11] : memref<32x12xf32, #tpu.memory_space<vmem>>, vector<1x1xf32>
    %482 = arith.truncf %479 : vector<32x16xf32> to vector<32x16xbf16>
    %cst_208 = arith.constant dense<0.000000e+00> : vector<1x16xf32>
    %483 = tpu.matmul %480, %482, %cst_208 {dimension_numbers = #tpu.dot_dimension_numbers<[1], [0], [0], [1], [0, 0, 1, 1], [], []>} : vector<1x32xbf16>, vector<32x16xbf16>, vector<1x16xf32> -> vector<1x16xf32>
    %484 = vector.broadcast %481 : vector<1x1xf32> to vector<1x16xf32>
    %485 = arith.addf %483, %484 : vector<1x16xf32>
    %486 = arith.truncf %485 : vector<1x16xf32> to vector<1x16xbf16>
    %cst_209 = arith.constant dense<0.000000e+00> : vector<1x16xf32>
    %487 = tpu.matmul %486, %0, %cst_209 {dimension_numbers = #tpu.dot_dimension_numbers<[1], [0], [0], [1], [0, 0, 1, 1], [], []>} : vector<1x16xbf16>, vector<16x16xbf16>, vector<1x16xf32> -> vector<1x16xf32>
    %488 = arith.negf %487 : vector<1x16xf32>
    %489 = math.exp %488 : vector<1x16xf32>
    %cst_210 = arith.constant 1.000000e+00 : f32
    %490 = vector.broadcast %cst_210 : f32 to vector<1x16xf32>
    %491 = arith.addf %490, %489 : vector<1x16xf32>
    %492 = arith.divf %490, %491 : vector<1x16xf32>
    %493 = vector.extract_strided_slice %40 {offsets = [1, 0, 0], sizes = [1, 3, 16], strides = [1, 1, 1]} : vector<2x3x16xf32> to vector<1x3x16xf32>
    %494 = vector.shape_cast %493 : vector<1x3x16xf32> to vector<3x16xf32>
    %495 = vector.extract_strided_slice %494 {offsets = [0, 0], sizes = [1, 16], strides = [1, 1]} : vector<3x16xf32> to vector<1x16xf32>
    %496 = vector.extract_strided_slice %494 {offsets = [1, 0], sizes = [1, 16], strides = [1, 1]} : vector<3x16xf32> to vector<1x16xf32>
    %497 = vector.extract_strided_slice %494 {offsets = [2, 0], sizes = [1, 16], strides = [1, 1]} : vector<3x16xf32> to vector<1x16xf32>
    %498 = arith.truncf %495 : vector<1x16xf32> to vector<1x16xbf16>
    %cst_211 = arith.constant dense<0.000000e+00> : vector<1x16xf32>
    %499 = tpu.matmul %498, %1, %cst_211 {dimension_numbers = #tpu.dot_dimension_numbers<[1], [0], [0], [1], [0, 0, 1, 1], [], []>} : vector<1x16xbf16>, vector<16x16xbf16>, vector<1x16xf32> -> vector<1x16xf32>
    %cst_212 = arith.constant 0.000000e+00 : f32
    %500 = vector.broadcast %cst_212 : f32 to vector<4x16xf32>
    %501 = tpu.concatenate %495, %496, %500 in 0 : vector<1x16xf32>, vector<1x16xf32>, vector<4x16xf32> -> vector<6x16xf32>
    %c0_213 = arith.constant 0 : index
    %c0_214 = arith.constant 0 : index
    %502 = vector.load %arg3[%c0_213, %c0_214] : memref<32x12xf32, #tpu.memory_space<vmem>>, vector<32x1xf32>
    %c0_215 = arith.constant 0 : index
    %c0_216 = arith.constant 0 : index
    %503 = vector.load %arg2[%c0_215, %c0_216] : memref<1312x32xbf16, #tpu.memory_space<vmem>>, vector<32x6xbf16>
    %c2_i32_217 = arith.constant 2 : i32
    %504 = tpu.dynamic_rotate %501 by %c2_i32_217 dim 1 : vector<6x16xf32>, i32 -> vector<6x16xf32>
    %cst_218 = arith.constant 0.000000e+00 : f32
    %505 = vector.shape_cast %11 : vector<1x16xi1> to vector<1x16xi1>
    %506 = vector.broadcast %505 : vector<1x16xi1> to vector<6x16xi1>
    %507 = vector.broadcast %cst_218 : f32 to vector<6x16xf32>
    %508 = arith.select %506, %504, %507 : vector<6x16xi1>, vector<6x16xf32>
    %509 = arith.truncf %508 : vector<6x16xf32> to vector<6x16xbf16>
    %cst_219 = arith.constant dense<0.000000e+00> : vector<32x16xf32>
    %510 = tpu.matmul %503, %509, %cst_219 {dimension_numbers = #tpu.dot_dimension_numbers<[1], [0], [0], [1], [0, 0, 1, 1], [], []>} : vector<32x6xbf16>, vector<6x16xbf16>, vector<32x16xf32> -> vector<32x16xf32>
    %511 = vector.broadcast %502 : vector<32x1xf32> to vector<32x16xf32>
    %512 = arith.addf %511, %510 : vector<32x16xf32>
    %c32_220 = arith.constant 32 : index
    %c0_221 = arith.constant 0 : index
    %513 = vector.load %arg2[%c32_220, %c0_221] : memref<1312x32xbf16, #tpu.memory_space<vmem>>, vector<32x6xbf16>
    %c1_i32_222 = arith.constant 1 : i32
    %514 = tpu.dynamic_rotate %501 by %c1_i32_222 dim 1 : vector<6x16xf32>, i32 -> vector<6x16xf32>
    %cst_223 = arith.constant 0.000000e+00 : f32
    %515 = vector.shape_cast %20 : vector<1x16xi1> to vector<1x16xi1>
    %516 = vector.broadcast %515 : vector<1x16xi1> to vector<6x16xi1>
    %517 = vector.broadcast %cst_223 : f32 to vector<6x16xf32>
    %518 = arith.select %516, %514, %517 : vector<6x16xi1>, vector<6x16xf32>
    %519 = arith.truncf %518 : vector<6x16xf32> to vector<6x16xbf16>
    %cst_224 = arith.constant dense<0.000000e+00> : vector<32x16xf32>
    %520 = tpu.matmul %513, %519, %cst_224 {dimension_numbers = #tpu.dot_dimension_numbers<[1], [0], [0], [1], [0, 0, 1, 1], [], []>} : vector<32x6xbf16>, vector<6x16xbf16>, vector<32x16xf32> -> vector<32x16xf32>
    %521 = arith.addf %512, %520 : vector<32x16xf32>
    %c64_225 = arith.constant 64 : index
    %c0_226 = arith.constant 0 : index
    %522 = vector.load %arg2[%c64_225, %c0_226] : memref<1312x32xbf16, #tpu.memory_space<vmem>>, vector<32x6xbf16>
    %523 = arith.truncf %501 : vector<6x16xf32> to vector<6x16xbf16>
    %cst_227 = arith.constant dense<0.000000e+00> : vector<32x16xf32>
    %524 = tpu.matmul %522, %523, %cst_227 {dimension_numbers = #tpu.dot_dimension_numbers<[1], [0], [0], [1], [0, 0, 1, 1], [], []>} : vector<32x6xbf16>, vector<6x16xbf16>, vector<32x16xf32> -> vector<32x16xf32>
    %525 = arith.addf %521, %524 : vector<32x16xf32>
    %c96_228 = arith.constant 96 : index
    %c0_229 = arith.constant 0 : index
    %526 = vector.load %arg2[%c96_228, %c0_229] : memref<1312x32xbf16, #tpu.memory_space<vmem>>, vector<32x6xbf16>
    %c15_i32_230 = arith.constant 15 : i32
    %527 = tpu.dynamic_rotate %501 by %c15_i32_230 dim 1 : vector<6x16xf32>, i32 -> vector<6x16xf32>
    %cst_231 = arith.constant 0.000000e+00 : f32
    %528 = vector.shape_cast %29 : vector<1x16xi1> to vector<1x16xi1>
    %529 = vector.broadcast %528 : vector<1x16xi1> to vector<6x16xi1>
    %530 = vector.broadcast %cst_231 : f32 to vector<6x16xf32>
    %531 = arith.select %529, %527, %530 : vector<6x16xi1>, vector<6x16xf32>
    %532 = arith.truncf %531 : vector<6x16xf32> to vector<6x16xbf16>
    %cst_232 = arith.constant dense<0.000000e+00> : vector<32x16xf32>
    %533 = tpu.matmul %526, %532, %cst_232 {dimension_numbers = #tpu.dot_dimension_numbers<[1], [0], [0], [1], [0, 0, 1, 1], [], []>} : vector<32x6xbf16>, vector<6x16xbf16>, vector<32x16xf32> -> vector<32x16xf32>
    %534 = arith.addf %525, %533 : vector<32x16xf32>
    %c128_233 = arith.constant 128 : index
    %c0_234 = arith.constant 0 : index
    %535 = vector.load %arg2[%c128_233, %c0_234] : memref<1312x32xbf16, #tpu.memory_space<vmem>>, vector<32x6xbf16>
    %c14_i32_235 = arith.constant 14 : i32
    %536 = tpu.dynamic_rotate %501 by %c14_i32_235 dim 1 : vector<6x16xf32>, i32 -> vector<6x16xf32>
    %cst_236 = arith.constant 0.000000e+00 : f32
    %537 = vector.shape_cast %38 : vector<1x16xi1> to vector<1x16xi1>
    %538 = vector.broadcast %537 : vector<1x16xi1> to vector<6x16xi1>
    %539 = vector.broadcast %cst_236 : f32 to vector<6x16xf32>
    %540 = arith.select %538, %536, %539 : vector<6x16xi1>, vector<6x16xf32>
    %541 = arith.truncf %540 : vector<6x16xf32> to vector<6x16xbf16>
    %cst_237 = arith.constant dense<0.000000e+00> : vector<32x16xf32>
    %542 = tpu.matmul %535, %541, %cst_237 {dimension_numbers = #tpu.dot_dimension_numbers<[1], [0], [0], [1], [0, 0, 1, 1], [], []>} : vector<32x6xbf16>, vector<6x16xbf16>, vector<32x16xf32> -> vector<32x16xf32>
    %543 = arith.addf %534, %542 : vector<32x16xf32>
    %cst_238 = arith.constant 0.000000e+00 : f32
    %544 = vector.broadcast %cst_238 : f32 to vector<32x16xf32>
    %545 = arith.cmpf ogt, %543, %544 : vector<32x16xf32>
    %cst_239 = arith.constant 0.000000e+00 : f32
    %546 = vector.broadcast %cst_239 : f32 to vector<32x16xf32>
    %547 = arith.minimumf %543, %546 : vector<32x16xf32>
    %548 = math.exp %547 : vector<32x16xf32>
    %cst_240 = arith.constant 1.000000e+00 : f32
    %549 = vector.broadcast %cst_240 : f32 to vector<32x16xf32>
    %550 = arith.subf %548, %549 : vector<32x16xf32>
    %551 = arith.select %545, %543, %550 : vector<32x16xi1>, vector<32x16xf32>
    %c0_241 = arith.constant 0 : index
    %c1_242 = arith.constant 1 : index
    %552 = vector.load %arg3[%c0_241, %c1_242] : memref<32x12xf32, #tpu.memory_space<vmem>>, vector<32x1xf32>
    %c160_243 = arith.constant 160 : index
    %c0_244 = arith.constant 0 : index
    %553 = vector.load %arg2[%c160_243, %c0_244] : memref<1312x32xbf16, #tpu.memory_space<vmem>>, vector<32x32xbf16>
    %c2_i32_245 = arith.constant 2 : i32
    %554 = tpu.dynamic_rotate %551 by %c2_i32_245 dim 1 : vector<32x16xf32>, i32 -> vector<32x16xf32>
    %cst_246 = arith.constant 0.000000e+00 : f32
    %555 = vector.shape_cast %11 : vector<1x16xi1> to vector<1x16xi1>
    %556 = vector.broadcast %555 : vector<1x16xi1> to vector<32x16xi1>
    %557 = vector.broadcast %cst_246 : f32 to vector<32x16xf32>
    %558 = arith.select %556, %554, %557 : vector<32x16xi1>, vector<32x16xf32>
    %559 = arith.truncf %558 : vector<32x16xf32> to vector<32x16xbf16>
    %cst_247 = arith.constant dense<0.000000e+00> : vector<32x16xf32>
    %560 = tpu.matmul %553, %559, %cst_247 {dimension_numbers = #tpu.dot_dimension_numbers<[1], [0], [0], [1], [0, 0, 1, 1], [], []>} : vector<32x32xbf16>, vector<32x16xbf16>, vector<32x16xf32> -> vector<32x16xf32>
    %561 = vector.broadcast %552 : vector<32x1xf32> to vector<32x16xf32>
    %562 = arith.addf %561, %560 : vector<32x16xf32>
    %c192_248 = arith.constant 192 : index
    %c0_249 = arith.constant 0 : index
    %563 = vector.load %arg2[%c192_248, %c0_249] : memref<1312x32xbf16, #tpu.memory_space<vmem>>, vector<32x32xbf16>
    %c1_i32_250 = arith.constant 1 : i32
    %564 = tpu.dynamic_rotate %551 by %c1_i32_250 dim 1 : vector<32x16xf32>, i32 -> vector<32x16xf32>
    %cst_251 = arith.constant 0.000000e+00 : f32
    %565 = vector.shape_cast %20 : vector<1x16xi1> to vector<1x16xi1>
    %566 = vector.broadcast %565 : vector<1x16xi1> to vector<32x16xi1>
    %567 = vector.broadcast %cst_251 : f32 to vector<32x16xf32>
    %568 = arith.select %566, %564, %567 : vector<32x16xi1>, vector<32x16xf32>
    %569 = arith.truncf %568 : vector<32x16xf32> to vector<32x16xbf16>
    %cst_252 = arith.constant dense<0.000000e+00> : vector<32x16xf32>
    %570 = tpu.matmul %563, %569, %cst_252 {dimension_numbers = #tpu.dot_dimension_numbers<[1], [0], [0], [1], [0, 0, 1, 1], [], []>} : vector<32x32xbf16>, vector<32x16xbf16>, vector<32x16xf32> -> vector<32x16xf32>
    %571 = arith.addf %562, %570 : vector<32x16xf32>
    %c224_253 = arith.constant 224 : index
    %c0_254 = arith.constant 0 : index
    %572 = vector.load %arg2[%c224_253, %c0_254] : memref<1312x32xbf16, #tpu.memory_space<vmem>>, vector<32x32xbf16>
    %573 = arith.truncf %551 : vector<32x16xf32> to vector<32x16xbf16>
    %cst_255 = arith.constant dense<0.000000e+00> : vector<32x16xf32>
    %574 = tpu.matmul %572, %573, %cst_255 {dimension_numbers = #tpu.dot_dimension_numbers<[1], [0], [0], [1], [0, 0, 1, 1], [], []>} : vector<32x32xbf16>, vector<32x16xbf16>, vector<32x16xf32> -> vector<32x16xf32>
    %575 = arith.addf %571, %574 : vector<32x16xf32>
    %c256_256 = arith.constant 256 : index
    %c0_257 = arith.constant 0 : index
    %576 = vector.load %arg2[%c256_256, %c0_257] : memref<1312x32xbf16, #tpu.memory_space<vmem>>, vector<32x32xbf16>
    %c15_i32_258 = arith.constant 15 : i32
    %577 = tpu.dynamic_rotate %551 by %c15_i32_258 dim 1 : vector<32x16xf32>, i32 -> vector<32x16xf32>
    %cst_259 = arith.constant 0.000000e+00 : f32
    %578 = vector.shape_cast %29 : vector<1x16xi1> to vector<1x16xi1>
    %579 = vector.broadcast %578 : vector<1x16xi1> to vector<32x16xi1>
    %580 = vector.broadcast %cst_259 : f32 to vector<32x16xf32>
    %581 = arith.select %579, %577, %580 : vector<32x16xi1>, vector<32x16xf32>
    %582 = arith.truncf %581 : vector<32x16xf32> to vector<32x16xbf16>
    %cst_260 = arith.constant dense<0.000000e+00> : vector<32x16xf32>
    %583 = tpu.matmul %576, %582, %cst_260 {dimension_numbers = #tpu.dot_dimension_numbers<[1], [0], [0], [1], [0, 0, 1, 1], [], []>} : vector<32x32xbf16>, vector<32x16xbf16>, vector<32x16xf32> -> vector<32x16xf32>
    %584 = arith.addf %575, %583 : vector<32x16xf32>
    %c288_261 = arith.constant 288 : index
    %c0_262 = arith.constant 0 : index
    %585 = vector.load %arg2[%c288_261, %c0_262] : memref<1312x32xbf16, #tpu.memory_space<vmem>>, vector<32x32xbf16>
    %c14_i32_263 = arith.constant 14 : i32
    %586 = tpu.dynamic_rotate %551 by %c14_i32_263 dim 1 : vector<32x16xf32>, i32 -> vector<32x16xf32>
    %cst_264 = arith.constant 0.000000e+00 : f32
    %587 = vector.shape_cast %38 : vector<1x16xi1> to vector<1x16xi1>
    %588 = vector.broadcast %587 : vector<1x16xi1> to vector<32x16xi1>
    %589 = vector.broadcast %cst_264 : f32 to vector<32x16xf32>
    %590 = arith.select %588, %586, %589 : vector<32x16xi1>, vector<32x16xf32>
    %591 = arith.truncf %590 : vector<32x16xf32> to vector<32x16xbf16>
    %cst_265 = arith.constant dense<0.000000e+00> : vector<32x16xf32>
    %592 = tpu.matmul %585, %591, %cst_265 {dimension_numbers = #tpu.dot_dimension_numbers<[1], [0], [0], [1], [0, 0, 1, 1], [], []>} : vector<32x32xbf16>, vector<32x16xbf16>, vector<32x16xf32> -> vector<32x16xf32>
    %593 = arith.addf %584, %592 : vector<32x16xf32>
    %cst_266 = arith.constant 0.000000e+00 : f32
    %594 = vector.broadcast %cst_266 : f32 to vector<32x16xf32>
    %595 = arith.cmpf ogt, %593, %594 : vector<32x16xf32>
    %cst_267 = arith.constant 0.000000e+00 : f32
    %596 = vector.broadcast %cst_267 : f32 to vector<32x16xf32>
    %597 = arith.minimumf %593, %596 : vector<32x16xf32>
    %598 = math.exp %597 : vector<32x16xf32>
    %cst_268 = arith.constant 1.000000e+00 : f32
    %599 = vector.broadcast %cst_268 : f32 to vector<32x16xf32>
    %600 = arith.subf %598, %599 : vector<32x16xf32>
    %601 = arith.select %595, %593, %600 : vector<32x16xi1>, vector<32x16xf32>
    %c320_269 = arith.constant 320 : index
    %c0_270 = arith.constant 0 : index
    %602 = vector.load %arg2[%c320_269, %c0_270] : memref<1312x32xbf16, #tpu.memory_space<vmem>>, vector<4x32xbf16>
    %c0_271 = arith.constant 0 : index
    %c2_272 = arith.constant 2 : index
    %603 = vector.load %arg3[%c0_271, %c2_272] : memref<32x12xf32, #tpu.memory_space<vmem>>, vector<4x1xf32>
    %604 = arith.truncf %601 : vector<32x16xf32> to vector<32x16xbf16>
    %cst_273 = arith.constant dense<0.000000e+00> : vector<4x16xf32>
    %605 = tpu.matmul %602, %604, %cst_273 {dimension_numbers = #tpu.dot_dimension_numbers<[1], [0], [0], [1], [0, 0, 1, 1], [], []>} : vector<4x32xbf16>, vector<32x16xbf16>, vector<4x16xf32> -> vector<4x16xf32>
    %606 = vector.broadcast %603 : vector<4x1xf32> to vector<4x16xf32>
    %607 = arith.addf %605, %606 : vector<4x16xf32>
    %608 = arith.subf %607, %500 : vector<4x16xf32>
    %609 = arith.truncf %608 : vector<4x16xf32> to vector<4x16xbf16>
    %cst_274 = arith.constant dense<0.000000e+00> : vector<4x16xf32>
    %610 = tpu.matmul %609, %1, %cst_274 {dimension_numbers = #tpu.dot_dimension_numbers<[1], [0], [0], [1], [0, 0, 1, 1], [], []>} : vector<4x16xbf16>, vector<16x16xbf16>, vector<4x16xf32> -> vector<4x16xf32>
    %611 = tpu.concatenate %499, %497, %610 in 0 : vector<1x16xf32>, vector<1x16xf32>, vector<4x16xf32> -> vector<6x16xf32>
    %c0_275 = arith.constant 0 : index
    %c3_276 = arith.constant 3 : index
    %612 = vector.load %arg3[%c0_275, %c3_276] : memref<32x12xf32, #tpu.memory_space<vmem>>, vector<32x1xf32>
    %c328_277 = arith.constant 328 : index
    %c0_278 = arith.constant 0 : index
    %613 = vector.load %arg2[%c328_277, %c0_278] : memref<1312x32xbf16, #tpu.memory_space<vmem>>, vector<32x6xbf16>
    %c2_i32_279 = arith.constant 2 : i32
    %614 = tpu.dynamic_rotate %611 by %c2_i32_279 dim 1 : vector<6x16xf32>, i32 -> vector<6x16xf32>
    %cst_280 = arith.constant 0.000000e+00 : f32
    %615 = vector.shape_cast %11 : vector<1x16xi1> to vector<1x16xi1>
    %616 = vector.broadcast %615 : vector<1x16xi1> to vector<6x16xi1>
    %617 = vector.broadcast %cst_280 : f32 to vector<6x16xf32>
    %618 = arith.select %616, %614, %617 : vector<6x16xi1>, vector<6x16xf32>
    %619 = arith.truncf %618 : vector<6x16xf32> to vector<6x16xbf16>
    %cst_281 = arith.constant dense<0.000000e+00> : vector<32x16xf32>
    %620 = tpu.matmul %613, %619, %cst_281 {dimension_numbers = #tpu.dot_dimension_numbers<[1], [0], [0], [1], [0, 0, 1, 1], [], []>} : vector<32x6xbf16>, vector<6x16xbf16>, vector<32x16xf32> -> vector<32x16xf32>
    %621 = vector.broadcast %612 : vector<32x1xf32> to vector<32x16xf32>
    %622 = arith.addf %621, %620 : vector<32x16xf32>
    %c360_282 = arith.constant 360 : index
    %c0_283 = arith.constant 0 : index
    %623 = vector.load %arg2[%c360_282, %c0_283] : memref<1312x32xbf16, #tpu.memory_space<vmem>>, vector<32x6xbf16>
    %c1_i32_284 = arith.constant 1 : i32
    %624 = tpu.dynamic_rotate %611 by %c1_i32_284 dim 1 : vector<6x16xf32>, i32 -> vector<6x16xf32>
    %cst_285 = arith.constant 0.000000e+00 : f32
    %625 = vector.shape_cast %20 : vector<1x16xi1> to vector<1x16xi1>
    %626 = vector.broadcast %625 : vector<1x16xi1> to vector<6x16xi1>
    %627 = vector.broadcast %cst_285 : f32 to vector<6x16xf32>
    %628 = arith.select %626, %624, %627 : vector<6x16xi1>, vector<6x16xf32>
    %629 = arith.truncf %628 : vector<6x16xf32> to vector<6x16xbf16>
    %cst_286 = arith.constant dense<0.000000e+00> : vector<32x16xf32>
    %630 = tpu.matmul %623, %629, %cst_286 {dimension_numbers = #tpu.dot_dimension_numbers<[1], [0], [0], [1], [0, 0, 1, 1], [], []>} : vector<32x6xbf16>, vector<6x16xbf16>, vector<32x16xf32> -> vector<32x16xf32>
    %631 = arith.addf %622, %630 : vector<32x16xf32>
    %c392_287 = arith.constant 392 : index
    %c0_288 = arith.constant 0 : index
    %632 = vector.load %arg2[%c392_287, %c0_288] : memref<1312x32xbf16, #tpu.memory_space<vmem>>, vector<32x6xbf16>
    %633 = arith.truncf %611 : vector<6x16xf32> to vector<6x16xbf16>
    %cst_289 = arith.constant dense<0.000000e+00> : vector<32x16xf32>
    %634 = tpu.matmul %632, %633, %cst_289 {dimension_numbers = #tpu.dot_dimension_numbers<[1], [0], [0], [1], [0, 0, 1, 1], [], []>} : vector<32x6xbf16>, vector<6x16xbf16>, vector<32x16xf32> -> vector<32x16xf32>
    %635 = arith.addf %631, %634 : vector<32x16xf32>
    %c424_290 = arith.constant 424 : index
    %c0_291 = arith.constant 0 : index
    %636 = vector.load %arg2[%c424_290, %c0_291] : memref<1312x32xbf16, #tpu.memory_space<vmem>>, vector<32x6xbf16>
    %c15_i32_292 = arith.constant 15 : i32
    %637 = tpu.dynamic_rotate %611 by %c15_i32_292 dim 1 : vector<6x16xf32>, i32 -> vector<6x16xf32>
    %cst_293 = arith.constant 0.000000e+00 : f32
    %638 = vector.shape_cast %29 : vector<1x16xi1> to vector<1x16xi1>
    %639 = vector.broadcast %638 : vector<1x16xi1> to vector<6x16xi1>
    %640 = vector.broadcast %cst_293 : f32 to vector<6x16xf32>
    %641 = arith.select %639, %637, %640 : vector<6x16xi1>, vector<6x16xf32>
    %642 = arith.truncf %641 : vector<6x16xf32> to vector<6x16xbf16>
    %cst_294 = arith.constant dense<0.000000e+00> : vector<32x16xf32>
    %643 = tpu.matmul %636, %642, %cst_294 {dimension_numbers = #tpu.dot_dimension_numbers<[1], [0], [0], [1], [0, 0, 1, 1], [], []>} : vector<32x6xbf16>, vector<6x16xbf16>, vector<32x16xf32> -> vector<32x16xf32>
    %644 = arith.addf %635, %643 : vector<32x16xf32>
    %c456_295 = arith.constant 456 : index
    %c0_296 = arith.constant 0 : index
    %645 = vector.load %arg2[%c456_295, %c0_296] : memref<1312x32xbf16, #tpu.memory_space<vmem>>, vector<32x6xbf16>
    %c14_i32_297 = arith.constant 14 : i32
    %646 = tpu.dynamic_rotate %611 by %c14_i32_297 dim 1 : vector<6x16xf32>, i32 -> vector<6x16xf32>
    %cst_298 = arith.constant 0.000000e+00 : f32
    %647 = vector.shape_cast %38 : vector<1x16xi1> to vector<1x16xi1>
    %648 = vector.broadcast %647 : vector<1x16xi1> to vector<6x16xi1>
    %649 = vector.broadcast %cst_298 : f32 to vector<6x16xf32>
    %650 = arith.select %648, %646, %649 : vector<6x16xi1>, vector<6x16xf32>
    %651 = arith.truncf %650 : vector<6x16xf32> to vector<6x16xbf16>
    %cst_299 = arith.constant dense<0.000000e+00> : vector<32x16xf32>
    %652 = tpu.matmul %645, %651, %cst_299 {dimension_numbers = #tpu.dot_dimension_numbers<[1], [0], [0], [1], [0, 0, 1, 1], [], []>} : vector<32x6xbf16>, vector<6x16xbf16>, vector<32x16xf32> -> vector<32x16xf32>
    %653 = arith.addf %644, %652 : vector<32x16xf32>
    %cst_300 = arith.constant 0.000000e+00 : f32
    %654 = vector.broadcast %cst_300 : f32 to vector<32x16xf32>
    %655 = arith.cmpf ogt, %653, %654 : vector<32x16xf32>
    %cst_301 = arith.constant 0.000000e+00 : f32
    %656 = vector.broadcast %cst_301 : f32 to vector<32x16xf32>
    %657 = arith.minimumf %653, %656 : vector<32x16xf32>
    %658 = math.exp %657 : vector<32x16xf32>
    %cst_302 = arith.constant 1.000000e+00 : f32
    %659 = vector.broadcast %cst_302 : f32 to vector<32x16xf32>
    %660 = arith.subf %658, %659 : vector<32x16xf32>
    %661 = arith.select %655, %653, %660 : vector<32x16xi1>, vector<32x16xf32>
    %c0_303 = arith.constant 0 : index
    %c4_304 = arith.constant 4 : index
    %662 = vector.load %arg3[%c0_303, %c4_304] : memref<32x12xf32, #tpu.memory_space<vmem>>, vector<32x1xf32>
    %c488_305 = arith.constant 488 : index
    %c0_306 = arith.constant 0 : index
    %663 = vector.load %arg2[%c488_305, %c0_306] : memref<1312x32xbf16, #tpu.memory_space<vmem>>, vector<32x32xbf16>
    %c2_i32_307 = arith.constant 2 : i32
    %664 = tpu.dynamic_rotate %661 by %c2_i32_307 dim 1 : vector<32x16xf32>, i32 -> vector<32x16xf32>
    %cst_308 = arith.constant 0.000000e+00 : f32
    %665 = vector.shape_cast %11 : vector<1x16xi1> to vector<1x16xi1>
    %666 = vector.broadcast %665 : vector<1x16xi1> to vector<32x16xi1>
    %667 = vector.broadcast %cst_308 : f32 to vector<32x16xf32>
    %668 = arith.select %666, %664, %667 : vector<32x16xi1>, vector<32x16xf32>
    %669 = arith.truncf %668 : vector<32x16xf32> to vector<32x16xbf16>
    %cst_309 = arith.constant dense<0.000000e+00> : vector<32x16xf32>
    %670 = tpu.matmul %663, %669, %cst_309 {dimension_numbers = #tpu.dot_dimension_numbers<[1], [0], [0], [1], [0, 0, 1, 1], [], []>} : vector<32x32xbf16>, vector<32x16xbf16>, vector<32x16xf32> -> vector<32x16xf32>
    %671 = vector.broadcast %662 : vector<32x1xf32> to vector<32x16xf32>
    %672 = arith.addf %671, %670 : vector<32x16xf32>
    %c520_310 = arith.constant 520 : index
    %c0_311 = arith.constant 0 : index
    %673 = vector.load %arg2[%c520_310, %c0_311] : memref<1312x32xbf16, #tpu.memory_space<vmem>>, vector<32x32xbf16>
    %c1_i32_312 = arith.constant 1 : i32
    %674 = tpu.dynamic_rotate %661 by %c1_i32_312 dim 1 : vector<32x16xf32>, i32 -> vector<32x16xf32>
    %cst_313 = arith.constant 0.000000e+00 : f32
    %675 = vector.shape_cast %20 : vector<1x16xi1> to vector<1x16xi1>
    %676 = vector.broadcast %675 : vector<1x16xi1> to vector<32x16xi1>
    %677 = vector.broadcast %cst_313 : f32 to vector<32x16xf32>
    %678 = arith.select %676, %674, %677 : vector<32x16xi1>, vector<32x16xf32>
    %679 = arith.truncf %678 : vector<32x16xf32> to vector<32x16xbf16>
    %cst_314 = arith.constant dense<0.000000e+00> : vector<32x16xf32>
    %680 = tpu.matmul %673, %679, %cst_314 {dimension_numbers = #tpu.dot_dimension_numbers<[1], [0], [0], [1], [0, 0, 1, 1], [], []>} : vector<32x32xbf16>, vector<32x16xbf16>, vector<32x16xf32> -> vector<32x16xf32>
    %681 = arith.addf %672, %680 : vector<32x16xf32>
    %c552_315 = arith.constant 552 : index
    %c0_316 = arith.constant 0 : index
    %682 = vector.load %arg2[%c552_315, %c0_316] : memref<1312x32xbf16, #tpu.memory_space<vmem>>, vector<32x32xbf16>
    %683 = arith.truncf %661 : vector<32x16xf32> to vector<32x16xbf16>
    %cst_317 = arith.constant dense<0.000000e+00> : vector<32x16xf32>
    %684 = tpu.matmul %682, %683, %cst_317 {dimension_numbers = #tpu.dot_dimension_numbers<[1], [0], [0], [1], [0, 0, 1, 1], [], []>} : vector<32x32xbf16>, vector<32x16xbf16>, vector<32x16xf32> -> vector<32x16xf32>
    %685 = arith.addf %681, %684 : vector<32x16xf32>
    %c584_318 = arith.constant 584 : index
    %c0_319 = arith.constant 0 : index
    %686 = vector.load %arg2[%c584_318, %c0_319] : memref<1312x32xbf16, #tpu.memory_space<vmem>>, vector<32x32xbf16>
    %c15_i32_320 = arith.constant 15 : i32
    %687 = tpu.dynamic_rotate %661 by %c15_i32_320 dim 1 : vector<32x16xf32>, i32 -> vector<32x16xf32>
    %cst_321 = arith.constant 0.000000e+00 : f32
    %688 = vector.shape_cast %29 : vector<1x16xi1> to vector<1x16xi1>
    %689 = vector.broadcast %688 : vector<1x16xi1> to vector<32x16xi1>
    %690 = vector.broadcast %cst_321 : f32 to vector<32x16xf32>
    %691 = arith.select %689, %687, %690 : vector<32x16xi1>, vector<32x16xf32>
    %692 = arith.truncf %691 : vector<32x16xf32> to vector<32x16xbf16>
    %cst_322 = arith.constant dense<0.000000e+00> : vector<32x16xf32>
    %693 = tpu.matmul %686, %692, %cst_322 {dimension_numbers = #tpu.dot_dimension_numbers<[1], [0], [0], [1], [0, 0, 1, 1], [], []>} : vector<32x32xbf16>, vector<32x16xbf16>, vector<32x16xf32> -> vector<32x16xf32>
    %694 = arith.addf %685, %693 : vector<32x16xf32>
    %c616_323 = arith.constant 616 : index
    %c0_324 = arith.constant 0 : index
    %695 = vector.load %arg2[%c616_323, %c0_324] : memref<1312x32xbf16, #tpu.memory_space<vmem>>, vector<32x32xbf16>
    %c14_i32_325 = arith.constant 14 : i32
    %696 = tpu.dynamic_rotate %661 by %c14_i32_325 dim 1 : vector<32x16xf32>, i32 -> vector<32x16xf32>
    %cst_326 = arith.constant 0.000000e+00 : f32
    %697 = vector.shape_cast %38 : vector<1x16xi1> to vector<1x16xi1>
    %698 = vector.broadcast %697 : vector<1x16xi1> to vector<32x16xi1>
    %699 = vector.broadcast %cst_326 : f32 to vector<32x16xf32>
    %700 = arith.select %698, %696, %699 : vector<32x16xi1>, vector<32x16xf32>
    %701 = arith.truncf %700 : vector<32x16xf32> to vector<32x16xbf16>
    %cst_327 = arith.constant dense<0.000000e+00> : vector<32x16xf32>
    %702 = tpu.matmul %695, %701, %cst_327 {dimension_numbers = #tpu.dot_dimension_numbers<[1], [0], [0], [1], [0, 0, 1, 1], [], []>} : vector<32x32xbf16>, vector<32x16xbf16>, vector<32x16xf32> -> vector<32x16xf32>
    %703 = arith.addf %694, %702 : vector<32x16xf32>
    %cst_328 = arith.constant 0.000000e+00 : f32
    %704 = vector.broadcast %cst_328 : f32 to vector<32x16xf32>
    %705 = arith.cmpf ogt, %703, %704 : vector<32x16xf32>
    %cst_329 = arith.constant 0.000000e+00 : f32
    %706 = vector.broadcast %cst_329 : f32 to vector<32x16xf32>
    %707 = arith.minimumf %703, %706 : vector<32x16xf32>
    %708 = math.exp %707 : vector<32x16xf32>
    %cst_330 = arith.constant 1.000000e+00 : f32
    %709 = vector.broadcast %cst_330 : f32 to vector<32x16xf32>
    %710 = arith.subf %708, %709 : vector<32x16xf32>
    %711 = arith.select %705, %703, %710 : vector<32x16xi1>, vector<32x16xf32>
    %c648_331 = arith.constant 648 : index
    %c0_332 = arith.constant 0 : index
    %712 = vector.load %arg2[%c648_331, %c0_332] : memref<1312x32xbf16, #tpu.memory_space<vmem>>, vector<4x32xbf16>
    %c0_333 = arith.constant 0 : index
    %c5_334 = arith.constant 5 : index
    %713 = vector.load %arg3[%c0_333, %c5_334] : memref<32x12xf32, #tpu.memory_space<vmem>>, vector<4x1xf32>
    %714 = arith.truncf %711 : vector<32x16xf32> to vector<32x16xbf16>
    %cst_335 = arith.constant dense<0.000000e+00> : vector<4x16xf32>
    %715 = tpu.matmul %712, %714, %cst_335 {dimension_numbers = #tpu.dot_dimension_numbers<[1], [0], [0], [1], [0, 0, 1, 1], [], []>} : vector<4x32xbf16>, vector<32x16xbf16>, vector<4x16xf32> -> vector<4x16xf32>
    %716 = vector.broadcast %713 : vector<4x1xf32> to vector<4x16xf32>
    %717 = arith.addf %715, %716 : vector<4x16xf32>
    %718 = arith.subf %717, %610 : vector<4x16xf32>
    %719 = arith.truncf %718 : vector<4x16xf32> to vector<4x16xbf16>
    %cst_336 = arith.constant dense<0.000000e+00> : vector<4x16xf32>
    %720 = tpu.matmul %719, %0, %cst_336 {dimension_numbers = #tpu.dot_dimension_numbers<[1], [0], [0], [1], [0, 0, 1, 1], [], []>} : vector<4x16xbf16>, vector<16x16xbf16>, vector<4x16xf32> -> vector<4x16xf32>
    %721 = tpu.concatenate %495, %496, %720 in 0 : vector<1x16xf32>, vector<1x16xf32>, vector<4x16xf32> -> vector<6x16xf32>
    %c0_337 = arith.constant 0 : index
    %c6_338 = arith.constant 6 : index
    %722 = vector.load %arg3[%c0_337, %c6_338] : memref<32x12xf32, #tpu.memory_space<vmem>>, vector<32x1xf32>
    %c656_339 = arith.constant 656 : index
    %c0_340 = arith.constant 0 : index
    %723 = vector.load %arg2[%c656_339, %c0_340] : memref<1312x32xbf16, #tpu.memory_space<vmem>>, vector<32x6xbf16>
    %c2_i32_341 = arith.constant 2 : i32
    %724 = tpu.dynamic_rotate %721 by %c2_i32_341 dim 1 : vector<6x16xf32>, i32 -> vector<6x16xf32>
    %cst_342 = arith.constant 0.000000e+00 : f32
    %725 = vector.shape_cast %11 : vector<1x16xi1> to vector<1x16xi1>
    %726 = vector.broadcast %725 : vector<1x16xi1> to vector<6x16xi1>
    %727 = vector.broadcast %cst_342 : f32 to vector<6x16xf32>
    %728 = arith.select %726, %724, %727 : vector<6x16xi1>, vector<6x16xf32>
    %729 = arith.truncf %728 : vector<6x16xf32> to vector<6x16xbf16>
    %cst_343 = arith.constant dense<0.000000e+00> : vector<32x16xf32>
    %730 = tpu.matmul %723, %729, %cst_343 {dimension_numbers = #tpu.dot_dimension_numbers<[1], [0], [0], [1], [0, 0, 1, 1], [], []>} : vector<32x6xbf16>, vector<6x16xbf16>, vector<32x16xf32> -> vector<32x16xf32>
    %731 = vector.broadcast %722 : vector<32x1xf32> to vector<32x16xf32>
    %732 = arith.addf %731, %730 : vector<32x16xf32>
    %c688_344 = arith.constant 688 : index
    %c0_345 = arith.constant 0 : index
    %733 = vector.load %arg2[%c688_344, %c0_345] : memref<1312x32xbf16, #tpu.memory_space<vmem>>, vector<32x6xbf16>
    %c1_i32_346 = arith.constant 1 : i32
    %734 = tpu.dynamic_rotate %721 by %c1_i32_346 dim 1 : vector<6x16xf32>, i32 -> vector<6x16xf32>
    %cst_347 = arith.constant 0.000000e+00 : f32
    %735 = vector.shape_cast %20 : vector<1x16xi1> to vector<1x16xi1>
    %736 = vector.broadcast %735 : vector<1x16xi1> to vector<6x16xi1>
    %737 = vector.broadcast %cst_347 : f32 to vector<6x16xf32>
    %738 = arith.select %736, %734, %737 : vector<6x16xi1>, vector<6x16xf32>
    %739 = arith.truncf %738 : vector<6x16xf32> to vector<6x16xbf16>
    %cst_348 = arith.constant dense<0.000000e+00> : vector<32x16xf32>
    %740 = tpu.matmul %733, %739, %cst_348 {dimension_numbers = #tpu.dot_dimension_numbers<[1], [0], [0], [1], [0, 0, 1, 1], [], []>} : vector<32x6xbf16>, vector<6x16xbf16>, vector<32x16xf32> -> vector<32x16xf32>
    %741 = arith.addf %732, %740 : vector<32x16xf32>
    %c720_349 = arith.constant 720 : index
    %c0_350 = arith.constant 0 : index
    %742 = vector.load %arg2[%c720_349, %c0_350] : memref<1312x32xbf16, #tpu.memory_space<vmem>>, vector<32x6xbf16>
    %743 = arith.truncf %721 : vector<6x16xf32> to vector<6x16xbf16>
    %cst_351 = arith.constant dense<0.000000e+00> : vector<32x16xf32>
    %744 = tpu.matmul %742, %743, %cst_351 {dimension_numbers = #tpu.dot_dimension_numbers<[1], [0], [0], [1], [0, 0, 1, 1], [], []>} : vector<32x6xbf16>, vector<6x16xbf16>, vector<32x16xf32> -> vector<32x16xf32>
    %745 = arith.addf %741, %744 : vector<32x16xf32>
    %c752_352 = arith.constant 752 : index
    %c0_353 = arith.constant 0 : index
    %746 = vector.load %arg2[%c752_352, %c0_353] : memref<1312x32xbf16, #tpu.memory_space<vmem>>, vector<32x6xbf16>
    %c15_i32_354 = arith.constant 15 : i32
    %747 = tpu.dynamic_rotate %721 by %c15_i32_354 dim 1 : vector<6x16xf32>, i32 -> vector<6x16xf32>
    %cst_355 = arith.constant 0.000000e+00 : f32
    %748 = vector.shape_cast %29 : vector<1x16xi1> to vector<1x16xi1>
    %749 = vector.broadcast %748 : vector<1x16xi1> to vector<6x16xi1>
    %750 = vector.broadcast %cst_355 : f32 to vector<6x16xf32>
    %751 = arith.select %749, %747, %750 : vector<6x16xi1>, vector<6x16xf32>
    %752 = arith.truncf %751 : vector<6x16xf32> to vector<6x16xbf16>
    %cst_356 = arith.constant dense<0.000000e+00> : vector<32x16xf32>
    %753 = tpu.matmul %746, %752, %cst_356 {dimension_numbers = #tpu.dot_dimension_numbers<[1], [0], [0], [1], [0, 0, 1, 1], [], []>} : vector<32x6xbf16>, vector<6x16xbf16>, vector<32x16xf32> -> vector<32x16xf32>
    %754 = arith.addf %745, %753 : vector<32x16xf32>
    %c784_357 = arith.constant 784 : index
    %c0_358 = arith.constant 0 : index
    %755 = vector.load %arg2[%c784_357, %c0_358] : memref<1312x32xbf16, #tpu.memory_space<vmem>>, vector<32x6xbf16>
    %c14_i32_359 = arith.constant 14 : i32
    %756 = tpu.dynamic_rotate %721 by %c14_i32_359 dim 1 : vector<6x16xf32>, i32 -> vector<6x16xf32>
    %cst_360 = arith.constant 0.000000e+00 : f32
    %757 = vector.shape_cast %38 : vector<1x16xi1> to vector<1x16xi1>
    %758 = vector.broadcast %757 : vector<1x16xi1> to vector<6x16xi1>
    %759 = vector.broadcast %cst_360 : f32 to vector<6x16xf32>
    %760 = arith.select %758, %756, %759 : vector<6x16xi1>, vector<6x16xf32>
    %761 = arith.truncf %760 : vector<6x16xf32> to vector<6x16xbf16>
    %cst_361 = arith.constant dense<0.000000e+00> : vector<32x16xf32>
    %762 = tpu.matmul %755, %761, %cst_361 {dimension_numbers = #tpu.dot_dimension_numbers<[1], [0], [0], [1], [0, 0, 1, 1], [], []>} : vector<32x6xbf16>, vector<6x16xbf16>, vector<32x16xf32> -> vector<32x16xf32>
    %763 = arith.addf %754, %762 : vector<32x16xf32>
    %cst_362 = arith.constant 0.000000e+00 : f32
    %764 = vector.broadcast %cst_362 : f32 to vector<32x16xf32>
    %765 = arith.cmpf ogt, %763, %764 : vector<32x16xf32>
    %cst_363 = arith.constant 0.000000e+00 : f32
    %766 = vector.broadcast %cst_363 : f32 to vector<32x16xf32>
    %767 = arith.minimumf %763, %766 : vector<32x16xf32>
    %768 = math.exp %767 : vector<32x16xf32>
    %cst_364 = arith.constant 1.000000e+00 : f32
    %769 = vector.broadcast %cst_364 : f32 to vector<32x16xf32>
    %770 = arith.subf %768, %769 : vector<32x16xf32>
    %771 = arith.select %765, %763, %770 : vector<32x16xi1>, vector<32x16xf32>
    %c0_365 = arith.constant 0 : index
    %c7_366 = arith.constant 7 : index
    %772 = vector.load %arg3[%c0_365, %c7_366] : memref<32x12xf32, #tpu.memory_space<vmem>>, vector<32x1xf32>
    %c816_367 = arith.constant 816 : index
    %c0_368 = arith.constant 0 : index
    %773 = vector.load %arg2[%c816_367, %c0_368] : memref<1312x32xbf16, #tpu.memory_space<vmem>>, vector<32x32xbf16>
    %c2_i32_369 = arith.constant 2 : i32
    %774 = tpu.dynamic_rotate %771 by %c2_i32_369 dim 1 : vector<32x16xf32>, i32 -> vector<32x16xf32>
    %cst_370 = arith.constant 0.000000e+00 : f32
    %775 = vector.shape_cast %11 : vector<1x16xi1> to vector<1x16xi1>
    %776 = vector.broadcast %775 : vector<1x16xi1> to vector<32x16xi1>
    %777 = vector.broadcast %cst_370 : f32 to vector<32x16xf32>
    %778 = arith.select %776, %774, %777 : vector<32x16xi1>, vector<32x16xf32>
    %779 = arith.truncf %778 : vector<32x16xf32> to vector<32x16xbf16>
    %cst_371 = arith.constant dense<0.000000e+00> : vector<32x16xf32>
    %780 = tpu.matmul %773, %779, %cst_371 {dimension_numbers = #tpu.dot_dimension_numbers<[1], [0], [0], [1], [0, 0, 1, 1], [], []>} : vector<32x32xbf16>, vector<32x16xbf16>, vector<32x16xf32> -> vector<32x16xf32>
    %781 = vector.broadcast %772 : vector<32x1xf32> to vector<32x16xf32>
    %782 = arith.addf %781, %780 : vector<32x16xf32>
    %c848_372 = arith.constant 848 : index
    %c0_373 = arith.constant 0 : index
    %783 = vector.load %arg2[%c848_372, %c0_373] : memref<1312x32xbf16, #tpu.memory_space<vmem>>, vector<32x32xbf16>
    %c1_i32_374 = arith.constant 1 : i32
    %784 = tpu.dynamic_rotate %771 by %c1_i32_374 dim 1 : vector<32x16xf32>, i32 -> vector<32x16xf32>
    %cst_375 = arith.constant 0.000000e+00 : f32
    %785 = vector.shape_cast %20 : vector<1x16xi1> to vector<1x16xi1>
    %786 = vector.broadcast %785 : vector<1x16xi1> to vector<32x16xi1>
    %787 = vector.broadcast %cst_375 : f32 to vector<32x16xf32>
    %788 = arith.select %786, %784, %787 : vector<32x16xi1>, vector<32x16xf32>
    %789 = arith.truncf %788 : vector<32x16xf32> to vector<32x16xbf16>
    %cst_376 = arith.constant dense<0.000000e+00> : vector<32x16xf32>
    %790 = tpu.matmul %783, %789, %cst_376 {dimension_numbers = #tpu.dot_dimension_numbers<[1], [0], [0], [1], [0, 0, 1, 1], [], []>} : vector<32x32xbf16>, vector<32x16xbf16>, vector<32x16xf32> -> vector<32x16xf32>
    %791 = arith.addf %782, %790 : vector<32x16xf32>
    %c880_377 = arith.constant 880 : index
    %c0_378 = arith.constant 0 : index
    %792 = vector.load %arg2[%c880_377, %c0_378] : memref<1312x32xbf16, #tpu.memory_space<vmem>>, vector<32x32xbf16>
    %793 = arith.truncf %771 : vector<32x16xf32> to vector<32x16xbf16>
    %cst_379 = arith.constant dense<0.000000e+00> : vector<32x16xf32>
    %794 = tpu.matmul %792, %793, %cst_379 {dimension_numbers = #tpu.dot_dimension_numbers<[1], [0], [0], [1], [0, 0, 1, 1], [], []>} : vector<32x32xbf16>, vector<32x16xbf16>, vector<32x16xf32> -> vector<32x16xf32>
    %795 = arith.addf %791, %794 : vector<32x16xf32>
    %c912_380 = arith.constant 912 : index
    %c0_381 = arith.constant 0 : index
    %796 = vector.load %arg2[%c912_380, %c0_381] : memref<1312x32xbf16, #tpu.memory_space<vmem>>, vector<32x32xbf16>
    %c15_i32_382 = arith.constant 15 : i32
    %797 = tpu.dynamic_rotate %771 by %c15_i32_382 dim 1 : vector<32x16xf32>, i32 -> vector<32x16xf32>
    %cst_383 = arith.constant 0.000000e+00 : f32
    %798 = vector.shape_cast %29 : vector<1x16xi1> to vector<1x16xi1>
    %799 = vector.broadcast %798 : vector<1x16xi1> to vector<32x16xi1>
    %800 = vector.broadcast %cst_383 : f32 to vector<32x16xf32>
    %801 = arith.select %799, %797, %800 : vector<32x16xi1>, vector<32x16xf32>
    %802 = arith.truncf %801 : vector<32x16xf32> to vector<32x16xbf16>
    %cst_384 = arith.constant dense<0.000000e+00> : vector<32x16xf32>
    %803 = tpu.matmul %796, %802, %cst_384 {dimension_numbers = #tpu.dot_dimension_numbers<[1], [0], [0], [1], [0, 0, 1, 1], [], []>} : vector<32x32xbf16>, vector<32x16xbf16>, vector<32x16xf32> -> vector<32x16xf32>
    %804 = arith.addf %795, %803 : vector<32x16xf32>
    %c944_385 = arith.constant 944 : index
    %c0_386 = arith.constant 0 : index
    %805 = vector.load %arg2[%c944_385, %c0_386] : memref<1312x32xbf16, #tpu.memory_space<vmem>>, vector<32x32xbf16>
    %c14_i32_387 = arith.constant 14 : i32
    %806 = tpu.dynamic_rotate %771 by %c14_i32_387 dim 1 : vector<32x16xf32>, i32 -> vector<32x16xf32>
    %cst_388 = arith.constant 0.000000e+00 : f32
    %807 = vector.shape_cast %38 : vector<1x16xi1> to vector<1x16xi1>
    %808 = vector.broadcast %807 : vector<1x16xi1> to vector<32x16xi1>
    %809 = vector.broadcast %cst_388 : f32 to vector<32x16xf32>
    %810 = arith.select %808, %806, %809 : vector<32x16xi1>, vector<32x16xf32>
    %811 = arith.truncf %810 : vector<32x16xf32> to vector<32x16xbf16>
    %cst_389 = arith.constant dense<0.000000e+00> : vector<32x16xf32>
    %812 = tpu.matmul %805, %811, %cst_389 {dimension_numbers = #tpu.dot_dimension_numbers<[1], [0], [0], [1], [0, 0, 1, 1], [], []>} : vector<32x32xbf16>, vector<32x16xbf16>, vector<32x16xf32> -> vector<32x16xf32>
    %813 = arith.addf %804, %812 : vector<32x16xf32>
    %cst_390 = arith.constant 0.000000e+00 : f32
    %814 = vector.broadcast %cst_390 : f32 to vector<32x16xf32>
    %815 = arith.cmpf ogt, %813, %814 : vector<32x16xf32>
    %cst_391 = arith.constant 0.000000e+00 : f32
    %816 = vector.broadcast %cst_391 : f32 to vector<32x16xf32>
    %817 = arith.minimumf %813, %816 : vector<32x16xf32>
    %818 = math.exp %817 : vector<32x16xf32>
    %cst_392 = arith.constant 1.000000e+00 : f32
    %819 = vector.broadcast %cst_392 : f32 to vector<32x16xf32>
    %820 = arith.subf %818, %819 : vector<32x16xf32>
    %821 = arith.select %815, %813, %820 : vector<32x16xi1>, vector<32x16xf32>
    %c976_393 = arith.constant 976 : index
    %c0_394 = arith.constant 0 : index
    %822 = vector.load %arg2[%c976_393, %c0_394] : memref<1312x32xbf16, #tpu.memory_space<vmem>>, vector<4x32xbf16>
    %c0_395 = arith.constant 0 : index
    %c8_396 = arith.constant 8 : index
    %823 = vector.load %arg3[%c0_395, %c8_396] : memref<32x12xf32, #tpu.memory_space<vmem>>, vector<4x1xf32>
    %824 = arith.truncf %821 : vector<32x16xf32> to vector<32x16xbf16>
    %cst_397 = arith.constant dense<0.000000e+00> : vector<4x16xf32>
    %825 = tpu.matmul %822, %824, %cst_397 {dimension_numbers = #tpu.dot_dimension_numbers<[1], [0], [0], [1], [0, 0, 1, 1], [], []>} : vector<4x32xbf16>, vector<32x16xbf16>, vector<4x16xf32> -> vector<4x16xf32>
    %826 = vector.broadcast %823 : vector<4x1xf32> to vector<4x16xf32>
    %827 = arith.addf %825, %826 : vector<4x16xf32>
    %828 = arith.subf %827, %720 : vector<4x16xf32>
    %829 = arith.truncf %828 : vector<4x16xf32> to vector<4x16xbf16>
    %cst_398 = arith.constant dense<0.000000e+00> : vector<4x16xf32>
    %830 = tpu.matmul %829, %1, %cst_398 {dimension_numbers = #tpu.dot_dimension_numbers<[1], [0], [0], [1], [0, 0, 1, 1], [], []>} : vector<4x16xbf16>, vector<16x16xbf16>, vector<4x16xf32> -> vector<4x16xf32>
    %831 = tpu.concatenate %499, %497, %830 in 0 : vector<1x16xf32>, vector<1x16xf32>, vector<4x16xf32> -> vector<6x16xf32>
    %c0_399 = arith.constant 0 : index
    %c9_400 = arith.constant 9 : index
    %832 = vector.load %arg3[%c0_399, %c9_400] : memref<32x12xf32, #tpu.memory_space<vmem>>, vector<32x1xf32>
    %c984_401 = arith.constant 984 : index
    %c0_402 = arith.constant 0 : index
    %833 = vector.load %arg2[%c984_401, %c0_402] : memref<1312x32xbf16, #tpu.memory_space<vmem>>, vector<32x6xbf16>
    %c2_i32_403 = arith.constant 2 : i32
    %834 = tpu.dynamic_rotate %831 by %c2_i32_403 dim 1 : vector<6x16xf32>, i32 -> vector<6x16xf32>
    %cst_404 = arith.constant 0.000000e+00 : f32
    %835 = vector.shape_cast %11 : vector<1x16xi1> to vector<1x16xi1>
    %836 = vector.broadcast %835 : vector<1x16xi1> to vector<6x16xi1>
    %837 = vector.broadcast %cst_404 : f32 to vector<6x16xf32>
    %838 = arith.select %836, %834, %837 : vector<6x16xi1>, vector<6x16xf32>
    %839 = arith.truncf %838 : vector<6x16xf32> to vector<6x16xbf16>
    %cst_405 = arith.constant dense<0.000000e+00> : vector<32x16xf32>
    %840 = tpu.matmul %833, %839, %cst_405 {dimension_numbers = #tpu.dot_dimension_numbers<[1], [0], [0], [1], [0, 0, 1, 1], [], []>} : vector<32x6xbf16>, vector<6x16xbf16>, vector<32x16xf32> -> vector<32x16xf32>
    %841 = vector.broadcast %832 : vector<32x1xf32> to vector<32x16xf32>
    %842 = arith.addf %841, %840 : vector<32x16xf32>
    %c1016_406 = arith.constant 1016 : index
    %c0_407 = arith.constant 0 : index
    %843 = vector.load %arg2[%c1016_406, %c0_407] : memref<1312x32xbf16, #tpu.memory_space<vmem>>, vector<32x6xbf16>
    %c1_i32_408 = arith.constant 1 : i32
    %844 = tpu.dynamic_rotate %831 by %c1_i32_408 dim 1 : vector<6x16xf32>, i32 -> vector<6x16xf32>
    %cst_409 = arith.constant 0.000000e+00 : f32
    %845 = vector.shape_cast %20 : vector<1x16xi1> to vector<1x16xi1>
    %846 = vector.broadcast %845 : vector<1x16xi1> to vector<6x16xi1>
    %847 = vector.broadcast %cst_409 : f32 to vector<6x16xf32>
    %848 = arith.select %846, %844, %847 : vector<6x16xi1>, vector<6x16xf32>
    %849 = arith.truncf %848 : vector<6x16xf32> to vector<6x16xbf16>
    %cst_410 = arith.constant dense<0.000000e+00> : vector<32x16xf32>
    %850 = tpu.matmul %843, %849, %cst_410 {dimension_numbers = #tpu.dot_dimension_numbers<[1], [0], [0], [1], [0, 0, 1, 1], [], []>} : vector<32x6xbf16>, vector<6x16xbf16>, vector<32x16xf32> -> vector<32x16xf32>
    %851 = arith.addf %842, %850 : vector<32x16xf32>
    %c1048_411 = arith.constant 1048 : index
    %c0_412 = arith.constant 0 : index
    %852 = vector.load %arg2[%c1048_411, %c0_412] : memref<1312x32xbf16, #tpu.memory_space<vmem>>, vector<32x6xbf16>
    %853 = arith.truncf %831 : vector<6x16xf32> to vector<6x16xbf16>
    %cst_413 = arith.constant dense<0.000000e+00> : vector<32x16xf32>
    %854 = tpu.matmul %852, %853, %cst_413 {dimension_numbers = #tpu.dot_dimension_numbers<[1], [0], [0], [1], [0, 0, 1, 1], [], []>} : vector<32x6xbf16>, vector<6x16xbf16>, vector<32x16xf32> -> vector<32x16xf32>
    %855 = arith.addf %851, %854 : vector<32x16xf32>
    %c1080_414 = arith.constant 1080 : index
    %c0_415 = arith.constant 0 : index
    %856 = vector.load %arg2[%c1080_414, %c0_415] : memref<1312x32xbf16, #tpu.memory_space<vmem>>, vector<32x6xbf16>
    %c15_i32_416 = arith.constant 15 : i32
    %857 = tpu.dynamic_rotate %831 by %c15_i32_416 dim 1 : vector<6x16xf32>, i32 -> vector<6x16xf32>
    %cst_417 = arith.constant 0.000000e+00 : f32
    %858 = vector.shape_cast %29 : vector<1x16xi1> to vector<1x16xi1>
    %859 = vector.broadcast %858 : vector<1x16xi1> to vector<6x16xi1>
    %860 = vector.broadcast %cst_417 : f32 to vector<6x16xf32>
    %861 = arith.select %859, %857, %860 : vector<6x16xi1>, vector<6x16xf32>
    %862 = arith.truncf %861 : vector<6x16xf32> to vector<6x16xbf16>
    %cst_418 = arith.constant dense<0.000000e+00> : vector<32x16xf32>
    %863 = tpu.matmul %856, %862, %cst_418 {dimension_numbers = #tpu.dot_dimension_numbers<[1], [0], [0], [1], [0, 0, 1, 1], [], []>} : vector<32x6xbf16>, vector<6x16xbf16>, vector<32x16xf32> -> vector<32x16xf32>
    %864 = arith.addf %855, %863 : vector<32x16xf32>
    %c1112_419 = arith.constant 1112 : index
    %c0_420 = arith.constant 0 : index
    %865 = vector.load %arg2[%c1112_419, %c0_420] : memref<1312x32xbf16, #tpu.memory_space<vmem>>, vector<32x6xbf16>
    %c14_i32_421 = arith.constant 14 : i32
    %866 = tpu.dynamic_rotate %831 by %c14_i32_421 dim 1 : vector<6x16xf32>, i32 -> vector<6x16xf32>
    %cst_422 = arith.constant 0.000000e+00 : f32
    %867 = vector.shape_cast %38 : vector<1x16xi1> to vector<1x16xi1>
    %868 = vector.broadcast %867 : vector<1x16xi1> to vector<6x16xi1>
    %869 = vector.broadcast %cst_422 : f32 to vector<6x16xf32>
    %870 = arith.select %868, %866, %869 : vector<6x16xi1>, vector<6x16xf32>
    %871 = arith.truncf %870 : vector<6x16xf32> to vector<6x16xbf16>
    %cst_423 = arith.constant dense<0.000000e+00> : vector<32x16xf32>
    %872 = tpu.matmul %865, %871, %cst_423 {dimension_numbers = #tpu.dot_dimension_numbers<[1], [0], [0], [1], [0, 0, 1, 1], [], []>} : vector<32x6xbf16>, vector<6x16xbf16>, vector<32x16xf32> -> vector<32x16xf32>
    %873 = arith.addf %864, %872 : vector<32x16xf32>
    %cst_424 = arith.constant 0.000000e+00 : f32
    %874 = vector.broadcast %cst_424 : f32 to vector<32x16xf32>
    %875 = arith.cmpf ogt, %873, %874 : vector<32x16xf32>
    %cst_425 = arith.constant 0.000000e+00 : f32
    %876 = vector.broadcast %cst_425 : f32 to vector<32x16xf32>
    %877 = arith.minimumf %873, %876 : vector<32x16xf32>
    %878 = math.exp %877 : vector<32x16xf32>
    %cst_426 = arith.constant 1.000000e+00 : f32
    %879 = vector.broadcast %cst_426 : f32 to vector<32x16xf32>
    %880 = arith.subf %878, %879 : vector<32x16xf32>
    %881 = arith.select %875, %873, %880 : vector<32x16xi1>, vector<32x16xf32>
    %c0_427 = arith.constant 0 : index
    %c10_428 = arith.constant 10 : index
    %882 = vector.load %arg3[%c0_427, %c10_428] : memref<32x12xf32, #tpu.memory_space<vmem>>, vector<32x1xf32>
    %c1144_429 = arith.constant 1144 : index
    %c0_430 = arith.constant 0 : index
    %883 = vector.load %arg2[%c1144_429, %c0_430] : memref<1312x32xbf16, #tpu.memory_space<vmem>>, vector<32x32xbf16>
    %c2_i32_431 = arith.constant 2 : i32
    %884 = tpu.dynamic_rotate %881 by %c2_i32_431 dim 1 : vector<32x16xf32>, i32 -> vector<32x16xf32>
    %cst_432 = arith.constant 0.000000e+00 : f32
    %885 = vector.shape_cast %11 : vector<1x16xi1> to vector<1x16xi1>
    %886 = vector.broadcast %885 : vector<1x16xi1> to vector<32x16xi1>
    %887 = vector.broadcast %cst_432 : f32 to vector<32x16xf32>
    %888 = arith.select %886, %884, %887 : vector<32x16xi1>, vector<32x16xf32>
    %889 = arith.truncf %888 : vector<32x16xf32> to vector<32x16xbf16>
    %cst_433 = arith.constant dense<0.000000e+00> : vector<32x16xf32>
    %890 = tpu.matmul %883, %889, %cst_433 {dimension_numbers = #tpu.dot_dimension_numbers<[1], [0], [0], [1], [0, 0, 1, 1], [], []>} : vector<32x32xbf16>, vector<32x16xbf16>, vector<32x16xf32> -> vector<32x16xf32>
    %891 = vector.broadcast %882 : vector<32x1xf32> to vector<32x16xf32>
    %892 = arith.addf %891, %890 : vector<32x16xf32>
    %c1176_434 = arith.constant 1176 : index
    %c0_435 = arith.constant 0 : index
    %893 = vector.load %arg2[%c1176_434, %c0_435] : memref<1312x32xbf16, #tpu.memory_space<vmem>>, vector<32x32xbf16>
    %c1_i32_436 = arith.constant 1 : i32
    %894 = tpu.dynamic_rotate %881 by %c1_i32_436 dim 1 : vector<32x16xf32>, i32 -> vector<32x16xf32>
    %cst_437 = arith.constant 0.000000e+00 : f32
    %895 = vector.shape_cast %20 : vector<1x16xi1> to vector<1x16xi1>
    %896 = vector.broadcast %895 : vector<1x16xi1> to vector<32x16xi1>
    %897 = vector.broadcast %cst_437 : f32 to vector<32x16xf32>
    %898 = arith.select %896, %894, %897 : vector<32x16xi1>, vector<32x16xf32>
    %899 = arith.truncf %898 : vector<32x16xf32> to vector<32x16xbf16>
    %cst_438 = arith.constant dense<0.000000e+00> : vector<32x16xf32>
    %900 = tpu.matmul %893, %899, %cst_438 {dimension_numbers = #tpu.dot_dimension_numbers<[1], [0], [0], [1], [0, 0, 1, 1], [], []>} : vector<32x32xbf16>, vector<32x16xbf16>, vector<32x16xf32> -> vector<32x16xf32>
    %901 = arith.addf %892, %900 : vector<32x16xf32>
    %c1208_439 = arith.constant 1208 : index
    %c0_440 = arith.constant 0 : index
    %902 = vector.load %arg2[%c1208_439, %c0_440] : memref<1312x32xbf16, #tpu.memory_space<vmem>>, vector<32x32xbf16>
    %903 = arith.truncf %881 : vector<32x16xf32> to vector<32x16xbf16>
    %cst_441 = arith.constant dense<0.000000e+00> : vector<32x16xf32>
    %904 = tpu.matmul %902, %903, %cst_441 {dimension_numbers = #tpu.dot_dimension_numbers<[1], [0], [0], [1], [0, 0, 1, 1], [], []>} : vector<32x32xbf16>, vector<32x16xbf16>, vector<32x16xf32> -> vector<32x16xf32>
    %905 = arith.addf %901, %904 : vector<32x16xf32>
    %c1240_442 = arith.constant 1240 : index
    %c0_443 = arith.constant 0 : index
    %906 = vector.load %arg2[%c1240_442, %c0_443] : memref<1312x32xbf16, #tpu.memory_space<vmem>>, vector<32x32xbf16>
    %c15_i32_444 = arith.constant 15 : i32
    %907 = tpu.dynamic_rotate %881 by %c15_i32_444 dim 1 : vector<32x16xf32>, i32 -> vector<32x16xf32>
    %cst_445 = arith.constant 0.000000e+00 : f32
    %908 = vector.shape_cast %29 : vector<1x16xi1> to vector<1x16xi1>
    %909 = vector.broadcast %908 : vector<1x16xi1> to vector<32x16xi1>
    %910 = vector.broadcast %cst_445 : f32 to vector<32x16xf32>
    %911 = arith.select %909, %907, %910 : vector<32x16xi1>, vector<32x16xf32>
    %912 = arith.truncf %911 : vector<32x16xf32> to vector<32x16xbf16>
    %cst_446 = arith.constant dense<0.000000e+00> : vector<32x16xf32>
    %913 = tpu.matmul %906, %912, %cst_446 {dimension_numbers = #tpu.dot_dimension_numbers<[1], [0], [0], [1], [0, 0, 1, 1], [], []>} : vector<32x32xbf16>, vector<32x16xbf16>, vector<32x16xf32> -> vector<32x16xf32>
    %914 = arith.addf %905, %913 : vector<32x16xf32>
    %c1272_447 = arith.constant 1272 : index
    %c0_448 = arith.constant 0 : index
    %915 = vector.load %arg2[%c1272_447, %c0_448] : memref<1312x32xbf16, #tpu.memory_space<vmem>>, vector<32x32xbf16>
    %c14_i32_449 = arith.constant 14 : i32
    %916 = tpu.dynamic_rotate %881 by %c14_i32_449 dim 1 : vector<32x16xf32>, i32 -> vector<32x16xf32>
    %cst_450 = arith.constant 0.000000e+00 : f32
    %917 = vector.shape_cast %38 : vector<1x16xi1> to vector<1x16xi1>
    %918 = vector.broadcast %917 : vector<1x16xi1> to vector<32x16xi1>
    %919 = vector.broadcast %cst_450 : f32 to vector<32x16xf32>
    %920 = arith.select %918, %916, %919 : vector<32x16xi1>, vector<32x16xf32>
    %921 = arith.truncf %920 : vector<32x16xf32> to vector<32x16xbf16>
    %cst_451 = arith.constant dense<0.000000e+00> : vector<32x16xf32>
    %922 = tpu.matmul %915, %921, %cst_451 {dimension_numbers = #tpu.dot_dimension_numbers<[1], [0], [0], [1], [0, 0, 1, 1], [], []>} : vector<32x32xbf16>, vector<32x16xbf16>, vector<32x16xf32> -> vector<32x16xf32>
    %923 = arith.addf %914, %922 : vector<32x16xf32>
    %cst_452 = arith.constant 0.000000e+00 : f32
    %924 = vector.broadcast %cst_452 : f32 to vector<32x16xf32>
    %925 = arith.cmpf ogt, %923, %924 : vector<32x16xf32>
    %cst_453 = arith.constant 0.000000e+00 : f32
    %926 = vector.broadcast %cst_453 : f32 to vector<32x16xf32>
    %927 = arith.minimumf %923, %926 : vector<32x16xf32>
    %928 = math.exp %927 : vector<32x16xf32>
    %cst_454 = arith.constant 1.000000e+00 : f32
    %929 = vector.broadcast %cst_454 : f32 to vector<32x16xf32>
    %930 = arith.subf %928, %929 : vector<32x16xf32>
    %931 = arith.select %925, %923, %930 : vector<32x16xi1>, vector<32x16xf32>
    %c1304_455 = arith.constant 1304 : index
    %c0_456 = arith.constant 0 : index
    %932 = vector.load %arg2[%c1304_455, %c0_456] : memref<1312x32xbf16, #tpu.memory_space<vmem>>, vector<1x32xbf16>
    %c0_457 = arith.constant 0 : index
    %c11_458 = arith.constant 11 : index
    %933 = vector.load %arg3[%c0_457, %c11_458] : memref<32x12xf32, #tpu.memory_space<vmem>>, vector<1x1xf32>
    %934 = arith.truncf %931 : vector<32x16xf32> to vector<32x16xbf16>
    %cst_459 = arith.constant dense<0.000000e+00> : vector<1x16xf32>
    %935 = tpu.matmul %932, %934, %cst_459 {dimension_numbers = #tpu.dot_dimension_numbers<[1], [0], [0], [1], [0, 0, 1, 1], [], []>} : vector<1x32xbf16>, vector<32x16xbf16>, vector<1x16xf32> -> vector<1x16xf32>
    %936 = vector.broadcast %933 : vector<1x1xf32> to vector<1x16xf32>
    %937 = arith.addf %935, %936 : vector<1x16xf32>
    %938 = arith.truncf %937 : vector<1x16xf32> to vector<1x16xbf16>
    %cst_460 = arith.constant dense<0.000000e+00> : vector<1x16xf32>
    %939 = tpu.matmul %938, %0, %cst_460 {dimension_numbers = #tpu.dot_dimension_numbers<[1], [0], [0], [1], [0, 0, 1, 1], [], []>} : vector<1x16xbf16>, vector<16x16xbf16>, vector<1x16xf32> -> vector<1x16xf32>
    %940 = arith.negf %939 : vector<1x16xf32>
    %941 = math.exp %940 : vector<1x16xf32>
    %cst_461 = arith.constant 1.000000e+00 : f32
    %942 = vector.broadcast %cst_461 : f32 to vector<1x16xf32>
    %943 = arith.addf %942, %941 : vector<1x16xf32>
    %944 = arith.divf %942, %943 : vector<1x16xf32>
    %945 = tpu.concatenate %492, %944 in 0 : vector<1x16xf32>, vector<1x16xf32> -> vector<2x16xf32>
    %c0_462 = arith.constant 0 : index
    %c0_463 = arith.constant 0 : index
    %c0_464 = arith.constant 0 : index
    %946 = vector.load %arg6[%c0_462, %c0_463, %c0_464] : memref<1x2x16xf32, #tpu.memory_space<vmem>>, vector<1x2x16xf32>
    %947 = vector.shape_cast %946 : vector<1x2x16xf32> to vector<2x16xf32>
    %948 = vector.shape_cast %945 : vector<2x16xf32> to vector<1x2x16xf32>
    tpu.vector_store %arg6[%c0_462, %c0_463, %c0_464], %948 {strides = array<i32>} : memref<1x2x16xf32, #tpu.memory_space<vmem>>, vector<1x2x16xf32>,
    return
  }
  func.func @transform_0(%arg0: i32) -> (i32, i32, i32, i32) {
    %c0_i32 = arith.constant 0 : i32
    %c0_i32_0 = arith.constant 0 : i32
    %c0_i32_1 = arith.constant 0 : i32
    %c0_i32_2 = arith.constant 0 : i32
    return %arg0, %c0_i32, %c0_i32_0, %c0_i32_1 : i32, i32, i32, i32
  }
  func.func @transform_1(%arg0: i32) -> (i32, i32) {
    %c0_i32 = arith.constant 0 : i32
    %c0_i32_0 = arith.constant 0 : i32
    %c0_i32_1 = arith.constant 0 : i32
    return %c0_i32, %c0_i32_0 : i32, i32
  }
  func.func @transform_2(%arg0: i32) -> (i32, i32) {
    %c0_i32 = arith.constant 0 : i32
    %c0_i32_0 = arith.constant 0 : i32
    %c0_i32_1 = arith.constant 0 : i32
    return %c0_i32, %c0_i32_0 : i32, i32
  }
  func.func @transform_3(%arg0: i32) -> (i32, i32) {
    %c0_i32 = arith.constant 0 : i32
    %c0_i32_0 = arith.constant 0 : i32
    %c0_i32_1 = arith.constant 0 : i32
    return %c0_i32, %c0_i32_0 : i32, i32
  }
  func.func @transform_4(%arg0: i32) -> (i32, i32) {
    %c0_i32 = arith.constant 0 : i32
    %c0_i32_0 = arith.constant 0 : i32
    %c0_i32_1 = arith.constant 0 : i32
    return %c0_i32, %c0_i32_0 : i32, i32
  }
  func.func @transform_5(%arg0: i32) -> (i32, i32, i32) {
    %c0_i32 = arith.constant 0 : i32
    %c0_i32_0 = arith.constant 0 : i32
    %c0_i32_1 = arith.constant 0 : i32
    return %arg0, %c0_i32, %c0_i32_0 : i32, i32, i32
  }
}

</mosaic_0001>

<bundles_post_ra>
// kernel: dec_large_cnn_forward.1
= control target key start
LH: loop header
LB: loop body
LE: loop exit
PB: predicated region body
PF: predicated region fallthrough
CT: control target
= control target key end

     0   :  { %10 = vsyncpa [#allocation3], 0  ;;  %s12853_s0 = inlined_call_operand.vmem [shape: f32[2,2,3,16], index: 0, kind: input, shape index: {}]   ;;  %s12854_s1 = inlined_call_operand.vmem [shape: bf16[1312,32], index: 1, kind: input, shape index: {}]   ;;  %s12855_s2 = inlined_call_operand.vmem [shape: f32[32,12], index: 2, kind: input, shape index: {}]   ;;  %s12856_s3 = inlined_call_operand.vmem [shape: bf16[16,16], index: 3, kind: input, shape index: {}]   ;;  %s12857_s4 = inlined_call_operand.vmem [shape: bf16[16,16], index: 4, kind: input, shape index: {}]   ;;  %s12858_s5 = inlined_call_operand.hbm [shape: f32[2,2,16], index: 5, kind: output, shape index: {}]  }
   0x1   :  { %12 = vsyncpa [#allocation3 + $0x1], 0  ;;  %s10819_s18 = smov 0   ;;  %s10821_s19 = smov 0  }
   0x2   :  { %s10823_s20 = smov 0   ;;  %s10825_s21 = smov 0  }
   0x3 LB: > { %s10840_s22 = sadd.s32 4294967295, %s10767_s21   ;;  %s7936_s23 = sadd.s32 4294967294, %s10767_s21   ;;  %s10767_s21 = sphi %s10825_s21, %s12960_s21   ;;  %s10763_s20 = sphi %s10823_s20, %s12959_s20   ;;  %s10759_s19 = sphi %s10821_s19, %s12958_s19   ;;  %s10755_s18 = sphi %s10819_s18, %s12957_s18  }
   0x4   : > { %s10844_s24 = sadd.s32 1, %s10767_s21   ;;  %s135_s25 = sadd.s32 1, %s10763_s20 }
   0x5   : > { %s132_s26 = ssub.s32 %s10767_s21, %s10844_s24  ;;  %p145_p0 = scmp.ne.s32.totalorder %s10763_s20, %s10759_s19 }
   0x6   : > { %p133_p1 = scmp.eq.s32.totalorder %s132_s26, 0  ;;  %p146_p2 = scmp.eq.s32.totalorder %s10840_s22, 1 }
   0x7   : > { %p151_p3 = scmp.ne.s32.totalorder %s10759_s19, %s10755_s18  ;;  %p152_p4 = scmp.eq.s32.totalorder %s7936_s23, 1 }
   0x8   : > { %s10855_s27 = scalar_select %p133_p1, %s10763_s20, %s135_s25  }
   0x9   : > { %p10857_p5 = por %p146_p2, %p145_p0  ;;  %p10861_p6 = por %p152_p4, %p151_p3 }
   0xa   : > { %p7939_p7 = scmp.ge.s32.totalorder %s10767_s21, 1  ;;  %p190_p8 = scmp.lt.s32.totalorder %s10767_s21, 3 }
   0xc   : > { %p191_p9 = pnand %p7939_p7, %p190_p8 }
   0xe   : > { %194 = sbr.rel (%p191_p9) target bundleno = 13348 (0x3424), region = 40 }
  0x15   : > { %p218_p10 = scmp.lt.s32.totalorder %s10840_s22, 1  ;;  %vm299_vm0 = vcmask 1041408   ;;  %s10769_s10 = smov 16   ;;  %vm309_vm1 = vcmask 1047680   ;;  %v10392_v4 = vld [vmem:[%s12854_s1] sm:$0xff]   ;;  %vm334_vm2 = vcmask 48128   ;;  %v228_v12 = vlaneseq }
  0x16   : > { %8798 = vmatprep.mubr.msk.bf16.mxu1 %vm334_vm2, %v10392_v4  ;;  %s10770_s13 = smov 127   ;;  %s10771_s14 = smov 114   ;;  %v10894_v7 = vld [vmem:[%s12855_s2 + $0x8] sm:$0xff]  ;;  %v10899_v8 = vld [vmem:[%s12855_s2] sm:$0xff]  ;;  %v10774_v9 = vmov 0   ;;  %v10906_v10 = vld [vmem:[%s12855_s2 + $0x10] sm:$0xff] }
  0x17   : > { %s219_s30 = scalar_select %p218_p10, %s10840_s22, 1  ;;  %9893 = vset.pattern.permute.xlu1 %v10774_v9  ;;  %9892 = vset.pattern.permute.xlu0 %v10774_v9  ;;  %v10911_v11 = vld [vmem:[%s12855_s2 + $0x18] sm:$0xff]  ;;  %v229_v13 = vand.u32 127, %v228_v12  ;;  %vm12864_vm8 = vcmask 1042432   ;;  %v10393_v23 = vld [vmem:[%s12854_s1 + $0x8] sm:$0xff]   ;;  %v10394_v25 = vld [vmem:[%s12854_s1 + $0x10] sm:$0xff]  }
  0x18   : > { %s10772_s15 = smov 113   ;;  %s10773_s16 = smov 126   ;;  %v10395_v31 = vld [vmem:[%s12854_s1 + $0x18] sm:$0xff]   ;;  %v10396_v33 = vld [vmem:[%s12854_s1 + $0x20] sm:$0xff]   ;;  %v10397_v38 = vld [vmem:[%s12854_s1 + $0x28] sm:$0xff]  }
  0x19   : > { %s8465_s6 = sshll.u32 %s219_s30, 3  ;;  %v230_v14 = vadd.s32 4294967294, %v229_v13  ;;  %v234_v15 = vadd.s32 4294967295, %v229_v13  ;;  %v10939_v29 = vadd.s32 1, %v229_v13  ;;  %v10954_v36 = vadd.s32 2, %v229_v13  ;;  %v10398_v40 = vld [vmem:[%s12854_s1 + $0x30] sm:$0xff]  }
  0x1a   : > { %s10872_s9 = scalar_lea.vmem %s12853_s0, %s8465_s6  ;;  %v10399_v43 = vld [vmem:[%s12854_s1 + $0x38] sm:$0xff]   ;;  %v10400_v44 = vld [vmem:[%s12854_s1 + $0x40] sm:$0xff]   ;;  %v10401_v46 = vld [vmem:[%s12854_s1 + $0x48] sm:$0xff]   ;;  %s8462_s26 = sshll.u32 %s10840_s22, 5 }
  0x1b   : > { %v10875_v0 = vld [vmem:[%s10872_s9] sm:$0x7]  ;;  %vm231_vm3 = vcmp.ge.s32.totalorder %v230_v14, 0  ;;  %vm232_vm4 = vcmp.lt.s32.totalorder %v230_v14, 16  ;;  %vm235_vm6 = vcmp.ge.s32.totalorder %v234_v15, 0  ;;  %vm236_vm7 = vcmp.lt.s32.totalorder %v234_v15, 16 }
  0x1c   : > { %v300_v1 = vsel %vm299_vm0, %v10875_v0, 0.0  ;;  %vm10915_vm5 = vmand %vm231_vm3, %vm232_vm4  ;;  %vm12862_vm10 = vcmp.lt.s32.totalorder %v10939_v29, 16  ;;  %vm12861_vm11 = vcmp.lt.s32.totalorder %v10954_v36, 16  ;;  %vm12859_vm3 = vmmov 0   ;;  %v10687_v16 = vld [vmem:[%s12854_s1 + $0x1fc] sm:$0xff]   ;;  %s10788_s12 = smov [#allocation2]  }
  0x1d   : > { %310 = vrot.lane.b32.xlu0 %v300_v1, %s10769_s10  ;;  %vm10921_vm9 = vmand %vm235_vm6, %vm236_vm7  ;;  %v505_v27 = vpack.c.bf16 %v300_v1, %v300_v1  ;;  %vm255_vm4 = vcmask 130048   ;;  %vm828_vm6 = vcmask 261120   ;;  %s10709_s17 = sshll.u32 %s10788_s12, 4  ;;  %s10710_s17 = int_to_ptr.vmem [resolvable:$false] %s10709_s17 }
  0x1e   : > { %vm11061_vm7 = vmpackc.low %vm10915_vm5, %vm10915_vm5  ;;  %s10711_s23 = scalar_lea.vmem %s10710_s17, 64 }
  0x1f   : > { %v523_v34 = vsel %vm12864_vm8, %v505_v27, 0 }
  0x8f   : > { %v311_v2 = vpop.permute.xlu0 %310 }
  0x90   : > { %v312_v3 = vsel %vm309_vm1, %v311_v2, %v300_v1 }
  0x91   : > { %313 = vrot.lane.b32.xlu0 %v312_v3, %s10769_s10 }
 0x103   : > { %v314_v5 = vpop.permute.xlu0 %313 }
 0x104   : > { %v315_v6 = vsel %vm309_vm1, %v314_v5, %v300_v1 }
 0x105   : > { %584 = vrot.lane.b32.xlu0 %v315_v6, %s10770_s13  ;;  %319 = vrot.lane.b32.xlu1 %v315_v6, %s10771_s14 }
 0x109   : > { %424 = vrot.lane.b32.xlu1 %v315_v6, %s10772_s15  ;;  %396 = vperm.xlu0 %9892, %v10899_v8  }
 0x10d   : > { %667 = vrot.lane.b32.xlu1 %v315_v6, %s10773_s16  ;;  %411 = vperm.xlu0 %9892, %v10911_v11  }
 0x111   : > { %401 = vperm.xlu1 %9893, %v10894_v7  }
 0x115   : > { %406 = vperm.xlu1 %9893, %v10906_v10  }
 0x177   : > { %v320_v17 = vpop.permute.xlu1 %319  ;;  %v585_v30 = vpop.permute.xlu0 %584 }
 0x178   : > { %v322_v18 = vsel %vm10915_vm5, %v320_v17, 0.0  ;;  %v587_v32 = vsel %vm12862_vm10, %v585_v30, 0.0 }
 0x179   : > { %v323_v19 = vpack.c.bf16 %v322_v18, %v322_v18  ;;  %v588_v35 = vpack.c.bf16 %v587_v32, %v587_v32 }
 0x17b   : > { %9794 = vmatprep.subr.msk.bf16.mxu1 %vm12864_vm8, %v323_v19  ;;  %v425_v21 = vpop.permute.xlu1 %424  ;;  %v343_v22 = vsel %vm12864_vm8, %v323_v19, 0  ;;  %v606_v42 = vsel %vm12864_vm8, %v588_v35, 0 }
 0x17c   : > { %v427_v24 = vsel %vm10921_vm9, %v425_v21, 0.0  ;;  %8797 = vmatpush3.bf16.msra.mxu1 %v343_v22 }
 0x17d   : > { %v428_v26 = vpack.c.bf16 %v427_v24, %v427_v24 }
 0x17f   : > { %8799 = vmatmul.mubr.msk.bf16.vlgmr.msra.gmra.mrb[0].mxu1 %vm334_vm2, %v10393_v23  ;;  %9795 = vmatprep.subr.msk.bf16.mxu1 %vm12864_vm8, %v428_v26  ;;  %v446_v28 = vsel %vm12864_vm8, %v428_v26, 0  ;;  %v668_v37 = vpop.permute.xlu1 %667 }
 0x180   : > { %8803 = vmatpush3.bf16.msra.mxu1 %v446_v28  ;;  %8804 = vmatprep.mubr.msk.bf16.mxu1 %vm334_vm2, %v10394_v25  ;;  %v670_v39 = vsel %vm12861_vm11, %v668_v37, 0.0 }
 0x181   : > { %9796 = vmatprep.subr.msk.bf16.mxu1 %vm12864_vm8, %v505_v27  ;;  %v671_v41 = vpack.c.bf16 %v670_v39, %v670_v39  ;;  %v12865_v39 = vmov 0.0  }
 0x182   : > { %8790 = vmatprep.subr.bf16.mxu0 %v12865_v39  ;;  %8792 = vmatprep.mubr.msk.bf16.mxu0 %vm12859_vm3, %v12865_v39 }
 0x183   : > { %v689_v45 = vsel %vm12864_vm8, %v671_v41, 0 }
 0x188   : > { %v10985_v48 = vpop.permute.xlu0 %396 }
 0x18b   : > { %8805 = vmatmul.mubr.msk.bf16.vlgmr.msra.gmra.mrb[0].mxu1 %vm334_vm2, %v10395_v31 }
 0x18c   : > { %8809 = vmatpush3.bf16.msra.mxu1 %v523_v34  ;;  %8810 = vmatprep.mubr.msk.bf16.mxu1 %vm334_vm2, %v10396_v33  ;;  %v10989_v51 = vpop.permute.xlu0 %411 }
 0x18d   : > { %9797 = vmatprep.subr.msk.bf16.mxu1 %vm12864_vm8, %v588_v35 }
 0x190   : > { %v10983_v47 = vpop.permute.xlu1 %401 }
 0x194   : > { %v10987_v49 = vpop.permute.xlu1 %406 }
 0x197   : > { %8811 = vmatmul.mubr.msk.bf16.vlgmr.msra.gmra.mrb[0].mxu1 %vm334_vm2, %v10397_v38  ;;  %v11022_v38 = vld [vmem:[%s12857_s4] sm:$0xff]  }
 0x198   : > { %8815 = vmatpush3.bf16.msra.mxu1 %v606_v42  ;;  %8816 = vmatprep.mubr.msk.bf16.mxu1 %vm334_vm2, %v10398_v40  ;;  %v248_v40 = vpack.c.bf16 %v10875_v0, %v10875_v0 }
 0x199   : > { %9798 = vmatprep.subr.msk.bf16.mxu1 %vm12864_vm8, %v671_v41  ;;  %8791 = vmatpush3.bf16.msra.mxu0 %v11022_v38 }
 0x19c   : > { %8793 = vmatmul.mubr.msk.bf16.vlgmr.msra.gmra.mrb[0].mxu0 %vm255_vm4, %v248_v40  ;;  %v10409_v40 = vld [vmem:[%s12854_s1 + $0x80] sm:$0xff]  }
 0x1a3   : > { %8817 = vmatmul.mubr.msk.bf16.vlgmr.msra.gmra.mrb[0].mxu1 %vm334_vm2, %v10399_v43 }
 0x1a4   : > { %8821 = vmatpush3.bf16.msra.mxu1 %v689_v45  ;;  %8822 = vmatprep.mubr.msk.bf16.mxu1 %vm334_vm2, %v10400_v44 }
 0x1a5   : > { %8866 = vmatprep.subr.bf16.mxu1 %v12865_v39 }
 0x1af   : > { %8823 = vmatmul.mubr.msk.bf16.vlgmr.msra.gmra.mrb[0].mxu1 %vm334_vm2, %v10401_v46 }
 0x1b0   : > { %8870 = vmatprep.mubr.msk.bf16.mxu1 %vm12859_vm3, %v12865_v39 }
 0x282   : > { %v8824_v50 = vpop.f32.mrb[0].mxu1 }
 0x283   : > { %v9474_v52 = vadd.f32 %v8824_v50, %v10987_v49  ;;  %v725_v53 = vpop.f32.mrb[1].mxu1 }
 0x284   : > { %v9475_v54 = vadd.f32 %v725_v53, %v10985_v48  ;;  %v8825_v55 = vpop.f32.mrb[2].mxu1 }
 0x285   : > { %v750_v56 = vmin.f32 %v9474_v52, 0.0  ;;  %v9476_v57 = vadd.f32 %v8825_v55, %v10989_v51  ;;  %v728_v58 = vpop.f32.mrb[3].mxu1  ;;  %vm746_vm12 = vcmp.gt.f32.partialorder %v9474_v52, 0.0 }
 0x286   : > { %v748_v59 = vmin.f32 %v9475_v54, 0.0  ;;  %v9477_v60 = vadd.f32 %v728_v58, %v10983_v47  ;;  %vm744_vm14 = vcmp.gt.f32.partialorder %v9475_v54, 0.0  ;;  %v10777_v58 = vmov 1  }
 0x287   : > { %v756_v61 = vmul.f32 1.442695, %v750_v56  ;;  %v751_v62 = vmin.f32 %v9476_v57, 0.0  ;;  %vm747_vm13 = vcmp.gt.f32.partialorder %v9476_v57, 0.0  ;;  %9954 = vset.pattern.permute.xlu1 %v10777_v58  ;;  %9955 = vset.pattern.permute.xlu0 %v10777_v58 }
 0x288   : > { %v752_v63 = vmul.f32 1.442695, %v748_v59  ;;  %v749_v1 = vmin.f32 %v9477_v60, 0.0  ;;  %vm745_vm15 = vcmp.gt.f32.partialorder %v9477_v60, 0.0 }
 0x289   : > { %10474 = vpow2.f32 %v756_v61  ;;  %v758_v2 = vmul.f32 1.442695, %v751_v62 }
 0x28a   : > { %10476 = vpow2.f32 %v752_v63  ;;  %v754_v3 = vmul.f32 1.442695, %v749_v1 }
 0x28b   : > { %10478 = vpow2.f32 %v758_v2 }
 0x28c   : > { %10480 = vpow2.f32 %v754_v3 }
 0x293   : > { %v10475_v4 = vpop.eup %10474 }
 0x294   : > { %v10477_v5 = vpop.eup %10476  ;;  %v7967_v6 = vadd.f32 -1.0, %v10475_v4 }
 0x295   : > { %v10479_v9 = vpop.eup %10478  ;;  %v7965_v12 = vadd.f32 -1.0, %v10477_v5 }
 0x296   : > { %v10481_v13 = vpop.eup %10480  ;;  %v7968_v14 = vadd.f32 -1.0, %v10479_v9  ;;  %v10995_v17 = vsel %vm746_vm12, %v9474_v52, %v7967_v6  ;;  %vm11074_vm12 = vmpackc.low %vm10921_vm9, %vm10921_vm9 }
 0x297   : > { %v7966_v15 = vadd.f32 -1.0, %v10481_v13  ;;  %v10999_v19 = vsel %vm744_vm14, %v9475_v54, %v7965_v12  ;;  %vm11132_vm14 = vmpackc.low %vm12861_vm11, %vm12861_vm11 }
 0x298   : > { %v10997_v18 = vsel %vm747_vm13, %v9476_v57, %v7968_v14  ;;  %v10403_v57 = vld [vmem:[%s12854_s1 + $0x50] sm:$0xff]   ;;  %vm11111_vm13 = vmpackc.low %vm12862_vm10, %vm12862_vm10 }
 0x299   : > { %v11001_v21 = vsel %vm745_vm15, %v9477_v60, %v7966_v15  ;;  %v9899_v22 = vpack.i.bf16 %v10997_v18, %v10995_v17  ;;  %8830 = vmatprep.mubr.msk.bf16.mxu0 %vm828_vm6, %v10403_v57  ;;  %v11162_v57 = vpop.f32.mrb[0].mxu0 }
 0x29a   : > { %v9894_v23 = vpack.i.bf16 %v11001_v21, %v10999_v19  ;;  %v8794_v58 = vpop.f32.mrb[1].mxu0 }
 0x29b   : > { %9900 = vrot.lane.b32.xlu0 %v9899_v22, %s10769_s10 }
 0x29c   : > { %9895 = vrot.lane.b32.xlu1 %v9894_v23, %s10769_s10  ;;  %v10404_v23 = vld [vmem:[%s12854_s1 + $0x58] sm:$0xff]  }
 0x30d   : > { %v9901_v24 = vpop.permute.xlu0 %9900 }
 0x30e   : > { %v9903_v25 = vunpack.i.h.bf16 %v9901_v24  ;;  %v9902_v26 = vunpack.i.l.bf16 %v9901_v24  ;;  %v9896_v27 = vpop.permute.xlu1 %9895  ;;  %v10405_v24 = vld [vmem:[%s12854_s1 + $0x60] sm:$0xff]  }
 0x30f   : > { %v9898_v28 = vunpack.i.h.bf16 %v9896_v27  ;;  %v9897_v30 = vunpack.i.l.bf16 %v9896_v27  ;;  %v10406_v27 = vld [vmem:[%s12854_s1 + $0x68] sm:$0xff]  }
 0x310   : > { %v780_v31 = vsel %vm309_vm1, %v9902_v26, %v10995_v17  ;;  %v783_v32 = vsel %vm309_vm1, %v9903_v25, %v10997_v18  ;;  %v999_v26 = vpack.c.bf16 %v11001_v21, %v10999_v19 }
 0x311   : > { %v9909_v33 = vpack.i.bf16 %v783_v32, %v780_v31  ;;  %v774_v34 = vsel %vm309_vm1, %v9897_v30, %v10999_v19  ;;  %v777_v35 = vsel %vm309_vm1, %v9898_v28, %v11001_v21  ;;  %v10407_v30 = vld [vmem:[%s12854_s1 + $0x70] sm:$0xff]  }
 0x312   : > { %v9904_v37 = vpack.i.bf16 %v777_v35, %v774_v34 }
 0x313   : > { %9910 = vrot.lane.b32.xlu0 %v9909_v33, %s10769_s10 }
 0x314   : > { %9905 = vrot.lane.b32.xlu1 %v9904_v37, %s10769_s10 }
 0x385   : > { %v9911_v41 = vpop.permute.xlu0 %9910 }
 0x386   : > { %v9913_v42 = vunpack.i.h.bf16 %v9911_v41  ;;  %v9912_v43 = vunpack.i.l.bf16 %v9911_v41  ;;  %v9906_v44 = vpop.permute.xlu1 %9905 }
 0x387   : > { %v9908_v45 = vunpack.i.h.bf16 %v9906_v44  ;;  %v9907_v46 = vunpack.i.l.bf16 %v9906_v44 }
 0x388   : > { %v794_v50 = vsel %vm309_vm1, %v9912_v43, %v10995_v17  ;;  %v795_v52 = vsel %vm309_vm1, %v9913_v42, %v10997_v18 }
 0x389   : > { %v9919_v53 = vpack.i.bf16 %v795_v52, %v794_v50  ;;  %v792_v54 = vsel %vm309_vm1, %v9907_v46, %v10999_v19  ;;  %v793_v55 = vsel %vm309_vm1, %v9908_v45, %v11001_v21  ;;  %v1000_v19 = vpack.c.bf16 %v10997_v18, %v10995_v17  ;;  %v10408_v17 = vld [vmem:[%s12854_s1 + $0x78] sm:$0xff]  }
 0x38a   : > { %v9914_v56 = vpack.i.bf16 %v793_v55, %v792_v54  ;;  %v10411_v54 = vld [vmem:[%s12854_s1 + $0x90] sm:$0xff]   ;;  %v10702_v21 = vld [vmem:[%s12854_s1 + $0x27c] sm:$0xff]  }
 0x38b   : > { %9920 = vrot.lane.b32.xlu0 %v9919_v53, %s10771_s14 }
 0x38c   : > { %9915 = vrot.lane.b32.xlu1 %v9914_v56, %s10771_s14 }
 0x38f   : > { %9930 = vrot.lane.b32.xlu0 %v9919_v53, %s10772_s15 }
 0x390   : > { %9925 = vrot.lane.b32.xlu1 %v9914_v56, %s10772_s15 }
 0x393   : > { %9940 = vrot.lane.b32.xlu0 %v9919_v53, %s10770_s13 }
 0x394   : > { %9935 = vrot.lane.b32.xlu1 %v9914_v56, %s10770_s13 }
 0x397   : > { %9950 = vrot.lane.b32.xlu0 %v9919_v53, %s10773_s16  ;;  %v10410_v53 = vld [vmem:[%s12854_s1 + $0x88] sm:$0xff]  }
 0x398   : > { %9945 = vrot.lane.b32.xlu1 %v9914_v56, %s10773_s16  ;;  %v10412_v56 = vld [vmem:[%s12854_s1 + $0x98] sm:$0xff]  }
 0x39b   : > { %889 = vperm.xlu0 %9955, %v10894_v7  }
 0x39c   : > { %885 = vperm.xlu1 %9954, %v10899_v8  }
 0x3a0   : > { %893 = vperm.xlu1 %9954, %v10906_v10  }
 0x3a4   : > { %897 = vperm.xlu1 %9954, %v10911_v11  }
 0x3fd   : > { %v9921_v59 = vpop.permute.xlu0 %9920 }
 0x3fe   : > { %v9916_v60 = vpop.permute.xlu1 %9915  ;;  %v9923_v61 = vunpack.i.h.bf16 %v9921_v59  ;;  %v9922_v62 = vunpack.i.l.bf16 %v9921_v59  ;;  %v296_v59 = vpop.f32.mrb[2].mxu0 }
 0x3ff   : > { %v9918_v63 = vunpack.i.h.bf16 %v9916_v60  ;;  %v9917_v1 = vunpack.i.l.bf16 %v9916_v60  ;;  %v8795_v60 = vpop.f32.mrb[3].mxu0 }
 0x400   : > { %v7975_v5 = vpack.c.bf16 %v9923_v61, %v9922_v62  ;;  %v11167_v61 = vld [vmem:[%s12855_s2] sm:$0xf]  ;;  %v10778_v62 = vmov 2   ;;  %v1373_v60 = vrot.slane %v10875_v0, 1 }
 0x401   : > { %v7972_v3 = vpack.c.bf16 %v9918_v63, %v9917_v1  ;;  %v9931_v12 = vpop.permute.xlu0 %9930  ;;  %9956 = vset.pattern.permute.xlu0 %v10778_v62 }
 0x402   : > { %v9926_v4 = vpop.permute.xlu1 %9925  ;;  %v9933_v14 = vunpack.i.h.bf16 %v9931_v12  ;;  %v9932_v15 = vunpack.i.l.bf16 %v9931_v12  ;;  %1282 = vperm.xlu0 %9956, %v11167_v61  }
 0x403   : > { %v9928_v6 = vunpack.i.h.bf16 %v9926_v4  ;;  %v9927_v9 = vunpack.i.l.bf16 %v9926_v4  ;;  %8826 = vmatprep.subr.msk.bf16.mxu0 %vm11061_vm7, %v7972_v3 }
 0x404   : > { %8827 = vmatpush3.bf16.msk.msra.mxu0 %vm11061_vm7, %v7972_v3  ;;  %v7985_v25 = vpack.c.bf16 %v9933_v14, %v9932_v15 }
 0x405   : > { %8828 = vmatprep.subr.msk.bf16.mxu0 %vm11061_vm7, %v7975_v5  ;;  %v7982_v22 = vpack.c.bf16 %v9928_v6, %v9927_v9  ;;  %v9941_v34 = vpop.permute.xlu0 %9940 }
 0x406   : > { %v9936_v28 = vpop.permute.xlu1 %9935  ;;  %v9943_v35 = vunpack.i.h.bf16 %v9941_v34  ;;  %v9942_v37 = vunpack.i.l.bf16 %v9941_v34 }
 0x407   : > { %v9938_v31 = vunpack.i.h.bf16 %v9936_v28  ;;  %v9937_v32 = vunpack.i.l.bf16 %v9936_v28 }
 0x408   : > { %8829 = vmatpush3.bf16.msk.msra.mxu0 %vm11061_vm7, %v7975_v5  ;;  %v7999_v41 = vpack.c.bf16 %v9943_v35, %v9942_v37 }
 0x409   : > { %8834 = vmatprep.subr.msk.bf16.mxu0 %vm11074_vm12, %v7982_v22  ;;  %v7996_v33 = vpack.c.bf16 %v9938_v31, %v9937_v32  ;;  %v9951_v46 = vpop.permute.xlu0 %9950 }
 0x40a   : > { %v9946_v18 = vpop.permute.xlu1 %9945  ;;  %v9953_v50 = vunpack.i.h.bf16 %v9951_v46  ;;  %v9952_v52 = vunpack.i.l.bf16 %v9951_v46 }
 0x40b   : > { %8831 = vmatmul.mubr.msk.bf16.vlgmr.msra.gmra.mrb[4].mxu0 %vm828_vm6, %v10404_v23  ;;  %v9948_v42 = vunpack.i.h.bf16 %v9946_v18  ;;  %v9947_v43 = vunpack.i.l.bf16 %v9946_v18 }
 0x40c   : > { %8835 = vmatpush3.bf16.msk.msra.mxu0 %vm11074_vm12, %v7982_v22  ;;  %8838 = vmatprep.mubr.msk.bf16.mxu0 %vm828_vm6, %v10405_v24  ;;  %v8009_v55 = vpack.c.bf16 %v9953_v50, %v9952_v52  ;;  %v1276_v50 = vld [vmem:[%s12854_s1 + $0xa0] sm:$0x3] }
 0x40d   : > { %8836 = vmatprep.subr.msk.bf16.mxu0 %vm11074_vm12, %v7985_v25  ;;  %v8006_v45 = vpack.c.bf16 %v9948_v42, %v9947_v43 }
 0x410   : > { %8837 = vmatpush3.bf16.msk.msra.mxu0 %vm11074_vm12, %v7985_v25 }
 0x411   : > { %8842 = vmatprep.subr.bf16.mxu0 %v999_v26 }
 0x417   : > { %8839 = vmatmul.mubr.msk.bf16.vlgmr.msra.gmra.mrb[4].mxu0 %vm828_vm6, %v10406_v27 }
 0x418   : > { %8843 = vmatpush3.bf16.msra.mxu0 %v999_v26  ;;  %8846 = vmatprep.mubr.msk.bf16.mxu0 %vm828_vm6, %v10407_v30 }
 0x419   : > { %8844 = vmatprep.subr.bf16.mxu0 %v1000_v19 }
 0x41a   : > { %v11175_v5 = vpop.permute.xlu0 %889 }
 0x41b   : > { %v11170_v63 = vpop.permute.xlu1 %885 }
 0x41c   : > { %8845 = vmatpush3.bf16.msra.mxu0 %v1000_v19 }
 0x41d   : > { %8850 = vmatprep.subr.msk.bf16.mxu0 %vm11111_vm13, %v7996_v33 }
 0x423   : > { %8847 = vmatmul.mubr.msk.bf16.vlgmr.msra.gmra.mrb[4].mxu0 %vm828_vm6, %v10408_v17 }
 0x424   : > { %8851 = vmatpush3.bf16.msk.msra.mxu0 %vm11111_vm13, %v7996_v33  ;;  %8854 = vmatprep.mubr.msk.bf16.mxu0 %vm828_vm6, %v10409_v40 }
 0x425   : > { %8852 = vmatprep.subr.msk.bf16.mxu0 %vm11111_vm13, %v7999_v41 }
 0x428   : > { %8853 = vmatpush3.bf16.msk.msra.mxu0 %vm11111_vm13, %v7999_v41 }
 0x429   : > { %8858 = vmatprep.subr.msk.bf16.mxu0 %vm11132_vm14, %v8006_v45 }
 0x42f   : > { %8855 = vmatmul.mubr.msk.bf16.vlgmr.msra.gmra.mrb[4].mxu0 %vm828_vm6, %v10410_v53 }
 0x430   : > { %8859 = vmatpush3.bf16.msk.msra.mxu0 %vm11132_vm14, %v8006_v45  ;;  %8862 = vmatprep.mubr.msk.bf16.mxu0 %vm828_vm6, %v10411_v54 }
 0x431   : > { %8860 = vmatprep.subr.msk.bf16.mxu0 %vm11132_vm14, %v8009_v55 }
 0x434   : > { %8861 = vmatpush3.bf16.msk.msra.mxu0 %vm11132_vm14, %v8009_v55 }
 0x435   : > { %8874 = vmatprep.subr.bf16.mxu0 %v12865_v39 }
 0x43b   : > { %8863 = vmatmul.mubr.msk.bf16.vlgmr.msra.gmra.mrb[4].mxu0 %vm828_vm6, %v10412_v56 }
 0x43c   : > { %8875 = vmatpush3.bf16.msra.mxu0 %v11022_v38  ;;  %8876 = vmatprep.mubr.msk.bf16.mxu0 %vm12859_vm3, %v12865_v39  ;;  %v11172_v38 = vpop.permute.xlu1 %893 }
 0x440   : > { %v11177_v6 = vpop.permute.xlu1 %897 }
 0x481   : > { %v11187_v52 = vpop.permute.xlu0 %1282 }
 0x50e   : > { %v8864_v1 = vpop.f32.mrb[4].mxu0 }
 0x50f   : > { %v9478_v3 = vadd.f32 %v8864_v1, %v11172_v38  ;;  %v1233_v4 = vpop.f32.mrb[5].mxu0 }
 0x510   : > { %v9479_v9 = vadd.f32 %v1233_v4, %v11170_v63  ;;  %v8865_v12 = vpop.f32.mrb[6].mxu0 }
 0x511   : > { %v1258_v14 = vmin.f32 %v9478_v3, 0.0  ;;  %v9480_v15 = vadd.f32 %v8865_v12, %v11177_v6  ;;  %v1236_v22 = vpop.f32.mrb[7].mxu0  ;;  %vm1254_vm15 = vcmp.gt.f32.partialorder %v9478_v3, 0.0 }
 0x512   : > { %v1256_v23 = vmin.f32 %v9479_v9, 0.0  ;;  %v9481_v24 = vadd.f32 %v1236_v22, %v11175_v5  ;;  %vm1252_vm11 = vcmp.gt.f32.partialorder %v9479_v9, 0.0  ;;  %v10413_v22 = vld [vmem:[%s12854_s1 + $0xa4] sm:$0xff]  }
 0x513   : > { %v1264_v25 = vmul.f32 1.442695, %v1258_v14  ;;  %v1259_v26 = vmin.f32 %v9480_v15, 0.0  ;;  %vm1255_vm3 = vcmp.gt.f32.partialorder %v9480_v15, 0.0 }
 0x514   : > { %v1260_v27 = vmul.f32 1.442695, %v1256_v23  ;;  %v1257_v28 = vmin.f32 %v9481_v24, 0.0  ;;  %vm1253_vm10 = vcmp.gt.f32.partialorder %v9481_v24, 0.0 }
 0x515   : > { %10482 = vpow2.f32 %v1264_v25  ;;  %v1266_v30 = vmul.f32 1.442695, %v1259_v26 }
 0x516   : > { %10484 = vpow2.f32 %v1260_v27  ;;  %v1262_v31 = vmul.f32 1.442695, %v1257_v28 }
 0x517   : > { %10486 = vpow2.f32 %v1266_v30 }
 0x518   : > { %10488 = vpow2.f32 %v1262_v31 }
 0x51f   : > { %v10483_v32 = vpop.eup %10482 }
 0x520   : > { %v10485_v19 = vpop.eup %10484  ;;  %v8015_v33 = vadd.f32 -1.0, %v10483_v32 }
 0x521   : > { %v10487_v34 = vpop.eup %10486  ;;  %v8013_v35 = vadd.f32 -1.0, %v10485_v19  ;;  %v10414_v19 = vld [vmem:[%s12854_s1 + $0xac] sm:$0xff]  }
 0x522   : > { %v10489_v37 = vpop.eup %10488  ;;  %v8016_v17 = vadd.f32 -1.0, %v10487_v34  ;;  %v1274_v40 = vsel %vm1254_vm15, %v9478_v3, %v8015_v33  ;;  %v10415_v33 = vld [vmem:[%s12854_s1 + $0xb4] sm:$0xff]   ;;  %vm12886_vm15 = vmmov 0  }
 0x523   : > { %v8014_v18 = vadd.f32 -1.0, %v10489_v37  ;;  %v1272_v42 = vsel %vm1252_vm11, %v9479_v9, %v8013_v35  ;;  %vm12884_vm11 = vcmp.lt.s32.totalorder %v10939_v29, 16 }
 0x524   : > { %v1275_v41 = vsel %vm1255_vm3, %v9480_v15, %v8016_v17  ;;  %v10416_v17 = vld [vmem:[%s12854_s1 + $0xbc] sm:$0xff]   ;;  %vm12885_vm3 = vcmp.lt.s32.totalorder %v10954_v36, 16 }
 0x525   : > { %v1279_v43 = vpack.c.bf16 %v1275_v41, %v1274_v40  ;;  %v1273_v45 = vsel %vm1253_vm10, %v9481_v24, %v8014_v18  ;;  %vm12863_vm10 = vcmask 1040384   ;;  %v10779_v24 = vmov 3   ;;  %v10417_v40 = vld [vmem:[%s12854_s1 + $0xc4] sm:$0xff]  }
 0x526   : > { %v1278_v46 = vpack.c.bf16 %v1273_v45, %v1272_v42  ;;  %v11197_v4 = vsel %vm12863_vm10, %v11162_v57, %v1373_v60  ;;  %9958 = vset.pattern.permute.xlu1 %v10779_v24  ;;  %9957 = vset.pattern.permute.xlu0 %v10779_v24  ;;  %v10418_v45 = vld [vmem:[%s12854_s1 + $0xcc] sm:$0xff]  }
 0x528   : > { %8867 = vmatpush3.bf16.msra.mxu1 %v1278_v46 }
 0x529   : > { %8868 = vmatprep.subr.bf16.mxu1 %v12865_v39 }
 0x52c   : > { %8869 = vmatpush3.bf16.msra.mxu1 %v1279_v43 }
 0x52f   : > { %8871 = vmatmul.mubr.msk.bf16.vlgmr.msra.gmra.mrb[4].mxu1 %vm828_vm6, %v1276_v50  ;;  %v10419_v50 = vld [vmem:[%s12854_s1 + $0xd4] sm:$0xff]  }
 0x530   : > { %8882 = vmatprep.mubr.msk.bf16.mxu1 %vm334_vm2, %v10413_v22 }
 0x602   : > { %v1322_v53 = vpop.f32.mrb[4].mxu1 }
 0x603   : > { %v1323_v54 = vadd.f32 %v1322_v53, %v11187_v52  ;;  %v8872_v55 = vpop.f32.mrb[5].mxu1 }
 0x604   : > { %v1325_v56 = vpop.f32.mrb[6].mxu1  ;;  %v10420_v55 = vld [vmem:[%s12854_s1 + $0xdc] sm:$0xff]  }
 0x605   : > { %v1328_v58 = vpack.c.bf16 %v1323_v54, %v1323_v54  ;;  %v8873_v59 = vpop.f32.mrb[7].mxu1  ;;  %v10421_v56 = vld [vmem:[%s12854_s1 + $0xe4] sm:$0xff]  }
 0x606   : > { %v10422_v59 = vld [vmem:[%s12854_s1 + $0xec] sm:$0xff]  }
 0x607   : > { %8877 = vmatmul.mubr.msk.bf16.vlgmr.msra.gmra.mrb[8].mxu0 %vm255_vm4, %v1328_v58 }
 0x6da   : > { %v11192_v62 = vpop.f32.mrb[8].mxu0 }
 0x6db   : > { %v1376_v1 = vrot.slane %v11192_v62, 6  ;;  %v8878_v3 = vpop.f32.mrb[9].mxu0 }
 0x6dc   : > { %v1369_v9 = vpop.f32.mrb[10].mxu0 }
 0x6dd   : > { %v8879_v12 = vpop.f32.mrb[11].mxu0  ;;  %v1380_v14 = vsel %vm299_vm0, %v11197_v4, %v1376_v1 }
 0x6de   : > { %1385 = vrot.lane.b32.xlu1 %v1380_v14, %s10769_s10  ;;  %v1570_v35 = vpack.c.bf16 %v1380_v14, %v1380_v14 }
 0x6e0   : > { %v1588_v42 = vsel %vm12864_vm8, %v1570_v35, 0 }
 0x750   : > { %v1386_v15 = vpop.permute.xlu1 %1385 }
 0x751   : > { %v1387_v0 = vsel %vm309_vm1, %v1386_v15, %v1380_v14 }
 0x752   : > { %1388 = vrot.lane.b32.xlu1 %v1387_v0, %s10769_s10 }
 0x7c4   : > { %v1389_v57 = vpop.permute.xlu1 %1388 }
 0x7c5   : > { %v1390_v23 = vsel %vm309_vm1, %v1389_v57, %v1380_v14 }
 0x7c6   : > { %1489 = vrot.lane.b32.xlu1 %v1390_v23, %s10772_s15  ;;  %1392 = vrot.lane.b32.xlu0 %v1390_v23, %s10771_s14 }
 0x7ca   : > { %1728 = vrot.lane.b32.xlu1 %v1390_v23, %s10773_s16  ;;  %1647 = vrot.lane.b32.xlu0 %v1390_v23, %s10770_s13 }
 0x7ce   : > { %1470 = vperm.xlu1 %9958, %v10894_v7   ;;  %1466 = vperm.xlu0 %9957, %v10899_v8  }
 0x7d2   : > { %1474 = vperm.xlu1 %9958, %v10906_v10   ;;  %1478 = vperm.xlu0 %9957, %v10911_v11  }
 0x838   : > { %v1490_v25 = vpop.permute.xlu1 %1489  ;;  %v1393_v26 = vpop.permute.xlu0 %1392 }
 0x839   : > { %v1492_v27 = vsel %vm10921_vm9, %v1490_v25, 0.0  ;;  %v1395_v28 = vsel %vm10915_vm5, %v1393_v26, 0.0 }
 0x83a   : > { %v1396_v30 = vpack.c.bf16 %v1395_v28, %v1395_v28  ;;  %v1493_v31 = vpack.c.bf16 %v1492_v27, %v1492_v27 }
 0x83c   : > { %9799 = vmatprep.subr.msk.bf16.mxu1 %vm12864_vm8, %v1396_v30  ;;  %v1414_v32 = vsel %vm12864_vm8, %v1396_v30, 0  ;;  %v1511_v34 = vsel %vm12864_vm8, %v1493_v31, 0  ;;  %v1648_v37 = vpop.permute.xlu0 %1647  ;;  %v1729_v43 = vpop.permute.xlu1 %1728 }
 0x83d   : > { %8881 = vmatpush3.bf16.msra.mxu1 %v1414_v32  ;;  %v1650_v18 = vsel %vm12884_vm11, %v1648_v37, 0.0  ;;  %v1731_v46 = vsel %vm12885_vm3, %v1729_v43, 0.0 }
 0x83e   : > { %9800 = vmatprep.subr.msk.bf16.mxu1 %vm12864_vm8, %v1493_v31  ;;  %v1651_v41 = vpack.c.bf16 %v1650_v18, %v1650_v18  ;;  %v1732_v53 = vpack.c.bf16 %v1731_v46, %v1731_v46 }
 0x840   : > { %8883 = vmatmul.mubr.msk.bf16.vlgmr.msra.gmra.mrb[8].mxu1 %vm334_vm2, %v10414_v19  ;;  %v1669_v54 = vsel %vm12864_vm8, %v1651_v41, 0  ;;  %v1750_v58 = vsel %vm12864_vm8, %v1732_v53, 0 }
 0x841   : > { %8887 = vmatpush3.bf16.msra.mxu1 %v1511_v34  ;;  %8888 = vmatprep.mubr.msk.bf16.mxu1 %vm334_vm2, %v10415_v33 }
 0x842   : > { %9801 = vmatprep.subr.msk.bf16.mxu1 %vm12864_vm8, %v1570_v35 }
 0x84c   : > { %8889 = vmatmul.mubr.msk.bf16.vlgmr.msra.gmra.mrb[8].mxu1 %vm334_vm2, %v10416_v17 }
 0x84d   : > { %8893 = vmatpush3.bf16.msra.mxu1 %v1588_v42  ;;  %8894 = vmatprep.mubr.msk.bf16.mxu1 %vm334_vm2, %v10417_v40  ;;  %v11274_v60 = vpop.permute.xlu1 %1470  ;;  %v11276_v1 = vpop.permute.xlu0 %1466 }
 0x84e   : > { %9802 = vmatprep.subr.msk.bf16.mxu1 %vm12864_vm8, %v1651_v41 }
 0x851   : > { %v11278_v3 = vpop.permute.xlu1 %1474  ;;  %v11280_v12 = vpop.permute.xlu0 %1478 }
 0x858   : > { %8895 = vmatmul.mubr.msk.bf16.vlgmr.msra.gmra.mrb[8].mxu1 %vm334_vm2, %v10418_v45 }
 0x859   : > { %8899 = vmatpush3.bf16.msra.mxu1 %v1669_v54  ;;  %8900 = vmatprep.mubr.msk.bf16.mxu1 %vm334_vm2, %v10419_v50 }
 0x85a   : > { %9803 = vmatprep.subr.msk.bf16.mxu1 %vm12864_vm8, %v1732_v53 }
 0x864   : > { %8901 = vmatmul.mubr.msk.bf16.vlgmr.msra.gmra.mrb[8].mxu1 %vm334_vm2, %v10420_v55 }
 0x865   : > { %8905 = vmatpush3.bf16.msra.mxu1 %v1750_v58  ;;  %8906 = vmatprep.mubr.msk.bf16.mxu1 %vm334_vm2, %v10421_v56 }
 0x866   : > { %8950 = vmatprep.subr.bf16.mxu1 %v12865_v39 }
 0x870   : > { %8907 = vmatmul.mubr.msk.bf16.vlgmr.msra.gmra.mrb[8].mxu1 %vm334_vm2, %v10422_v59 }
 0x871   : > { %8954 = vmatprep.mubr.msk.bf16.mxu1 %vm12886_vm15, %v12865_v39 }
 0x943   : > { %v8908_v9 = vpop.f32.mrb[8].mxu1 }
 0x944   : > { %v9482_v14 = vadd.f32 %v8908_v9, %v11278_v3  ;;  %v1786_v15 = vpop.f32.mrb[9].mxu1 }
 0x945   : > { %v9483_v0 = vadd.f32 %v1786_v15, %v11276_v1  ;;  %v8909_v22 = vpop.f32.mrb[10].mxu1 }
 0x946   : > { %v1811_v57 = vmin.f32 %v9482_v14, 0.0  ;;  %v9484_v23 = vadd.f32 %v8909_v22, %v11280_v12  ;;  %v1789_v24 = vpop.f32.mrb[11].mxu1  ;;  %vm1807_vm11 = vcmp.gt.f32.partialorder %v9482_v14, 0.0 }
 0x947   : > { %v1809_v25 = vmin.f32 %v9483_v0, 0.0  ;;  %v9485_v26 = vadd.f32 %v1789_v24, %v11274_v60  ;;  %vm1805_vm10 = vcmp.gt.f32.partialorder %v9483_v0, 0.0 }
 0x948   : > { %v1817_v27 = vmul.f32 1.442695, %v1811_v57  ;;  %v1812_v28 = vmin.f32 %v9484_v23, 0.0  ;;  %vm1808_vm3 = vcmp.gt.f32.partialorder %v9484_v23, 0.0 }
 0x949   : > { %v1813_v30 = vmul.f32 1.442695, %v1809_v25  ;;  %v1810_v31 = vmin.f32 %v9485_v26, 0.0  ;;  %vm1806_vm8 = vcmp.gt.f32.partialorder %v9485_v26, 0.0 }
 0x94a   : > { %10490 = vpow2.f32 %v1817_v27  ;;  %v1819_v32 = vmul.f32 1.442695, %v1812_v28 }
 0x94b   : > { %10492 = vpow2.f32 %v1813_v30  ;;  %v1815_v19 = vmul.f32 1.442695, %v1810_v31 }
 0x94c   : > { %10494 = vpow2.f32 %v1819_v32 }
 0x94d   : > { %10496 = vpow2.f32 %v1815_v19 }
 0x954   : > { %v10491_v33 = vpop.eup %10490 }
 0x955   : > { %v10493_v34 = vpop.eup %10492  ;;  %v8041_v35 = vadd.f32 -1.0, %v10491_v33 }
 0x956   : > { %v10495_v37 = vpop.eup %10494  ;;  %v8039_v17 = vadd.f32 -1.0, %v10493_v34 }
 0x957   : > { %v10497_v18 = vpop.eup %10496  ;;  %v8042_v40 = vadd.f32 -1.0, %v10495_v37  ;;  %v11286_v42 = vsel %vm1807_vm11, %v9482_v14, %v8041_v35  ;;  %v10423_v37 = vld [vmem:[%s12854_s1 + $0xf4] sm:$0xff]  }
 0x958   : > { %v8040_v41 = vadd.f32 -1.0, %v10497_v18  ;;  %v11290_v45 = vsel %vm1805_vm10, %v9483_v0, %v8039_v17  ;;  %8914 = vmatprep.mubr.msk.bf16.mxu0 %vm828_vm6, %v10423_v37  ;;  %v10780_v17 = vmov 4  }
 0x959   : > { %v11288_v43 = vsel %vm1808_vm3, %v9484_v23, %v8042_v40  ;;  %10019 = vset.pattern.permute.xlu1 %v10780_v17  ;;  %10020 = vset.pattern.permute.xlu0 %v10780_v17 }
 0x95a   : > { %v11292_v46 = vsel %vm1806_vm8, %v9485_v26, %v8040_v41  ;;  %v9964_v50 = vpack.i.bf16 %v11288_v43, %v11286_v42 }
 0x95b   : > { %v9959_v53 = vpack.i.bf16 %v11292_v46, %v11290_v45 }
 0x95c   : > { %9965 = vrot.lane.b32.xlu0 %v9964_v50, %s10769_s10 }
 0x95d   : > { %9960 = vrot.lane.b32.xlu1 %v9959_v53, %s10769_s10 }
 0x9ce   : > { %v9966_v54 = vpop.permute.xlu0 %9965 }
 0x9cf   : > { %v9968_v55 = vunpack.i.h.bf16 %v9966_v54  ;;  %v9967_v56 = vunpack.i.l.bf16 %v9966_v54  ;;  %v9961_v58 = vpop.permute.xlu1 %9960 }
 0x9d0   : > { %v9963_v59 = vunpack.i.h.bf16 %v9961_v58  ;;  %v9962_v9 = vunpack.i.l.bf16 %v9961_v58 }
 0x9d1   : > { %v1841_v14 = vsel %vm309_vm1, %v9967_v56, %v11286_v42  ;;  %v1844_v15 = vsel %vm309_vm1, %v9968_v55, %v11288_v43 }
 0x9d2   : > { %v9974_v0 = vpack.i.bf16 %v1844_v15, %v1841_v14  ;;  %v1835_v22 = vsel %vm309_vm1, %v9962_v9, %v11290_v45  ;;  %v1838_v57 = vsel %vm309_vm1, %v9963_v59, %v11292_v46  ;;  %v10424_v14 = vld [vmem:[%s12854_s1 + $0xfc] sm:$0xff]   ;;  %v10425_v15 = vld [vmem:[%s12854_s1 + $0x104] sm:$0xff]  }
 0x9d3   : > { %v9969_v23 = vpack.i.bf16 %v1838_v57, %v1835_v22  ;;  %v2059_v22 = vpack.c.bf16 %v11292_v46, %v11290_v45  ;;  %v10426_v57 = vld [vmem:[%s12854_s1 + $0x10c] sm:$0xff]  }
 0x9d4   : > { %9975 = vrot.lane.b32.xlu0 %v9974_v0, %s10769_s10 }
 0x9d5   : > { %9970 = vrot.lane.b32.xlu1 %v9969_v23, %s10769_s10 }
 0xa46   : > { %v9976_v24 = vpop.permute.xlu0 %9975 }
 0xa47   : > { %v9978_v25 = vunpack.i.h.bf16 %v9976_v24  ;;  %v9977_v26 = vunpack.i.l.bf16 %v9976_v24  ;;  %v9971_v27 = vpop.permute.xlu1 %9970  ;;  %v10427_v24 = vld [vmem:[%s12854_s1 + $0x114] sm:$0xff]  }
 0xa48   : > { %v9973_v28 = vunpack.i.h.bf16 %v9971_v27  ;;  %v9972_v30 = vunpack.i.l.bf16 %v9971_v27 }
 0xa49   : > { %v1855_v31 = vsel %vm309_vm1, %v9977_v26, %v11286_v42  ;;  %v1856_v32 = vsel %vm309_vm1, %v9978_v25, %v11288_v43 }
 0xa4a   : > { %v9984_v19 = vpack.i.bf16 %v1856_v32, %v1855_v31  ;;  %v1853_v33 = vsel %vm309_vm1, %v9972_v30, %v11290_v45  ;;  %v1854_v34 = vsel %vm309_vm1, %v9973_v28, %v11292_v46  ;;  %v2060_v45 = vpack.c.bf16 %v11288_v43, %v11286_v42  ;;  %v10428_v31 = vld [vmem:[%s12854_s1 + $0x11c] sm:$0xff]   ;;  %v10429_v42 = vld [vmem:[%s12854_s1 + $0x124] sm:$0xff]  }
 0xa4b   : > { %v9979_v35 = vpack.i.bf16 %v1854_v34, %v1853_v33 }
 0xa4c   : > { %9985 = vrot.lane.b32.xlu0 %v9984_v19, %s10771_s14 }
 0xa4d   : > { %9980 = vrot.lane.b32.xlu1 %v9979_v35, %s10771_s14 }
 0xa50   : > { %9995 = vrot.lane.b32.xlu0 %v9984_v19, %s10772_s15 }
 0xa51   : > { %9990 = vrot.lane.b32.xlu1 %v9979_v35, %s10772_s15 }
 0xa54   : > { %10005 = vrot.lane.b32.xlu0 %v9984_v19, %s10770_s13 }
 0xa55   : > { %10000 = vrot.lane.b32.xlu1 %v9979_v35, %s10770_s13 }
 0xa58   : > { %10015 = vrot.lane.b32.xlu0 %v9984_v19, %s10773_s16 }
 0xa59   : > { %10010 = vrot.lane.b32.xlu1 %v9979_v35, %s10773_s16 }
 0xa5c   : > { %1949 = vperm.xlu0 %10020, %v10894_v7  }
 0xa5d   : > { %1945 = vperm.xlu1 %10019, %v10899_v8  }
 0xa61   : > { %1953 = vperm.xlu1 %10019, %v10906_v10  }
 0xa65   : > { %1957 = vperm.xlu1 %10019, %v10911_v11  }
 0xabe   : > { %v9986_v18 = vpop.permute.xlu0 %9985 }
 0xabf   : > { %v9981_v40 = vpop.permute.xlu1 %9980  ;;  %v9988_v41 = vunpack.i.h.bf16 %v9986_v18  ;;  %v9987_v50 = vunpack.i.l.bf16 %v9986_v18  ;;  %v10430_v18 = vld [vmem:[%s12854_s1 + $0x12c] sm:$0xff]  }
 0xac0   : > { %v9983_v53 = vunpack.i.h.bf16 %v9981_v40  ;;  %v9982_v54 = vunpack.i.l.bf16 %v9981_v40  ;;  %v10431_v40 = vld [vmem:[%s12854_s1 + $0x134] sm:$0xff]  }
 0xac1   : > { %v8049_v58 = vpack.c.bf16 %v9988_v41, %v9987_v50  ;;  %v10432_v50 = vld [vmem:[%s12854_s1 + $0x13c] sm:$0xff]  }
 0xac2   : > { %v8046_v55 = vpack.c.bf16 %v9983_v53, %v9982_v54  ;;  %v9996_v8 = vpop.permute.xlu0 %9995  ;;  %v10781_v53 = vmov 5  }
 0xac3   : > { %v9991_v56 = vpop.permute.xlu1 %9990  ;;  %v9998_v7 = vunpack.i.h.bf16 %v9996_v8  ;;  %v9997_v10 = vunpack.i.l.bf16 %v9996_v8  ;;  %10021 = vset.pattern.permute.xlu0 %v10781_v53 }
 0xac4   : > { %v9993_v59 = vunpack.i.h.bf16 %v9991_v56  ;;  %v9992_v9 = vunpack.i.l.bf16 %v9991_v56  ;;  %8910 = vmatprep.subr.msk.bf16.mxu0 %vm11061_vm7, %v8046_v55  ;;  %2340 = vperm.xlu0 %10021, %v11167_v61  }
 0xac5   : > { %8911 = vmatpush3.bf16.msk.msra.mxu0 %vm11061_vm7, %v8046_v55  ;;  %v8059_v0 = vpack.c.bf16 %v9998_v7, %v9997_v10 }
 0xac6   : > { %8912 = vmatprep.subr.msk.bf16.mxu0 %vm11061_vm7, %v8049_v58  ;;  %v8056_v11 = vpack.c.bf16 %v9993_v59, %v9992_v9  ;;  %v10006_v27 = vpop.permute.xlu0 %10005 }
 0xac7   : > { %v10001_v23 = vpop.permute.xlu1 %10000  ;;  %v10008_v28 = vunpack.i.h.bf16 %v10006_v27  ;;  %v10007_v30 = vunpack.i.l.bf16 %v10006_v27 }
 0xac8   : > { %v10003_v25 = vunpack.i.h.bf16 %v10001_v23  ;;  %v10002_v26 = vunpack.i.l.bf16 %v10001_v23 }
 0xac9   : > { %8913 = vmatpush3.bf16.msk.msra.mxu0 %vm11061_vm7, %v8049_v58  ;;  %v8073_v43 = vpack.c.bf16 %v10008_v28, %v10007_v30 }
 0xaca   : > { %8918 = vmatprep.subr.msk.bf16.mxu0 %vm11074_vm12, %v8056_v11  ;;  %v8070_v46 = vpack.c.bf16 %v10003_v25, %v10002_v26  ;;  %v10016_v35 = vpop.permute.xlu0 %10015 }
 0xacb   : > { %v10011_v32 = vpop.permute.xlu1 %10010  ;;  %v10018_v37 = vunpack.i.h.bf16 %v10016_v35  ;;  %v10017_v17 = vunpack.i.l.bf16 %v10016_v35 }
 0xacc   : > { %8915 = vmatmul.mubr.msk.bf16.vlgmr.msra.gmra.mrb[12].mxu0 %vm828_vm6, %v10424_v14  ;;  %v10013_v19 = vunpack.i.h.bf16 %v10011_v32  ;;  %v10012_v33 = vunpack.i.l.bf16 %v10011_v32 }
 0xacd   : > { %8919 = vmatpush3.bf16.msk.msra.mxu0 %vm11074_vm12, %v8056_v11  ;;  %8922 = vmatprep.mubr.msk.bf16.mxu0 %vm828_vm6, %v10425_v15  ;;  %v8083_v41 = vpack.c.bf16 %v10018_v37, %v10017_v17  ;;  %v2336_v17 = vld [vmem:[%s12854_s1 + $0x144] sm:$0x3] }
 0xace   : > { %8920 = vmatprep.subr.msk.bf16.mxu0 %vm11074_vm12, %v8059_v0  ;;  %v8080_v34 = vpack.c.bf16 %v10013_v19, %v10012_v33 }
 0xad1   : > { %8921 = vmatpush3.bf16.msk.msra.mxu0 %vm11074_vm12, %v8059_v0 }
 0xad2   : > { %8926 = vmatprep.subr.bf16.mxu0 %v2059_v22 }
 0xad8   : > { %8923 = vmatmul.mubr.msk.bf16.vlgmr.msra.gmra.mrb[12].mxu0 %vm828_vm6, %v10426_v57 }
 0xad9   : > { %8927 = vmatpush3.bf16.msra.mxu0 %v2059_v22  ;;  %8930 = vmatprep.mubr.msk.bf16.mxu0 %vm828_vm6, %v10427_v24 }
 0xada   : > { %8928 = vmatprep.subr.bf16.mxu0 %v2060_v45 }
 0xadb   : > { %v11415_v9 = vpop.permute.xlu0 %1949 }
 0xadc   : > { %v11410_v54 = vpop.permute.xlu1 %1945 }
 0xadd   : > { %8929 = vmatpush3.bf16.msra.mxu0 %v2060_v45 }
 0xade   : > { %8934 = vmatprep.subr.msk.bf16.mxu0 %vm11111_vm13, %v8070_v46 }
 0xae0   : > { %v11412_v55 = vpop.permute.xlu1 %1953 }
 0xae4   : > { %8931 = vmatmul.mubr.msk.bf16.vlgmr.msra.gmra.mrb[12].mxu0 %vm828_vm6, %v10428_v31  ;;  %v11417_v8 = vpop.permute.xlu1 %1957 }
 0xae5   : > { %8935 = vmatpush3.bf16.msk.msra.mxu0 %vm11111_vm13, %v8070_v46  ;;  %8938 = vmatprep.mubr.msk.bf16.mxu0 %vm828_vm6, %v10429_v42 }
 0xae6   : > { %8936 = vmatprep.subr.msk.bf16.mxu0 %vm11111_vm13, %v8073_v43 }
 0xae9   : > { %8937 = vmatpush3.bf16.msk.msra.mxu0 %vm11111_vm13, %v8073_v43 }
 0xaea   : > { %8942 = vmatprep.subr.msk.bf16.mxu0 %vm11132_vm14, %v8080_v34 }
 0xaf0   : > { %8939 = vmatmul.mubr.msk.bf16.vlgmr.msra.gmra.mrb[12].mxu0 %vm828_vm6, %v10430_v18  ;;  %v10433_v18 = vld [vmem:[%s12856_s3] sm:$0xff]  }
 0xaf1   : > { %8943 = vmatpush3.bf16.msk.msra.mxu0 %vm11132_vm14, %v8080_v34  ;;  %8946 = vmatprep.mubr.msk.bf16.mxu0 %vm828_vm6, %v10431_v40 }
 0xaf2   : > { %8944 = vmatprep.subr.msk.bf16.mxu0 %vm11132_vm14, %v8083_v41 }
 0xaf5   : > { %8945 = vmatpush3.bf16.msk.msra.mxu0 %vm11132_vm14, %v8083_v41 }
 0xaf6   : > { %8958 = vmatprep.subr.bf16.mxu0 %v12865_v39 }
 0xafc   : > { %8947 = vmatmul.mubr.msk.bf16.vlgmr.msra.gmra.mrb[12].mxu0 %vm828_vm6, %v10432_v50 }
 0xafd   : > { %8960 = vmatprep.mubr.msk.bf16.mxu0 %vm12886_vm15, %v12865_v39  ;;  %8959 = vmatpush3.bf16.msra.mxu0 %v10433_v18 }
 0xb43   : > { %v11430_v40 = vpop.permute.xlu0 %2340 }
 0xbcf   : > { %v8948_v56 = vpop.f32.mrb[12].mxu0 }
 0xbd0   : > { %v9486_v58 = vadd.f32 %v8948_v56, %v11412_v55  ;;  %v2293_v59 = vpop.f32.mrb[13].mxu0 }
 0xbd1   : > { %v9487_v7 = vadd.f32 %v2293_v59, %v11410_v54  ;;  %v8949_v10 = vpop.f32.mrb[14].mxu0 }
 0xbd2   : > { %v2318_v11 = vmin.f32 %v9486_v58, 0.0  ;;  %v9488_v14 = vadd.f32 %v8949_v10, %v11417_v8  ;;  %v2296_v15 = vpop.f32.mrb[15].mxu0  ;;  %vm2314_vm8 = vcmp.gt.f32.partialorder %v9486_v58, 0.0 }
 0xbd3   : > { %v2316_v61 = vmin.f32 %v9487_v7, 0.0  ;;  %v9489_v0 = vadd.f32 %v2296_v15, %v11415_v9  ;;  %vm2312_vm11 = vcmp.gt.f32.partialorder %v9487_v7, 0.0 }
 0xbd4   : > { %v2324_v22 = vmul.f32 1.442695, %v2318_v11  ;;  %v2319_v57 = vmin.f32 %v9488_v14, 0.0  ;;  %vm2315_vm10 = vcmp.gt.f32.partialorder %v9488_v14, 0.0 }
 0xbd5   : > { %v2320_v23 = vmul.f32 1.442695, %v2316_v61  ;;  %v2317_v24 = vmin.f32 %v9489_v0, 0.0  ;;  %vm2313_vm3 = vcmp.gt.f32.partialorder %v9489_v0, 0.0 }
 0xbd6   : > { %10498 = vpow2.f32 %v2324_v22  ;;  %v2326_v25 = vmul.f32 1.442695, %v2319_v57 }
 0xbd7   : > { %10500 = vpow2.f32 %v2320_v23  ;;  %v2322_v26 = vmul.f32 1.442695, %v2317_v24 }
 0xbd8   : > { %10502 = vpow2.f32 %v2326_v25 }
 0xbd9   : > { %10504 = vpow2.f32 %v2322_v26  ;;  %v10782_v26 = vmov 6  }
 0xbda   : > { %10023 = vset.pattern.permute.xlu1 %v10782_v26  ;;  %10022 = vset.pattern.permute.xlu0 %v10782_v26 }
 0xbe0   : > { %v10499_v45 = vpop.eup %10498 }
 0xbe1   : > { %v10501_v46 = vpop.eup %10500  ;;  %v8089_v27 = vadd.f32 -1.0, %v10499_v45  ;;  %v11455_v45 = vld [vmem:[%s12855_s2 + $0x8] sm:$0xff] }
 0xbe2   : > { %v10503_v28 = vpop.eup %10502  ;;  %v8087_v30 = vadd.f32 -1.0, %v10501_v46  ;;  %v11461_v46 = vld [vmem:[%s12855_s2] sm:$0xff] }
 0xbe3   : > { %v10505_v31 = vpop.eup %10504  ;;  %v8090_v32 = vadd.f32 -1.0, %v10503_v28  ;;  %v2334_v43 = vsel %vm2314_vm8, %v9486_v58, %v8089_v27  ;;  %v11467_v27 = vld [vmem:[%s12855_s2 + $0x10] sm:$0xff]  ;;  %v11473_v28 = vld [vmem:[%s12855_s2 + $0x18] sm:$0xff]  ;;  %vm12887_vm8 = vcmask 1042432  }
 0xbe4   : > { %v8088_v42 = vadd.f32 -1.0, %v10505_v31  ;;  %v2332_v33 = vsel %vm2312_vm11, %v9487_v7, %v8087_v30  ;;  %vm12889_vm11 = vmmov %vm12887_vm8 }
 0xbe5   : > { %v2335_v19 = vsel %vm2315_vm10, %v9488_v14, %v8090_v32  ;;  %vm12888_vm10 = vmmov %vm12887_vm8 }
 0xbe6   : > { %v2338_v34 = vpack.c.bf16 %v2335_v19, %v2334_v43  ;;  %v2333_v35 = vsel %vm2313_vm3, %v9489_v0, %v8088_v42  ;;  %v10610_v0 = vld [vmem:[%s10872_s9] sm:$0x7]  ;;  %vm12890_vm3 = vmmov %vm12887_vm8 }
 0xbe7   : > { %v2337_v37 = vpack.c.bf16 %v2333_v35, %v2332_v33  ;;  %v10436_v35 = vld [vmem:[%s12854_s1 + $0x158] sm:$0xff]  }
 0xbe9   : > { %8951 = vmatpush3.bf16.msra.mxu1 %v2337_v37 }
 0xbea   : > { %8952 = vmatprep.subr.bf16.mxu1 %v12865_v39 }
 0xbed   : > { %8953 = vmatpush3.bf16.msra.mxu1 %v2338_v34  ;;  %v10435_v34 = vld [vmem:[%s12854_s1 + $0x150] sm:$0xff]  }
 0xbf0   : > { %8955 = vmatmul.mubr.msk.bf16.vlgmr.msra.gmra.mrb[12].mxu1 %vm828_vm6, %v2336_v17 }
 0xcc3   : > { %v2380_v41 = vpop.f32.mrb[12].mxu1 }
 0xcc4   : > { %v2381_v50 = vadd.f32 %v2380_v41, %v11430_v40  ;;  %v8956_v53 = vpop.f32.mrb[13].mxu1  ;;  %v10437_v41 = vld [vmem:[%s12854_s1 + $0x160] sm:$0xff]  }
 0xcc5   : > { %v2383_v56 = vpop.f32.mrb[14].mxu1  ;;  %v10438_v53 = vld [vmem:[%s12854_s1 + $0x168] sm:$0xff]  }
 0xcc6   : > { %v2386_v58 = vsub.f32 %v2381_v50, %v11192_v62  ;;  %v8957_v59 = vpop.f32.mrb[15].mxu1  ;;  %v10434_v62 = vld [vmem:[%s12854_s1 + $0x148] sm:$0xff]  }
 0xcc7   : > { %8966 = vmatprep.mubr.msk.bf16.mxu1 %vm334_vm2, %v10434_v62 }
 0xcc8   : > { %v2387_v7 = vpack.c.bf16 %v2386_v58, %v2386_v58 }
 0xcca   : > { %8961 = vmatmul.mubr.msk.bf16.vlgmr.msra.gmra.mrb[16].mxu0 %vm255_vm4, %v2387_v7  ;;  %v10439_v7 = vld [vmem:[%s12854_s1 + $0x170] sm:$0xff]  }
 0xd9d   : > { %v11435_v10 = vpop.f32.mrb[16].mxu0 }
 0xd9e   : > { %v2438_v11 = vrot.slane %v11435_v10, 6  ;;  %v8962_v14 = vpop.f32.mrb[17].mxu0 }
 0xd9f   : > { %v2434_v15 = vpop.f32.mrb[18].mxu0  ;;  %v10440_v14 = vld [vmem:[%s12854_s1 + $0x178] sm:$0xff]  }
 0xda0   : > { %v8963_v61 = vpop.f32.mrb[19].mxu0  ;;  %v2440_v22 = vsel %vm299_vm0, %v10610_v0, %v2438_v11  ;;  %v10441_v0 = vld [vmem:[%s12854_s1 + $0x180] sm:$0xff]  }
 0xda1   : > { %2445 = vrot.lane.b32.xlu1 %v2440_v22, %s10769_s10  ;;  %v2630_v17 = vpack.c.bf16 %v2440_v22, %v2440_v22 }
 0xe13   : > { %v2446_v57 = vpop.permute.xlu1 %2445 }
 0xe14   : > { %v2447_v23 = vsel %vm309_vm1, %v2446_v57, %v2440_v22 }
 0xe15   : > { %2448 = vrot.lane.b32.xlu1 %v2447_v23, %s10769_s10  ;;  %v10443_v23 = vld [vmem:[%s12854_s1 + $0x190] sm:$0xff]  }
 0xe87   : > { %v2449_v24 = vpop.permute.xlu1 %2448 }
 0xe88   : > { %v2450_v25 = vsel %vm309_vm1, %v2449_v24, %v2440_v22  ;;  %v10442_v22 = vld [vmem:[%s12854_s1 + $0x188] sm:$0xff]  }
 0xe89   : > { %2549 = vrot.lane.b32.xlu1 %v2450_v25, %s10772_s15  ;;  %2452 = vrot.lane.b32.xlu0 %v2450_v25, %s10771_s14 }
 0xe8d   : > { %2788 = vrot.lane.b32.xlu1 %v2450_v25, %s10773_s16  ;;  %2707 = vrot.lane.b32.xlu0 %v2450_v25, %s10770_s13 }
 0xe91   : > { %2530 = vperm.xlu1 %10023, %v11455_v45   ;;  %2526 = vperm.xlu0 %10022, %v11461_v46  }
 0xe95   : > { %2534 = vperm.xlu1 %10023, %v11467_v27   ;;  %2538 = vperm.xlu0 %10022, %v11473_v28  }
 0xefb   : > { %v2550_v30 = vpop.permute.xlu1 %2549  ;;  %v2453_v31 = vpop.permute.xlu0 %2452 }
 0xefc   : > { %v2552_v32 = vsel %vm10921_vm9, %v2550_v30, 0.0  ;;  %v2455_v42 = vsel %vm10915_vm5, %v2453_v31, 0.0 }
 0xefd   : > { %v2456_v43 = vpack.c.bf16 %v2455_v42, %v2455_v42  ;;  %v2553_v19 = vpack.c.bf16 %v2552_v32, %v2552_v32 }
 0xeff   : > { %9804 = vmatprep.subr.msk.bf16.mxu1 %vm12887_vm8, %v2456_v43  ;;  %v2474_v33 = vsel %vm12888_vm10, %v2456_v43, 0  ;;  %v2571_v37 = vsel %vm12890_vm3, %v2553_v19, 0  ;;  %vm12891_vm8 = vmmov %vm12890_vm3  ;;  %v2708_v18 = vpop.permute.xlu0 %2707  ;;  %vm12892_vm10 = vcmp.lt.s32.totalorder %v10939_v29, 16  ;;  %v2789_v59 = vpop.permute.xlu1 %2788 }
 0xf00   : > { %8965 = vmatpush3.bf16.msra.mxu1 %v2474_v33  ;;  %v2710_v50 = vsel %vm12892_vm10, %v2708_v18, 0.0  ;;  %vm12895_vm10 = vmmov %vm12890_vm3 }
 0xf01   : > { %9805 = vmatprep.subr.msk.bf16.mxu1 %vm12889_vm11, %v2553_v19  ;;  %v2711_v56 = vpack.c.bf16 %v2710_v50, %v2710_v50  ;;  %vm12893_vm11 = vmmov %vm12890_vm3 }
 0xf02   : > { %v2648_v58 = vsel %vm12893_vm11, %v2630_v17, 0  ;;  %vm12896_vm11 = vmmov %vm12890_vm3 }
 0xf03   : > { %8967 = vmatmul.mubr.msk.bf16.vlgmr.msra.gmra.mrb[16].mxu1 %vm334_vm2, %v10435_v34  ;;  %v2729_v61 = vsel %vm12895_vm10, %v2711_v56, 0 }
 0xf04   : > { %8971 = vmatpush3.bf16.msra.mxu1 %v2571_v37  ;;  %8972 = vmatprep.mubr.msk.bf16.mxu1 %vm334_vm2, %v10436_v35 }
 0xf05   : > { %9806 = vmatprep.subr.msk.bf16.mxu1 %vm12891_vm8, %v2630_v17  ;;  %vm12894_vm8 = vcmp.lt.s32.totalorder %v10954_v36, 16 }
 0xf06   : > { %v2791_v11 = vsel %vm12894_vm8, %v2789_v59, 0.0 }
 0xf07   : > { %v2792_v15 = vpack.c.bf16 %v2791_v11, %v2791_v11 }
 0xf09   : > { %v2810_v57 = vsel %vm12890_vm3, %v2792_v15, 0 }
 0xf0f   : > { %8973 = vmatmul.mubr.msk.bf16.vlgmr.msra.gmra.mrb[16].mxu1 %vm334_vm2, %v10437_v41 }
 0xf10   : > { %8977 = vmatpush3.bf16.msra.mxu1 %v2648_v58  ;;  %8978 = vmatprep.mubr.msk.bf16.mxu1 %vm334_vm2, %v10438_v53  ;;  %v11533_v62 = vpop.permute.xlu1 %2530  ;;  %v11535_v24 = vpop.permute.xlu0 %2526 }
 0xf11   : > { %9807 = vmatprep.subr.msk.bf16.mxu1 %vm12890_vm3, %v2711_v56 }
 0xf14   : > { %v11537_v25 = vpop.permute.xlu1 %2534  ;;  %v11539_v30 = vpop.permute.xlu0 %2538 }
 0xf1b   : > { %8979 = vmatmul.mubr.msk.bf16.vlgmr.msra.gmra.mrb[16].mxu1 %vm334_vm2, %v10439_v7 }
 0xf1c   : > { %8983 = vmatpush3.bf16.msra.mxu1 %v2729_v61  ;;  %8984 = vmatprep.mubr.msk.bf16.mxu1 %vm334_vm2, %v10440_v14 }
 0xf1d   : > { %9808 = vmatprep.subr.msk.bf16.mxu1 %vm12896_vm11, %v2792_v15 }
 0xf27   : > { %8985 = vmatmul.mubr.msk.bf16.vlgmr.msra.gmra.mrb[16].mxu1 %vm334_vm2, %v10441_v0 }
 0xf28   : > { %8989 = vmatpush3.bf16.msra.mxu1 %v2810_v57  ;;  %8990 = vmatprep.mubr.msk.bf16.mxu1 %vm334_vm2, %v10442_v22 }
 0xf29   : > { %9034 = vmatprep.subr.bf16.mxu1 %v12865_v39 }
 0xf33   : > { %8991 = vmatmul.mubr.msk.bf16.vlgmr.msra.gmra.mrb[16].mxu1 %vm334_vm2, %v10443_v23 }
 0xf34   : > { %9038 = vmatprep.mubr.msk.bf16.mxu1 %vm12886_vm15, %v12865_v39 }
0x1006   : > { %v8992_v26 = vpop.f32.mrb[16].mxu1 }
0x1007   : > { %v9490_v31 = vadd.f32 %v8992_v26, %v11537_v25  ;;  %v2846_v32 = vpop.f32.mrb[17].mxu1 }
0x1008   : > { %v9491_v42 = vadd.f32 %v2846_v32, %v11535_v24  ;;  %v8993_v43 = vpop.f32.mrb[18].mxu1 }
0x1009   : > { %v2871_v19 = vmin.f32 %v9490_v31, 0.0  ;;  %v9492_v33 = vadd.f32 %v8993_v43, %v11539_v30  ;;  %v2849_v34 = vpop.f32.mrb[19].mxu1  ;;  %vm2867_vm8 = vcmp.gt.f32.partialorder %v9490_v31, 0.0 }
0x100a   : > { %v2869_v35 = vmin.f32 %v9491_v42, 0.0  ;;  %v9493_v37 = vadd.f32 %v2849_v34, %v11533_v62  ;;  %vm2865_vm11 = vcmp.gt.f32.partialorder %v9491_v42, 0.0 }
0x100b   : > { %v2877_v17 = vmul.f32 1.442695, %v2871_v19  ;;  %v2872_v18 = vmin.f32 %v9492_v33, 0.0  ;;  %vm2868_vm10 = vcmp.gt.f32.partialorder %v9492_v33, 0.0 }
0x100c   : > { %v2873_v41 = vmul.f32 1.442695, %v2869_v35  ;;  %v2870_v50 = vmin.f32 %v9493_v37, 0.0  ;;  %vm2866_vm3 = vcmp.gt.f32.partialorder %v9493_v37, 0.0 }
0x100d   : > { %10506 = vpow2.f32 %v2877_v17  ;;  %v2879_v53 = vmul.f32 1.442695, %v2872_v18 }
0x100e   : > { %10508 = vpow2.f32 %v2873_v41  ;;  %v2875_v56 = vmul.f32 1.442695, %v2870_v50 }
0x100f   : > { %10510 = vpow2.f32 %v2879_v53 }
0x1010   : > { %10512 = vpow2.f32 %v2875_v56 }
0x1017   : > { %v10507_v58 = vpop.eup %10506 }
0x1018   : > { %v10509_v59 = vpop.eup %10508  ;;  %v8116_v7 = vadd.f32 -1.0, %v10507_v58 }
0x1019   : > { %v10511_v11 = vpop.eup %10510  ;;  %v8114_v14 = vadd.f32 -1.0, %v10509_v59 }
0x101a   : > { %v10513_v15 = vpop.eup %10512  ;;  %v8117_v61 = vadd.f32 -1.0, %v10511_v11  ;;  %v11545_v22 = vsel %vm2867_vm8, %v9490_v31, %v8116_v7 }
0x101b   : > { %v8115_v0 = vadd.f32 -1.0, %v10513_v15  ;;  %v11549_v23 = vsel %vm2865_vm11, %v9491_v42, %v8114_v14 }
0x101c   : > { %v11547_v57 = vsel %vm2868_vm10, %v9492_v33, %v8117_v61 }
0x101d   : > { %v11551_v26 = vsel %vm2866_vm3, %v9493_v37, %v8115_v0  ;;  %v10029_v32 = vpack.i.bf16 %v11547_v57, %v11545_v22 }
0x101e   : > { %v10024_v43 = vpack.i.bf16 %v11551_v26, %v11549_v23 }
0x101f   : > { %10030 = vrot.lane.b32.xlu0 %v10029_v32, %s10769_s10 }
0x1020   : > { %10025 = vrot.lane.b32.xlu1 %v10024_v43, %s10769_s10 }
0x1091   : > { %v10031_v31 = vpop.permute.xlu0 %10030 }
0x1092   : > { %v10033_v19 = vunpack.i.h.bf16 %v10031_v31  ;;  %v10032_v34 = vunpack.i.l.bf16 %v10031_v31  ;;  %v10026_v33 = vpop.permute.xlu1 %10025 }
0x1093   : > { %v10028_v35 = vunpack.i.h.bf16 %v10026_v33  ;;  %v10027_v17 = vunpack.i.l.bf16 %v10026_v33 }
0x1094   : > { %v2901_v42 = vsel %vm309_vm1, %v10032_v34, %v11545_v22  ;;  %v2904_v37 = vsel %vm309_vm1, %v10033_v19, %v11547_v57  ;;  %v10444_v19 = vld [vmem:[%s12854_s1 + $0x198] sm:$0xff]   ;;  %v10783_v34 = vmov 7  }
0x1095   : > { %v10039_v18 = vpack.i.bf16 %v2904_v37, %v2901_v42  ;;  %v2895_v41 = vsel %vm309_vm1, %v10027_v17, %v11549_v23  ;;  %v2898_v50 = vsel %vm309_vm1, %v10028_v35, %v11551_v26  ;;  %8998 = vmatprep.mubr.msk.bf16.mxu0 %vm828_vm6, %v10444_v19  ;;  %10084 = vset.pattern.permute.xlu1 %v10783_v34  ;;  %v10448_v19 = vld [vmem:[%s12854_s1 + $0x1b8] sm:$0xff]  }
0x1096   : > { %v10034_v53 = vpack.i.bf16 %v2898_v50, %v2895_v41  ;;  %10085 = vset.pattern.permute.xlu0 %v10783_v34 }
0x1097   : > { %10040 = vrot.lane.b32.xlu0 %v10039_v18, %s10769_s10 }
0x1098   : > { %10035 = vrot.lane.b32.xlu1 %v10034_v53, %s10769_s10 }
0x1109   : > { %v10041_v56 = vpop.permute.xlu0 %10040 }
0x110a   : > { %v10043_v58 = vunpack.i.h.bf16 %v10041_v56  ;;  %v10042_v59 = vunpack.i.l.bf16 %v10041_v56  ;;  %v10036_v7 = vpop.permute.xlu1 %10035 }
0x110b   : > { %v10038_v11 = vunpack.i.h.bf16 %v10036_v7  ;;  %v10037_v14 = vunpack.i.l.bf16 %v10036_v7 }
0x110c   : > { %v2915_v15 = vsel %vm309_vm1, %v10042_v59, %v11545_v22  ;;  %v2916_v61 = vsel %vm309_vm1, %v10043_v58, %v11547_v57 }
0x110d   : > { %v10049_v0 = vpack.i.bf16 %v2916_v61, %v2915_v15  ;;  %v2913_v32 = vsel %vm309_vm1, %v10037_v14, %v11549_v23  ;;  %v2914_v43 = vsel %vm309_vm1, %v10038_v11, %v11551_v26  ;;  %v10445_v15 = vld [vmem:[%s12854_s1 + $0x1a0] sm:$0xff]   ;;  %v10446_v61 = vld [vmem:[%s12854_s1 + $0x1a8] sm:$0xff]  }
0x110e   : > { %v10044_v31 = vpack.i.bf16 %v2914_v43, %v2913_v32  ;;  %v3119_v32 = vpack.c.bf16 %v11551_v26, %v11549_v23  ;;  %v10447_v43 = vld [vmem:[%s12854_s1 + $0x1b0] sm:$0xff]   ;;  %v3120_v23 = vpack.c.bf16 %v11547_v57, %v11545_v22  ;;  %v10450_v22 = vld [vmem:[%s12854_s1 + $0x1c8] sm:$0xff]  }
0x110f   : > { %10050 = vrot.lane.b32.xlu0 %v10049_v0, %s10771_s14 }
0x1110   : > { %10045 = vrot.lane.b32.xlu1 %v10044_v31, %s10771_s14 }
0x1113   : > { %10060 = vrot.lane.b32.xlu0 %v10049_v0, %s10772_s15 }
0x1114   : > { %10055 = vrot.lane.b32.xlu1 %v10044_v31, %s10772_s15 }
0x1117   : > { %10070 = vrot.lane.b32.xlu0 %v10049_v0, %s10770_s13 }
0x1118   : > { %10065 = vrot.lane.b32.xlu1 %v10044_v31, %s10770_s13 }
0x111b   : > { %10080 = vrot.lane.b32.xlu0 %v10049_v0, %s10773_s16 }
0x111c   : > { %10075 = vrot.lane.b32.xlu1 %v10044_v31, %s10773_s16 }
0x111f   : > { %3009 = vperm.xlu0 %10085, %v11455_v45  }
0x1120   : > { %3005 = vperm.xlu1 %10084, %v11461_v46  }
0x1124   : > { %3013 = vperm.xlu1 %10084, %v11467_v27  }
0x1128   : > { %3017 = vperm.xlu1 %10084, %v11473_v28  }
0x1181   : > { %v10051_v33 = vpop.permute.xlu0 %10050 }
0x1182   : > { %v10046_v35 = vpop.permute.xlu1 %10045  ;;  %v10053_v17 = vunpack.i.h.bf16 %v10051_v33  ;;  %v10052_v42 = vunpack.i.l.bf16 %v10051_v33 }
0x1183   : > { %v10048_v37 = vunpack.i.h.bf16 %v10046_v35  ;;  %v10047_v18 = vunpack.i.l.bf16 %v10046_v35 }
0x1184   : > { %v8124_v53 = vpack.c.bf16 %v10053_v17, %v10052_v42 }
0x1185   : > { %v8121_v41 = vpack.c.bf16 %v10048_v37, %v10047_v18  ;;  %v10061_v59 = vpop.permute.xlu0 %10060  ;;  %v10449_v37 = vld [vmem:[%s12854_s1 + $0x1c0] sm:$0xff]  }
0x1186   : > { %v10056_v50 = vpop.permute.xlu1 %10055  ;;  %v10063_v7 = vunpack.i.h.bf16 %v10061_v59  ;;  %v10062_v11 = vunpack.i.l.bf16 %v10061_v59 }
0x1187   : > { %v10058_v56 = vunpack.i.h.bf16 %v10056_v50  ;;  %v10057_v58 = vunpack.i.l.bf16 %v10056_v50  ;;  %8994 = vmatprep.subr.msk.bf16.mxu0 %vm11061_vm7, %v8121_v41 }
0x1188   : > { %8995 = vmatpush3.bf16.msk.msra.mxu0 %vm11061_vm7, %v8121_v41  ;;  %v8134_v0 = vpack.c.bf16 %v10063_v7, %v10062_v11  ;;  %v10451_v7 = vld [vmem:[%s12854_s1 + $0x1d0] sm:$0xff]   ;;  %v10452_v11 = vld [vmem:[%s12854_s1 + $0x1d8] sm:$0xff]  }
0x1189   : > { %8996 = vmatprep.subr.msk.bf16.mxu0 %vm11061_vm7, %v8124_v53  ;;  %v8131_v14 = vpack.c.bf16 %v10058_v56, %v10057_v58  ;;  %v10071_v35 = vpop.permute.xlu0 %10070 }
0x118a   : > { %v10066_v31 = vpop.permute.xlu1 %10065  ;;  %v10073_v17 = vunpack.i.h.bf16 %v10071_v35  ;;  %v10072_v42 = vunpack.i.l.bf16 %v10071_v35 }
0x118b   : > { %v10068_v34 = vunpack.i.h.bf16 %v10066_v31  ;;  %v10067_v33 = vunpack.i.l.bf16 %v10066_v31 }
0x118c   : > { %8997 = vmatpush3.bf16.msk.msra.mxu0 %vm11061_vm7, %v8124_v53  ;;  %v8148_v57 = vpack.c.bf16 %v10073_v17, %v10072_v42 }
0x118d   : > { %9002 = vmatprep.subr.msk.bf16.mxu0 %vm11074_vm12, %v8131_v14  ;;  %v8145_v26 = vpack.c.bf16 %v10068_v34, %v10067_v33  ;;  %v10081_v56 = vpop.permute.xlu0 %10080 }
0x118e   : > { %v10076_v18 = vpop.permute.xlu1 %10075  ;;  %v10083_v58 = vunpack.i.h.bf16 %v10081_v56  ;;  %v10082_v59 = vunpack.i.l.bf16 %v10081_v56 }
0x118f   : > { %8999 = vmatmul.mubr.msk.bf16.vlgmr.msra.gmra.mrb[20].mxu0 %vm828_vm6, %v10445_v15  ;;  %v10078_v41 = vunpack.i.h.bf16 %v10076_v18  ;;  %v10077_v50 = vunpack.i.l.bf16 %v10076_v18  ;;  %v10453_v15 = vld [vmem:[%s12854_s1 + $0x1e0] sm:$0xff]  }
0x1190   : > { %9003 = vmatpush3.bf16.msk.msra.mxu0 %vm11074_vm12, %v8131_v14  ;;  %9006 = vmatprep.mubr.msk.bf16.mxu0 %vm828_vm6, %v10446_v61  ;;  %v8158_v14 = vpack.c.bf16 %v10083_v58, %v10082_v59  ;;  %v11669_v61 = vld [vmem:[%s12857_s4] sm:$0xff]  }
0x1191   : > { %9004 = vmatprep.subr.msk.bf16.mxu0 %vm11074_vm12, %v8134_v0  ;;  %v8155_v53 = vpack.c.bf16 %v10078_v41, %v10077_v50 }
0x1194   : > { %9005 = vmatpush3.bf16.msk.msra.mxu0 %vm11074_vm12, %v8134_v0  ;;  %v10784_v0 = vmov 8  }
0x1195   : > { %9010 = vmatprep.subr.bf16.mxu0 %v3119_v32  ;;  %10086 = vset.pattern.permute.xlu0 %v10784_v0 }
0x119b   : > { %9007 = vmatmul.mubr.msk.bf16.vlgmr.msra.gmra.mrb[20].mxu0 %vm828_vm6, %v10447_v43 }
0x119c   : > { %9011 = vmatpush3.bf16.msra.mxu0 %v3119_v32  ;;  %9014 = vmatprep.mubr.msk.bf16.mxu0 %vm828_vm6, %v10448_v19  ;;  %v10616_v32 = vld [vmem:[%s12855_s2] sm:$0xf] }
0x119d   : > { %9012 = vmatprep.subr.bf16.mxu0 %v3120_v23  ;;  %3400 = vperm.xlu0 %10086, %v10616_v32  }
0x119f   : > { %v11677_v43 = vpop.permute.xlu1 %3005 }
0x11a0   : > { %9013 = vmatpush3.bf16.msra.mxu0 %v3120_v23  ;;  %v11682_v23 = vpop.permute.xlu0 %3009 }
0x11a1   : > { %9018 = vmatprep.subr.msk.bf16.mxu0 %vm11111_vm13, %v8145_v26 }
0x11a3   : > { %v11679_v31 = vpop.permute.xlu1 %3013 }
0x11a7   : > { %9015 = vmatmul.mubr.msk.bf16.vlgmr.msra.gmra.mrb[20].mxu0 %vm828_vm6, %v10449_v37 }
0x11a8   : > { %9019 = vmatpush3.bf16.msk.msra.mxu0 %vm11111_vm13, %v8145_v26  ;;  %9022 = vmatprep.mubr.msk.bf16.mxu0 %vm828_vm6, %v10450_v22  ;;  %v11684_v26 = vpop.permute.xlu1 %3017 }
0x11a9   : > { %9020 = vmatprep.subr.msk.bf16.mxu0 %vm11111_vm13, %v8148_v57 }
0x11ac   : > { %9021 = vmatpush3.bf16.msk.msra.mxu0 %vm11111_vm13, %v8148_v57 }
0x11ad   : > { %9026 = vmatprep.subr.msk.bf16.mxu0 %vm11132_vm14, %v8155_v53 }
0x11b3   : > { %9023 = vmatmul.mubr.msk.bf16.vlgmr.msra.gmra.mrb[20].mxu0 %vm828_vm6, %v10451_v7 }
0x11b4   : > { %9027 = vmatpush3.bf16.msk.msra.mxu0 %vm11132_vm14, %v8155_v53  ;;  %9030 = vmatprep.mubr.msk.bf16.mxu0 %vm828_vm6, %v10452_v11 }
0x11b5   : > { %9028 = vmatprep.subr.msk.bf16.mxu0 %vm11132_vm14, %v8158_v14 }
0x11b8   : > { %9029 = vmatpush3.bf16.msk.msra.mxu0 %vm11132_vm14, %v8158_v14 }
0x11b9   : > { %9042 = vmatprep.subr.bf16.mxu0 %v12865_v39 }
0x11bf   : > { %9031 = vmatmul.mubr.msk.bf16.vlgmr.msra.gmra.mrb[20].mxu0 %vm828_vm6, %v10453_v15 }
0x11c0   : > { %9043 = vmatpush3.bf16.msra.mxu0 %v11669_v61  ;;  %9044 = vmatprep.mubr.msk.bf16.mxu0 %vm12886_vm15, %v12865_v39 }
0x1292   : > { %v9032_v19 = vpop.f32.mrb[20].mxu0 }
0x1293   : > { %v9494_v34 = vadd.f32 %v9032_v19, %v11679_v31  ;;  %v3353_v33 = vpop.f32.mrb[21].mxu0 }
0x1294   : > { %v9495_v35 = vadd.f32 %v3353_v33, %v11677_v43  ;;  %v9033_v17 = vpop.f32.mrb[22].mxu0 }
0x1295   : > { %v3378_v42 = vmin.f32 %v9494_v34, 0.0  ;;  %v9496_v37 = vadd.f32 %v9033_v17, %v11684_v26  ;;  %v3356_v18 = vpop.f32.mrb[23].mxu0  ;;  %vm3374_vm8 = vcmp.gt.f32.partialorder %v9494_v34, 0.0 }
0x1296   : > { %v3376_v22 = vmin.f32 %v9495_v35, 0.0  ;;  %v9497_v57 = vadd.f32 %v3356_v18, %v11682_v23  ;;  %vm3372_vm11 = vcmp.gt.f32.partialorder %v9495_v35, 0.0 }
0x1297   : > { %v3384_v41 = vmul.f32 1.442695, %v3378_v42  ;;  %v3379_v50 = vmin.f32 %v9496_v37, 0.0  ;;  %vm3375_vm10 = vcmp.gt.f32.partialorder %v9496_v37, 0.0 }
0x1298   : > { %v3380_v53 = vmul.f32 1.442695, %v3376_v22  ;;  %v3377_v56 = vmin.f32 %v9497_v57, 0.0  ;;  %vm3373_vm3 = vcmp.gt.f32.partialorder %v9497_v57, 0.0 }
0x1299   : > { %10514 = vpow2.f32 %v3384_v41  ;;  %v3386_v58 = vmul.f32 1.442695, %v3379_v50 }
0x129a   : > { %10516 = vpow2.f32 %v3380_v53  ;;  %v3382_v59 = vmul.f32 1.442695, %v3377_v56  ;;  %v3396_v53 = vld [vmem:[%s12854_s1 + $0x1e8] sm:$0x3]  ;;  %v11694_v56 = vpop.permute.xlu0 %3400 }
0x129b   : > { %10518 = vpow2.f32 %v3386_v58 }
0x129c   : > { %10520 = vpow2.f32 %v3382_v59 }
0x12a3   : > { %v10515_v7 = vpop.eup %10514 }
0x12a4   : > { %v10517_v11 = vpop.eup %10516  ;;  %v8164_v14 = vadd.f32 -1.0, %v10515_v7 }
0x12a5   : > { %v10519_v15 = vpop.eup %10518  ;;  %v8162_v0 = vadd.f32 -1.0, %v10517_v11 }
0x12a6   : > { %v10521_v32 = vpop.eup %10520  ;;  %v8165_v19 = vadd.f32 -1.0, %v10519_v15  ;;  %v3394_v17 = vsel %vm3374_vm8, %v9494_v34, %v8164_v14  ;;  %vm12897_vm8 = vcmask 1042432  }
0x12a7   : > { %v8163_v33 = vadd.f32 -1.0, %v10521_v32  ;;  %v3392_v18 = vsel %vm3372_vm11, %v9495_v35, %v8162_v0  ;;  %vm12899_vm11 = vmmov %vm12897_vm8 }
0x12a8   : > { %v3395_v42 = vsel %vm3375_vm10, %v9496_v37, %v8165_v19  ;;  %vm12898_vm10 = vmmov %vm12897_vm8 }
0x12a9   : > { %v3398_v22 = vpack.c.bf16 %v3395_v42, %v3394_v17  ;;  %v3393_v41 = vsel %vm3373_vm3, %v9497_v57, %v8163_v33  ;;  %vm12900_vm3 = vmmov %vm12897_vm8 }
0x12aa   : > { %v3397_v50 = vpack.c.bf16 %v3393_v41, %v3392_v18 }
0x12ac   : > { %9035 = vmatpush3.bf16.msra.mxu1 %v3397_v50 }
0x12ad   : > { %9036 = vmatprep.subr.bf16.mxu1 %v12865_v39 }
0x12b0   : > { %9037 = vmatpush3.bf16.msra.mxu1 %v3398_v22 }
0x12b3   : > { %9039 = vmatmul.mubr.msk.bf16.vlgmr.msra.gmra.mrb[20].mxu1 %vm828_vm6, %v3396_v53 }
0x1386   : > { %v3440_v34 = vpop.f32.mrb[20].mxu1 }
0x1387   : > { %v3441_v37 = vadd.f32 %v3440_v34, %v11694_v56  ;;  %v9040_v58 = vpop.f32.mrb[21].mxu1 }
0x1388   : > { %v3443_v35 = vpop.f32.mrb[22].mxu1 }
0x1389   : > { %v3446_v57 = vsub.f32 %v3441_v37, %v11435_v10  ;;  %v9041_v59 = vpop.f32.mrb[23].mxu1  ;;  %v10454_v10 = vld [vmem:[%s12854_s1 + $0x1ec] sm:$0xff]   ;;  %v10455_v35 = vld [vmem:[%s12854_s1 + $0x1f4] sm:$0xff]  }
0x138a   : > { %9050 = vmatprep.mubr.msk.bf16.mxu1 %vm334_vm2, %v10454_v10 }
0x138b   : > { %v3447_v7 = vpack.c.bf16 %v3446_v57, %v3446_v57  ;;  %v10456_v57 = vld [vmem:[%s12854_s1 + $0x1fc] sm:$0xff]  }
0x138d   : > { %9045 = vmatmul.mubr.msk.bf16.vlgmr.msra.gmra.mrb[24].mxu0 %vm255_vm4, %v3447_v7 }
0x1460   : > { %v3485_v11 = vpop.f32.mrb[24].mxu0 }
0x1461   : > { %v3492_v14 = vrot.slane %v3485_v11, 6  ;;  %v9046_v15 = vpop.f32.mrb[25].mxu0 }
0x1462   : > { %v3488_v0 = vpop.f32.mrb[26].mxu0 }
0x1463   : > { %v9047_v32 = vpop.f32.mrb[27].mxu0  ;;  %v3494_v19 = vsel %vm299_vm0, %v11197_v4, %v3492_v14  ;;  %v10785_v4 = vmov 9   ;;  %v10457_v14 = vld [vmem:[%s12854_s1 + $0x204] sm:$0xff]   ;;  %v10458_v0 = vld [vmem:[%s12854_s1 + $0x20c] sm:$0xff]  }
0x1464   : > { %3499 = vrot.lane.b32.xlu1 %v3494_v19, %s10769_s10  ;;  %10087 = vset.pattern.permute.xlu0 %v10785_v4  ;;  %v3684_v7 = vpack.c.bf16 %v3494_v19, %v3494_v19 }
0x1465   : > { %10088 = vset.pattern.permute.xlu1 %v10785_v4 }
0x14d6   : > { %v3500_v33 = vpop.permute.xlu1 %3499 }
0x14d7   : > { %v3501_v17 = vsel %vm309_vm1, %v3500_v33, %v3494_v19 }
0x14d8   : > { %3502 = vrot.lane.b32.xlu1 %v3501_v17, %s10769_s10  ;;  %v10459_v17 = vld [vmem:[%s12854_s1 + $0x214] sm:$0xff]  }
0x154a   : > { %v3503_v42 = vpop.permute.xlu1 %3502 }
0x154b   : > { %v3504_v18 = vsel %vm309_vm1, %v3503_v42, %v3494_v19  ;;  %v10460_v42 = vld [vmem:[%s12854_s1 + $0x21c] sm:$0xff]  }
0x154c   : > { %3603 = vrot.lane.b32.xlu1 %v3504_v18, %s10772_s15  ;;  %3506 = vrot.lane.b32.xlu0 %v3504_v18, %s10771_s14 }
0x1550   : > { %3842 = vrot.lane.b32.xlu1 %v3504_v18, %s10773_s16  ;;  %3761 = vrot.lane.b32.xlu0 %v3504_v18, %s10770_s13 }
0x1554   : > { %3584 = vperm.xlu1 %10088, %v11455_v45   ;;  %3580 = vperm.xlu0 %10087, %v11461_v46  }
0x1558   : > { %3588 = vperm.xlu1 %10088, %v11467_v27   ;;  %3592 = vperm.xlu0 %10087, %v11473_v28  }
0x15be   : > { %v3604_v22 = vpop.permute.xlu1 %3603  ;;  %v3507_v41 = vpop.permute.xlu0 %3506 }
0x15bf   : > { %v3606_v50 = vsel %vm10921_vm9, %v3604_v22, 0.0  ;;  %v3509_v53 = vsel %vm10915_vm5, %v3507_v41, 0.0  ;;  %v10461_v22 = vld [vmem:[%s12854_s1 + $0x224] sm:$0xff]   ;;  %v10462_v41 = vld [vmem:[%s12854_s1 + $0x22c] sm:$0xff]  }
0x15c0   : > { %v3510_v34 = vpack.c.bf16 %v3509_v53, %v3509_v53  ;;  %v3607_v37 = vpack.c.bf16 %v3606_v50, %v3606_v50  ;;  %v10463_v53 = vld [vmem:[%s12854_s1 + $0x234] sm:$0xff]  }
0x15c2   : > { %v3528_v58 = vsel %vm12897_vm8, %v3510_v34, 0  ;;  %9809 = vmatprep.subr.msk.bf16.mxu1 %vm12898_vm10, %v3510_v34  ;;  %v3625_v59 = vsel %vm12900_vm3, %v3607_v37, 0  ;;  %vm12901_vm8 = vmmov %vm12900_vm3  ;;  %v3762_v11 = vpop.permute.xlu0 %3761  ;;  %vm12902_vm10 = vcmp.lt.s32.totalorder %v10939_v29, 16  ;;  %v3843_v33 = vpop.permute.xlu1 %3842 }
0x15c3   : > { %9049 = vmatpush3.bf16.msra.mxu1 %v3528_v58  ;;  %v3764_v15 = vsel %vm12902_vm10, %v3762_v11, 0.0  ;;  %vm12905_vm10 = vmmov %vm12900_vm3 }
0x15c4   : > { %9810 = vmatprep.subr.msk.bf16.mxu1 %vm12899_vm11, %v3607_v37  ;;  %v3765_v32 = vpack.c.bf16 %v3764_v15, %v3764_v15  ;;  %vm12903_vm11 = vmmov %vm12900_vm3 }
0x15c5   : > { %v3702_v19 = vsel %vm12903_vm11, %v3684_v7, 0  ;;  %vm12906_vm11 = vmmov %vm12900_vm3 }
0x15c6   : > { %9051 = vmatmul.mubr.msk.bf16.vlgmr.msra.gmra.mrb[24].mxu1 %vm334_vm2, %v10455_v35  ;;  %v3783_v4 = vsel %vm12905_vm10, %v3765_v32, 0 }
0x15c7   : > { %9055 = vmatpush3.bf16.msra.mxu1 %v3625_v59  ;;  %9056 = vmatprep.mubr.msk.bf16.mxu1 %vm334_vm2, %v10456_v57 }
0x15c8   : > { %9811 = vmatprep.subr.msk.bf16.mxu1 %vm12901_vm8, %v3684_v7  ;;  %vm12904_vm8 = vcmp.lt.s32.totalorder %v10954_v36, 16 }
0x15c9   : > { %v3845_v10 = vsel %vm12904_vm8, %v3843_v33, 0.0 }
0x15ca   : > { %v3846_v18 = vpack.c.bf16 %v3845_v10, %v3845_v10 }
0x15cc   : > { %v3864_v50 = vsel %vm12900_vm3, %v3846_v18, 0 }
0x15d2   : > { %9057 = vmatmul.mubr.msk.bf16.vlgmr.msra.gmra.mrb[24].mxu1 %vm334_vm2, %v10457_v14 }
0x15d3   : > { %9061 = vmatpush3.bf16.msra.mxu1 %v3702_v19  ;;  %9062 = vmatprep.mubr.msk.bf16.mxu1 %vm334_vm2, %v10458_v0  ;;  %v11774_v34 = vpop.permute.xlu1 %3584  ;;  %v11776_v37 = vpop.permute.xlu0 %3580 }
0x15d4   : > { %9812 = vmatprep.subr.msk.bf16.mxu1 %vm12900_vm3, %v3765_v32 }
0x15d7   : > { %v11778_v58 = vpop.permute.xlu1 %3588  ;;  %v11780_v57 = vpop.permute.xlu0 %3592 }
0x15de   : > { %9063 = vmatmul.mubr.msk.bf16.vlgmr.msra.gmra.mrb[24].mxu1 %vm334_vm2, %v10459_v17 }
0x15df   : > { %9067 = vmatpush3.bf16.msra.mxu1 %v3783_v4  ;;  %9068 = vmatprep.mubr.msk.bf16.mxu1 %vm334_vm2, %v10460_v42 }
0x15e0   : > { %9813 = vmatprep.subr.msk.bf16.mxu1 %vm12906_vm11, %v3846_v18 }
0x15ea   : > { %9069 = vmatmul.mubr.msk.bf16.vlgmr.msra.gmra.mrb[24].mxu1 %vm334_vm2, %v10461_v22 }
0x15eb   : > { %9073 = vmatpush3.bf16.msra.mxu1 %v3864_v50  ;;  %9074 = vmatprep.mubr.msk.bf16.mxu1 %vm334_vm2, %v10462_v41 }
0x15ec   : > { %9118 = vmatprep.subr.bf16.mxu1 %v12865_v39 }
0x15f6   : > { %9075 = vmatmul.mubr.msk.bf16.vlgmr.msra.gmra.mrb[24].mxu1 %vm334_vm2, %v10463_v53 }
0x15f7   : > { %9122 = vmatprep.mubr.msk.bf16.mxu1 %vm12886_vm15, %v12865_v39 }
0x16c9   : > { %v9076_v35 = vpop.f32.mrb[24].mxu1 }
0x16ca   : > { %v9498_v59 = vadd.f32 %v9076_v35, %v11778_v58  ;;  %v3900_v7 = vpop.f32.mrb[25].mxu1 }
0x16cb   : > { %v9499_v11 = vadd.f32 %v3900_v7, %v11776_v37  ;;  %v9077_v14 = vpop.f32.mrb[26].mxu1 }
0x16cc   : > { %v3925_v15 = vmin.f32 %v9498_v59, 0.0  ;;  %v9500_v0 = vadd.f32 %v9077_v14, %v11780_v57  ;;  %v3903_v32 = vpop.f32.mrb[27].mxu1  ;;  %vm3921_vm8 = vcmp.gt.f32.partialorder %v9498_v59, 0.0 }
0x16cd   : > { %v3923_v19 = vmin.f32 %v9499_v11, 0.0  ;;  %v9501_v33 = vadd.f32 %v3903_v32, %v11774_v34  ;;  %vm3919_vm11 = vcmp.gt.f32.partialorder %v9499_v11, 0.0 }
0x16ce   : > { %v3931_v17 = vmul.f32 1.442695, %v3925_v15  ;;  %v3926_v10 = vmin.f32 %v9500_v0, 0.0  ;;  %vm3922_vm10 = vcmp.gt.f32.partialorder %v9500_v0, 0.0 }
0x16cf   : > { %v3927_v42 = vmul.f32 1.442695, %v3923_v19  ;;  %v3924_v18 = vmin.f32 %v9501_v33, 0.0  ;;  %vm3920_vm3 = vcmp.gt.f32.partialorder %v9501_v33, 0.0 }
0x16d0   : > { %10522 = vpow2.f32 %v3931_v17  ;;  %v3933_v4 = vmul.f32 1.442695, %v3926_v10 }
0x16d1   : > { %10524 = vpow2.f32 %v3927_v42  ;;  %v3929_v22 = vmul.f32 1.442695, %v3924_v18 }
0x16d2   : > { %10526 = vpow2.f32 %v3933_v4 }
0x16d3   : > { %10528 = vpow2.f32 %v3929_v22 }
0x16da   : > { %v10523_v41 = vpop.eup %10522 }
0x16db   : > { %v10525_v50 = vpop.eup %10524  ;;  %v8190_v53 = vadd.f32 -1.0, %v10523_v41 }
0x16dc   : > { %v10527_v35 = vpop.eup %10526  ;;  %v8188_v7 = vadd.f32 -1.0, %v10525_v50 }
0x16dd   : > { %v10529_v14 = vpop.eup %10528  ;;  %v8191_v39 = vadd.f32 -1.0, %v10527_v35  ;;  %v11786_v15 = vsel %vm3921_vm8, %v9498_v59, %v8190_v53 }
0x16de   : > { %v8189_v32 = vadd.f32 -1.0, %v10529_v14  ;;  %v11790_v17 = vsel %vm3919_vm11, %v9499_v11, %v8188_v7 }
0x16df   : > { %v11788_v19 = vsel %vm3922_vm10, %v9500_v0, %v8191_v39 }
0x16e0   : > { %v11792_v10 = vsel %vm3920_vm3, %v9501_v33, %v8189_v32  ;;  %v10094_v42 = vpack.i.bf16 %v11788_v19, %v11786_v15 }
0x16e1   : > { %v10089_v18 = vpack.i.bf16 %v11792_v10, %v11790_v17 }
0x16e2   : > { %10095 = vrot.lane.b32.xlu0 %v10094_v42, %s10769_s10 }
0x16e3   : > { %10090 = vrot.lane.b32.xlu1 %v10089_v18, %s10769_s10 }
0x1754   : > { %v10096_v59 = vpop.permute.xlu0 %10095 }
0x1755   : > { %v10098_v4 = vunpack.i.h.bf16 %v10096_v59  ;;  %v10097_v22 = vunpack.i.l.bf16 %v10096_v59  ;;  %v10091_v39 = vpop.permute.xlu1 %10090 }
0x1756   : > { %v10093_v0 = vunpack.i.h.bf16 %v10091_v39  ;;  %v10092_v41 = vunpack.i.l.bf16 %v10091_v39 }
0x1757   : > { %v3955_v11 = vsel %vm309_vm1, %v10097_v22, %v11786_v15  ;;  %v3958_v33 = vsel %vm309_vm1, %v10098_v4, %v11788_v19 }
0x1758   : > { %v3952_v50 = vsel %vm309_vm1, %v10093_v0, %v11792_v10  ;;  %v3949_v53 = vsel %vm309_vm1, %v10092_v41, %v11790_v17  ;;  %v10104_v35 = vpack.i.bf16 %v3958_v33, %v3955_v11 }
0x1759   : > { %v10099_v7 = vpack.i.bf16 %v3952_v50, %v3949_v53  ;;  %v10464_v50 = vld [vmem:[%s12854_s1 + $0x23c] sm:$0xff]   ;;  %v11831_v53 = vld [vmem:[%s10872_s9 + $0x4] sm:$0x7] }
0x175a   : > { %10105 = vrot.lane.b32.xlu0 %v10104_v35, %s10769_s10  ;;  %9082 = vmatprep.mubr.msk.bf16.mxu0 %vm828_vm6, %v10464_v50  ;;  %v10786_v35 = vmov 10   ;;  %v10466_v50 = vld [vmem:[%s12854_s1 + $0x24c] sm:$0xff]  }
0x175b   : > { %10100 = vrot.lane.b32.xlu1 %v10099_v7, %s10769_s10  ;;  %10150 = vset.pattern.permute.xlu0 %v10786_v35  ;;  %v11837_v7 = vsel %vm299_vm0, %v11831_v53, 0.0 }
0x175c   : > { %10149 = vset.pattern.permute.xlu1 %v10786_v35 }
0x17cc   : > { %v10106_v14 = vpop.permute.xlu0 %10105 }
0x17cd   : > { %v10108_v32 = vunpack.i.h.bf16 %v10106_v14  ;;  %v10107_v42 = vunpack.i.l.bf16 %v10106_v14  ;;  %v10101_v18 = vpop.permute.xlu1 %10100 }
0x17ce   : > { %v10103_v59 = vunpack.i.h.bf16 %v10101_v18  ;;  %v10102_v22 = vunpack.i.l.bf16 %v10101_v18 }
0x17cf   : > { %v3970_v4 = vsel %vm309_vm1, %v10108_v32, %v11788_v19  ;;  %v3969_v39 = vsel %vm309_vm1, %v10107_v42, %v11786_v15 }
0x17d0   : > { %v3968_v0 = vsel %vm309_vm1, %v10103_v59, %v11792_v10  ;;  %v3967_v41 = vsel %vm309_vm1, %v10102_v22, %v11790_v17  ;;  %v10114_v11 = vpack.i.bf16 %v3970_v4, %v3969_v39 }
0x17d1   : > { %v10109_v33 = vpack.i.bf16 %v3968_v0, %v3967_v41 }
0x17d2   : > { %10115 = vrot.lane.b32.xlu0 %v10114_v11, %s10771_s14 }
0x17d3   : > { %10110 = vrot.lane.b32.xlu1 %v10109_v33, %s10771_s14 }
0x17d6   : > { %10125 = vrot.lane.b32.xlu0 %v10114_v11, %s10772_s15 }
0x17d7   : > { %10120 = vrot.lane.b32.xlu1 %v10109_v33, %s10772_s15 }
0x17da   : > { %10135 = vrot.lane.b32.xlu0 %v10114_v11, %s10770_s13 }
0x17db   : > { %10130 = vrot.lane.b32.xlu1 %v10109_v33, %s10770_s13 }
0x17de   : > { %10145 = vrot.lane.b32.xlu0 %v10114_v11, %s10773_s16 }
0x17df   : > { %10140 = vrot.lane.b32.xlu1 %v10109_v33, %s10773_s16  ;;  %v10465_v33 = vld [vmem:[%s12854_s1 + $0x244] sm:$0xff]  }
0x17e2   : > { %4063 = vperm.xlu0 %10150, %v11455_v45  }
0x17e3   : > { %4059 = vperm.xlu1 %10149, %v11461_v46  }
0x17e6   : > { %4597 = vrot.lane.b32.xlu0 %v11837_v7, %s10769_s10 }
0x17e7   : > { %4067 = vperm.xlu1 %10149, %v11467_v27  }
0x17eb   : > { %4071 = vperm.xlu1 %10149, %v11473_v28  }
0x1844   : > { %v10116_v14 = vpop.permute.xlu0 %10115 }
0x1845   : > { %v10111_v32 = vpop.permute.xlu1 %10110  ;;  %v10118_v42 = vunpack.i.h.bf16 %v10116_v14  ;;  %v10117_v18 = vunpack.i.l.bf16 %v10116_v14  ;;  %v4173_v14 = vpack.c.bf16 %v11792_v10, %v11790_v17  ;;  %v4174_v17 = vpack.c.bf16 %v11788_v19, %v11786_v15  ;;  %v10470_v15 = vld [vmem:[%s12854_s1 + $0x26c] sm:$0xff]  }
0x1846   : > { %v10113_v59 = vunpack.i.h.bf16 %v10111_v32  ;;  %v10112_v22 = vunpack.i.l.bf16 %v10111_v32  ;;  %v10467_v32 = vld [vmem:[%s12854_s1 + $0x254] sm:$0xff]  }
0x1847   : > { %v8198_v45 = vpack.c.bf16 %v10118_v42, %v10117_v18  ;;  %v10468_v18 = vld [vmem:[%s12854_s1 + $0x25c] sm:$0xff]  }
0x1848   : > { %v8195_v46 = vpack.c.bf16 %v10113_v59, %v10112_v22  ;;  %v10126_v27 = vpop.permute.xlu0 %10125 }
0x1849   : > { %v10121_v4 = vpop.permute.xlu1 %10120  ;;  %v10128_v28 = vunpack.i.h.bf16 %v10126_v27  ;;  %v10127_v41 = vunpack.i.l.bf16 %v10126_v27 }
0x184a   : > { %v10123_v39 = vunpack.i.h.bf16 %v10121_v4  ;;  %v10122_v0 = vunpack.i.l.bf16 %v10121_v4  ;;  %9078 = vmatprep.subr.msk.bf16.mxu0 %vm11061_vm7, %v8195_v46 }
0x184b   : > { %9079 = vmatpush3.bf16.msk.msra.mxu0 %vm11061_vm7, %v8195_v46  ;;  %v8208_v35 = vpack.c.bf16 %v10128_v28, %v10127_v41 }
0x184c   : > { %9080 = vmatprep.subr.msk.bf16.mxu0 %vm11061_vm7, %v8198_v45  ;;  %v8205_v11 = vpack.c.bf16 %v10123_v39, %v10122_v0  ;;  %v10136_v46 = vpop.permute.xlu0 %10135  ;;  %v10469_v39 = vld [vmem:[%s12854_s1 + $0x264] sm:$0xff]  }
0x184d   : > { %v10131_v42 = vpop.permute.xlu1 %10130  ;;  %v10138_v4 = vunpack.i.h.bf16 %v10136_v46 }
0x184e   : > { %v10133_v59 = vunpack.i.h.bf16 %v10131_v42  ;;  %v10132_v22 = vunpack.i.l.bf16 %v10131_v42  ;;  %v12907_v42 = vmov 0.0  }
0x184f   : > { %9081 = vmatpush3.bf16.msk.msra.mxu0 %vm11061_vm7, %v8198_v45  ;;  %v10137_v45 = vunpack.i.l.bf16 %v10136_v46  ;;  %v4451_v46 = vld [vmem:[%s12855_s2] sm:$0x1] }
0x1850   : > { %9086 = vmatprep.subr.msk.bf16.mxu0 %vm11074_vm12, %v8205_v11  ;;  %v8219_v10 = vpack.c.bf16 %v10133_v59, %v10132_v22  ;;  %v10617_v59 = vld [vmem:[%s12856_s3] sm:$0xff]  }
0x1851   : > { %v10141_v0 = vpop.permute.xlu1 %10140  ;;  %v8222_v19 = vpack.c.bf16 %v10138_v4, %v10137_v45  ;;  %v10787_v4 = vmov 11  }
0x1852   : > { %9083 = vmatmul.mubr.msk.bf16.vlgmr.msra.gmra.mrb[28].mxu0 %vm828_vm6, %v10465_v33  ;;  %v10143_v27 = vunpack.i.h.bf16 %v10141_v0  ;;  %v10142_v28 = vunpack.i.l.bf16 %v10141_v0  ;;  %10151 = vset.pattern.permute.xlu0 %v10787_v4 }
0x1853   : > { %9087 = vmatpush3.bf16.msk.msra.mxu0 %vm11074_vm12, %v8205_v11  ;;  %9090 = vmatprep.mubr.msk.bf16.mxu0 %vm828_vm6, %v10466_v50  ;;  %v10146_v11 = vpop.permute.xlu0 %10145 }
0x1854   : > { %9088 = vmatprep.subr.msk.bf16.mxu0 %vm11074_vm12, %v8208_v35  ;;  %v8229_v41 = vpack.c.bf16 %v10143_v27, %v10142_v28  ;;  %v10148_v33 = vunpack.i.h.bf16 %v10146_v11  ;;  %v10147_v50 = vunpack.i.l.bf16 %v10146_v11  ;;  %4456 = vperm.xlu0 %10151, %v4451_v46  }
0x1857   : > { %9089 = vmatpush3.bf16.msk.msra.mxu0 %vm11074_vm12, %v8208_v35  ;;  %v10471_v35 = vld [vmem:[%s12854_s1 + $0x274] sm:$0xff]  }
0x1858   : > { %9094 = vmatprep.subr.bf16.mxu0 %v4173_v14 }
0x185e   : > { %9091 = vmatmul.mubr.msk.bf16.vlgmr.msra.gmra.mrb[28].mxu0 %vm828_vm6, %v10467_v32  ;;  %v8232_v32 = vpack.c.bf16 %v10148_v33, %v10147_v50 }
0x185f   : > { %9095 = vmatpush3.bf16.msra.mxu0 %v4173_v14  ;;  %9098 = vmatprep.mubr.msk.bf16.mxu0 %vm828_vm6, %v10468_v18  ;;  %v10472_v14 = vld [vmem:[%s12854_s1 + $0x27c] sm:$0xff]   ;;  %v10473_v18 = vld [vmem:[%s12854_s1 + $0x284] sm:$0xff]  }
0x1860   : > { %9096 = vmatprep.subr.bf16.mxu0 %v4174_v17 }
0x1861   : > { %v11921_v22 = vpop.permute.xlu0 %4063 }
0x1862   : > { %12908 = vst [vmem:[#allocation5_spill] sm:$0xff] %v11921_v22  ;;  %v11929_v45 = vpop.permute.xlu1 %4059 }
0x1863   : > { %9097 = vmatpush3.bf16.msra.mxu0 %v4174_v17  ;;  %12909 = vst [vmem:[#allocation6_spill] sm:$0xff] %v11929_v45 }
0x1864   : > { %9102 = vmatprep.subr.msk.bf16.mxu0 %vm11111_vm13, %v8219_v10 }
0x1865   : > { %v4598_v17 = vpop.permute.xlu0 %4597 }
0x186a   : > { %9099 = vmatmul.mubr.msk.bf16.vlgmr.msra.gmra.mrb[28].mxu0 %vm828_vm6, %v10469_v39  ;;  %v11931_v39 = vpop.permute.xlu1 %4067 }
0x186b   : > { %9103 = vmatpush3.bf16.msk.msra.mxu0 %vm11111_vm13, %v8219_v10  ;;  %9106 = vmatprep.mubr.msk.bf16.mxu0 %vm828_vm6, %v10470_v15  ;;  %v4599_v10 = vsel %vm309_vm1, %v4598_v17, %v11837_v7 }
0x186c   : > { %9104 = vmatprep.subr.msk.bf16.mxu0 %vm11111_vm13, %v8222_v19  ;;  %4600 = vrot.lane.b32.xlu1 %v4599_v10, %s10769_s10 }
0x186e   : > { %v11933_v0 = vpop.permute.xlu1 %4071 }
0x186f   : > { %9105 = vmatpush3.bf16.msk.msra.mxu0 %vm11111_vm13, %v8222_v19  ;;  %12910 = vst [vmem:[#allocation7_spill] sm:$0xff] %v11933_v0 }
0x1870   : > { %9110 = vmatprep.subr.msk.bf16.mxu0 %vm11132_vm14, %v8229_v41 }
0x1876   : > { %9107 = vmatmul.mubr.msk.bf16.vlgmr.msra.gmra.mrb[28].mxu0 %vm828_vm6, %v10471_v35 }
0x1877   : > { %9111 = vmatpush3.bf16.msk.msra.mxu0 %vm11132_vm14, %v8229_v41  ;;  %9114 = vmatprep.mubr.msk.bf16.mxu0 %vm828_vm6, %v10472_v14 }
0x1878   : > { %9112 = vmatprep.subr.msk.bf16.mxu0 %vm11132_vm14, %v8232_v32 }
0x187b   : > { %9113 = vmatpush3.bf16.msk.msra.mxu0 %vm11132_vm14, %v8232_v32 }
0x187c   : > { %9126 = vmatprep.subr.bf16.mxu0 %v12907_v42 }
0x1882   : > { %9115 = vmatmul.mubr.msk.bf16.vlgmr.msra.gmra.mrb[28].mxu0 %vm828_vm6, %v10473_v18 }
0x1883   : > { %9127 = vmatpush3.bf16.msra.mxu0 %v10617_v59  ;;  %9128 = vmatprep.mubr.msk.bf16.mxu0 %vm12886_vm15, %v12907_v42 }
0x18de   : > { %v4601_v15 = vpop.permute.xlu1 %4600 }
0x18df   : > { %v4602_v27 = vsel %vm309_vm1, %v4601_v15, %v11837_v7 }
0x18e0   : > { %4604 = vrot.lane.b32.xlu1 %v4602_v27, %s10771_s14  ;;  %4783 = vrot.lane.b32.xlu0 %v4602_v27, %s10770_s13 }
0x18e4   : > { %4665 = vrot.lane.b32.xlu1 %v4602_v27, %s10772_s15 }
0x18e8   : > { %4844 = vrot.lane.b32.xlu1 %v4602_v27, %s10773_s16  ;;  %v4450_v27 = vld [vmem:[%s12854_s1 + $0x28c] sm:$0x1] }
0x1955   : > { %v9116_v19 = vpop.f32.mrb[28].mxu0 }
0x1956   : > { %v9502_v28 = vadd.f32 %v9116_v19, %v11931_v39  ;;  %v4407_v41 = vpop.f32.mrb[29].mxu0 }
0x1957   : > { %v9503_v11 = vadd.f32 %v4407_v41, %v11929_v45  ;;  %v9117_v33 = vpop.f32.mrb[30].mxu0 }
0x1958   : > { %v4432_v50 = vmin.f32 %v9502_v28, 0.0  ;;  %v9504_v35 = vadd.f32 %v9117_v33, %v11933_v0  ;;  %v4410_v14 = vpop.f32.mrb[31].mxu0  ;;  %vm4428_vm8 = vcmp.gt.f32.partialorder %v9502_v28, 0.0 }
0x1959   : > { %v4430_v32 = vmin.f32 %v9503_v11, 0.0  ;;  %v9505_v18 = vadd.f32 %v4410_v14, %v11921_v22  ;;  %vm4426_vm11 = vcmp.gt.f32.partialorder %v9503_v11, 0.0 }
0x195a   : > { %v4438_v59 = vmul.f32 1.442695, %v4432_v50  ;;  %v4433_v17 = vmin.f32 %v9504_v35, 0.0  ;;  %vm4429_vm10 = vcmp.gt.f32.partialorder %v9504_v35, 0.0 }
0x195b   : > { %v4434_v10 = vmul.f32 1.442695, %v4430_v32  ;;  %v4431_v46 = vmin.f32 %v9505_v18, 0.0  ;;  %vm4427_vm3 = vcmp.gt.f32.partialorder %v9505_v18, 0.0 }
0x195c   : > { %10530 = vpow2.f32 %v4438_v59  ;;  %v4440_v4 = vmul.f32 1.442695, %v4433_v17 }
0x195d   : > { %10532 = vpow2.f32 %v4434_v10  ;;  %v4436_v15 = vmul.f32 1.442695, %v4431_v46 }
0x195e   : > { %10534 = vpow2.f32 %v4440_v4 }
0x195f   : > { %10536 = vpow2.f32 %v4436_v15 }
0x1966   : > { %v10531_v19 = vpop.eup %10530 }
0x1967   : > { %v10533_v41 = vpop.eup %10532  ;;  %v8238_v33 = vadd.f32 -1.0, %v10531_v19 }
0x1968   : > { %v10535_v0 = vpop.eup %10534  ;;  %v8236_v45 = vadd.f32 -1.0, %v10533_v41 }
0x1969   : > { %v10537_v14 = vpop.eup %10536  ;;  %v8239_v50 = vadd.f32 -1.0, %v10535_v0  ;;  %v4448_v32 = vsel %vm4428_vm8, %v9502_v28, %v8238_v33  ;;  %v4605_v0 = vpop.permute.xlu1 %4604  ;;  %vm12911_vm8 = vcmask 1042432  }
0x196a   : > { %v8237_v22 = vadd.f32 -1.0, %v10537_v14  ;;  %v4446_v17 = vsel %vm4426_vm11, %v9503_v11, %v8236_v45  ;;  %v10618_v45 = vld [vmem:[%s12854_s1 + $0x50] sm:$0xff]   ;;  %v4607_v28 = vsel %vm10915_vm5, %v4605_v0, 0.0  ;;  %vm12913_vm11 = vmmov %vm12911_vm8 }
0x196b   : > { %v4449_v59 = vsel %vm4429_vm10, %v9504_v35, %v8239_v50  ;;  %v4608_v11 = vpack.c.bf16 %v4607_v28, %v4607_v28  ;;  %vm12912_vm10 = vmmov %vm12911_vm8  ;;  %v10622_v28 = vld [vmem:[%s12854_s1 + $0x18] sm:$0xff]  }
0x196c   : > { %v4453_v10 = vpack.c.bf16 %v4449_v59, %v4448_v32  ;;  %v4447_v46 = vsel %vm4427_vm3, %v9505_v18, %v8237_v22  ;;  %v4552_v22 = vpack.c.bf16 %v11831_v53, %v11831_v53  ;;  %vm12914_vm3 = vmmov %vm12911_vm8 }
0x196d   : > { %v4452_v4 = vpack.c.bf16 %v4447_v46, %v4446_v17  ;;  %9814 = vmatprep.subr.msk.bf16.mxu0 %vm12911_vm8, %v4608_v11  ;;  %v4666_v35 = vpop.permute.xlu1 %4665  ;;  %v4610_v14 = vsel %vm12912_vm10, %v4608_v11, 0  ;;  %v10619_v17 = vld [vmem:[%s12854_s1] sm:$0xff]   ;;  %vm12915_vm8 = vmmov %vm12914_vm3  ;;  %vm12916_vm10 = vcmp.lt.s32.totalorder %v10939_v29, 16 }
0x196e   : > { %v4668_v15 = vsel %vm10921_vm9, %v4666_v35, 0.0  ;;  %v10623_v11 = vld [vmem:[%s12854_s1 + $0x20] sm:$0xff]  }
0x196f   : > { %9119 = vmatpush3.bf16.msra.mxu1 %v4452_v4  ;;  %v4669_v32 = vpack.c.bf16 %v4668_v15, %v4668_v15  ;;  %v10620_v4 = vld [vmem:[%s12854_s1 + $0x8] sm:$0xff]  }
0x1970   : > { %9120 = vmatprep.subr.bf16.mxu1 %v12907_v42 }
0x1971   : > { %v4671_v46 = vsel %vm12914_vm3, %v4669_v32, 0  ;;  %v4845_v35 = vpop.permute.xlu1 %4844 }
0x1973   : > { %9121 = vmatpush3.bf16.msra.mxu1 %v4453_v10  ;;  %v4726_v10 = vpack.c.bf16 %v11837_v7, %v11837_v7 }
0x1974   : > { %9132 = vmatprep.subr.bf16.mxu1 %v12907_v42 }
0x1976   : > { %9123 = vmatmul.mubr.msk.bf16.vlgmr.msra.gmra.mrb[28].mxu1 %vm828_vm6, %v4450_v27  ;;  %v10621_v27 = vld [vmem:[%s12854_s1 + $0x10] sm:$0xff]  }
0x1977   : > { %9133 = vmatpush3.bf16.msra.mxu1 %v11669_v61  ;;  %9134 = vmatprep.mubr.msk.bf16.mxu1 %vm12886_vm15, %v12907_v42  ;;  %v11964_v61 = vpop.permute.xlu0 %4456 }
0x197e   : > { %9135 = vmatmul.mubr.msk.bf16.vlgmr.msra.gmra.mrb[32].mxu1 %vm255_vm4, %v4552_v22  ;;  %v4784_v22 = vpop.permute.xlu0 %4783 }
0x197f   : > { %9172 = vmatprep.mubr.msk.bf16.mxu1 %vm828_vm6, %v10618_v45  ;;  %v4786_v7 = vsel %vm12916_vm10, %v4784_v22, 0.0  ;;  %vm12919_vm10 = vmmov %vm12914_vm3 }
0x1980   : > { %v4787_v0 = vpack.c.bf16 %v4786_v7, %v4786_v7 }
0x1982   : > { %v4789_v15 = vsel %vm12919_vm10, %v4787_v0, 0 }
0x1a49   : > { %v4496_v18 = vpop.f32.mrb[28].mxu1 }
0x1a4a   : > { %v4497_v19 = vadd.f32 %v4496_v18, %v11964_v61  ;;  %v9124_v41 = vpop.f32.mrb[29].mxu1 }
0x1a4b   : > { %v4499_v33 = vpop.f32.mrb[30].mxu1  ;;  %v10624_v41 = vld [vmem:[%s12854_s1 + $0x28] sm:$0xff]  }
0x1a4c   : > { %v4502_v50 = vpack.c.bf16 %v4497_v19, %v4497_v19  ;;  %v9125_v59 = vpop.f32.mrb[31].mxu1  ;;  %v10625_v33 = vld [vmem:[%s12854_s1 + $0x30] sm:$0xff]  }
0x1a4d   : > { %v10628_v59 = vld [vmem:[%s12854_s1 + $0x48] sm:$0xff]  }
0x1a4e   : > { %9129 = vmatmul.mubr.msk.bf16.vlgmr.msra.gmra.mrb[32].mxu0 %vm255_vm4, %v4502_v50  ;;  %v10626_v50 = vld [vmem:[%s12854_s1 + $0x38] sm:$0xff]  }
0x1a4f   : > { %9139 = vmatpush3.bf16.msra.mxu0 %v4610_v14  ;;  %9140 = vmatprep.mubr.msk.bf16.mxu0 %vm334_vm2, %v10619_v17 }
0x1a50   : > { %9815 = vmatprep.subr.msk.bf16.mxu0 %vm12913_vm11, %v4669_v32  ;;  %vm12917_vm11 = vmmov %vm12914_vm3  ;;  %v10627_v32 = vld [vmem:[%s12854_s1 + $0x40] sm:$0xff]  }
0x1a51   : > { %v4728_v45 = vsel %vm12917_vm11, %v4726_v10, 0  ;;  %vm12920_vm11 = vmmov %vm12914_vm3 }
0x1a56   : > { %9141 = vmatmul.mubr.msk.bf16.vlgmr.msra.gmra.mrb[36].mxu0 %vm334_vm2, %v10620_v4 }
0x1a57   : > { %9145 = vmatpush3.bf16.msra.mxu0 %v4671_v46  ;;  %9146 = vmatprep.mubr.msk.bf16.mxu0 %vm334_vm2, %v10621_v27 }
0x1a58   : > { %9816 = vmatprep.subr.msk.bf16.mxu0 %vm12915_vm8, %v4726_v10  ;;  %vm12918_vm8 = vcmp.lt.s32.totalorder %v10954_v36, 16 }
0x1a59   : > { %v4847_v18 = vsel %vm12918_vm8, %v4845_v35, 0.0 }
0x1a5a   : > { %v4848_v19 = vpack.c.bf16 %v4847_v18, %v4847_v18 }
0x1a5c   : > { %v4850_v14 = vsel %vm12914_vm3, %v4848_v19, 0 }
0x1a62   : > { %9147 = vmatmul.mubr.msk.bf16.vlgmr.msra.gmra.mrb[36].mxu0 %vm334_vm2, %v10622_v28 }
0x1a63   : > { %9151 = vmatpush3.bf16.msra.mxu0 %v4728_v45  ;;  %9152 = vmatprep.mubr.msk.bf16.mxu0 %vm334_vm2, %v10623_v11 }
0x1a64   : > { %9817 = vmatprep.subr.msk.bf16.mxu0 %vm12914_vm3, %v4787_v0 }
0x1a6e   : > { %9153 = vmatmul.mubr.msk.bf16.vlgmr.msra.gmra.mrb[36].mxu0 %vm334_vm2, %v10624_v41 }
0x1a6f   : > { %9157 = vmatpush3.bf16.msra.mxu0 %v4789_v15  ;;  %9158 = vmatprep.mubr.msk.bf16.mxu0 %vm334_vm2, %v10625_v33 }
0x1a70   : > { %9818 = vmatprep.subr.msk.bf16.mxu0 %vm12920_vm11, %v4848_v19 }
0x1a7a   : > { %9159 = vmatmul.mubr.msk.bf16.vlgmr.msra.gmra.mrb[36].mxu0 %vm334_vm2, %v10626_v50 }
0x1a7b   : > { %9163 = vmatpush3.bf16.msra.mxu0 %v4850_v14  ;;  %9164 = vmatprep.mubr.msk.bf16.mxu0 %vm334_vm2, %v10627_v32 }
0x1a7c   : > { %9208 = vmatprep.subr.bf16.mxu0 %v12907_v42 }
0x1a86   : > { %9165 = vmatmul.mubr.msk.bf16.vlgmr.msra.gmra.mrb[36].mxu0 %vm334_vm2, %v10628_v59 }
0x1a87   : > { %9212 = vmatprep.mubr.msk.bf16.mxu0 %vm12886_vm15, %v12907_v42 }
0x1b21   : > { %v12028_v17 = vpop.f32.mrb[32].mxu0 }
0x1b22   : > { %v9130_v10 = vpop.f32.mrb[33].mxu0 }
0x1b23   : > { %v4543_v46 = vpop.f32.mrb[34].mxu0 }
0x1b24   : > { %v9131_v4 = vpop.f32.mrb[35].mxu0 }
0x1b59   : > { %v9166_v27 = vpop.f32.mrb[36].mxu0 }
0x1b5a   : > { %v9506_v22 = vadd.f32 %v9166_v27, %v10987_v49  ;;  %v4886_v7 = vpop.f32.mrb[37].mxu0 }
0x1b5b   : > { %v9507_v45 = vadd.f32 %v4886_v7, %v10985_v48  ;;  %v9167_v0 = vpop.f32.mrb[38].mxu0 }
0x1b5c   : > { %v4911_v28 = vmin.f32 %v9506_v22, 0.0  ;;  %v9508_v11 = vadd.f32 %v9167_v0, %v10989_v51  ;;  %v4889_v35 = vpop.f32.mrb[39].mxu0  ;;  %vm4907_vm8 = vcmp.gt.f32.partialorder %v9506_v22, 0.0 }
0x1b5d   : > { %v4909_v18 = vmin.f32 %v9507_v45, 0.0  ;;  %v9509_v15 = vadd.f32 %v4889_v35, %v10983_v47  ;;  %vm4905_vm11 = vcmp.gt.f32.partialorder %v9507_v45, 0.0 }
0x1b5e   : > { %v4917_v19 = vmul.f32 1.442695, %v4911_v28  ;;  %v4912_v41 = vmin.f32 %v9508_v11, 0.0  ;;  %vm4908_vm10 = vcmp.gt.f32.partialorder %v9508_v11, 0.0 }
0x1b5f   : > { %v4913_v33 = vmul.f32 1.442695, %v4909_v18  ;;  %v4910_v14 = vmin.f32 %v9509_v15, 0.0  ;;  %vm4906_vm3 = vcmp.gt.f32.partialorder %v9509_v15, 0.0 }
0x1b60   : > { %10538 = vpow2.f32 %v4917_v19  ;;  %v4919_v50 = vmul.f32 1.442695, %v4912_v41 }
0x1b61   : > { %10540 = vpow2.f32 %v4913_v33  ;;  %v4915_v32 = vmul.f32 1.442695, %v4910_v14 }
0x1b62   : > { %10542 = vpow2.f32 %v4919_v50 }
0x1b63   : > { %10544 = vpow2.f32 %v4915_v32 }
0x1b6a   : > { %v10539_v49 = vpop.eup %10538 }
0x1b6b   : > { %v10541_v48 = vpop.eup %10540  ;;  %v8256_v59 = vadd.f32 -1.0, %v10539_v49 }
0x1b6c   : > { %v10543_v10 = vpop.eup %10542  ;;  %v8254_v46 = vadd.f32 -1.0, %v10541_v48 }
0x1b6d   : > { %v10545_v51 = vpop.eup %10544  ;;  %v8257_v4 = vadd.f32 -1.0, %v10543_v10  ;;  %v12034_v27 = vsel %vm4907_vm8, %v9506_v22, %v8256_v59 }
0x1b6e   : > { %v8255_v47 = vadd.f32 -1.0, %v10545_v51  ;;  %v12038_v0 = vsel %vm4905_vm11, %v9507_v45, %v8254_v46 }
0x1b6f   : > { %v12036_v7 = vsel %vm4908_vm10, %v9508_v11, %v8257_v4 }
0x1b70   : > { %v12040_v28 = vsel %vm4906_vm3, %v9509_v15, %v8255_v47  ;;  %v10157_v35 = vpack.i.bf16 %v12036_v7, %v12034_v27 }
0x1b71   : > { %v10152_v18 = vpack.i.bf16 %v12040_v28, %v12038_v0 }
0x1b72   : > { %10158 = vrot.lane.b32.xlu1 %v10157_v35, %s10769_s10 }
0x1b73   : > { %10153 = vrot.lane.b32.xlu0 %v10152_v18, %s10769_s10 }
0x1be4   : > { %v10159_v22 = vpop.permute.xlu1 %10158 }
0x1be5   : > { %v10161_v19 = vunpack.i.h.bf16 %v10159_v22  ;;  %v10160_v41 = vunpack.i.l.bf16 %v10159_v22  ;;  %v10154_v11 = vpop.permute.xlu0 %10153 }
0x1be6   : > { %v10156_v33 = vunpack.i.h.bf16 %v10154_v11  ;;  %v10155_v14 = vunpack.i.l.bf16 %v10154_v11 }
0x1be7   : > { %v4940_v45 = vsel %vm309_vm1, %v10161_v19, %v12036_v7  ;;  %v4937_v15 = vsel %vm309_vm1, %v10160_v41, %v12034_v27 }
0x1be8   : > { %v10167_v50 = vpack.i.bf16 %v4940_v45, %v4937_v15  ;;  %v4934_v32 = vsel %vm309_vm1, %v10156_v33, %v12040_v28  ;;  %v4931_v49 = vsel %vm309_vm1, %v10155_v14, %v12038_v0  ;;  %v12074_v33 = vpop.f32.mrb[32].mxu1 }
0x1be9   : > { %v10162_v48 = vpack.i.bf16 %v4934_v32, %v4931_v49  ;;  %v9136_v14 = vpop.f32.mrb[33].mxu1 }
0x1bea   : > { %10168 = vrot.lane.b32.xlu1 %v10167_v50, %s10769_s10  ;;  %v4593_v45 = vpop.f32.mrb[34].mxu1  ;;  %v10629_v14 = vld [vmem:[%s12854_s1 + $0x58] sm:$0xff]  }
0x1beb   : > { %10163 = vrot.lane.b32.xlu0 %v10162_v48, %s10769_s10  ;;  %v9137_v15 = vpop.f32.mrb[35].mxu1  ;;  %v10630_v45 = vld [vmem:[%s12854_s1 + $0x60] sm:$0xff]  }
0x1bec   : > { %v5099_v15 = vpack.c.bf16 %v12040_v28, %v12038_v0 }
0x1c5c   : > { %v10169_v59 = vpop.permute.xlu1 %10168 }
0x1c5d   : > { %v10171_v10 = vunpack.i.h.bf16 %v10169_v59  ;;  %v10170_v46 = vunpack.i.l.bf16 %v10169_v59  ;;  %v10164_v51 = vpop.permute.xlu0 %10163 }
0x1c5e   : > { %v10166_v4 = vunpack.i.h.bf16 %v10164_v51  ;;  %v10165_v47 = vunpack.i.l.bf16 %v10164_v51 }
0x1c5f   : > { %v4952_v35 = vsel %vm309_vm1, %v10171_v10, %v12036_v7  ;;  %v4951_v18 = vsel %vm309_vm1, %v10170_v46, %v12034_v27 }
0x1c60   : > { %v4950_v22 = vsel %vm309_vm1, %v10166_v4, %v12040_v28  ;;  %v4949_v19 = vsel %vm309_vm1, %v10165_v47, %v12038_v0  ;;  %v10177_v41 = vpack.i.bf16 %v4952_v35, %v4951_v18  ;;  %v10632_v0 = vld [vmem:[%s12854_s1 + $0x70] sm:$0xff]  }
0x1c61   : > { %v10172_v11 = vpack.i.bf16 %v4950_v22, %v4949_v19 }
0x1c62   : > { %10178 = vrot.lane.b32.xlu1 %v10177_v41, %s10771_s14 }
0x1c63   : > { %10173 = vrot.lane.b32.xlu0 %v10172_v11, %s10771_s14 }
0x1c66   : > { %10188 = vrot.lane.b32.xlu1 %v10177_v41, %s10772_s15 }
0x1c67   : > { %10183 = vrot.lane.b32.xlu0 %v10172_v11, %s10772_s15 }
0x1c6a   : > { %10198 = vrot.lane.b32.xlu1 %v10177_v41, %s10770_s13 }
0x1c6b   : > { %10193 = vrot.lane.b32.xlu0 %v10172_v11, %s10770_s13 }
0x1c6e   : > { %10208 = vrot.lane.b32.xlu1 %v10177_v41, %s10773_s16 }
0x1c6f   : > { %10203 = vrot.lane.b32.xlu0 %v10172_v11, %s10773_s16 }
0x1cd4   : > { %v10179_v50 = vpop.permute.xlu1 %10178 }
0x1cd5   : > { %v10174_v32 = vpop.permute.xlu0 %10173  ;;  %v10181_v49 = vunpack.i.h.bf16 %v10179_v50  ;;  %v10180_v48 = vunpack.i.l.bf16 %v10179_v50 }
0x1cd6   : > { %v10176_v59 = vunpack.i.h.bf16 %v10174_v32  ;;  %v10175_v10 = vunpack.i.l.bf16 %v10174_v32 }
0x1cd7   : > { %v8262_v4 = vpack.c.bf16 %v10181_v49, %v10180_v48  ;;  %v10631_v48 = vld [vmem:[%s12854_s1 + $0x68] sm:$0xff]  }
0x1cd8   : > { %v8259_v46 = vpack.c.bf16 %v10176_v59, %v10175_v10  ;;  %v10189_v18 = vpop.permute.xlu1 %10188  ;;  %v5100_v59 = vpack.c.bf16 %v12036_v7, %v12034_v27  ;;  %v10633_v7 = vld [vmem:[%s12854_s1 + $0x78] sm:$0xff]  }
0x1cd9   : > { %v10184_v51 = vpop.permute.xlu0 %10183  ;;  %v10191_v22 = vunpack.i.h.bf16 %v10189_v18  ;;  %v10190_v19 = vunpack.i.l.bf16 %v10189_v18  ;;  %v10634_v18 = vld [vmem:[%s12854_s1 + $0x80] sm:$0xff]  }
0x1cda   : > { %v10186_v47 = vunpack.i.h.bf16 %v10184_v51  ;;  %v10185_v35 = vunpack.i.l.bf16 %v10184_v51  ;;  %9168 = vmatprep.subr.msk.bf16.mxu1 %vm11061_vm7, %v8259_v46 }
0x1cdb   : > { %9169 = vmatpush3.bf16.msk.msra.mxu1 %vm11061_vm7, %v8259_v46  ;;  %v8270_v11 = vpack.c.bf16 %v10191_v22, %v10190_v19 }
0x1cdc   : > { %9170 = vmatprep.subr.msk.bf16.mxu1 %vm11061_vm7, %v8262_v4  ;;  %v8267_v41 = vpack.c.bf16 %v10186_v47, %v10185_v35  ;;  %v10199_v10 = vpop.permute.xlu1 %10198 }
0x1cdd   : > { %v10194_v50 = vpop.permute.xlu0 %10193  ;;  %v10201_v46 = vunpack.i.h.bf16 %v10199_v10  ;;  %v10200_v51 = vunpack.i.l.bf16 %v10199_v10 }
0x1cde   : > { %v10196_v32 = vunpack.i.h.bf16 %v10194_v50  ;;  %v10195_v49 = vunpack.i.l.bf16 %v10194_v50  ;;  %v10637_v50 = vld [vmem:[%s12854_s1 + $0x98] sm:$0xff]  }
0x1cdf   : > { %9171 = vmatpush3.bf16.msk.msra.mxu1 %vm11061_vm7, %v8262_v4  ;;  %v8280_v47 = vpack.c.bf16 %v10201_v46, %v10200_v51 }
0x1ce0   : > { %9176 = vmatprep.subr.msk.bf16.mxu1 %vm11074_vm12, %v8267_v41  ;;  %v8277_v28 = vpack.c.bf16 %v10196_v32, %v10195_v49  ;;  %v10209_v19 = vpop.permute.xlu1 %10208  ;;  %v12152_v32 = vld [vmem:[%s12857_s4] sm:$0xff]  }
0x1ce1   : > { %v10204_v4 = vpop.permute.xlu0 %10203 }
0x1ce2   : > { %9173 = vmatmul.mubr.msk.bf16.vlgmr.msra.gmra.mrb[36].mxu1 %vm828_vm6, %v10629_v14  ;;  %v10206_v35 = vunpack.i.h.bf16 %v10204_v4  ;;  %v10205_v27 = vunpack.i.l.bf16 %v10204_v4 }
0x1ce3   : > { %9177 = vmatpush3.bf16.msk.msra.mxu1 %vm11074_vm12, %v8267_v41  ;;  %9180 = vmatprep.mubr.msk.bf16.mxu1 %vm828_vm6, %v10630_v45  ;;  %v10211_v41 = vunpack.i.h.bf16 %v10209_v19  ;;  %v10635_v45 = vld [vmem:[%s12854_s1 + $0x88] sm:$0xff]  }
0x1ce4   : > { %9178 = vmatprep.subr.msk.bf16.mxu1 %vm11074_vm12, %v8270_v11  ;;  %v8285_v22 = vpack.c.bf16 %v10206_v35, %v10205_v27 }
0x1ce7   : > { %9179 = vmatpush3.bf16.msk.msra.mxu1 %vm11074_vm12, %v8270_v11  ;;  %v10210_v11 = vunpack.i.l.bf16 %v10209_v19 }
0x1ce8   : > { %9184 = vmatprep.subr.bf16.mxu1 %v5099_v15 }
0x1ce9   : > { %v8288_v14 = vpack.c.bf16 %v10211_v41, %v10210_v11 }
0x1cee   : > { %9181 = vmatmul.mubr.msk.bf16.vlgmr.msra.gmra.mrb[36].mxu1 %vm828_vm6, %v10631_v48 }
0x1cef   : > { %9185 = vmatpush3.bf16.msra.mxu1 %v5099_v15  ;;  %9188 = vmatprep.mubr.msk.bf16.mxu1 %vm828_vm6, %v10632_v0  ;;  %v10636_v15 = vld [vmem:[%s12854_s1 + $0x90] sm:$0xff]  }
0x1cf0   : > { %9186 = vmatprep.subr.bf16.mxu1 %v5100_v59 }
0x1cf3   : > { %9187 = vmatpush3.bf16.msra.mxu1 %v5100_v59 }
0x1cf4   : > { %9192 = vmatprep.subr.msk.bf16.mxu1 %vm11111_vm13, %v8277_v28 }
0x1cfa   : > { %9189 = vmatmul.mubr.msk.bf16.vlgmr.msra.gmra.mrb[36].mxu1 %vm828_vm6, %v10633_v7 }
0x1cfb   : > { %9193 = vmatpush3.bf16.msk.msra.mxu1 %vm11111_vm13, %v8277_v28  ;;  %9196 = vmatprep.mubr.msk.bf16.mxu1 %vm828_vm6, %v10634_v18 }
0x1cfc   : > { %9194 = vmatprep.subr.msk.bf16.mxu1 %vm11111_vm13, %v8280_v47 }
0x1cff   : > { %9195 = vmatpush3.bf16.msk.msra.mxu1 %vm11111_vm13, %v8280_v47 }
0x1d00   : > { %9200 = vmatprep.subr.msk.bf16.mxu1 %vm11132_vm14, %v8285_v22 }
0x1d06   : > { %9197 = vmatmul.mubr.msk.bf16.vlgmr.msra.gmra.mrb[36].mxu1 %vm828_vm6, %v10635_v45 }
0x1d07   : > { %9201 = vmatpush3.bf16.msk.msra.mxu1 %vm11132_vm14, %v8285_v22  ;;  %9204 = vmatprep.mubr.msk.bf16.mxu1 %vm828_vm6, %v10636_v15 }
0x1d08   : > { %9202 = vmatprep.subr.msk.bf16.mxu1 %vm11132_vm14, %v8288_v14 }
0x1d0b   : > { %9203 = vmatpush3.bf16.msk.msra.mxu1 %vm11132_vm14, %v8288_v14 }
0x1d0c   : > { %9216 = vmatprep.subr.bf16.mxu1 %v12907_v42 }
0x1d12   : > { %9205 = vmatmul.mubr.msk.bf16.vlgmr.msra.gmra.mrb[36].mxu1 %vm828_vm6, %v10637_v50 }
0x1d13   : > { %9217 = vmatpush3.bf16.msra.mxu1 %v12152_v32  ;;  %9218 = vmatprep.mubr.msk.bf16.mxu1 %vm12886_vm15, %v12907_v42 }
0x1de5   : > { %v9206_v49 = vpop.f32.mrb[36].mxu1 }
0x1de6   : > { %v9510_v48 = vadd.f32 %v9206_v49, %v11172_v38  ;;  %v5277_v59 = vpop.f32.mrb[37].mxu1 }
0x1de7   : > { %v9511_v0 = vadd.f32 %v5277_v59, %v11170_v63  ;;  %v9207_v28 = vpop.f32.mrb[38].mxu1 }
0x1de8   : > { %v5302_v10 = vmin.f32 %v9510_v48, 0.0  ;;  %v9512_v46 = vadd.f32 %v9207_v28, %v11177_v6  ;;  %v5280_v51 = vpop.f32.mrb[39].mxu1  ;;  %vm5298_vm8 = vcmp.gt.f32.partialorder %v9510_v48, 0.0 }
0x1de9   : > { %v5300_v4 = vmin.f32 %v9511_v0, 0.0  ;;  %v9513_v47 = vadd.f32 %v5280_v51, %v11175_v5  ;;  %vm5296_vm11 = vcmp.gt.f32.partialorder %v9511_v0, 0.0  ;;  %v10639_v51 = vld [vmem:[%s12854_s1 + $0xa0] sm:$0x3] }
0x1dea   : > { %v5308_v35 = vmul.f32 1.442695, %v5302_v10  ;;  %v5303_v27 = vmin.f32 %v9512_v46, 0.0  ;;  %vm5299_vm10 = vcmp.gt.f32.partialorder %v9512_v46, 0.0 }
0x1deb   : > { %v5304_v7 = vmul.f32 1.442695, %v5300_v4  ;;  %v5301_v18 = vmin.f32 %v9513_v47, 0.0  ;;  %vm5297_vm3 = vcmp.gt.f32.partialorder %v9513_v47, 0.0 }
0x1dec   : > { %10546 = vpow2.f32 %v5308_v35  ;;  %v5310_v22 = vmul.f32 1.442695, %v5303_v27 }
0x1ded   : > { %10548 = vpow2.f32 %v5304_v7  ;;  %v5306_v19 = vmul.f32 1.442695, %v5301_v18  ;;  %v10641_v7 = vld [vmem:[%s12854_s1 + $0xf4] sm:$0xff]   ;;  %v5407_v18 = vrot.slane %v11831_v53, 1 }
0x1dee   : > { %10550 = vpow2.f32 %v5310_v22 }
0x1def   : > { %10552 = vpow2.f32 %v5306_v19 }
0x1df6   : > { %v10547_v38 = vpop.eup %10546 }
0x1df7   : > { %v10549_v63 = vpop.eup %10548  ;;  %v8294_v41 = vadd.f32 -1.0, %v10547_v38 }
0x1df8   : > { %v10551_v11 = vpop.eup %10550  ;;  %v8292_v14 = vadd.f32 -1.0, %v10549_v63 }
0x1df9   : > { %v10553_v6 = vpop.eup %10552  ;;  %v8295_v45 = vadd.f32 -1.0, %v10551_v11  ;;  %v5318_v15 = vsel %vm5298_vm8, %v9510_v48, %v8294_v41  ;;  %v10640_v48 = vld [vmem:[%s12854_s1 + $0xa4] sm:$0xff]   ;;  %vm12921_vm8 = vcmask 1040384  }
0x1dfa   : > { %v8293_v5 = vadd.f32 -1.0, %v10553_v6  ;;  %v5316_v49 = vsel %vm5296_vm11, %v9511_v0, %v8292_v14 }
0x1dfb   : > { %v5319_v50 = vsel %vm5299_vm10, %v9512_v46, %v8295_v45  ;;  %vm12922_vm10 = vcmask 1042432  }
0x1dfc   : > { %v5321_v59 = vpack.c.bf16 %v5319_v50, %v5318_v15  ;;  %v5317_v28 = vsel %vm5297_vm3, %v9513_v47, %v8293_v5  ;;  %vm12923_vm11 = vmmov %vm12922_vm10 }
0x1dfd   : > { %v5320_v10 = vpack.c.bf16 %v5317_v28, %v5316_v49  ;;  %vm12924_vm3 = vmmov %vm12922_vm10 }
0x1dff   : > { %9209 = vmatpush3.bf16.msra.mxu0 %v5320_v10 }
0x1e00   : > { %9210 = vmatprep.subr.bf16.mxu0 %v12907_v42 }
0x1e03   : > { %9211 = vmatpush3.bf16.msra.mxu0 %v5321_v59 }
0x1e06   : > { %9213 = vmatmul.mubr.msk.bf16.vlgmr.msra.gmra.mrb[40].mxu0 %vm828_vm6, %v10639_v51  ;;  %v10642_v51 = vld [vmem:[%s12854_s1 + $0xac] sm:$0xff]  }
0x1e07   : > { %9224 = vmatprep.mubr.msk.bf16.mxu0 %vm334_vm2, %v10640_v48 }
0x1ed9   : > { %v5356_v0 = vpop.f32.mrb[40].mxu0 }
0x1eda   : > { %v5357_v46 = vadd.f32 %v5356_v0, %v11187_v52  ;;  %v9214_v4 = vpop.f32.mrb[41].mxu0  ;;  %v12182_v52 = vsel %vm12921_vm8, %v12074_v33, %v5407_v18  ;;  %vm12925_vm8 = vmmov %vm12924_vm3  ;;  %v10643_v0 = vld [vmem:[%s12854_s1 + $0xb4] sm:$0xff]  }
0x1edb   : > { %v5359_v47 = vpop.f32.mrb[42].mxu0 }
0x1edc   : > { %v5362_v35 = vpack.c.bf16 %v5357_v46, %v5357_v46  ;;  %v9215_v27 = vpop.f32.mrb[43].mxu0 }
0x1ede   : > { %9219 = vmatmul.mubr.msk.bf16.vlgmr.msra.gmra.mrb[40].mxu1 %vm255_vm4, %v5362_v35  ;;  %v10644_v35 = vld [vmem:[%s12854_s1 + $0xbc] sm:$0xff]  }
0x1edf   : > { %9256 = vmatprep.mubr.msk.bf16.mxu1 %vm828_vm6, %v10641_v7  ;;  %v10645_v7 = vld [vmem:[%s12854_s1 + $0xc4] sm:$0xff]  }
0x1fb1   : > { %v12177_v22 = vpop.f32.mrb[40].mxu1 }
0x1fb2   : > { %v5410_v19 = vrot.slane %v12177_v22, 6  ;;  %v9220_v38 = vpop.f32.mrb[41].mxu1 }
0x1fb3   : > { %v5403_v63 = vpop.f32.mrb[42].mxu1 }
0x1fb4   : > { %v9221_v41 = vpop.f32.mrb[43].mxu1  ;;  %v5413_v11 = vsel %vm299_vm0, %v12182_v52, %v5410_v19 }
0x1fb5   : > { %5414 = vrot.lane.b32.xlu0 %v5413_v11, %s10769_s10  ;;  %v5543_v48 = vpack.c.bf16 %v5413_v11, %v5413_v11  ;;  %v10646_v41 = vld [vmem:[%s12854_s1 + $0xcc] sm:$0xff]  }
0x1fb7   : > { %v5545_v27 = vsel %vm12924_vm3, %v5543_v48, 0 }
0x2027   : > { %v5415_v14 = vpop.permute.xlu0 %5414 }
0x2028   : > { %v5416_v6 = vsel %vm309_vm1, %v5415_v14, %v5413_v11 }
0x2029   : > { %5417 = vrot.lane.b32.xlu1 %v5416_v6, %s10769_s10  ;;  %v10648_v6 = vld [vmem:[%s12854_s1 + $0xdc] sm:$0xff]  }
0x209b   : > { %v5418_v53 = vpop.permute.xlu1 %5417 }
0x209c   : > { %v5419_v45 = vsel %vm309_vm1, %v5418_v53, %v5413_v11  ;;  %v10647_v11 = vld [vmem:[%s12854_s1 + $0xd4] sm:$0xff]   ;;  %v10649_v53 = vld [vmem:[%s12854_s1 + $0xe4] sm:$0xff]  }
0x209d   : > { %5482 = vrot.lane.b32.xlu1 %v5419_v45, %s10772_s15  ;;  %5421 = vrot.lane.b32.xlu0 %v5419_v45, %s10771_s14 }
0x20a1   : > { %5661 = vrot.lane.b32.xlu1 %v5419_v45, %s10773_s16  ;;  %5600 = vrot.lane.b32.xlu0 %v5419_v45, %s10770_s13  ;;  %v10650_v45 = vld [vmem:[%s12854_s1 + $0xec] sm:$0xff]  }
0x210f   : > { %v5483_v33 = vpop.permute.xlu1 %5482  ;;  %v5422_v5 = vpop.permute.xlu0 %5421 }
0x2110   : > { %v5485_v15 = vsel %vm10921_vm9, %v5483_v33, 0.0  ;;  %v5424_v50 = vsel %vm10915_vm5, %v5422_v5, 0.0 }
0x2111   : > { %v5425_v49 = vpack.c.bf16 %v5424_v50, %v5424_v50  ;;  %v5486_v59 = vpack.c.bf16 %v5485_v15, %v5485_v15 }
0x2113   : > { %v5427_v28 = vsel %vm12922_vm10, %v5425_v49, 0  ;;  %9819 = vmatprep.subr.msk.bf16.mxu0 %vm12923_vm11, %v5425_v49  ;;  %v5488_v10 = vsel %vm12925_vm8, %v5486_v59, 0  ;;  %vm12926_vm10 = vmmov %vm12924_vm3  ;;  %v5601_v46 = vpop.permute.xlu0 %5600  ;;  %vm12927_vm11 = vcmp.lt.s32.totalorder %v10939_v29, 16  ;;  %v5662_v18 = vpop.permute.xlu1 %5661 }
0x2114   : > { %9223 = vmatpush3.bf16.msra.mxu0 %v5427_v28  ;;  %v5603_v4 = vsel %vm12927_vm11, %v5601_v46, 0.0  ;;  %vm12928_vm8 = vmmov %vm12924_vm3 }
0x2115   : > { %9820 = vmatprep.subr.msk.bf16.mxu0 %vm12924_vm3, %v5486_v59  ;;  %v5604_v47 = vpack.c.bf16 %v5603_v4, %v5603_v4  ;;  %vm12930_vm11 = vmmov %vm12924_vm3 }
0x2117   : > { %9225 = vmatmul.mubr.msk.bf16.vlgmr.msra.gmra.mrb[44].mxu0 %vm334_vm2, %v10642_v51  ;;  %v5606_v63 = vsel %vm12930_vm11, %v5604_v47, 0 }
0x2118   : > { %9229 = vmatpush3.bf16.msra.mxu0 %v5488_v10  ;;  %9230 = vmatprep.mubr.msk.bf16.mxu0 %vm334_vm2, %v10643_v0 }
0x2119   : > { %9821 = vmatprep.subr.msk.bf16.mxu0 %vm12926_vm10, %v5543_v48  ;;  %vm12929_vm10 = vcmp.lt.s32.totalorder %v10954_v36, 16 }
0x211a   : > { %v5664_v19 = vsel %vm12929_vm10, %v5662_v18, 0.0 }
0x211b   : > { %v5665_v38 = vpack.c.bf16 %v5664_v19, %v5664_v19 }
0x2123   : > { %9231 = vmatmul.mubr.msk.bf16.vlgmr.msra.gmra.mrb[44].mxu0 %vm334_vm2, %v10644_v35 }
0x2124   : > { %9235 = vmatpush3.bf16.msra.mxu0 %v5545_v27  ;;  %9236 = vmatprep.mubr.msk.bf16.mxu0 %vm334_vm2, %v10645_v7 }
0x2125   : > { %9822 = vmatprep.subr.msk.bf16.mxu0 %vm12928_vm8, %v5604_v47  ;;  %vm12931_vm8 = vmmov %vm12924_vm3 }
0x2126   : > { %v5667_v14 = vsel %vm12931_vm8, %v5665_v38, 0 }
0x212f   : > { %9237 = vmatmul.mubr.msk.bf16.vlgmr.msra.gmra.mrb[44].mxu0 %vm334_vm2, %v10646_v41 }
0x2130   : > { %9241 = vmatpush3.bf16.msra.mxu0 %v5606_v63  ;;  %9242 = vmatprep.mubr.msk.bf16.mxu0 %vm334_vm2, %v10647_v11 }
0x2131   : > { %9823 = vmatprep.subr.msk.bf16.mxu0 %vm12924_vm3, %v5665_v38 }
0x213b   : > { %9243 = vmatmul.mubr.msk.bf16.vlgmr.msra.gmra.mrb[44].mxu0 %vm334_vm2, %v10648_v6 }
0x213c   : > { %9247 = vmatpush3.bf16.msra.mxu0 %v5667_v14  ;;  %9248 = vmatprep.mubr.msk.bf16.mxu0 %vm334_vm2, %v10649_v53 }
0x213d   : > { %9292 = vmatprep.subr.bf16.mxu0 %v12907_v42 }
0x2147   : > { %9249 = vmatmul.mubr.msk.bf16.vlgmr.msra.gmra.mrb[44].mxu0 %vm334_vm2, %v10650_v45 }
0x2148   : > { %9296 = vmatprep.mubr.msk.bf16.mxu0 %vm12886_vm15, %v12907_v42 }
0x221a   : > { %v9250_v33 = vpop.f32.mrb[44].mxu0 }
0x221b   : > { %v9514_v5 = vadd.f32 %v9250_v33, %v11278_v3  ;;  %v5703_v15 = vpop.f32.mrb[45].mxu0 }
0x221c   : > { %v9515_v50 = vadd.f32 %v5703_v15, %v11276_v1  ;;  %v9251_v49 = vpop.f32.mrb[46].mxu0 }
0x221d   : > { %v5728_v59 = vmin.f32 %v9514_v5, 0.0  ;;  %v9516_v28 = vadd.f32 %v9251_v49, %v11280_v12  ;;  %v5706_v10 = vpop.f32.mrb[47].mxu0  ;;  %vm5724_vm10 = vcmp.gt.f32.partialorder %v9514_v5, 0.0 }
0x221e   : > { %v5726_v51 = vmin.f32 %v9515_v50, 0.0  ;;  %v9517_v48 = vadd.f32 %v5706_v10, %v11274_v60  ;;  %vm5722_vm3 = vcmp.gt.f32.partialorder %v9515_v50, 0.0 }
0x221f   : > { %v5734_v0 = vmul.f32 1.442695, %v5728_v59  ;;  %v5729_v46 = vmin.f32 %v9516_v28, 0.0  ;;  %vm5725_vm11 = vcmp.gt.f32.partialorder %v9516_v28, 0.0 }
0x2220   : > { %v5730_v4 = vmul.f32 1.442695, %v5726_v51  ;;  %v5727_v47 = vmin.f32 %v9517_v48, 0.0  ;;  %vm5723_vm8 = vcmp.gt.f32.partialorder %v9517_v48, 0.0 }
0x2221   : > { %10554 = vpow2.f32 %v5734_v0  ;;  %v5736_v35 = vmul.f32 1.442695, %v5729_v46 }
0x2222   : > { %10556 = vpow2.f32 %v5730_v4  ;;  %v5732_v27 = vmul.f32 1.442695, %v5727_v47 }
0x2223   : > { %10558 = vpow2.f32 %v5736_v35 }
0x2224   : > { %10560 = vpow2.f32 %v5732_v27 }
0x222b   : > { %v10555_v3 = vpop.eup %10554 }
0x222c   : > { %v10557_v1 = vpop.eup %10556  ;;  %v8310_v7 = vadd.f32 -1.0, %v10555_v3 }
0x222d   : > { %v10559_v18 = vpop.eup %10558  ;;  %v8308_v19 = vadd.f32 -1.0, %v10557_v1 }
0x222e   : > { %v10561_v12 = vpop.eup %10560  ;;  %v8311_v38 = vadd.f32 -1.0, %v10559_v18  ;;  %v12255_v63 = vsel %vm5724_vm10, %v9514_v5, %v8310_v7 }
0x222f   : > { %v8309_v60 = vadd.f32 -1.0, %v10561_v12  ;;  %v12259_v11 = vsel %vm5722_vm3, %v9515_v50, %v8308_v19 }
0x2230   : > { %v12257_v41 = vsel %vm5725_vm11, %v9516_v28, %v8311_v38 }
0x2231   : > { %v12261_v14 = vsel %vm5723_vm8, %v9517_v48, %v8309_v60  ;;  %v10217_v6 = vpack.i.bf16 %v12257_v41, %v12255_v63 }
0x2232   : > { %v10212_v53 = vpack.i.bf16 %v12261_v14, %v12259_v11 }
0x2233   : > { %10218 = vrot.lane.b32.xlu1 %v10217_v6, %s10769_s10 }
0x2234   : > { %10213 = vrot.lane.b32.xlu0 %v10212_v53, %s10769_s10 }
0x22a5   : > { %v10219_v45 = vpop.permute.xlu1 %10218 }
0x22a6   : > { %v10221_v33 = vunpack.i.h.bf16 %v10219_v45  ;;  %v10220_v5 = vunpack.i.l.bf16 %v10219_v45  ;;  %v10214_v15 = vpop.permute.xlu0 %10213 }
0x22a7   : > { %v10216_v49 = vunpack.i.h.bf16 %v10214_v15  ;;  %v10215_v59 = vunpack.i.l.bf16 %v10214_v15 }
0x22a8   : > { %v5757_v50 = vsel %vm309_vm1, %v10221_v33, %v12257_v41  ;;  %v5754_v28 = vsel %vm309_vm1, %v10220_v5, %v12255_v63 }
0x22a9   : > { %v10227_v10 = vpack.i.bf16 %v5757_v50, %v5754_v28  ;;  %v5751_v51 = vsel %vm309_vm1, %v10216_v49, %v12261_v14  ;;  %v5748_v48 = vsel %vm309_vm1, %v10215_v59, %v12259_v11 }
0x22aa   : > { %v10222_v0 = vpack.i.bf16 %v5751_v51, %v5748_v48 }
0x22ab   : > { %10228 = vrot.lane.b32.xlu1 %v10227_v10, %s10769_s10 }
0x22ac   : > { %10223 = vrot.lane.b32.xlu0 %v10222_v0, %s10769_s10 }
0x231d   : > { %v10229_v46 = vpop.permute.xlu1 %10228 }
0x231e   : > { %v10231_v4 = vunpack.i.h.bf16 %v10229_v46  ;;  %v10230_v47 = vunpack.i.l.bf16 %v10229_v46  ;;  %v10224_v35 = vpop.permute.xlu0 %10223 }
0x231f   : > { %v10226_v27 = vunpack.i.h.bf16 %v10224_v35  ;;  %v10225_v3 = vunpack.i.l.bf16 %v10224_v35  ;;  %v5916_v35 = vpack.c.bf16 %v12261_v14, %v12259_v11 }
0x2320   : > { %v5769_v1 = vsel %vm309_vm1, %v10231_v4, %v12257_v41  ;;  %v5768_v7 = vsel %vm309_vm1, %v10230_v47, %v12255_v63  ;;  %v10651_v4 = vld [vmem:[%s12854_s1 + $0xfc] sm:$0xff]   ;;  %v10652_v47 = vld [vmem:[%s12854_s1 + $0x104] sm:$0xff]  }
0x2321   : > { %v5767_v18 = vsel %vm309_vm1, %v10226_v27, %v12261_v14  ;;  %v5766_v19 = vsel %vm309_vm1, %v10225_v3, %v12259_v11  ;;  %v10237_v12 = vpack.i.bf16 %v5769_v1, %v5768_v7  ;;  %v10653_v7 = vld [vmem:[%s12854_s1 + $0x10c] sm:$0xff]   ;;  %v10654_v11 = vld [vmem:[%s12854_s1 + $0x114] sm:$0xff]  }
0x2322   : > { %v10232_v38 = vpack.i.bf16 %v5767_v18, %v5766_v19  ;;  %v5917_v18 = vpack.c.bf16 %v12257_v41, %v12255_v63  ;;  %v10655_v41 = vld [vmem:[%s12854_s1 + $0x11c] sm:$0xff]  }
0x2323   : > { %10238 = vrot.lane.b32.xlu1 %v10237_v12, %s10771_s14 }
0x2324   : > { %10233 = vrot.lane.b32.xlu0 %v10232_v38, %s10771_s14 }
0x2327   : > { %10248 = vrot.lane.b32.xlu1 %v10237_v12, %s10772_s15 }
0x2328   : > { %10243 = vrot.lane.b32.xlu0 %v10232_v38, %s10772_s15 }
0x232b   : > { %10258 = vrot.lane.b32.xlu1 %v10237_v12, %s10770_s13 }
0x232c   : > { %10253 = vrot.lane.b32.xlu0 %v10232_v38, %s10770_s13 }
0x232f   : > { %10268 = vrot.lane.b32.xlu1 %v10237_v12, %s10773_s16 }
0x2330   : > { %10263 = vrot.lane.b32.xlu0 %v10232_v38, %s10773_s16 }
0x2395   : > { %v10239_v60 = vpop.permute.xlu1 %10238 }
0x2396   : > { %v10234_v6 = vpop.permute.xlu0 %10233  ;;  %v10241_v53 = vunpack.i.h.bf16 %v10239_v60  ;;  %v10240_v45 = vunpack.i.l.bf16 %v10239_v60 }
0x2397   : > { %v10236_v33 = vunpack.i.h.bf16 %v10234_v6  ;;  %v10235_v5 = vunpack.i.l.bf16 %v10234_v6 }
0x2398   : > { %v8316_v59 = vpack.c.bf16 %v10241_v53, %v10240_v45  ;;  %v10656_v45 = vld [vmem:[%s12854_s1 + $0x124] sm:$0xff]  }
0x2399   : > { %v8313_v15 = vpack.c.bf16 %v10236_v33, %v10235_v5  ;;  %v10249_v10 = vpop.permute.xlu1 %10248 }
0x239a   : > { %v10244_v49 = vpop.permute.xlu0 %10243  ;;  %v10251_v51 = vunpack.i.h.bf16 %v10249_v10  ;;  %v10250_v48 = vunpack.i.l.bf16 %v10249_v10  ;;  %v10659_v10 = vld [vmem:[%s12854_s1 + $0x13c] sm:$0xff]  }
0x239b   : > { %v10246_v50 = vunpack.i.h.bf16 %v10244_v49  ;;  %v10245_v28 = vunpack.i.l.bf16 %v10244_v49  ;;  %9252 = vmatprep.subr.msk.bf16.mxu1 %vm11061_vm7, %v8313_v15 }
0x239c   : > { %9253 = vmatpush3.bf16.msk.msra.mxu1 %vm11061_vm7, %v8313_v15  ;;  %v8324_v46 = vpack.c.bf16 %v10251_v51, %v10250_v48  ;;  %v12371_v51 = vld [vmem:[%s12856_s3] sm:$0xff]  }
0x239d   : > { %9254 = vmatprep.subr.msk.bf16.mxu1 %vm11061_vm7, %v8316_v59  ;;  %v8321_v0 = vpack.c.bf16 %v10246_v50, %v10245_v28  ;;  %v10259_v19 = vpop.permute.xlu1 %10258  ;;  %v10657_v50 = vld [vmem:[%s12854_s1 + $0x12c] sm:$0xff]   ;;  %v10658_v28 = vld [vmem:[%s12854_s1 + $0x134] sm:$0xff]  }
0x239e   : > { %v10254_v27 = vpop.permute.xlu0 %10253  ;;  %v10261_v12 = vunpack.i.h.bf16 %v10259_v19  ;;  %v10260_v38 = vunpack.i.l.bf16 %v10259_v19 }
0x239f   : > { %v10256_v3 = vunpack.i.h.bf16 %v10254_v27  ;;  %v10255_v1 = vunpack.i.l.bf16 %v10254_v27 }
0x23a0   : > { %9255 = vmatpush3.bf16.msk.msra.mxu1 %vm11061_vm7, %v8316_v59  ;;  %v8334_v6 = vpack.c.bf16 %v10261_v12, %v10260_v38 }
0x23a1   : > { %9260 = vmatprep.subr.msk.bf16.mxu1 %vm11074_vm12, %v8321_v0  ;;  %v8331_v14 = vpack.c.bf16 %v10256_v3, %v10255_v1  ;;  %v10269_v5 = vpop.permute.xlu1 %10268 }
0x23a2   : > { %v10264_v60 = vpop.permute.xlu0 %10263  ;;  %v10271_v15 = vunpack.i.h.bf16 %v10269_v5  ;;  %v10270_v49 = vunpack.i.l.bf16 %v10269_v5 }
0x23a3   : > { %9257 = vmatmul.mubr.msk.bf16.vlgmr.msra.gmra.mrb[44].mxu1 %vm828_vm6, %v10651_v4  ;;  %v10266_v53 = vunpack.i.h.bf16 %v10264_v60  ;;  %v10265_v63 = vunpack.i.l.bf16 %v10264_v60 }
0x23a4   : > { %9261 = vmatpush3.bf16.msk.msra.mxu1 %vm11074_vm12, %v8321_v0  ;;  %9264 = vmatprep.mubr.msk.bf16.mxu1 %vm828_vm6, %v10652_v47  ;;  %v8342_v59 = vpack.c.bf16 %v10271_v15, %v10270_v49 }
0x23a5   : > { %9262 = vmatprep.subr.msk.bf16.mxu1 %vm11074_vm12, %v8324_v46  ;;  %v8339_v33 = vpack.c.bf16 %v10266_v53, %v10265_v63 }
0x23a8   : > { %9263 = vmatpush3.bf16.msk.msra.mxu1 %vm11074_vm12, %v8324_v46 }
0x23a9   : > { %9268 = vmatprep.subr.bf16.mxu1 %v5916_v35 }
0x23af   : > { %9265 = vmatmul.mubr.msk.bf16.vlgmr.msra.gmra.mrb[44].mxu1 %vm828_vm6, %v10653_v7 }
0x23b0   : > { %9269 = vmatpush3.bf16.msra.mxu1 %v5916_v35  ;;  %9272 = vmatprep.mubr.msk.bf16.mxu1 %vm828_vm6, %v10654_v11 }
0x23b1   : > { %9270 = vmatprep.subr.bf16.mxu1 %v5917_v18 }
0x23b4   : > { %9271 = vmatpush3.bf16.msra.mxu1 %v5917_v18 }
0x23b5   : > { %9276 = vmatprep.subr.msk.bf16.mxu1 %vm11111_vm13, %v8331_v14 }
0x23bb   : > { %9273 = vmatmul.mubr.msk.bf16.vlgmr.msra.gmra.mrb[44].mxu1 %vm828_vm6, %v10655_v41 }
0x23bc   : > { %9277 = vmatpush3.bf16.msk.msra.mxu1 %vm11111_vm13, %v8331_v14  ;;  %9280 = vmatprep.mubr.msk.bf16.mxu1 %vm828_vm6, %v10656_v45 }
0x23bd   : > { %9278 = vmatprep.subr.msk.bf16.mxu1 %vm11111_vm13, %v8334_v6 }
0x23c0   : > { %9279 = vmatpush3.bf16.msk.msra.mxu1 %vm11111_vm13, %v8334_v6 }
0x23c1   : > { %9284 = vmatprep.subr.msk.bf16.mxu1 %vm11132_vm14, %v8339_v33 }
0x23c7   : > { %9281 = vmatmul.mubr.msk.bf16.vlgmr.msra.gmra.mrb[44].mxu1 %vm828_vm6, %v10657_v50  ;;  %v10662_v50 = vld [vmem:[%s12854_s1 + $0x148] sm:$0xff]  }
0x23c8   : > { %9285 = vmatpush3.bf16.msk.msra.mxu1 %vm11132_vm14, %v8339_v33  ;;  %9288 = vmatprep.mubr.msk.bf16.mxu1 %vm828_vm6, %v10658_v28 }
0x23c9   : > { %9286 = vmatprep.subr.msk.bf16.mxu1 %vm11132_vm14, %v8342_v59 }
0x23cc   : > { %9287 = vmatpush3.bf16.msk.msra.mxu1 %vm11132_vm14, %v8342_v59  ;;  %v10661_v59 = vld [vmem:[%s12854_s1 + $0x144] sm:$0x3] }
0x23cd   : > { %9300 = vmatprep.subr.bf16.mxu1 %v12907_v42 }
0x23d3   : > { %9289 = vmatmul.mubr.msk.bf16.vlgmr.msra.gmra.mrb[44].mxu1 %vm828_vm6, %v10659_v10 }
0x23d4   : > { %9301 = vmatpush3.bf16.msra.mxu1 %v12371_v51  ;;  %9302 = vmatprep.mubr.msk.bf16.mxu1 %vm12886_vm15, %v12907_v42 }
0x24a6   : > { %v9290_v48 = vpop.f32.mrb[44].mxu1 }
0x24a7   : > { %v9518_v0 = vadd.f32 %v9290_v48, %v11412_v55  ;;  %v6094_v46 = vpop.f32.mrb[45].mxu1 }
0x24a8   : > { %v9519_v4 = vadd.f32 %v6094_v46, %v11410_v54  ;;  %v9291_v47 = vpop.f32.mrb[46].mxu1 }
0x24a9   : > { %v6119_v35 = vmin.f32 %v9518_v0, 0.0  ;;  %v9520_v27 = vadd.f32 %v9291_v47, %v11417_v8  ;;  %v6097_v3 = vpop.f32.mrb[47].mxu1  ;;  %vm6115_vm10 = vcmp.gt.f32.partialorder %v9518_v0, 0.0 }
0x24aa   : > { %v6117_v1 = vmin.f32 %v9519_v4, 0.0  ;;  %v9521_v7 = vadd.f32 %v6097_v3, %v11415_v9  ;;  %vm6113_vm3 = vcmp.gt.f32.partialorder %v9519_v4, 0.0 }
0x24ab   : > { %v6125_v18 = vmul.f32 1.442695, %v6119_v35  ;;  %v6120_v11 = vmin.f32 %v9520_v27, 0.0  ;;  %vm6116_vm11 = vcmp.gt.f32.partialorder %v9520_v27, 0.0  ;;  %v10663_v35 = vld [vmem:[%s12854_s1 + $0x198] sm:$0xff]  }
0x24ac   : > { %v6121_v14 = vmul.f32 1.442695, %v6117_v1  ;;  %v6118_v19 = vmin.f32 %v9521_v7, 0.0  ;;  %vm6114_vm8 = vcmp.gt.f32.partialorder %v9521_v7, 0.0 }
0x24ad   : > { %10562 = vpow2.f32 %v6125_v18  ;;  %v6127_v12 = vmul.f32 1.442695, %v6120_v11  ;;  %v10664_v18 = vld [vmem:[%s10872_s9 + $0x4] sm:$0x7]  ;;  %s12810_s9 = scalar_lea.hbm %s12858_s5, %s8462_s26 }
0x24ae   : > { %10564 = vpow2.f32 %v6121_v14  ;;  %v6123_v38 = vmul.f32 1.442695, %v6118_v19 }
0x24af   : > { %10566 = vpow2.f32 %v6127_v12 }
0x24b0   : > { %10568 = vpow2.f32 %v6123_v38 }
0x24b7   : > { %v10563_v55 = vpop.eup %10562 }
0x24b8   : > { %v10565_v54 = vpop.eup %10564  ;;  %v8348_v60 = vadd.f32 -1.0, %v10563_v55 }
0x24b9   : > { %v10567_v6 = vpop.eup %10566  ;;  %v8346_v53 = vadd.f32 -1.0, %v10565_v54 }
0x24ba   : > { %v10569_v8 = vpop.eup %10568  ;;  %v8349_v63 = vadd.f32 -1.0, %v10567_v6  ;;  %v6135_v41 = vsel %vm6115_vm10, %v9518_v0, %v8348_v60  ;;  %vm12932_vm10 = vcmask 1042432  }
0x24bb   : > { %v8347_v9 = vadd.f32 -1.0, %v10569_v8  ;;  %v6133_v33 = vsel %vm6113_vm3, %v9519_v4, %v8346_v53  ;;  %vm12934_vm3 = vmmov %vm12932_vm10 }
0x24bc   : > { %v6136_v45 = vsel %vm6116_vm11, %v9520_v27, %v8349_v63  ;;  %vm12933_vm11 = vmmov %vm12932_vm10 }
0x24bd   : > { %v6138_v5 = vpack.c.bf16 %v6136_v45, %v6135_v41  ;;  %v6134_v15 = vsel %vm6114_vm8, %v9521_v7, %v8347_v9  ;;  %vm12935_vm8 = vmmov %vm12934_vm3  ;;  %v10665_v9 = vld [vmem:[%s12854_s1 + $0x150] sm:$0xff]   ;;  %v10666_v45 = vld [vmem:[%s12854_s1 + $0x158] sm:$0xff]  }
0x24be   : > { %v6137_v49 = vpack.c.bf16 %v6134_v15, %v6133_v33 }
0x24c0   : > { %9293 = vmatpush3.bf16.msra.mxu0 %v6137_v49  ;;  %v10667_v49 = vld [vmem:[%s12854_s1 + $0x160] sm:$0xff]  }
0x24c1   : > { %9294 = vmatprep.subr.bf16.mxu0 %v12907_v42 }
0x24c4   : > { %9295 = vmatpush3.bf16.msra.mxu0 %v6138_v5 }
0x24c7   : > { %9297 = vmatmul.mubr.msk.bf16.vlgmr.msra.gmra.mrb[48].mxu0 %vm828_vm6, %v10661_v59 }
0x24c8   : > { %9308 = vmatprep.mubr.msk.bf16.mxu0 %vm334_vm2, %v10662_v50  ;;  %v10668_v50 = vld [vmem:[%s12854_s1 + $0x168] sm:$0xff]  }
0x259a   : > { %v6173_v28 = vpop.f32.mrb[48].mxu0 }
0x259b   : > { %v6174_v10 = vadd.f32 %v6173_v28, %v11430_v40  ;;  %v9298_v48 = vpop.f32.mrb[49].mxu0 }
0x259c   : > { %v6176_v0 = vpop.f32.mrb[50].mxu0 }
0x259d   : > { %v6179_v46 = vsub.f32 %v6174_v10, %v12177_v22  ;;  %v9299_v4 = vpop.f32.mrb[51].mxu0 }
0x259e   : > { %v10670_v4 = vld [vmem:[%s12854_s1 + $0x178] sm:$0xff]  }
0x259f   : > { %v6180_v47 = vpack.c.bf16 %v6179_v46, %v6179_v46  ;;  %v10669_v46 = vld [vmem:[%s12854_s1 + $0x170] sm:$0xff]  }
0x25a1   : > { %9303 = vmatmul.mubr.msk.bf16.vlgmr.msra.gmra.mrb[48].mxu1 %vm255_vm4, %v6180_v47 }
0x25a2   : > { %9340 = vmatprep.mubr.msk.bf16.mxu1 %vm828_vm6, %v10663_v35  ;;  %v10671_v35 = vld [vmem:[%s12854_s1 + $0x180] sm:$0xff]  }
0x2674   : > { %v12396_v27 = vpop.f32.mrb[48].mxu1 }
0x2675   : > { %v6225_v3 = vrot.slane %v12396_v27, 6  ;;  %v9304_v1 = vpop.f32.mrb[49].mxu1 }
0x2676   : > { %v6221_v40 = vpop.f32.mrb[50].mxu1  ;;  %v10673_v1 = vld [vmem:[%s12854_s1 + $0x190] sm:$0xff]  }
0x2677   : > { %v9305_v7 = vpop.f32.mrb[51].mxu1  ;;  %v6227_v22 = vsel %vm299_vm0, %v10664_v18, %v6225_v3  ;;  %v10672_v3 = vld [vmem:[%s12854_s1 + $0x188] sm:$0xff]  }
0x2678   : > { %6228 = vrot.lane.b32.xlu0 %v6227_v22, %s10769_s10  ;;  %v6357_v41 = vpack.c.bf16 %v6227_v22, %v6227_v22 }
0x267a   : > { %v6359_v59 = vsel %vm12934_vm3, %v6357_v41, 0 }
0x26ea   : > { %v6229_v11 = vpop.permute.xlu0 %6228 }
0x26eb   : > { %v6230_v14 = vsel %vm309_vm1, %v6229_v11, %v6227_v22 }
0x26ec   : > { %6231 = vrot.lane.b32.xlu1 %v6230_v14, %s10769_s10 }
0x275e   : > { %v6232_v19 = vpop.permute.xlu1 %6231 }
0x275f   : > { %v6233_v12 = vsel %vm309_vm1, %v6232_v19, %v6227_v22 }
0x2760   : > { %6296 = vrot.lane.b32.xlu1 %v6233_v12, %s10772_s15  ;;  %6235 = vrot.lane.b32.xlu0 %v6233_v12, %s10771_s14 }
0x2764   : > { %6475 = vrot.lane.b32.xlu1 %v6233_v12, %s10773_s16  ;;  %6414 = vrot.lane.b32.xlu0 %v6233_v12, %s10770_s13 }
0x27d2   : > { %v6297_v38 = vpop.permute.xlu1 %6296  ;;  %v6236_v55 = vpop.permute.xlu0 %6235 }
0x27d3   : > { %v6299_v54 = vsel %vm10921_vm9, %v6297_v38, 0.0  ;;  %v6238_v60 = vsel %vm10915_vm5, %v6236_v55, 0.0 }
0x27d4   : > { %v6239_v6 = vpack.c.bf16 %v6238_v60, %v6238_v60  ;;  %v6300_v53 = vpack.c.bf16 %v6299_v54, %v6299_v54 }
0x27d6   : > { %v6241_v8 = vsel %vm12932_vm10, %v6239_v6, 0  ;;  %9824 = vmatprep.subr.msk.bf16.mxu0 %vm12933_vm11, %v6239_v6  ;;  %v6302_v63 = vsel %vm12935_vm8, %v6300_v53, 0  ;;  %vm12936_vm10 = vmmov %vm12934_vm3  ;;  %v6415_v33 = vpop.permute.xlu0 %6414  ;;  %vm12937_vm11 = vcmp.lt.s32.totalorder %v10939_v29, 16  ;;  %v6476_v28 = vpop.permute.xlu1 %6475 }
0x27d7   : > { %9307 = vmatpush3.bf16.msra.mxu0 %v6241_v8  ;;  %v6417_v5 = vsel %vm12937_vm11, %v6415_v33, 0.0  ;;  %vm12938_vm8 = vmmov %vm12934_vm3 }
0x27d8   : > { %9825 = vmatprep.subr.msk.bf16.mxu0 %vm12934_vm3, %v6300_v53  ;;  %v6418_v15 = vpack.c.bf16 %v6417_v5, %v6417_v5  ;;  %vm12940_vm11 = vmmov %vm12934_vm3 }
0x27da   : > { %9309 = vmatmul.mubr.msk.bf16.vlgmr.msra.gmra.mrb[52].mxu0 %vm334_vm2, %v10665_v9  ;;  %v6420_v0 = vsel %vm12940_vm11, %v6418_v15, 0 }
0x27db   : > { %9313 = vmatpush3.bf16.msra.mxu0 %v6302_v63  ;;  %9314 = vmatprep.mubr.msk.bf16.mxu0 %vm334_vm2, %v10666_v45 }
0x27dc   : > { %9826 = vmatprep.subr.msk.bf16.mxu0 %vm12936_vm10, %v6357_v41  ;;  %vm12939_vm10 = vcmp.lt.s32.totalorder %v10954_v36, 16 }
0x27dd   : > { %v6478_v10 = vsel %vm12939_vm10, %v6476_v28, 0.0 }
0x27de   : > { %v6479_v48 = vpack.c.bf16 %v6478_v10, %v6478_v10 }
0x27e6   : > { %9315 = vmatmul.mubr.msk.bf16.vlgmr.msra.gmra.mrb[52].mxu0 %vm334_vm2, %v10667_v49 }
0x27e7   : > { %9319 = vmatpush3.bf16.msra.mxu0 %v6359_v59  ;;  %9320 = vmatprep.mubr.msk.bf16.mxu0 %vm334_vm2, %v10668_v50 }
0x27e8   : > { %9827 = vmatprep.subr.msk.bf16.mxu0 %vm12938_vm8, %v6418_v15  ;;  %vm12941_vm8 = vmmov %vm12934_vm3 }
0x27e9   : > { %v6481_v47 = vsel %vm12941_vm8, %v6479_v48, 0 }
0x27f2   : > { %9321 = vmatmul.mubr.msk.bf16.vlgmr.msra.gmra.mrb[52].mxu0 %vm334_vm2, %v10669_v46 }
0x27f3   : > { %9325 = vmatpush3.bf16.msra.mxu0 %v6420_v0  ;;  %9326 = vmatprep.mubr.msk.bf16.mxu0 %vm334_vm2, %v10670_v4 }
0x27f4   : > { %9828 = vmatprep.subr.msk.bf16.mxu0 %vm12934_vm3, %v6479_v48 }
0x27fe   : > { %9327 = vmatmul.mubr.msk.bf16.vlgmr.msra.gmra.mrb[52].mxu0 %vm334_vm2, %v10671_v35 }
0x27ff   : > { %9331 = vmatpush3.bf16.msra.mxu0 %v6481_v47  ;;  %9332 = vmatprep.mubr.msk.bf16.mxu0 %vm334_vm2, %v10672_v3 }
0x2800   : > { %9376 = vmatprep.subr.bf16.mxu0 %v12907_v42 }
0x280a   : > { %9333 = vmatmul.mubr.msk.bf16.vlgmr.msra.gmra.mrb[52].mxu0 %vm334_vm2, %v10673_v1 }
0x280b   : > { %9380 = vmatprep.mubr.msk.bf16.mxu0 %vm12886_vm15, %v12907_v42 }
0x28dd   : > { %v9334_v40 = vpop.f32.mrb[52].mxu0 }
0x28de   : > { %v9522_v7 = vadd.f32 %v9334_v40, %v11537_v25  ;;  %v6517_v18 = vpop.f32.mrb[53].mxu0 }
0x28df   : > { %v9523_v22 = vadd.f32 %v6517_v18, %v11535_v24  ;;  %v9335_v11 = vpop.f32.mrb[54].mxu0 }
0x28e0   : > { %v6542_v14 = vmin.f32 %v9522_v7, 0.0  ;;  %v9524_v19 = vadd.f32 %v9335_v11, %v11539_v30  ;;  %v6520_v12 = vpop.f32.mrb[55].mxu0  ;;  %vm6538_vm10 = vcmp.gt.f32.partialorder %v9522_v7, 0.0 }
0x28e1   : > { %v6540_v38 = vmin.f32 %v9523_v22, 0.0  ;;  %v9525_v55 = vadd.f32 %v6520_v12, %v11533_v62  ;;  %vm6536_vm3 = vcmp.gt.f32.partialorder %v9523_v22, 0.0 }
0x28e2   : > { %v6548_v54 = vmul.f32 1.442695, %v6542_v14  ;;  %v6543_v60 = vmin.f32 %v9524_v19, 0.0  ;;  %vm6539_vm11 = vcmp.gt.f32.partialorder %v9524_v19, 0.0 }
0x28e3   : > { %v6544_v6 = vmul.f32 1.442695, %v6540_v38  ;;  %v6541_v53 = vmin.f32 %v9525_v55, 0.0  ;;  %vm6537_vm8 = vcmp.gt.f32.partialorder %v9525_v55, 0.0 }
0x28e4   : > { %10570 = vpow2.f32 %v6548_v54  ;;  %v6550_v8 = vmul.f32 1.442695, %v6543_v60 }
0x28e5   : > { %10572 = vpow2.f32 %v6544_v6  ;;  %v6546_v63 = vmul.f32 1.442695, %v6541_v53 }
0x28e6   : > { %10574 = vpow2.f32 %v6550_v8 }
0x28e7   : > { %10576 = vpow2.f32 %v6546_v63 }
0x28ee   : > { %v10571_v25 = vpop.eup %10570 }
0x28ef   : > { %v10573_v24 = vpop.eup %10572  ;;  %v8364_v9 = vadd.f32 -1.0, %v10571_v25 }
0x28f0   : > { %v10575_v41 = vpop.eup %10574  ;;  %v8362_v45 = vadd.f32 -1.0, %v10573_v24 }
0x28f1   : > { %v10577_v30 = vpop.eup %10576  ;;  %v8365_v33 = vadd.f32 -1.0, %v10575_v41  ;;  %v12470_v5 = vsel %vm6538_vm10, %v9522_v7, %v8364_v9 }
0x28f2   : > { %v8363_v62 = vadd.f32 -1.0, %v10577_v30  ;;  %v12474_v49 = vsel %vm6536_vm3, %v9523_v22, %v8362_v45 }
0x28f3   : > { %v12472_v15 = vsel %vm6539_vm11, %v9524_v19, %v8365_v33 }
0x28f4   : > { %v12476_v59 = vsel %vm6537_vm8, %v9525_v55, %v8363_v62  ;;  %v10277_v50 = vpack.i.bf16 %v12472_v15, %v12470_v5 }
0x28f5   : > { %v10272_v28 = vpack.i.bf16 %v12476_v59, %v12474_v49 }
0x28f6   : > { %10278 = vrot.lane.b32.xlu1 %v10277_v50, %s10769_s10 }
0x28f7   : > { %10273 = vrot.lane.b32.xlu0 %v10272_v28, %s10769_s10 }
0x2968   : > { %v10279_v10 = vpop.permute.xlu1 %10278 }
0x2969   : > { %v10281_v48 = vunpack.i.h.bf16 %v10279_v10  ;;  %v10280_v0 = vunpack.i.l.bf16 %v10279_v10  ;;  %v10274_v46 = vpop.permute.xlu0 %10273 }
0x296a   : > { %v10276_v4 = vunpack.i.h.bf16 %v10274_v46  ;;  %v10275_v47 = vunpack.i.l.bf16 %v10274_v46 }
0x296b   : > { %v6571_v35 = vsel %vm309_vm1, %v10281_v48, %v12472_v15  ;;  %v6568_v3 = vsel %vm309_vm1, %v10280_v0, %v12470_v5 }
0x296c   : > { %v10287_v1 = vpack.i.bf16 %v6571_v35, %v6568_v3  ;;  %v6565_v40 = vsel %vm309_vm1, %v10276_v4, %v12476_v59  ;;  %v6562_v7 = vsel %vm309_vm1, %v10275_v47, %v12474_v49  ;;  %v10674_v47 = vld [vmem:[%s12854_s1 + $0x1a0] sm:$0xff]   ;;  %v10675_v35 = vld [vmem:[%s12854_s1 + $0x1a8] sm:$0xff]   ;;  %v6730_v3 = vpack.c.bf16 %v12476_v59, %v12474_v49 }
0x296d   : > { %v10282_v18 = vpack.i.bf16 %v6565_v40, %v6562_v7 }
0x296e   : > { %10288 = vrot.lane.b32.xlu1 %v10287_v1, %s10769_s10 }
0x296f   : > { %10283 = vrot.lane.b32.xlu0 %v10282_v18, %s10769_s10  ;;  %v10676_v18 = vld [vmem:[%s12854_s1 + $0x1b0] sm:$0xff]  }
0x29e0   : > { %v10289_v22 = vpop.permute.xlu1 %10288 }
0x29e1   : > { %v10291_v11 = vunpack.i.h.bf16 %v10289_v22  ;;  %v10290_v14 = vunpack.i.l.bf16 %v10289_v22  ;;  %v10284_v19 = vpop.permute.xlu0 %10283  ;;  %v6731_v22 = vpack.c.bf16 %v12472_v15, %v12470_v5 }
0x29e2   : > { %v10286_v12 = vunpack.i.h.bf16 %v10284_v19  ;;  %v10285_v38 = vunpack.i.l.bf16 %v10284_v19 }
0x29e3   : > { %v6583_v55 = vsel %vm309_vm1, %v10291_v11, %v12472_v15  ;;  %v6582_v54 = vsel %vm309_vm1, %v10290_v14, %v12470_v5  ;;  %v10678_v15 = vld [vmem:[%s12854_s1 + $0x1c0] sm:$0xff]  }
0x29e4   : > { %v6581_v60 = vsel %vm309_vm1, %v10286_v12, %v12476_v59  ;;  %v6580_v6 = vsel %vm309_vm1, %v10285_v38, %v12474_v49  ;;  %v10297_v53 = vpack.i.bf16 %v6583_v55, %v6582_v54  ;;  %v10677_v49 = vld [vmem:[%s12854_s1 + $0x1b8] sm:$0xff]   ;;  %v10679_v54 = vld [vmem:[%s12854_s1 + $0x1c8] sm:$0xff]  }
0x29e5   : > { %v10292_v8 = vpack.i.bf16 %v6581_v60, %v6580_v6 }
0x29e6   : > { %10298 = vrot.lane.b32.xlu1 %v10297_v53, %s10771_s14 }
0x29e7   : > { %10293 = vrot.lane.b32.xlu0 %v10292_v8, %s10771_s14 }
0x29ea   : > { %10308 = vrot.lane.b32.xlu1 %v10297_v53, %s10772_s15 }
0x29eb   : > { %10303 = vrot.lane.b32.xlu0 %v10292_v8, %s10772_s15 }
0x29ee   : > { %10318 = vrot.lane.b32.xlu1 %v10297_v53, %s10770_s13 }
0x29ef   : > { %10313 = vrot.lane.b32.xlu0 %v10292_v8, %s10770_s13 }
0x29f2   : > { %10328 = vrot.lane.b32.xlu1 %v10297_v53, %s10773_s16 }
0x29f3   : > { %10323 = vrot.lane.b32.xlu0 %v10292_v8, %s10773_s16 }
0x2a58   : > { %v10299_v63 = vpop.permute.xlu1 %10298 }
0x2a59   : > { %v10294_v25 = vpop.permute.xlu0 %10293  ;;  %v10301_v24 = vunpack.i.h.bf16 %v10299_v63  ;;  %v10300_v9 = vunpack.i.l.bf16 %v10299_v63 }
0x2a5a   : > { %v10296_v41 = vunpack.i.h.bf16 %v10294_v25  ;;  %v10295_v45 = vunpack.i.l.bf16 %v10294_v25  ;;  %v10680_v25 = vld [vmem:[%s12854_s1 + $0x1d0] sm:$0xff]  }
0x2a5b   : > { %v8370_v62 = vpack.c.bf16 %v10301_v24, %v10300_v9  ;;  %v10681_v24 = vld [vmem:[%s12854_s1 + $0x1d8] sm:$0xff]   ;;  %v10682_v9 = vld [vmem:[%s12854_s1 + $0x1e0] sm:$0xff]  }
0x2a5c   : > { %v8367_v30 = vpack.c.bf16 %v10296_v41, %v10295_v45  ;;  %v10309_v10 = vpop.permute.xlu1 %10308 }
0x2a5d   : > { %v10304_v33 = vpop.permute.xlu0 %10303  ;;  %v10311_v48 = vunpack.i.h.bf16 %v10309_v10  ;;  %v10310_v0 = vunpack.i.l.bf16 %v10309_v10 }
0x2a5e   : > { %v10306_v50 = vunpack.i.h.bf16 %v10304_v33  ;;  %v10305_v28 = vunpack.i.l.bf16 %v10304_v33  ;;  %9336 = vmatprep.subr.msk.bf16.mxu1 %vm11061_vm7, %v8367_v30 }
0x2a5f   : > { %9337 = vmatpush3.bf16.msk.msra.mxu1 %vm11061_vm7, %v8367_v30  ;;  %v8378_v4 = vpack.c.bf16 %v10311_v48, %v10310_v0 }
0x2a60   : > { %9338 = vmatprep.subr.msk.bf16.mxu1 %vm11061_vm7, %v8370_v62  ;;  %v8375_v46 = vpack.c.bf16 %v10306_v50, %v10305_v28  ;;  %v10319_v11 = vpop.permute.xlu1 %10318 }
0x2a61   : > { %v10314_v1 = vpop.permute.xlu0 %10313  ;;  %v10321_v14 = vunpack.i.h.bf16 %v10319_v11  ;;  %v10320_v19 = vunpack.i.l.bf16 %v10319_v11 }
0x2a62   : > { %v10316_v40 = vunpack.i.h.bf16 %v10314_v1  ;;  %v10315_v7 = vunpack.i.l.bf16 %v10314_v1 }
0x2a63   : > { %9339 = vmatpush3.bf16.msk.msra.mxu1 %vm11061_vm7, %v8370_v62  ;;  %v8388_v38 = vpack.c.bf16 %v10321_v14, %v10320_v19 }
0x2a64   : > { %9344 = vmatprep.subr.msk.bf16.mxu1 %vm11074_vm12, %v8375_v46  ;;  %v8385_v59 = vpack.c.bf16 %v10316_v40, %v10315_v7  ;;  %v10329_v6 = vpop.permute.xlu1 %10328 }
0x2a65   : > { %v10324_v12 = vpop.permute.xlu0 %10323  ;;  %v10331_v53 = vunpack.i.h.bf16 %v10329_v6  ;;  %v10330_v8 = vunpack.i.l.bf16 %v10329_v6 }
0x2a66   : > { %9341 = vmatmul.mubr.msk.bf16.vlgmr.msra.gmra.mrb[52].mxu1 %vm828_vm6, %v10674_v47  ;;  %v10326_v55 = vunpack.i.h.bf16 %v10324_v12  ;;  %v10325_v5 = vunpack.i.l.bf16 %v10324_v12  ;;  %v10683_v12 = vld [vmem:[%s12854_s1 + $0x1e8] sm:$0x3] }
0x2a67   : > { %9345 = vmatpush3.bf16.msk.msra.mxu1 %vm11074_vm12, %v8375_v46  ;;  %9348 = vmatprep.mubr.msk.bf16.mxu1 %vm828_vm6, %v10675_v35  ;;  %v8396_v63 = vpack.c.bf16 %v10331_v53, %v10330_v8  ;;  %v10685_v8 = vld [vmem:[%s12854_s1 + $0x23c] sm:$0xff]  }
0x2a68   : > { %9346 = vmatprep.subr.msk.bf16.mxu1 %vm11074_vm12, %v8378_v4  ;;  %v8393_v60 = vpack.c.bf16 %v10326_v55, %v10325_v5 }
0x2a6b   : > { %9347 = vmatpush3.bf16.msk.msra.mxu1 %vm11074_vm12, %v8378_v4 }
0x2a6c   : > { %9352 = vmatprep.subr.bf16.mxu1 %v6730_v3 }
0x2a72   : > { %9349 = vmatmul.mubr.msk.bf16.vlgmr.msra.gmra.mrb[52].mxu1 %vm828_vm6, %v10676_v18 }
0x2a73   : > { %9353 = vmatpush3.bf16.msra.mxu1 %v6730_v3  ;;  %9356 = vmatprep.mubr.msk.bf16.mxu1 %vm828_vm6, %v10677_v49 }
0x2a74   : > { %9354 = vmatprep.subr.bf16.mxu1 %v6731_v22 }
0x2a77   : > { %9355 = vmatpush3.bf16.msra.mxu1 %v6731_v22 }
0x2a78   : > { %9360 = vmatprep.subr.msk.bf16.mxu1 %vm11111_vm13, %v8385_v59 }
0x2a7e   : > { %9357 = vmatmul.mubr.msk.bf16.vlgmr.msra.gmra.mrb[52].mxu1 %vm828_vm6, %v10678_v15 }
0x2a7f   : > { %9361 = vmatpush3.bf16.msk.msra.mxu1 %vm11111_vm13, %v8385_v59  ;;  %9364 = vmatprep.mubr.msk.bf16.mxu1 %vm828_vm6, %v10679_v54 }
0x2a80   : > { %9362 = vmatprep.subr.msk.bf16.mxu1 %vm11111_vm13, %v8388_v38 }
0x2a83   : > { %9363 = vmatpush3.bf16.msk.msra.mxu1 %vm11111_vm13, %v8388_v38  ;;  %v10684_v38 = vld [vmem:[%s12854_s1 + $0x1ec] sm:$0xff]  }
0x2a84   : > { %9368 = vmatprep.subr.msk.bf16.mxu1 %vm11132_vm14, %v8393_v60 }
0x2a8a   : > { %9365 = vmatmul.mubr.msk.bf16.vlgmr.msra.gmra.mrb[52].mxu1 %vm828_vm6, %v10680_v25 }
0x2a8b   : > { %9369 = vmatpush3.bf16.msk.msra.mxu1 %vm11132_vm14, %v8393_v60  ;;  %9372 = vmatprep.mubr.msk.bf16.mxu1 %vm828_vm6, %v10681_v24 }
0x2a8c   : > { %9370 = vmatprep.subr.msk.bf16.mxu1 %vm11132_vm14, %v8396_v63 }
0x2a8f   : > { %9371 = vmatpush3.bf16.msk.msra.mxu1 %vm11132_vm14, %v8396_v63 }
0x2a90   : > { %9384 = vmatprep.subr.bf16.mxu1 %v12907_v42 }
0x2a96   : > { %9373 = vmatmul.mubr.msk.bf16.vlgmr.msra.gmra.mrb[52].mxu1 %vm828_vm6, %v10682_v9 }
0x2a97   : > { %9385 = vmatpush3.bf16.msra.mxu1 %v12152_v32  ;;  %9386 = vmatprep.mubr.msk.bf16.mxu1 %vm12886_vm15, %v12907_v42 }
0x2b69   : > { %v9374_v41 = vpop.f32.mrb[52].mxu1 }
0x2b6a   : > { %v9526_v45 = vadd.f32 %v9374_v41, %v11679_v31  ;;  %v6908_v30 = vpop.f32.mrb[53].mxu1 }
0x2b6b   : > { %v9527_v33 = vadd.f32 %v6908_v30, %v11677_v43  ;;  %v9375_v62 = vpop.f32.mrb[54].mxu1 }
0x2b6c   : > { %v6933_v50 = vmin.f32 %v9526_v45, 0.0  ;;  %v9528_v28 = vadd.f32 %v9375_v62, %v11684_v26  ;;  %v6911_v10 = vpop.f32.mrb[55].mxu1  ;;  %vm6929_vm10 = vcmp.gt.f32.partialorder %v9526_v45, 0.0 }
0x2b6d   : > { %v6931_v48 = vmin.f32 %v9527_v33, 0.0  ;;  %v9529_v0 = vadd.f32 %v6911_v10, %v11682_v23  ;;  %vm6927_vm3 = vcmp.gt.f32.partialorder %v9527_v33, 0.0 }
0x2b6e   : > { %v6939_v46 = vmul.f32 1.442695, %v6933_v50  ;;  %v6934_v4 = vmin.f32 %v9528_v28, 0.0  ;;  %vm6930_vm11 = vcmp.gt.f32.partialorder %v9528_v28, 0.0 }
0x2b6f   : > { %v6935_v32 = vmul.f32 1.442695, %v6931_v48  ;;  %v6932_v47 = vmin.f32 %v9529_v0, 0.0  ;;  %vm6928_vm8 = vcmp.gt.f32.partialorder %v9529_v0, 0.0 }
0x2b70   : > { %10578 = vpow2.f32 %v6939_v46  ;;  %v6941_v35 = vmul.f32 1.442695, %v6934_v4  ;;  %v10686_v4 = vld [vmem:[%s12854_s1 + $0x1f4] sm:$0xff]  }
0x2b71   : > { %10580 = vpow2.f32 %v6935_v32  ;;  %v6937_v3 = vmul.f32 1.442695, %v6932_v47 }
0x2b72   : > { %10582 = vpow2.f32 %v6941_v35 }
0x2b73   : > { %10584 = vpow2.f32 %v6937_v3  ;;  %v10688_v3 = vld [vmem:[%s12854_s1 + $0x204] sm:$0xff]  }
0x2b7a   : > { %v10579_v31 = vpop.eup %10578 }
0x2b7b   : > { %v10581_v43 = vpop.eup %10580  ;;  %v8402_v1 = vadd.f32 -1.0, %v10579_v31 }
0x2b7c   : > { %v10583_v40 = vpop.eup %10582  ;;  %v8400_v7 = vadd.f32 -1.0, %v10581_v43  ;;  %v10689_v43 = vld [vmem:[%s12854_s1 + $0x20c] sm:$0xff]  }
0x2b7d   : > { %v10585_v26 = vpop.eup %10584  ;;  %v8403_v18 = vadd.f32 -1.0, %v10583_v40  ;;  %v6949_v22 = vsel %vm6929_vm10, %v9526_v45, %v8402_v1 }
0x2b7e   : > { %v8401_v23 = vadd.f32 -1.0, %v10585_v26  ;;  %v6947_v59 = vsel %vm6927_vm3, %v9527_v33, %v8400_v7  ;;  %v10690_v26 = vld [vmem:[%s12854_s1 + $0x214] sm:$0xff]  }
0x2b7f   : > { %v6950_v49 = vsel %vm6930_vm11, %v9528_v28, %v8403_v18  ;;  %v10691_v18 = vld [vmem:[%s12854_s1 + $0x21c] sm:$0xff]  }
0x2b80   : > { %v6952_v11 = vpack.c.bf16 %v6950_v49, %v6949_v22  ;;  %v6948_v14 = vsel %vm6928_vm8, %v9529_v0, %v8401_v23  ;;  %v10692_v23 = vld [vmem:[%s12854_s1 + $0x224] sm:$0xff]   ;;  %v10693_v22 = vld [vmem:[%s12854_s1 + $0x22c] sm:$0xff]   ;;  %v10694_v49 = vld [vmem:[%s12854_s1 + $0x234] sm:$0xff]  }
0x2b81   : > { %v6951_v19 = vpack.c.bf16 %v6948_v14, %v6947_v59 }
0x2b83   : > { %9377 = vmatpush3.bf16.msra.mxu0 %v6951_v19 }
0x2b84   : > { %9378 = vmatprep.subr.bf16.mxu0 %v12907_v42 }
0x2b87   : > { %9379 = vmatpush3.bf16.msra.mxu0 %v6952_v11 }
0x2b8a   : > { %9381 = vmatmul.mubr.msk.bf16.vlgmr.msra.gmra.mrb[56].mxu0 %vm828_vm6, %v10683_v12 }
0x2b8b   : > { %9392 = vmatprep.mubr.msk.bf16.mxu0 %vm334_vm2, %v10684_v38 }
0x2c5d   : > { %v6987_v55 = vpop.f32.mrb[56].mxu0 }
0x2c5e   : > { %v6988_v5 = vadd.f32 %v6987_v55, %v11694_v56  ;;  %v9382_v15 = vpop.f32.mrb[57].mxu0 }
0x2c5f   : > { %v6990_v54 = vpop.f32.mrb[58].mxu0 }
0x2c60   : > { %v6993_v60 = vsub.f32 %v6988_v5, %v12396_v27  ;;  %v9383_v6 = vpop.f32.mrb[59].mxu0 }
0x2c62   : > { %v6994_v53 = vpack.c.bf16 %v6993_v60, %v6993_v60 }
0x2c64   : > { %9387 = vmatmul.mubr.msk.bf16.vlgmr.msra.gmra.mrb[56].mxu1 %vm255_vm4, %v6994_v53 }
0x2c65   : > { %9424 = vmatprep.mubr.msk.bf16.mxu1 %vm828_vm6, %v10685_v8 }
0x2d37   : > { %v7032_v63 = vpop.f32.mrb[56].mxu1 }
0x2d38   : > { %v7039_v25 = vrot.slane %v7032_v63, 6  ;;  %v9388_v24 = vpop.f32.mrb[57].mxu1 }
0x2d39   : > { %v7035_v9 = vpop.f32.mrb[58].mxu1 }
0x2d3a   : > { %v9389_v41 = vpop.f32.mrb[59].mxu1  ;;  %v7041_v56 = vsel %vm299_vm0, %v12182_v52, %v7039_v25  ;;  %vm12942_vm0 = vcmask 1042432  }
0x2d3b   : > { %7042 = vrot.lane.b32.xlu0 %v7041_v56, %s10769_s10  ;;  %vm12943_vm10 = vmmov %vm12942_vm0  ;;  %v7171_v20 = vpack.c.bf16 %v7041_v56, %v7041_v56 }
0x2d3c   : > { %vm12944_vm11 = vmmov %vm12942_vm0 }
0x2d3d   : > { %vm12945_vm3 = vmmov %vm12942_vm0 }
0x2d3e   : > { %vm12948_vm8 = vmmov %vm12942_vm0 }
0x2d3f   : > { %v7173_v31 = vsel %vm12948_vm8, %v7171_v20, 0 }
0x2dad   : > { %v7043_v27 = vpop.permute.xlu0 %7042 }
0x2dae   : > { %v7044_v45 = vsel %vm309_vm1, %v7043_v27, %v7041_v56 }
0x2daf   : > { %7045 = vrot.lane.b32.xlu1 %v7044_v45, %s10769_s10 }
0x2e21   : > { %v7046_v30 = vpop.permute.xlu1 %7045 }
0x2e22   : > { %v7047_v33 = vsel %vm309_vm1, %v7046_v30, %v7041_v56 }
0x2e23   : > { %7110 = vrot.lane.b32.xlu1 %v7047_v33, %s10772_s15  ;;  %7049 = vrot.lane.b32.xlu0 %v7047_v33, %s10771_s14 }
0x2e27   : > { %7289 = vrot.lane.b32.xlu1 %v7047_v33, %s10773_s16  ;;  %7228 = vrot.lane.b32.xlu0 %v7047_v33, %s10770_s13 }
0x2e95   : > { %v7111_v62 = vpop.permute.xlu1 %7110  ;;  %v7050_v52 = vpop.permute.xlu0 %7049 }
0x2e96   : > { %v7113_v50 = vsel %vm10921_vm9, %v7111_v62, 0.0  ;;  %v7052_v28 = vsel %vm10915_vm5, %v7050_v52, 0.0  ;;  %vm12946_vm5 = vmmov %vm12942_vm0  ;;  %vm12947_vm9 = vcmp.lt.s32.totalorder %v10939_v29, 16 }
0x2e97   : > { %v7053_v10 = vpack.c.bf16 %v7052_v28, %v7052_v28  ;;  %v7114_v48 = vpack.c.bf16 %v7113_v50, %v7113_v50 }
0x2e99   : > { %v7055_v0 = vsel %vm12942_vm0, %v7053_v10, 0  ;;  %9829 = vmatprep.subr.msk.bf16.mxu0 %vm12943_vm10, %v7053_v10  ;;  %v7116_v46 = vsel %vm12945_vm3, %v7114_v48, 0  ;;  %v7229_v32 = vpop.permute.xlu0 %7228  ;;  %v7290_v29 = vpop.permute.xlu1 %7289  ;;  %vm12949_vm10 = vcmp.lt.s32.totalorder %v10954_v36, 16  ;;  %vm12951_vm3 = vmmov %vm12942_vm0 }
0x2e9a   : > { %9391 = vmatpush3.bf16.msra.mxu0 %v7055_v0  ;;  %v7231_v47 = vsel %vm12947_vm9, %v7229_v32, 0.0  ;;  %v7292_v1 = vsel %vm12949_vm10, %v7290_v29, 0.0 }
0x2e9b   : > { %9830 = vmatprep.subr.msk.bf16.mxu0 %vm12944_vm11, %v7114_v48  ;;  %v7232_v35 = vpack.c.bf16 %v7231_v47, %v7231_v47  ;;  %v7293_v40 = vpack.c.bf16 %v7292_v1, %v7292_v1  ;;  %vm12950_vm11 = vmmov %vm12942_vm0 }
0x2e9d   : > { %9393 = vmatmul.mubr.msk.bf16.vlgmr.msra.gmra.mrb[60].mxu0 %vm334_vm2, %v10686_v4  ;;  %v7234_v7 = vsel %vm12950_vm11, %v7232_v35, 0 }
0x2e9e   : > { %9397 = vmatpush3.bf16.msra.mxu0 %v7116_v46  ;;  %9398 = vmatprep.mubr.msk.bf16.mxu0 %vm334_vm2, %v10687_v16 }
0x2e9f   : > { %9831 = vmatprep.subr.msk.bf16.mxu0 %vm12946_vm5, %v7171_v20  ;;  %vm12952_vm5 = vmmov %vm12942_vm0 }
0x2ea0   : > { %v7295_v36 = vsel %vm12952_vm5, %v7293_v40, 0 }
0x2ea9   : > { %9399 = vmatmul.mubr.msk.bf16.vlgmr.msra.gmra.mrb[60].mxu0 %vm334_vm2, %v10688_v3 }
0x2eaa   : > { %9403 = vmatpush3.bf16.msra.mxu0 %v7173_v31  ;;  %9404 = vmatprep.mubr.msk.bf16.mxu0 %vm334_vm2, %v10689_v43 }
0x2eab   : > { %9832 = vmatprep.subr.msk.bf16.mxu0 %vm12942_vm0, %v7232_v35 }
0x2eb5   : > { %9405 = vmatmul.mubr.msk.bf16.vlgmr.msra.gmra.mrb[60].mxu0 %vm334_vm2, %v10690_v26 }
0x2eb6   : > { %9409 = vmatpush3.bf16.msra.mxu0 %v7234_v7  ;;  %9410 = vmatprep.mubr.msk.bf16.mxu0 %vm334_vm2, %v10691_v18 }
0x2eb7   : > { %9833 = vmatprep.subr.msk.bf16.mxu0 %vm12951_vm3, %v7293_v40 }
0x2ec1   : > { %9411 = vmatmul.mubr.msk.bf16.vlgmr.msra.gmra.mrb[60].mxu0 %vm334_vm2, %v10692_v23 }
0x2ec2   : > { %9415 = vmatpush3.bf16.msra.mxu0 %v7295_v36  ;;  %9416 = vmatprep.mubr.msk.bf16.mxu0 %vm334_vm2, %v10693_v22 }
0x2ec3   : > { %9460 = vmatprep.subr.bf16.mxu0 %v12907_v42 }
0x2ecd   : > { %9417 = vmatmul.mubr.msk.bf16.vlgmr.msra.gmra.mrb[60].mxu0 %vm334_vm2, %v10694_v49 }
0x2ece   : > { %9464 = vmatprep.mubr.msk.bf16.mxu0 %vm12886_vm15, %v12907_v42 }
0x2fa0   : > { %v9418_v59 = vpop.f32.mrb[60].mxu0 }
0x2fa1   : > { %v9530_v11 = vadd.f32 %v9418_v59, %v11778_v58  ;;  %v7331_v14 = vpop.f32.mrb[61].mxu0 }
0x2fa2   : > { %v9531_v19 = vadd.f32 %v7331_v14, %v11776_v37  ;;  %v9419_v12 = vpop.f32.mrb[62].mxu0 }
0x2fa3   : > { %v7356_v38 = vmin.f32 %v9530_v11, 0.0  ;;  %v9532_v55 = vadd.f32 %v9419_v12, %v11780_v57  ;;  %v7334_v5 = vpop.f32.mrb[63].mxu0  ;;  %vm7352_vm2 = vcmp.gt.f32.partialorder %v9530_v11, 0.0 }
0x2fa4   : > { %v7354_v15 = vmin.f32 %v9531_v19, 0.0  ;;  %v9533_v54 = vadd.f32 %v7334_v5, %v11774_v34  ;;  %vm7350_vm8 = vcmp.gt.f32.partialorder %v9531_v19, 0.0 }
0x2fa5   : > { %v7362_v60 = vmul.f32 1.442695, %v7356_v38  ;;  %v7357_v6 = vmin.f32 %v9532_v55, 0.0  ;;  %vm7353_vm9 = vcmp.gt.f32.partialorder %v9532_v55, 0.0 }
0x2fa6   : > { %v7358_v53 = vmul.f32 1.442695, %v7354_v15  ;;  %v7355_v8 = vmin.f32 %v9533_v54, 0.0  ;;  %vm7351_vm0 = vcmp.gt.f32.partialorder %v9533_v54, 0.0 }
0x2fa7   : > { %10586 = vpow2.f32 %v7362_v60  ;;  %v7364_v63 = vmul.f32 1.442695, %v7357_v6 }
0x2fa8   : > { %10588 = vpow2.f32 %v7358_v53  ;;  %v7360_v25 = vmul.f32 1.442695, %v7355_v8 }
0x2fa9   : > { %10590 = vpow2.f32 %v7364_v63 }
0x2faa   : > { %10592 = vpow2.f32 %v7360_v25  ;;  %v10695_v25 = vld [vmem:[%s12854_s1 + $0x244] sm:$0xff]  }
0x2fb1   : > { %v10587_v58 = vpop.eup %10586 }
0x2fb2   : > { %v10589_v37 = vpop.eup %10588  ;;  %v8418_v24 = vadd.f32 -1.0, %v10587_v58  ;;  %v10696_v58 = vld [vmem:[%s12854_s1 + $0x24c] sm:$0xff]  }
0x2fb3   : > { %v10591_v9 = vpop.eup %10590  ;;  %v8416_v41 = vadd.f32 -1.0, %v10589_v37 }
0x2fb4   : > { %v10593_v57 = vpop.eup %10592  ;;  %v8419_v56 = vadd.f32 -1.0, %v10591_v9  ;;  %v12677_v27 = vsel %vm7352_vm2, %v9530_v11, %v8418_v24 }
0x2fb5   : > { %v8417_v34 = vadd.f32 -1.0, %v10593_v57  ;;  %v12681_v30 = vsel %vm7350_vm8, %v9531_v19, %v8416_v41  ;;  %v10697_v41 = vld [vmem:[%s12854_s1 + $0x254] sm:$0xff]  }
0x2fb6   : > { %v12679_v45 = vsel %vm7353_vm9, %v9532_v55, %v8419_v56  ;;  %v10698_v56 = vld [vmem:[%s12854_s1 + $0x25c] sm:$0xff]  }
0x2fb7   : > { %v12683_v33 = vsel %vm7351_vm0, %v9533_v54, %v8417_v34  ;;  %v10337_v62 = vpack.i.bf16 %v12679_v45, %v12677_v27  ;;  %v7545_v57 = vpack.c.bf16 %v12679_v45, %v12677_v27 }
0x2fb8   : > { %v10332_v52 = vpack.i.bf16 %v12683_v33, %v12681_v30  ;;  %v7544_v2 = vpack.c.bf16 %v12683_v33, %v12681_v30 }
0x2fb9   : > { %10338 = vrot.lane.b32.xlu1 %v10337_v62, %s10769_s10 }
0x2fba   : > { %10333 = vrot.lane.b32.xlu0 %v10332_v52, %s10769_s10 }
0x302b   : > { %v10339_v50 = vpop.permute.xlu1 %10338 }
0x302c   : > { %v10341_v28 = vunpack.i.h.bf16 %v10339_v50  ;;  %v10340_v10 = vunpack.i.l.bf16 %v10339_v50  ;;  %v10334_v48 = vpop.permute.xlu0 %10333 }
0x302d   : > { %v10336_v0 = vunpack.i.h.bf16 %v10334_v48  ;;  %v10335_v46 = vunpack.i.l.bf16 %v10334_v48 }
0x302e   : > { %v7385_v4 = vsel %vm309_vm1, %v10341_v28, %v12679_v45  ;;  %v7382_v20 = vsel %vm309_vm1, %v10340_v10, %v12677_v27  ;;  %v10700_v28 = vld [vmem:[%s12854_s1 + $0x26c] sm:$0xff]  }
0x302f   : > { %v10347_v16 = vpack.i.bf16 %v7385_v4, %v7382_v20  ;;  %v7379_v32 = vsel %vm309_vm1, %v10336_v0, %v12683_v33  ;;  %v7376_v47 = vsel %vm309_vm1, %v10335_v46, %v12681_v30  ;;  %v10701_v20 = vld [vmem:[%s12854_s1 + $0x274] sm:$0xff]  }
0x3030   : > { %v10342_v35 = vpack.i.bf16 %v7379_v32, %v7376_v47 }
0x3031   : > { %10348 = vrot.lane.b32.xlu1 %v10347_v16, %s10769_s10  ;;  %v10703_v16 = vld [vmem:[%s12854_s1 + $0x284] sm:$0xff]  }
0x3032   : > { %10343 = vrot.lane.b32.xlu0 %v10342_v35, %s10769_s10 }
0x30a3   : > { %v10349_v3 = vpop.permute.xlu1 %10348 }
0x30a4   : > { %v10351_v31 = vunpack.i.h.bf16 %v10349_v3  ;;  %v10350_v43 = vunpack.i.l.bf16 %v10349_v3  ;;  %v10344_v29 = vpop.permute.xlu0 %10343  ;;  %v12953_v3 = vld [vmem:[#allocation6_spill] sm:$0xff] }
0x30a5   : > { %v10346_v1 = vunpack.i.h.bf16 %v10344_v29  ;;  %v10345_v40 = vunpack.i.l.bf16 %v10344_v29  ;;  %v12954_v29 = vld [vmem:[#allocation7_spill] sm:$0xff] }
0x30a6   : > { %v7397_v7 = vsel %vm309_vm1, %v10351_v31, %v12679_v45  ;;  %v7396_v26 = vsel %vm309_vm1, %v10350_v43, %v12677_v27  ;;  %v10699_v45 = vld [vmem:[%s12854_s1 + $0x264] sm:$0xff]  }
0x30a7   : > { %v7395_v18 = vsel %vm309_vm1, %v10346_v1, %v12683_v33  ;;  %v7394_v36 = vsel %vm309_vm1, %v10345_v40, %v12681_v30  ;;  %v10357_v23 = vpack.i.bf16 %v7397_v7, %v7396_v26  ;;  %v12955_v26 = vld [vmem:[#allocation5_spill] sm:$0xff] }
0x30a8   : > { %v10352_v22 = vpack.i.bf16 %v7395_v18, %v7394_v36 }
0x30a9   : > { %10358 = vrot.lane.b32.xlu1 %v10357_v23, %s10771_s14 }
0x30aa   : > { %10353 = vrot.lane.b32.xlu0 %v10352_v22, %s10771_s14 }
0x30ad   : > { %10368 = vrot.lane.b32.xlu1 %v10357_v23, %s10772_s15 }
0x30ae   : > { %10363 = vrot.lane.b32.xlu0 %v10352_v22, %s10772_s15 }
0x30b1   : > { %10378 = vrot.lane.b32.xlu1 %v10357_v23, %s10770_s13 }
0x30b2   : > { %10373 = vrot.lane.b32.xlu0 %v10352_v22, %s10770_s13 }
0x30b5   : > { %10388 = vrot.lane.b32.xlu1 %v10357_v23, %s10773_s16 }
0x30b6   : > { %10383 = vrot.lane.b32.xlu0 %v10352_v22, %s10773_s16  ;;  %s215_s16 = sand.u32 1, %s10759_s19  }
0x30b7   : > { %s7940_s25 = sshll.u32 %s215_s16, 1  ;;  %s7864_s22 = scalar_lea.sflag [#allocation3], %s215_s16 }
0x30b8   : > { %s217_s30 = scalar_lea.vmem [#allocation2], %s7940_s25 }
0x30b9   : > { %s7877_s6 = sshll.u32 %s217_s30, 4  ;;  %s12812_s6 = int_to_ptr.vmem [resolvable:$true] %s7877_s6 }
0x30ba   : > { %s10705_s11 = scalar_lea.vmem %s12812_s6, 32  ;;  %p10712_p0 = scmp.lt.s32.totalorder %s12812_s6, %s10710_s17 }
0x30bb   : > { %p10706_p11 = scmp.ne.s32.totalorder %s12812_s6, %s10705_s11  ;;  %p10713_p1 = scmp.lt.s32.totalorder %s10711_s23, %s10705_s11 }
0x30bd   : > { %p10707_p12 = pnand %p10706_p11, %p10857_p5  ;;  %p10714_p2 = por %p10713_p1, %p10712_p0 }
0x30bf   : > { %p10708_p13 = pneg %p10707_p12 }
0x30c1   : > { %p10715_p3 = pnand %p10714_p2, %p10708_p13 }
0x311b   : > { %v10359_v49 = vpop.permute.xlu1 %10358 }
0x311c   : > { %v10354_v59 = vpop.permute.xlu0 %10353  ;;  %v10361_v11 = vunpack.i.h.bf16 %v10359_v49  ;;  %v10360_v14 = vunpack.i.l.bf16 %v10359_v49 }
0x311d   : > { %v10356_v19 = vunpack.i.h.bf16 %v10354_v59  ;;  %v10355_v12 = vunpack.i.l.bf16 %v10354_v59 }
0x311e   : > { %v8424_v5 = vpack.c.bf16 %v10361_v11, %v10360_v14 }
0x311f   : > { %v8421_v38 = vpack.c.bf16 %v10356_v19, %v10355_v12  ;;  %v10369_v60 = vpop.permute.xlu1 %10368 }
0x3120   : > { %v10364_v55 = vpop.permute.xlu0 %10363  ;;  %v10371_v6 = vunpack.i.h.bf16 %v10369_v60  ;;  %v10370_v53 = vunpack.i.l.bf16 %v10369_v60 }
0x3121   : > { %v10366_v15 = vunpack.i.h.bf16 %v10364_v55  ;;  %v10365_v54 = vunpack.i.l.bf16 %v10364_v55  ;;  %9420 = vmatprep.subr.msk.bf16.mxu1 %vm11061_vm7, %v8421_v38 }
0x3122   : > { %9421 = vmatpush3.bf16.msk.msra.mxu1 %vm11061_vm7, %v8421_v38  ;;  %v8432_v63 = vpack.c.bf16 %v10371_v6, %v10370_v53 }
0x3123   : > { %9422 = vmatprep.subr.msk.bf16.mxu1 %vm11061_vm7, %v8424_v5  ;;  %v8429_v8 = vpack.c.bf16 %v10366_v15, %v10365_v54  ;;  %v10379_v34 = vpop.permute.xlu1 %10378 }
0x3124   : > { %v10374_v37 = vpop.permute.xlu0 %10373  ;;  %v10381_v30 = vunpack.i.h.bf16 %v10379_v34  ;;  %v10380_v33 = vunpack.i.l.bf16 %v10379_v34 }
0x3125   : > { %v10376_v24 = vunpack.i.h.bf16 %v10374_v37  ;;  %v10375_v9 = vunpack.i.l.bf16 %v10374_v37 }
0x3126   : > { %9423 = vmatpush3.bf16.msk.msra.mxu1 %vm11061_vm7, %v8424_v5  ;;  %v8442_v52 = vpack.c.bf16 %v10381_v30, %v10380_v33 }
0x3127   : > { %9428 = vmatprep.subr.msk.bf16.mxu1 %vm11074_vm12, %v8429_v8  ;;  %v8439_v13 = vpack.c.bf16 %v10376_v24, %v10375_v9  ;;  %v10389_v48 = vpop.permute.xlu1 %10388 }
0x3128   : > { %v10384_v62 = vpop.permute.xlu0 %10383  ;;  %v10391_v0 = vunpack.i.h.bf16 %v10389_v48  ;;  %v10390_v46 = vunpack.i.l.bf16 %v10389_v48 }
0x3129   : > { %9425 = vmatmul.mubr.msk.bf16.vlgmr.msra.gmra.mrb[60].mxu1 %vm828_vm6, %v10695_v25  ;;  %v10386_v50 = vunpack.i.h.bf16 %v10384_v62  ;;  %v10385_v27 = vunpack.i.l.bf16 %v10384_v62 }
0x312a   : > { %9429 = vmatpush3.bf16.msk.msra.mxu1 %vm11074_vm12, %v8429_v8  ;;  %9432 = vmatprep.mubr.msk.bf16.mxu1 %vm828_vm6, %v10696_v58  ;;  %v8450_v4 = vpack.c.bf16 %v10391_v0, %v10390_v46 }
0x312b   : > { %9430 = vmatprep.subr.msk.bf16.mxu1 %vm11074_vm12, %v8432_v63  ;;  %v8447_v10 = vpack.c.bf16 %v10386_v50, %v10385_v27 }
0x312e   : > { %9431 = vmatpush3.bf16.msk.msra.mxu1 %vm11074_vm12, %v8432_v63  ;;  %v10704_v63 = vld [vmem:[%s12854_s1 + $0x28c] sm:$0x1] }
0x312f   : > { %9436 = vmatprep.subr.bf16.mxu1 %v7544_v2 }
0x3135   : > { %9433 = vmatmul.mubr.msk.bf16.vlgmr.msra.gmra.mrb[60].mxu1 %vm828_vm6, %v10697_v41  ;;  %v8242_v41 = vmul.f32 -1.442695, %v12028_v17 }
0x3136   : > { %9437 = vmatpush3.bf16.msra.mxu1 %v7544_v2  ;;  %9440 = vmatprep.mubr.msk.bf16.mxu1 %vm828_vm6, %v10698_v56 }
0x3137   : > { %9438 = vmatprep.subr.bf16.mxu1 %v7545_v57 }
0x313a   : > { %9439 = vmatpush3.bf16.msra.mxu1 %v7545_v57 }
0x313b   : > { %9444 = vmatprep.subr.msk.bf16.mxu1 %vm11111_vm13, %v8439_v13 }
0x3141   : > { %9441 = vmatmul.mubr.msk.bf16.vlgmr.msra.gmra.mrb[60].mxu1 %vm828_vm6, %v10699_v45 }
0x3142   : > { %9445 = vmatpush3.bf16.msk.msra.mxu1 %vm11111_vm13, %v8439_v13  ;;  %9448 = vmatprep.mubr.msk.bf16.mxu1 %vm828_vm6, %v10700_v28 }
0x3143   : > { %9446 = vmatprep.subr.msk.bf16.mxu1 %vm11111_vm13, %v8442_v52 }
0x3146   : > { %9447 = vmatpush3.bf16.msk.msra.mxu1 %vm11111_vm13, %v8442_v52 }
0x3147   : > { %9452 = vmatprep.subr.msk.bf16.mxu1 %vm11132_vm14, %v8447_v10 }
0x314d   : > { %9449 = vmatmul.mubr.msk.bf16.vlgmr.msra.gmra.mrb[60].mxu1 %vm828_vm6, %v10701_v20 }
0x314e   : > { %9453 = vmatpush3.bf16.msk.msra.mxu1 %vm11132_vm14, %v8447_v10  ;;  %9456 = vmatprep.mubr.msk.bf16.mxu1 %vm828_vm6, %v10702_v21 }
0x314f   : > { %9454 = vmatprep.subr.msk.bf16.mxu1 %vm11132_vm14, %v8450_v4 }
0x3152   : > { %9455 = vmatpush3.bf16.msk.msra.mxu1 %vm11132_vm14, %v8450_v4 }
0x3153   : > { %9468 = vmatprep.subr.bf16.mxu1 %v12907_v42 }
0x3159   : > { %9457 = vmatmul.mubr.msk.bf16.vlgmr.msra.gmra.mrb[60].mxu1 %vm828_vm6, %v10703_v16 }
0x315a   : > { %9469 = vmatpush3.bf16.msra.mxu1 %v12371_v51  ;;  %9470 = vmatprep.mubr.msk.bf16.mxu1 %vm12886_vm15, %v12907_v42 }
0x322c   : > { %v9458_v32 = vpop.f32.mrb[60].mxu1 }
0x322d   : > { %v9534_v47 = vadd.f32 %v9458_v32, %v11931_v39  ;;  %v7722_v35 = vpop.f32.mrb[61].mxu1 }
0x322e   : > { %v9535_v44 = vadd.f32 %v7722_v35, %v12953_v3  ;;  %v9459_v31 = vpop.f32.mrb[62].mxu1 }
0x322f   : > { %v7747_v43 = vmin.f32 %v9534_v47, 0.0  ;;  %v9536_v1 = vadd.f32 %v9459_v31, %v12954_v29  ;;  %v7725_v40 = vpop.f32.mrb[63].mxu1  ;;  %vm7743_vm1 = vcmp.gt.f32.partialorder %v9534_v47, 0.0 }
0x3230   : > { %v7745_v7 = vmin.f32 %v9535_v44, 0.0  ;;  %v9537_v18 = vadd.f32 %v7725_v40, %v12955_v26  ;;  %vm7741_vm12 = vcmp.gt.f32.partialorder %v9535_v44, 0.0 }
0x3231   : > { %v7753_v36 = vmul.f32 1.442695, %v7747_v43  ;;  %v7748_v23 = vmin.f32 %v9536_v1, 0.0  ;;  %vm7744_vm7 = vcmp.gt.f32.partialorder %v9536_v1, 0.0 }
0x3232   : > { %v7749_v51 = vmul.f32 1.442695, %v7745_v7  ;;  %v7746_v22 = vmin.f32 %v9537_v18, 0.0  ;;  %vm7742_vm13 = vcmp.gt.f32.partialorder %v9537_v18, 0.0 }
0x3233   : > { %10594 = vpow2.f32 %v7753_v36  ;;  %v7755_v49 = vmul.f32 1.442695, %v7748_v23 }
0x3234   : > { %10596 = vpow2.f32 %v7749_v51  ;;  %v7751_v59 = vmul.f32 1.442695, %v7746_v22 }
0x3235   : > { %10598 = vpow2.f32 %v7755_v49 }
0x3236   : > { %10600 = vpow2.f32 %v7751_v59 }
0x3237   : > { %10602 = vpow2.f32 %v8242_v41 }
0x323d   : > { %v10595_v39 = vpop.eup %10594 }
0x323e   : > { %v10597_v11 = vpop.eup %10596  ;;  %v8456_v14 = vadd.f32 -1.0, %v10595_v39 }
0x323f   : > { %v10599_v19 = vpop.eup %10598  ;;  %v8454_v12 = vadd.f32 -1.0, %v10597_v11 }
0x3240   : > { %v10601_v38 = vpop.eup %10600  ;;  %v8457_v55 = vadd.f32 -1.0, %v10599_v19  ;;  %v7763_v15 = vsel %vm7743_vm1, %v9534_v47, %v8456_v14 }
0x3241   : > { %v8455_v5 = vadd.f32 -1.0, %v10601_v38  ;;  %v7761_v60 = vsel %vm7741_vm12, %v9535_v44, %v8454_v12  ;;  %v10603_v30 = vpop.eup %10602 }
0x3242   : > { %v7764_v54 = vsel %vm7744_vm7, %v9536_v1, %v8457_v55 }
0x3243   : > { %v7766_v6 = vpack.c.bf16 %v7764_v54, %v7763_v15  ;;  %v7762_v53 = vsel %vm7742_vm13, %v9537_v18, %v8455_v5 }
0x3244   : > { %v7765_v8 = vpack.c.bf16 %v7762_v53, %v7761_v60 }
0x3246   : > { %9461 = vmatpush3.bf16.msra.mxu0 %v7765_v8 }
0x3247   : > { %9462 = vmatprep.subr.bf16.mxu0 %v12907_v42 }
0x324a   : > { %9463 = vmatpush3.bf16.msra.mxu0 %v7766_v6 }
0x324d   : > { %9465 = vmatmul.mubr.msk.bf16.vlgmr.msra.gmra.mrb[64].mxu0 %vm828_vm6, %v10704_v63  ;;  %vm12956_vm6 = vcmask 1040384  }
0x3320   : > { %v7801_v25 = vpop.f32.mrb[64].mxu0 }
0x3321   : > { %v7802_v58 = vadd.f32 %v7801_v25, %v11964_v61  ;;  %v9466_v2 = vpop.f32.mrb[65].mxu0  ;;  %v4549_v61 = vadd.f32 1.0, %v10603_v30 }
0x3322   : > { %v7804_v37 = vpop.f32.mrb[66].mxu0 }
0x3323   : > { %v7807_v24 = vpack.c.bf16 %v7802_v58, %v7802_v58  ;;  %v9467_v9 = vpop.f32.mrb[67].mxu0 }
0x3325   : > { %9471 = vmatmul.mubr.msk.bf16.vlgmr.msra.gmra.mrb[64].mxu1 %vm255_vm4, %v7807_v24  ;;  %vm7861_vm4 = vcmask 123904  }
0x33f8   : > { %v7845_v42 = vpop.f32.mrb[64].mxu1 }
0x33f9   : > { %v8460_v57 = vmul.f32 -1.442695, %v7845_v42  ;;  %v9472_v56 = vpop.f32.mrb[65].mxu1 }
0x33fa   : > { %v7848_v13 = vpop.f32.mrb[66].mxu1 }
0x33fb   : > { %10604 = vpow2.f32 %v8460_v57  ;;  %v9473_v34 = vpop.f32.mrb[67].mxu1 }
0x3405   : > { %v10605_v33 = vpop.eup %10604 }
0x3406   : > { %v7854_v62 = vadd.f32 1.0, %v10605_v33 }
0x3408   : > { %10606 = vrcp.f32 %v7854_v62 }
0x3409   : > { %10608 = vrcp.f32 %v4549_v61 }
0x3412   : > { %v10607_v17 = vpop.eup %10606 }
0x3413   : > { %v7858_v52 = vrot.slane %v10607_v17, 7  ;;  %v10609_v50 = vpop.eup %10608 }
0x3415   : > { %v7860_v27 = vsel %vm12956_vm6, %v10609_v50, %v7858_v52 }
0x3416   : > { %7862 = vst.msk [vmem:[%s217_s30] sm:$0x3] %vm7861_vm4, %v7860_v27 }
0x3417   : > { %10718 = shalt.err (!%p10715_p3)
}
0x3418   : > { %s10719_s10 = scalar_lea.hbm %s12810_s9, 32  ;;  %s10723_s15 = scalar_lea.hbm %s12858_s5, 64 }
0x3419   : > { %p10720_p4 = scmp.ne.s32.totalorder %s12810_s9, %s10719_s10  ;;  %p10724_p9 = scmp.lt.u32.totalorder %s12810_s9, %s12858_s5 }
0x341a   : > { %p10725_p10 = scmp.lt.u32.totalorder %s10723_s15, %s10719_s10  ;;  %p10727_p12 = scmp.lt.u32.totalorder %s10719_s10, %s12810_s9 }
0x341b   : > { %p10721_p7 = pnand %p10720_p4, %p10857_p5 }
0x341c   : > { %p10726_p11 = por %p10725_p10, %p10724_p9 }
0x341d   : > { %p10722_p8 = pneg %p10721_p7 }
0x341e   : > { %p10728_p13 = por %p10727_p12, %p10726_p11 }
0x3420   : > { %p10729_p0 = pnand %p10728_p13, %p10722_p8 }
0x3422   : > { %10732 = shalt.err (!%p10729_p0)
}
0x3423   : > { %9834 = dma.vmem_to_hbm [thread:$0]  (%p10857_p5), %s12812_s6, 32, %s12810_s9, %s7864_s22  }
0x3424 PF: > { %p9840_p1 = scmp.ge.s32.totalorder %s10767_s21, 2  ;;  %s7889_s26 = sand.u32 1, %s10755_s18  }
0x3425   : > { %s7890_s30 = scalar_lea.sflag [#allocation3], %s7889_s26 }
0x3426   : > { %p9837_p2 = pnand %p9840_p1, %p10861_p6 }
0x3428   : > { %10750 = dma.done.wait (!%p9837_p2), %s7890_s30, 32  }
0x3429   : > { %10752 = vsyncadd (!%p9837_p2), %s7890_s30, 4294967264  ;;  %p15_p3 = scmp.ge.s32.totalorder %s10844_s24, 4   ;;  %s12957_s18 = smov %s10759_s19 }
0x342a   : > { %s12958_s19 = smov %s10763_s20  ;;  %s12959_s20 = smov %s10855_s27 }
0x342b   : > { %s12960_s21 = smov %s10844_s24  ;;  %17 = sbr.rel (!%p15_p3) target bundleno = 3 (0x3), region = 75 }
0x3432   :  { %7895 = vsyncpa [#allocation3], 1 }
0x3433   :  { %7897 = vsyncpa [#allocation3 + $0x1], 1 }

</bundles_post_ra>
